<compile_context>
chip_gen: v7x
topology: tpu7x:2x2x1
jax: 0.10.0
libtpu: 0.0.40
codegen_flags: <defaults>
</compile_context>

<pallas_src>
import math

import jax
import jax.numpy as jnp
from jax.experimental import pallas as pl
from jax.experimental.pallas import tpu as pltpu


def _round_up(x, m):
    return (x + m - 1) // m * m


def _xavier_uniform(key, shape, fan_in, fan_out, dtype=jnp.float32):
    bound = math.sqrt(6.0 / (fan_in + fan_out))
    return jax.random.uniform(key, shape, dtype=dtype, minval=-bound, maxval=bound)


# ---------------------------------------------------------------------------
# Kernel
# ---------------------------------------------------------------------------
def _make_kernel(T, Tp, Cp, nei, Bt, mha_scale, compute_dtype):
    f32 = jnp.float32
    cdt = compute_dtype
    exact = jnp.dtype(compute_dtype) == jnp.dtype(jnp.float32)
    # exact f32 path: highest-precision MXU + exact divides (correctness check at 1e-4);
    # bf16 path: default precision + EUP approx reciprocal.
    prec = jax.lax.Precision.HIGHEST if exact else None

    def dot_t(a, b):  # a @ b.T on the MXU without materializing the transpose
        return jax.lax.dot_general(a, b, (((1,), (1,)), ((), ())),
                                   precision=prec, preferred_element_type=f32)

    def mm(a, b):
        return jnp.dot(a, b, precision=prec, preferred_element_type=f32)

    def l2norm(t):  # torch F.normalize(dim=-1): t / max(||t||, 1e-12); rsqrt on the EUP
        ss = jnp.sum(t * t, axis=-1, keepdims=True)
        return t * jax.lax.rsqrt(jnp.maximum(ss, 1e-24))

    def softmax_rows(logits):  # logits stay f32 (mask constants need f32 headroom)
        logits = logits - jnp.max(logits, axis=-1, keepdims=True)
        e = jnp.exp(logits)
        s = jnp.sum(e, axis=-1, keepdims=True)
        if exact:
            return e / s
        return e * pl.reciprocal(s, approx=True)   # EUP slot, frees the VALU

    def kernel(x_ref, mask_ref, inxs_ref, wall_ref, wnn_ref, wns_ref, o_ref):
        # ---- fused projections: one MXU matmul, M = Bt*Tp rows, N = 7*Cp lanes ----
        x_all = x_ref[...].reshape(Bt * Tp, Cp)                  # compute dtype
        proj = mm(x_all, wall_ref[...])                          # (Bt*Tp, 7*Cp) f32

        # padded key columns for the MHA softmax (the neighbor softmax gets its
        # padded-column kill from the host-built mask).  Python-scalar arithmetic only.
        if Tp > T:
            col = jax.lax.broadcasted_iota(jnp.int32, (Tp, Tp), 1)
            pad_bias = (col >= T).astype(f32) * (-1e30)
        else:
            pad_bias = None

        # NOTE: static unroll over the block batch; fine at small Bt.  (On v7x, weights
        # could additionally be single-buffered via pipeline_mode once Cp grows.)
        for b in range(Bt):
            rows = slice(b * Tp, (b + 1) * Tp)

            def head(i, _rows=rows):  # 128-aligned lane slice of the fused projection
                return proj[_rows, i * Cp:(i + 1) * Cp]

            # ---- neighbor-similarity attention: f32 elementwise, compute-dtype matmul operands
            q = l2norm(head(0)).astype(cdt)
            k = l2norm(head(1)).astype(cdt)
            qs = l2norm(head(2)).astype(cdt)
            v = head(3).astype(cdt)

            sim_s = dot_t(qs, qs)                                # (Tp, Tp) f32

            inxs = inxs_ref[b]                                   # (nei*Tp, Tp) compute dtype
            qn = mm(inxs, q).astype(cdt)                         # (nei*Tp, Cp)
            kn = mm(inxs, k)                                     # (nei*Tp, Cp) f32

            # sim_nn: block-wise gram + running max over the y (column) blocks
            # == AdaptiveMaxPool2d((topk,1)); w_nn-weighted sum over the x (row) blocks
            # == Linear(topk, 1, bias=False).  Avoids the (nei*Tp)^2 intermediate.
            max_y = dot_t(qn, qn[0:Tp, :])                       # (nei*Tp, Tp)
            for m in range(1, nei):
                max_y = jnp.maximum(max_y, dot_t(qn, qn[m * Tp:(m + 1) * Tp, :]))
            sim_nn = wnn_ref[0] * max_y[0:Tp, :]
            for n in range(1, nei):
                sim_nn = sim_nn + wnn_ref[n] * max_y[n * Tp:(n + 1) * Tp, :]

            # sim_ns: Linear_ns over the neighbor axis folds into a w_ns-weighted sum of
            # the kn blocks followed by one (Tp,Cp)x(Cp,Tp) matmul.
            kw = wns_ref[0] * kn[0:Tp, :]
            for n in range(1, nei):
                kw = kw + wns_ref[n] * kn[n * Tp:(n + 1) * Tp, :]
            sim_ns = dot_t(kw.astype(cdt), k)

            mask = mask_ref[b].astype(f32)                       # host-built build_mask(adj)+pad
            sim = softmax_rows(sim_s + sim_nn + sim_ns + mask)
            out_n = mm(sim.astype(cdt), v)                       # (Tp, Cp) f32

            # ---- MHA (heads=1, dim_head=C -> to_out == Identity), after the neighbor
            #      branch so its intermediates don't extend live ranges ----
            qm = head(4).astype(cdt)
            km = head(5).astype(cdt)
            vm = head(6).astype(cdt)
            dots = dot_t(qm, km) * mha_scale
            if pad_bias is not None:
                dots = dots + pad_bias
            attn = softmax_rows(dots)
            out_m = mm(attn.astype(cdt), vm)

            # TODO(synk): nn.Dropout (on attn and on the summed output) is identity in eval
            # mode; training-mode dropout would use pltpu.prng_seed / prng_random_bits.
            o_ref[b] = (out_n + out_m).astype(o_ref.dtype)

    return kernel


# ---------------------------------------------------------------------------
# Wrapper
# ---------------------------------------------------------------------------
def mneighbor_attent_pallas(x, adj, inxs,
                            Wq, Wk, Wqs, Wv,       # torch layout (out, in) = (C, C)
                            w_nn, w_ns,            # (topk,) effective weight-norm weights
                            Wmq, Wmk, Wmv,         # MHA to_qkv chunks, each (C, C)
                            *, compute_dtype=jnp.bfloat16):
    B, T, C = x.shape
    nei = inxs.shape[2]
    assert inxs.shape == (B, T, nei, T)
    assert w_nn.shape == (nei,) and w_ns.shape == (nei,)

    f32 = jnp.float32
    Cp = _round_up(C, 128)         # lane-dense feature dim
    Tp = _round_up(T, 16)          # sublane / bf16-pack friendly token dim
    mha_scale = float(C) ** -0.5   # MHA dim_head = in_ch

    # block-batch: several batch elements per grid step so the fused projection has
    # M = Bt*Tp rows (MXU utilization + per-step overhead amortization); Bt must divide B.
    Bt = max(1, min(B, 256 // Tp))
    while B % Bt:
        Bt -= 1
    grid = (B // Bt,)

    # ---- host-side layout prep (one-time; a real model stores weights in this layout) ----
    xp = (jnp.zeros((B, Tp, Cp), f32)
          .at[:, :T, :C].set(x.astype(f32)).astype(compute_dtype))

    # build_mask(adj) folded on the host (adj==0 -> -1e22, adj>0 -> 0, else keep) and the
    # padded key columns/rows killed with -1e30, shipped in the compute dtype.
    adj_f = adj.astype(f32)
    mask = jnp.where(adj_f == 0, -1e22, jnp.where(adj_f > 0, 0.0, adj_f))
    maskp = (jnp.full((B, Tp, Tp), -1e30, f32)
             .at[:, :T, :T].set(mask).astype(compute_dtype))

    # (B, T, nei, T) -> (B, nei, T, T) -> pad -> (B, nei*Tp, Tp): row n*Tp+i is the one-hot
    # selector of node i's n-th neighbor (contiguous sublane blocks), in the compute dtype.
    inx2 = jnp.transpose(inxs.astype(f32), (0, 2, 1, 3))
    inxp = (jnp.zeros((B, nei, Tp, Tp), f32)
            .at[:, :, :T, :T].set(inx2)
            .reshape(B, nei * Tp, Tp).astype(compute_dtype))

    # fused projection weight: torch (out,in) -> pre-transposed (in,out), padded to (Cp,Cp),
    # concatenated along the output dim -> (Cp, 7*Cp), kept VMEM-resident (constant index map).
    def prep_w(W):
        return jnp.zeros((Cp, Cp), f32).at[:C, :C].set(W.astype(f32).T)
    w_all = jnp.concatenate(
        [prep_w(W) for W in (Wq, Wk, Wqs, Wv, Wmq, Wmk, Wmv)], axis=1
    ).astype(compute_dtype)

    wnn = w_nn.astype(f32)
    wns = w_ns.astype(f32)

    kernel = _make_kernel(T, Tp, Cp, nei, Bt, mha_scale, compute_dtype)

    # ---- cost estimate (advisory) ----
    itemsize = jnp.dtype(compute_dtype).itemsize
    flops = int(B * (2 * Tp * Cp * (7 * Cp)               # fused projections
                     + 2 * 2 * (nei * Tp) * Tp * Cp       # qn, kn
                     + 2 * nei * (nei * Tp) * Tp * Cp     # block-wise neighbor gram
                     + 5 * 2 * Tp * Tp * Cp))             # sim_s, sim_ns, sim@v, qk^T, attn@v
    bytes_accessed = int(B * Tp * Cp * itemsize           # x
                         + B * Tp * Tp * itemsize         # mask
                         + B * nei * Tp * Tp * itemsize   # inxs
                         + 7 * Cp * Cp * itemsize         # resident fused weight
                         + B * Tp * Cp * jnp.dtype(x.dtype).itemsize)   # output
    cost = pl.CostEstimate(flops=flops,
                           transcendentals=int(2 * B * Tp * Tp),
                           bytes_accessed=bytes_accessed)

    # ---- generation-aware VMEM limit (v7x: 64 MiB physical per TC; v5e/v6e: 128 MiB) ----
    try:
        vmem_cap = int(pltpu.get_tpu_info().vmem_capacity_bytes)
    except Exception:
        vmem_cap = 128 * 1024 * 1024
    vmem_limit = int(min(64 * 1024 * 1024, (vmem_cap * 3) // 4))

    smem_spec = pl.BlockSpec(memory_space=pltpu.MemorySpace.SMEM)

    out_p = pl.pallas_call(
        kernel,
        out_shape=jax.ShapeDtypeStruct((B, Tp, Cp), x.dtype),
        grid_spec=pltpu.PrefetchScalarGridSpec(
            num_scalar_prefetch=0,
            grid=grid,
            in_specs=[
                pl.BlockSpec((Bt, Tp, Cp), lambda g: (g, 0, 0)),          # x
                pl.BlockSpec((Bt, Tp, Tp), lambda g: (g, 0, 0)),          # mask (host-built)
                pl.BlockSpec((Bt, nei * Tp, Tp), lambda g: (g, 0, 0)),    # inxs (rearranged)
                pl.BlockSpec((Cp, 7 * Cp), lambda g: (0, 0)),             # fused weights (resident)
                smem_spec, smem_spec,                                     # w_nn, w_ns
            ],
            out_specs=pl.BlockSpec((Bt, Tp, Cp), lambda g: (g, 0, 0)),
        ),
        compiler_params=pltpu.CompilerParams(
            dimension_semantics=("parallel",),        # shard grid steps across TCs on v7x
            vmem_limit_bytes=vmem_limit,
        ),
        cost_estimate=cost,
    )(xp, maskp, inxp, w_all, wnn, wns)

    return out_p[:, :T, :C]


# ---------------------------------------------------------------------------
# Pure-JAX reference (mirrors the PyTorch forward in eval mode)
# ---------------------------------------------------------------------------
def mneighbor_attent_reference(x, adj, inxs, Wq, Wk, Wqs, Wv, w_nn, w_ns,
                               Wmq, Wmk, Wmv):
    PREC = jax.lax.Precision.HIGHEST
    B, T, C = x.shape

    def l2norm(t):
        n = jnp.linalg.norm(t, axis=-1, keepdims=True)
        return t / jnp.maximum(n, 1e-12)

    def proj(W):
        return jnp.einsum('btc,dc->btd', x, W, precision=PREC)

    q = l2norm(proj(Wq))
    k = l2norm(proj(Wk))
    qs = l2norm(proj(Wqs))
    v = proj(Wv)

    mask = jnp.where(adj == 0, -1e22, jnp.where(adj > 0, 0.0, adj))
    sim_s = jnp.einsum('bxc,byc->bxy', qs, qs, precision=PREC)

    qn = jnp.einsum('bxnt,btc->bxnc', inxs, q, precision=PREC)
    snn = jnp.einsum('bixd,bjyd->bijxy', qn, qn, precision=PREC)   # (B,T,T,nei,nei)
    pooled = jnp.max(snn, axis=-1)                                 # AdaptiveMaxPool2d((topk,1))
    sim_nn = jnp.einsum('bijx,x->bij', pooled, w_nn, precision=PREC)  # Linear(topk,1,bias=False)

    kn = jnp.einsum('bxnt,btc->bxnc', inxs, k, precision=PREC)
    sns = jnp.einsum('bxnc,byc->bxyn', kn, k, precision=PREC)
    sim_ns = jnp.einsum('bxyn,n->bxy', sns, w_ns, precision=PREC)

    sim = jax.nn.softmax(sim_s + sim_nn + sim_ns + mask, axis=-1)
    out_n = jnp.einsum('bkt,btd->bkd', sim, v, precision=PREC)

    qm, km, vm = proj(Wmq), proj(Wmk), proj(Wmv)
    dots = jnp.einsum('bic,bjc->bij', qm, km, precision=PREC) * (C ** -0.5)
    attn = jax.nn.softmax(dots, axis=-1)
    out_m = jnp.einsum('bij,bjd->bid', attn, vm, precision=PREC)
    return out_n + out_m


if __name__ == "__main__":
    B, T, C, topk = 2, 16, 32, 4
    nei = topk   # the module requires nei == topk (Linear(topk, 1) over the nei axis)

    key = jax.random.PRNGKey(0)
    ks = jax.random.split(key, 12)

    x = jax.random.normal(ks[0], (B, T, C), jnp.float32)
    adj = (jax.random.uniform(ks[1], (B, T, T)) > 0.5).astype(jnp.float32)
    adj = jnp.maximum(adj, jnp.eye(T, dtype=jnp.float32)[None])   # no empty rows
    nbr = jax.random.randint(ks[2], (B, T, nei), 0, T)
    inxs = jax.nn.one_hot(nbr, T, dtype=jnp.float32)              # (B, T, nei, T)

    # xavier_uniform_ weights, torch nn.Linear layout (out_features, in_features)
    Wq = _xavier_uniform(ks[3], (C, C), C, C)
    Wk = _xavier_uniform(ks[4], (C, C), C, C)
    Wqs = _xavier_uniform(ks[5], (C, C), C, C)
    Wv = _xavier_uniform(ks[6], (C, C), C, C)
    # weight_norm(nn)/weight_norm(ns): at init the effective weight equals the
    # xavier-initialized weight, so the forward uses it directly.
    w_nn = _xavier_uniform(ks[7], (1, topk), topk, 1)[0]
    w_ns = _xavier_uniform(ks[8], (1, topk), topk, 1)[0]
    # MHA to_qkv (heads=1, dim_head=C): three (C, C) chunks of the (3C, C) weight.
    Wmq = _xavier_uniform(ks[9], (C, C), C, C)
    Wmk = _xavier_uniform(ks[10], (C, C), C, C)
    Wmv = _xavier_uniform(ks[11], (C, C), C, C)

    args = (x, adj, inxs, Wq, Wk, Wqs, Wv, w_nn, w_ns, Wmq, Wmk, Wmv)

    out_f32 = jax.block_until_ready(
        mneighbor_attent_pallas(*args, compute_dtype=jnp.float32))
    out_bf16 = jax.block_until_ready(
        mneighbor_attent_pallas(*args, compute_dtype=jnp.bfloat16))
    ref = jax.block_until_ready(mneighbor_attent_reference(*args))

    assert out_f32.shape == (B, T, C)
    assert out_bf16.shape == (B, T, C)
    # exact path (f32 everywhere, highest-precision MXU)
    assert jnp.allclose(out_f32, ref, atol=1e-4, rtol=1e-4), \
        float(jnp.max(jnp.abs(out_f32 - ref)))
    # bf16-MXU path (f32 accumulation): looser tolerance for bf16 operand rounding
    assert jnp.allclose(out_bf16, ref, atol=1e-1, rtol=1e-1), \
        float(jnp.max(jnp.abs(out_bf16 - ref)))

    print("KERNEL_OK")
</pallas_src>

<mosaic_0001>
module attributes {stable_mosaic.version = 11 : i64} {
  func.func @kernel(%arg0: i32, %arg1: memref<2x16x128xf32, #tpu.memory_space<vmem>>, %arg2: memref<2x16x16xf32, #tpu.memory_space<vmem>>, %arg3: memref<2x64x16xf32, #tpu.memory_space<vmem>>, %arg4: memref<128x896xf32, #tpu.memory_space<vmem>>, %arg5: memref<4xf32, #tpu.memory_space<smem>>, %arg6: memref<4xf32, #tpu.memory_space<smem>>, %arg7: memref<2x16x128xf32, #tpu.memory_space<vmem>>) attributes {dimension_semantics = [#tpu.dimension_semantics<parallel>], iteration_bounds = array<i64: 1>, scalar_prefetch = 0 : i64, scratch_operands = 0 : i64, tpu.core_type = #tpu.core_type<tc>, window_params = [{transform_indices = @transform_0, window_bounds = array<i64: 2, 16, 128>}, {transform_indices = @transform_1, window_bounds = array<i64: 2, 16, 16>}, {transform_indices = @transform_2, window_bounds = array<i64: 2, 64, 16>}, {pipeline_mode = #tpu.pipeline_mode<synchronous>, transform_indices = @transform_3, window_bounds = array<i64: 128, 896>}, {transform_indices = @transform_4, window_bounds = array<i64: 4>}, {transform_indices = @transform_5, window_bounds = array<i64: 4>}, {transform_indices = @transform_6, window_bounds = array<i64: 2, 16, 128>}]} {
    %c0 = arith.constant 0 : index
    %c0_0 = arith.constant 0 : index
    %c0_1 = arith.constant 0 : index
    %0 = vector.load %arg1[%c0, %c0_0, %c0_1] : memref<2x16x128xf32, #tpu.memory_space<vmem>>, vector<2x16x128xf32>
    %1 = vector.shape_cast %0 : vector<2x16x128xf32> to vector<32x128xf32>
    %c0_2 = arith.constant 0 : index
    %c0_3 = arith.constant 0 : index
    %2 = vector.load %arg4[%c0_2, %c0_3] : memref<128x896xf32, #tpu.memory_space<vmem>>, vector<128x896xf32>
    %cst = arith.constant dense<0.000000e+00> : vector<32x896xf32>
    %3 = tpu.matmul %1, %2, %cst {dimension_numbers = #tpu.dot_dimension_numbers<[1], [0], [0], [1], [0, 0, 1, 1], [], []>, precision = #tpu.contract_precision<fp32>} : vector<32x128xf32>, vector<128x896xf32>, vector<32x896xf32> -> vector<32x896xf32>
    %4 = vector.extract_strided_slice %3 {offsets = [0, 0], sizes = [16, 128], strides = [1, 1]} : vector<32x896xf32> to vector<16x128xf32>
    %5 = arith.mulf %4, %4 : vector<16x128xf32>
    %cst_4 = arith.constant dense<0.000000e+00> : vector<16xf32>
    %6 = vector.multi_reduction <add>, %5, %cst_4 [1] : vector<16x128xf32> to vector<16xf32>
    %7 = vector.shape_cast %6 : vector<16xf32> to vector<16x1xf32>
    %cst_5 = arith.constant 1.000000e-24 : f32
    %8 = vector.broadcast %cst_5 : f32 to vector<16x1xf32>
    %9 = arith.maximumf %7, %8 : vector<16x1xf32>
    %10 = math.rsqrt %9 : vector<16x1xf32>
    %11 = vector.broadcast %10 : vector<16x1xf32> to vector<16x128xf32>
    %12 = arith.mulf %4, %11 : vector<16x128xf32>
    %13 = vector.extract_strided_slice %3 {offsets = [0, 128], sizes = [16, 128], strides = [1, 1]} : vector<32x896xf32> to vector<16x128xf32>
    %14 = arith.mulf %13, %13 : vector<16x128xf32>
    %cst_6 = arith.constant dense<0.000000e+00> : vector<16xf32>
    %15 = vector.multi_reduction <add>, %14, %cst_6 [1] : vector<16x128xf32> to vector<16xf32>
    %16 = vector.shape_cast %15 : vector<16xf32> to vector<16x1xf32>
    %cst_7 = arith.constant 1.000000e-24 : f32
    %17 = vector.broadcast %cst_7 : f32 to vector<16x1xf32>
    %18 = arith.maximumf %16, %17 : vector<16x1xf32>
    %19 = math.rsqrt %18 : vector<16x1xf32>
    %20 = vector.broadcast %19 : vector<16x1xf32> to vector<16x128xf32>
    %21 = arith.mulf %13, %20 : vector<16x128xf32>
    %22 = vector.extract_strided_slice %3 {offsets = [0, 256], sizes = [16, 128], strides = [1, 1]} : vector<32x896xf32> to vector<16x128xf32>
    %23 = arith.mulf %22, %22 : vector<16x128xf32>
    %cst_8 = arith.constant dense<0.000000e+00> : vector<16xf32>
    %24 = vector.multi_reduction <add>, %23, %cst_8 [1] : vector<16x128xf32> to vector<16xf32>
    %25 = vector.shape_cast %24 : vector<16xf32> to vector<16x1xf32>
    %cst_9 = arith.constant 1.000000e-24 : f32
    %26 = vector.broadcast %cst_9 : f32 to vector<16x1xf32>
    %27 = arith.maximumf %25, %26 : vector<16x1xf32>
    %28 = math.rsqrt %27 : vector<16x1xf32>
    %29 = vector.broadcast %28 : vector<16x1xf32> to vector<16x128xf32>
    %30 = arith.mulf %22, %29 : vector<16x128xf32>
    %31 = vector.extract_strided_slice %3 {offsets = [0, 384], sizes = [16, 128], strides = [1, 1]} : vector<32x896xf32> to vector<16x128xf32>
    %cst_10 = arith.constant dense<0.000000e+00> : vector<16x16xf32>
    %32 = tpu.matmul %30, %30, %cst_10 {dimension_numbers = #tpu.dot_dimension_numbers<[1], [1], [0], [0], [0, 0, 1, 0], [], []>, precision = #tpu.contract_precision<fp32>} : vector<16x128xf32>, vector<16x128xf32>, vector<16x16xf32> -> vector<16x16xf32>
    %c0_11 = arith.constant 0 : index
    %c0_12 = arith.constant 0 : index
    %c0_13 = arith.constant 0 : index
    %33 = vector.load %arg3[%c0_11, %c0_12, %c0_13] : memref<2x64x16xf32, #tpu.memory_space<vmem>>, vector<1x64x16xf32>
    %34 = vector.shape_cast %33 : vector<1x64x16xf32> to vector<64x16xf32>
    %cst_14 = arith.constant dense<0.000000e+00> : vector<64x128xf32>
    %35 = tpu.matmul %34, %12, %cst_14 {dimension_numbers = #tpu.dot_dimension_numbers<[1], [0], [0], [1], [0, 0, 1, 1], [], []>, precision = #tpu.contract_precision<fp32>} : vector<64x16xf32>, vector<16x128xf32>, vector<64x128xf32> -> vector<64x128xf32>
    %cst_15 = arith.constant dense<0.000000e+00> : vector<64x128xf32>
    %36 = tpu.matmul %34, %21, %cst_15 {dimension_numbers = #tpu.dot_dimension_numbers<[1], [0], [0], [1], [0, 0, 1, 1], [], []>, precision = #tpu.contract_precision<fp32>} : vector<64x16xf32>, vector<16x128xf32>, vector<64x128xf32> -> vector<64x128xf32>
    %37 = vector.extract_strided_slice %35 {offsets = [0, 0], sizes = [16, 128], strides = [1, 1]} : vector<64x128xf32> to vector<16x128xf32>
    %cst_16 = arith.constant dense<0.000000e+00> : vector<64x16xf32>
    %38 = tpu.matmul %35, %37, %cst_16 {dimension_numbers = #tpu.dot_dimension_numbers<[1], [1], [0], [0], [0, 0, 1, 0], [], []>, precision = #tpu.contract_precision<fp32>} : vector<64x128xf32>, vector<16x128xf32>, vector<64x16xf32> -> vector<64x16xf32>
    %39 = vector.extract_strided_slice %35 {offsets = [16, 0], sizes = [16, 128], strides = [1, 1]} : vector<64x128xf32> to vector<16x128xf32>
    %cst_17 = arith.constant dense<0.000000e+00> : vector<64x16xf32>
    %40 = tpu.matmul %35, %39, %cst_17 {dimension_numbers = #tpu.dot_dimension_numbers<[1], [1], [0], [0], [0, 0, 1, 0], [], []>, precision = #tpu.contract_precision<fp32>} : vector<64x128xf32>, vector<16x128xf32>, vector<64x16xf32> -> vector<64x16xf32>
    %41 = arith.maximumf %38, %40 : vector<64x16xf32>
    %42 = vector.extract_strided_slice %35 {offsets = [32, 0], sizes = [16, 128], strides = [1, 1]} : vector<64x128xf32> to vector<16x128xf32>
    %cst_18 = arith.constant dense<0.000000e+00> : vector<64x16xf32>
    %43 = tpu.matmul %35, %42, %cst_18 {dimension_numbers = #tpu.dot_dimension_numbers<[1], [1], [0], [0], [0, 0, 1, 0], [], []>, precision = #tpu.contract_precision<fp32>} : vector<64x128xf32>, vector<16x128xf32>, vector<64x16xf32> -> vector<64x16xf32>
    %44 = arith.maximumf %41, %43 : vector<64x16xf32>
    %45 = vector.extract_strided_slice %35 {offsets = [48, 0], sizes = [16, 128], strides = [1, 1]} : vector<64x128xf32> to vector<16x128xf32>
    %cst_19 = arith.constant dense<0.000000e+00> : vector<64x16xf32>
    %46 = tpu.matmul %35, %45, %cst_19 {dimension_numbers = #tpu.dot_dimension_numbers<[1], [1], [0], [0], [0, 0, 1, 0], [], []>, precision = #tpu.contract_precision<fp32>} : vector<64x128xf32>, vector<16x128xf32>, vector<64x16xf32> -> vector<64x16xf32>
    %47 = arith.maximumf %44, %46 : vector<64x16xf32>
    %c0_20 = arith.constant 0 : index
    %48 = memref.load %arg5[%c0_20] : memref<4xf32, #tpu.memory_space<smem>>
    %49 = vector.extract_strided_slice %47 {offsets = [0, 0], sizes = [16, 16], strides = [1, 1]} : vector<64x16xf32> to vector<16x16xf32>
    %50 = vector.broadcast %48 : f32 to vector<16x16xf32>
    %51 = arith.mulf %50, %49 : vector<16x16xf32>
    %c1 = arith.constant 1 : index
    %52 = memref.load %arg5[%c1] : memref<4xf32, #tpu.memory_space<smem>>
    %53 = vector.extract_strided_slice %47 {offsets = [16, 0], sizes = [16, 16], strides = [1, 1]} : vector<64x16xf32> to vector<16x16xf32>
    %54 = vector.broadcast %52 : f32 to vector<16x16xf32>
    %55 = arith.mulf %54, %53 : vector<16x16xf32>
    %56 = arith.addf %51, %55 : vector<16x16xf32>
    %c2 = arith.constant 2 : index
    %57 = memref.load %arg5[%c2] : memref<4xf32, #tpu.memory_space<smem>>
    %58 = vector.extract_strided_slice %47 {offsets = [32, 0], sizes = [16, 16], strides = [1, 1]} : vector<64x16xf32> to vector<16x16xf32>
    %59 = vector.broadcast %57 : f32 to vector<16x16xf32>
    %60 = arith.mulf %59, %58 : vector<16x16xf32>
    %61 = arith.addf %56, %60 : vector<16x16xf32>
    %c3 = arith.constant 3 : index
    %62 = memref.load %arg5[%c3] : memref<4xf32, #tpu.memory_space<smem>>
    %63 = vector.extract_strided_slice %47 {offsets = [48, 0], sizes = [16, 16], strides = [1, 1]} : vector<64x16xf32> to vector<16x16xf32>
    %64 = vector.broadcast %62 : f32 to vector<16x16xf32>
    %65 = arith.mulf %64, %63 : vector<16x16xf32>
    %66 = arith.addf %61, %65 : vector<16x16xf32>
    %c0_21 = arith.constant 0 : index
    %67 = memref.load %arg6[%c0_21] : memref<4xf32, #tpu.memory_space<smem>>
    %68 = vector.extract_strided_slice %36 {offsets = [0, 0], sizes = [16, 128], strides = [1, 1]} : vector<64x128xf32> to vector<16x128xf32>
    %69 = vector.broadcast %67 : f32 to vector<16x128xf32>
    %70 = arith.mulf %69, %68 : vector<16x128xf32>
    %c1_22 = arith.constant 1 : index
    %71 = memref.load %arg6[%c1_22] : memref<4xf32, #tpu.memory_space<smem>>
    %72 = vector.extract_strided_slice %36 {offsets = [16, 0], sizes = [16, 128], strides = [1, 1]} : vector<64x128xf32> to vector<16x128xf32>
    %73 = vector.broadcast %71 : f32 to vector<16x128xf32>
    %74 = arith.mulf %73, %72 : vector<16x128xf32>
    %75 = arith.addf %70, %74 : vector<16x128xf32>
    %c2_23 = arith.constant 2 : index
    %76 = memref.load %arg6[%c2_23] : memref<4xf32, #tpu.memory_space<smem>>
    %77 = vector.extract_strided_slice %36 {offsets = [32, 0], sizes = [16, 128], strides = [1, 1]} : vector<64x128xf32> to vector<16x128xf32>
    %78 = vector.broadcast %76 : f32 to vector<16x128xf32>
    %79 = arith.mulf %78, %77 : vector<16x128xf32>
    %80 = arith.addf %75, %79 : vector<16x128xf32>
    %c3_24 = arith.constant 3 : index
    %81 = memref.load %arg6[%c3_24] : memref<4xf32, #tpu.memory_space<smem>>
    %82 = vector.extract_strided_slice %36 {offsets = [48, 0], sizes = [16, 128], strides = [1, 1]} : vector<64x128xf32> to vector<16x128xf32>
    %83 = vector.broadcast %81 : f32 to vector<16x128xf32>
    %84 = arith.mulf %83, %82 : vector<16x128xf32>
    %85 = arith.addf %80, %84 : vector<16x128xf32>
    %cst_25 = arith.constant dense<0.000000e+00> : vector<16x16xf32>
    %86 = tpu.matmul %85, %21, %cst_25 {dimension_numbers = #tpu.dot_dimension_numbers<[1], [1], [0], [0], [0, 0, 1, 0], [], []>, precision = #tpu.contract_precision<fp32>} : vector<16x128xf32>, vector<16x128xf32>, vector<16x16xf32> -> vector<16x16xf32>
    %c0_26 = arith.constant 0 : index
    %c0_27 = arith.constant 0 : index
    %c0_28 = arith.constant 0 : index
    %87 = vector.load %arg2[%c0_26, %c0_27, %c0_28] : memref<2x16x16xf32, #tpu.memory_space<vmem>>, vector<1x16x16xf32>
    %88 = vector.shape_cast %87 : vector<1x16x16xf32> to vector<16x16xf32>
    %89 = arith.addf %32, %66 : vector<16x16xf32>
    %90 = arith.addf %89, %86 : vector<16x16xf32>
    %91 = arith.addf %90, %88 : vector<16x16xf32>
    %cst_29 = arith.constant dense<0xFF800000> : vector<16xf32>
    %92 = vector.multi_reduction <maximumf>, %91, %cst_29 [1] : vector<16x16xf32> to vector<16xf32>
    %93 = vector.shape_cast %92 : vector<16xf32> to vector<16x1xf32>
    %94 = vector.broadcast %93 : vector<16x1xf32> to vector<16x16xf32>
    %95 = arith.subf %91, %94 : vector<16x16xf32>
    %96 = math.exp %95 : vector<16x16xf32>
    %cst_30 = arith.constant dense<0.000000e+00> : vector<16xf32>
    %97 = vector.multi_reduction <add>, %96, %cst_30 [1] : vector<16x16xf32> to vector<16xf32>
    %98 = vector.shape_cast %97 : vector<16xf32> to vector<16x1xf32>
    %99 = vector.broadcast %98 : vector<16x1xf32> to vector<16x16xf32>
    %100 = arith.divf %96, %99 : vector<16x16xf32>
    %cst_31 = arith.constant dense<0.000000e+00> : vector<16x128xf32>
    %101 = tpu.matmul %100, %31, %cst_31 {dimension_numbers = #tpu.dot_dimension_numbers<[1], [0], [0], [1], [0, 0, 1, 1], [], []>, precision = #tpu.contract_precision<fp32>} : vector<16x16xf32>, vector<16x128xf32>, vector<16x128xf32> -> vector<16x128xf32>
    %102 = vector.extract_strided_slice %3 {offsets = [0, 512], sizes = [16, 128], strides = [1, 1]} : vector<32x896xf32> to vector<16x128xf32>
    %103 = vector.extract_strided_slice %3 {offsets = [0, 640], sizes = [16, 128], strides = [1, 1]} : vector<32x896xf32> to vector<16x128xf32>
    %104 = vector.extract_strided_slice %3 {offsets = [0, 768], sizes = [16, 128], strides = [1, 1]} : vector<32x896xf32> to vector<16x128xf32>
    %cst_32 = arith.constant dense<0.000000e+00> : vector<16x16xf32>
    %105 = tpu.matmul %102, %103, %cst_32 {dimension_numbers = #tpu.dot_dimension_numbers<[1], [1], [0], [0], [0, 0, 1, 0], [], []>, precision = #tpu.contract_precision<fp32>} : vector<16x128xf32>, vector<16x128xf32>, vector<16x16xf32> -> vector<16x16xf32>
    %cst_33 = arith.constant 0.176776692 : f32
    %106 = vector.broadcast %cst_33 : f32 to vector<16x16xf32>
    %107 = arith.mulf %105, %106 : vector<16x16xf32>
    %cst_34 = arith.constant dense<0xFF800000> : vector<16xf32>
    %108 = vector.multi_reduction <maximumf>, %107, %cst_34 [1] : vector<16x16xf32> to vector<16xf32>
    %109 = vector.shape_cast %108 : vector<16xf32> to vector<16x1xf32>
    %110 = vector.broadcast %109 : vector<16x1xf32> to vector<16x16xf32>
    %111 = arith.subf %107, %110 : vector<16x16xf32>
    %112 = math.exp %111 : vector<16x16xf32>
    %cst_35 = arith.constant dense<0.000000e+00> : vector<16xf32>
    %113 = vector.multi_reduction <add>, %112, %cst_35 [1] : vector<16x16xf32> to vector<16xf32>
    %114 = vector.shape_cast %113 : vector<16xf32> to vector<16x1xf32>
    %115 = vector.broadcast %114 : vector<16x1xf32> to vector<16x16xf32>
    %116 = arith.divf %112, %115 : vector<16x16xf32>
    %cst_36 = arith.constant dense<0.000000e+00> : vector<16x128xf32>
    %117 = tpu.matmul %116, %104, %cst_36 {dimension_numbers = #tpu.dot_dimension_numbers<[1], [0], [0], [1], [0, 0, 1, 1], [], []>, precision = #tpu.contract_precision<fp32>} : vector<16x16xf32>, vector<16x128xf32>, vector<16x128xf32> -> vector<16x128xf32>
    %118 = arith.addf %101, %117 : vector<16x128xf32>
    %c0_37 = arith.constant 0 : index
    %c0_38 = arith.constant 0 : index
    %c0_39 = arith.constant 0 : index
    %119 = vector.load %arg7[%c0_37, %c0_38, %c0_39] : memref<2x16x128xf32, #tpu.memory_space<vmem>>, vector<1x16x128xf32>
    %120 = vector.shape_cast %119 : vector<1x16x128xf32> to vector<16x128xf32>
    %121 = vector.shape_cast %118 : vector<16x128xf32> to vector<1x16x128xf32>
    tpu.vector_store %arg7[%c0_37, %c0_38, %c0_39], %121 {strides = array<i32>} : memref<2x16x128xf32, #tpu.memory_space<vmem>>, vector<1x16x128xf32>,
    %122 = vector.extract_strided_slice %3 {offsets = [16, 0], sizes = [16, 128], strides = [1, 1]} : vector<32x896xf32> to vector<16x128xf32>
    %123 = arith.mulf %122, %122 : vector<16x128xf32>
    %cst_40 = arith.constant dense<0.000000e+00> : vector<16xf32>
    %124 = vector.multi_reduction <add>, %123, %cst_40 [1] : vector<16x128xf32> to vector<16xf32>
    %125 = vector.shape_cast %124 : vector<16xf32> to vector<16x1xf32>
    %cst_41 = arith.constant 1.000000e-24 : f32
    %126 = vector.broadcast %cst_41 : f32 to vector<16x1xf32>
    %127 = arith.maximumf %125, %126 : vector<16x1xf32>
    %128 = math.rsqrt %127 : vector<16x1xf32>
    %129 = vector.broadcast %128 : vector<16x1xf32> to vector<16x128xf32>
    %130 = arith.mulf %122, %129 : vector<16x128xf32>
    %131 = vector.extract_strided_slice %3 {offsets = [16, 128], sizes = [16, 128], strides = [1, 1]} : vector<32x896xf32> to vector<16x128xf32>
    %132 = arith.mulf %131, %131 : vector<16x128xf32>
    %cst_42 = arith.constant dense<0.000000e+00> : vector<16xf32>
    %133 = vector.multi_reduction <add>, %132, %cst_42 [1] : vector<16x128xf32> to vector<16xf32>
    %134 = vector.shape_cast %133 : vector<16xf32> to vector<16x1xf32>
    %cst_43 = arith.constant 1.000000e-24 : f32
    %135 = vector.broadcast %cst_43 : f32 to vector<16x1xf32>
    %136 = arith.maximumf %134, %135 : vector<16x1xf32>
    %137 = math.rsqrt %136 : vector<16x1xf32>
    %138 = vector.broadcast %137 : vector<16x1xf32> to vector<16x128xf32>
    %139 = arith.mulf %131, %138 : vector<16x128xf32>
    %140 = vector.extract_strided_slice %3 {offsets = [16, 256], sizes = [16, 128], strides = [1, 1]} : vector<32x896xf32> to vector<16x128xf32>
    %141 = arith.mulf %140, %140 : vector<16x128xf32>
    %cst_44 = arith.constant dense<0.000000e+00> : vector<16xf32>
    %142 = vector.multi_reduction <add>, %141, %cst_44 [1] : vector<16x128xf32> to vector<16xf32>
    %143 = vector.shape_cast %142 : vector<16xf32> to vector<16x1xf32>
    %cst_45 = arith.constant 1.000000e-24 : f32
    %144 = vector.broadcast %cst_45 : f32 to vector<16x1xf32>
    %145 = arith.maximumf %143, %144 : vector<16x1xf32>
    %146 = math.rsqrt %145 : vector<16x1xf32>
    %147 = vector.broadcast %146 : vector<16x1xf32> to vector<16x128xf32>
    %148 = arith.mulf %140, %147 : vector<16x128xf32>
    %149 = vector.extract_strided_slice %3 {offsets = [16, 384], sizes = [16, 128], strides = [1, 1]} : vector<32x896xf32> to vector<16x128xf32>
    %cst_46 = arith.constant dense<0.000000e+00> : vector<16x16xf32>
    %150 = tpu.matmul %148, %148, %cst_46 {dimension_numbers = #tpu.dot_dimension_numbers<[1], [1], [0], [0], [0, 0, 1, 0], [], []>, precision = #tpu.contract_precision<fp32>} : vector<16x128xf32>, vector<16x128xf32>, vector<16x16xf32> -> vector<16x16xf32>
    %c1_47 = arith.constant 1 : index
    %c0_48 = arith.constant 0 : index
    %c0_49 = arith.constant 0 : index
    %151 = vector.load %arg3[%c1_47, %c0_48, %c0_49] : memref<2x64x16xf32, #tpu.memory_space<vmem>>, vector<1x64x16xf32>
    %152 = vector.shape_cast %151 : vector<1x64x16xf32> to vector<64x16xf32>
    %cst_50 = arith.constant dense<0.000000e+00> : vector<64x128xf32>
    %153 = tpu.matmul %152, %130, %cst_50 {dimension_numbers = #tpu.dot_dimension_numbers<[1], [0], [0], [1], [0, 0, 1, 1], [], []>, precision = #tpu.contract_precision<fp32>} : vector<64x16xf32>, vector<16x128xf32>, vector<64x128xf32> -> vector<64x128xf32>
    %cst_51 = arith.constant dense<0.000000e+00> : vector<64x128xf32>
    %154 = tpu.matmul %152, %139, %cst_51 {dimension_numbers = #tpu.dot_dimension_numbers<[1], [0], [0], [1], [0, 0, 1, 1], [], []>, precision = #tpu.contract_precision<fp32>} : vector<64x16xf32>, vector<16x128xf32>, vector<64x128xf32> -> vector<64x128xf32>
    %155 = vector.extract_strided_slice %153 {offsets = [0, 0], sizes = [16, 128], strides = [1, 1]} : vector<64x128xf32> to vector<16x128xf32>
    %cst_52 = arith.constant dense<0.000000e+00> : vector<64x16xf32>
    %156 = tpu.matmul %153, %155, %cst_52 {dimension_numbers = #tpu.dot_dimension_numbers<[1], [1], [0], [0], [0, 0, 1, 0], [], []>, precision = #tpu.contract_precision<fp32>} : vector<64x128xf32>, vector<16x128xf32>, vector<64x16xf32> -> vector<64x16xf32>
    %157 = vector.extract_strided_slice %153 {offsets = [16, 0], sizes = [16, 128], strides = [1, 1]} : vector<64x128xf32> to vector<16x128xf32>
    %cst_53 = arith.constant dense<0.000000e+00> : vector<64x16xf32>
    %158 = tpu.matmul %153, %157, %cst_53 {dimension_numbers = #tpu.dot_dimension_numbers<[1], [1], [0], [0], [0, 0, 1, 0], [], []>, precision = #tpu.contract_precision<fp32>} : vector<64x128xf32>, vector<16x128xf32>, vector<64x16xf32> -> vector<64x16xf32>
    %159 = arith.maximumf %156, %158 : vector<64x16xf32>
    %160 = vector.extract_strided_slice %153 {offsets = [32, 0], sizes = [16, 128], strides = [1, 1]} : vector<64x128xf32> to vector<16x128xf32>
    %cst_54 = arith.constant dense<0.000000e+00> : vector<64x16xf32>
    %161 = tpu.matmul %153, %160, %cst_54 {dimension_numbers = #tpu.dot_dimension_numbers<[1], [1], [0], [0], [0, 0, 1, 0], [], []>, precision = #tpu.contract_precision<fp32>} : vector<64x128xf32>, vector<16x128xf32>, vector<64x16xf32> -> vector<64x16xf32>
    %162 = arith.maximumf %159, %161 : vector<64x16xf32>
    %163 = vector.extract_strided_slice %153 {offsets = [48, 0], sizes = [16, 128], strides = [1, 1]} : vector<64x128xf32> to vector<16x128xf32>
    %cst_55 = arith.constant dense<0.000000e+00> : vector<64x16xf32>
    %164 = tpu.matmul %153, %163, %cst_55 {dimension_numbers = #tpu.dot_dimension_numbers<[1], [1], [0], [0], [0, 0, 1, 0], [], []>, precision = #tpu.contract_precision<fp32>} : vector<64x128xf32>, vector<16x128xf32>, vector<64x16xf32> -> vector<64x16xf32>
    %165 = arith.maximumf %162, %164 : vector<64x16xf32>
    %c0_56 = arith.constant 0 : index
    %166 = memref.load %arg5[%c0_56] : memref<4xf32, #tpu.memory_space<smem>>
    %167 = vector.extract_strided_slice %165 {offsets = [0, 0], sizes = [16, 16], strides = [1, 1]} : vector<64x16xf32> to vector<16x16xf32>
    %168 = vector.broadcast %166 : f32 to vector<16x16xf32>
    %169 = arith.mulf %168, %167 : vector<16x16xf32>
    %c1_57 = arith.constant 1 : index
    %170 = memref.load %arg5[%c1_57] : memref<4xf32, #tpu.memory_space<smem>>
    %171 = vector.extract_strided_slice %165 {offsets = [16, 0], sizes = [16, 16], strides = [1, 1]} : vector<64x16xf32> to vector<16x16xf32>
    %172 = vector.broadcast %170 : f32 to vector<16x16xf32>
    %173 = arith.mulf %172, %171 : vector<16x16xf32>
    %174 = arith.addf %169, %173 : vector<16x16xf32>
    %c2_58 = arith.constant 2 : index
    %175 = memref.load %arg5[%c2_58] : memref<4xf32, #tpu.memory_space<smem>>
    %176 = vector.extract_strided_slice %165 {offsets = [32, 0], sizes = [16, 16], strides = [1, 1]} : vector<64x16xf32> to vector<16x16xf32>
    %177 = vector.broadcast %175 : f32 to vector<16x16xf32>
    %178 = arith.mulf %177, %176 : vector<16x16xf32>
    %179 = arith.addf %174, %178 : vector<16x16xf32>
    %c3_59 = arith.constant 3 : index
    %180 = memref.load %arg5[%c3_59] : memref<4xf32, #tpu.memory_space<smem>>
    %181 = vector.extract_strided_slice %165 {offsets = [48, 0], sizes = [16, 16], strides = [1, 1]} : vector<64x16xf32> to vector<16x16xf32>
    %182 = vector.broadcast %180 : f32 to vector<16x16xf32>
    %183 = arith.mulf %182, %181 : vector<16x16xf32>
    %184 = arith.addf %179, %183 : vector<16x16xf32>
    %c0_60 = arith.constant 0 : index
    %185 = memref.load %arg6[%c0_60] : memref<4xf32, #tpu.memory_space<smem>>
    %186 = vector.extract_strided_slice %154 {offsets = [0, 0], sizes = [16, 128], strides = [1, 1]} : vector<64x128xf32> to vector<16x128xf32>
    %187 = vector.broadcast %185 : f32 to vector<16x128xf32>
    %188 = arith.mulf %187, %186 : vector<16x128xf32>
    %c1_61 = arith.constant 1 : index
    %189 = memref.load %arg6[%c1_61] : memref<4xf32, #tpu.memory_space<smem>>
    %190 = vector.extract_strided_slice %154 {offsets = [16, 0], sizes = [16, 128], strides = [1, 1]} : vector<64x128xf32> to vector<16x128xf32>
    %191 = vector.broadcast %189 : f32 to vector<16x128xf32>
    %192 = arith.mulf %191, %190 : vector<16x128xf32>
    %193 = arith.addf %188, %192 : vector<16x128xf32>
    %c2_62 = arith.constant 2 : index
    %194 = memref.load %arg6[%c2_62] : memref<4xf32, #tpu.memory_space<smem>>
    %195 = vector.extract_strided_slice %154 {offsets = [32, 0], sizes = [16, 128], strides = [1, 1]} : vector<64x128xf32> to vector<16x128xf32>
    %196 = vector.broadcast %194 : f32 to vector<16x128xf32>
    %197 = arith.mulf %196, %195 : vector<16x128xf32>
    %198 = arith.addf %193, %197 : vector<16x128xf32>
    %c3_63 = arith.constant 3 : index
    %199 = memref.load %arg6[%c3_63] : memref<4xf32, #tpu.memory_space<smem>>
    %200 = vector.extract_strided_slice %154 {offsets = [48, 0], sizes = [16, 128], strides = [1, 1]} : vector<64x128xf32> to vector<16x128xf32>
    %201 = vector.broadcast %199 : f32 to vector<16x128xf32>
    %202 = arith.mulf %201, %200 : vector<16x128xf32>
    %203 = arith.addf %198, %202 : vector<16x128xf32>
    %cst_64 = arith.constant dense<0.000000e+00> : vector<16x16xf32>
    %204 = tpu.matmul %203, %139, %cst_64 {dimension_numbers = #tpu.dot_dimension_numbers<[1], [1], [0], [0], [0, 0, 1, 0], [], []>, precision = #tpu.contract_precision<fp32>} : vector<16x128xf32>, vector<16x128xf32>, vector<16x16xf32> -> vector<16x16xf32>
    %c1_65 = arith.constant 1 : index
    %c0_66 = arith.constant 0 : index
    %c0_67 = arith.constant 0 : index
    %205 = vector.load %arg2[%c1_65, %c0_66, %c0_67] : memref<2x16x16xf32, #tpu.memory_space<vmem>>, vector<1x16x16xf32>
    %206 = vector.shape_cast %205 : vector<1x16x16xf32> to vector<16x16xf32>
    %207 = arith.addf %150, %184 : vector<16x16xf32>
    %208 = arith.addf %207, %204 : vector<16x16xf32>
    %209 = arith.addf %208, %206 : vector<16x16xf32>
    %cst_68 = arith.constant dense<0xFF800000> : vector<16xf32>
    %210 = vector.multi_reduction <maximumf>, %209, %cst_68 [1] : vector<16x16xf32> to vector<16xf32>
    %211 = vector.shape_cast %210 : vector<16xf32> to vector<16x1xf32>
    %212 = vector.broadcast %211 : vector<16x1xf32> to vector<16x16xf32>
    %213 = arith.subf %209, %212 : vector<16x16xf32>
    %214 = math.exp %213 : vector<16x16xf32>
    %cst_69 = arith.constant dense<0.000000e+00> : vector<16xf32>
    %215 = vector.multi_reduction <add>, %214, %cst_69 [1] : vector<16x16xf32> to vector<16xf32>
    %216 = vector.shape_cast %215 : vector<16xf32> to vector<16x1xf32>
    %217 = vector.broadcast %216 : vector<16x1xf32> to vector<16x16xf32>
    %218 = arith.divf %214, %217 : vector<16x16xf32>
    %cst_70 = arith.constant dense<0.000000e+00> : vector<16x128xf32>
    %219 = tpu.matmul %218, %149, %cst_70 {dimension_numbers = #tpu.dot_dimension_numbers<[1], [0], [0], [1], [0, 0, 1, 1], [], []>, precision = #tpu.contract_precision<fp32>} : vector<16x16xf32>, vector<16x128xf32>, vector<16x128xf32> -> vector<16x128xf32>
    %220 = vector.extract_strided_slice %3 {offsets = [16, 512], sizes = [16, 128], strides = [1, 1]} : vector<32x896xf32> to vector<16x128xf32>
    %221 = vector.extract_strided_slice %3 {offsets = [16, 640], sizes = [16, 128], strides = [1, 1]} : vector<32x896xf32> to vector<16x128xf32>
    %222 = vector.extract_strided_slice %3 {offsets = [16, 768], sizes = [16, 128], strides = [1, 1]} : vector<32x896xf32> to vector<16x128xf32>
    %cst_71 = arith.constant dense<0.000000e+00> : vector<16x16xf32>
    %223 = tpu.matmul %220, %221, %cst_71 {dimension_numbers = #tpu.dot_dimension_numbers<[1], [1], [0], [0], [0, 0, 1, 0], [], []>, precision = #tpu.contract_precision<fp32>} : vector<16x128xf32>, vector<16x128xf32>, vector<16x16xf32> -> vector<16x16xf32>
    %cst_72 = arith.constant 0.176776692 : f32
    %224 = vector.broadcast %cst_72 : f32 to vector<16x16xf32>
    %225 = arith.mulf %223, %224 : vector<16x16xf32>
    %cst_73 = arith.constant dense<0xFF800000> : vector<16xf32>
    %226 = vector.multi_reduction <maximumf>, %225, %cst_73 [1] : vector<16x16xf32> to vector<16xf32>
    %227 = vector.shape_cast %226 : vector<16xf32> to vector<16x1xf32>
    %228 = vector.broadcast %227 : vector<16x1xf32> to vector<16x16xf32>
    %229 = arith.subf %225, %228 : vector<16x16xf32>
    %230 = math.exp %229 : vector<16x16xf32>
    %cst_74 = arith.constant dense<0.000000e+00> : vector<16xf32>
    %231 = vector.multi_reduction <add>, %230, %cst_74 [1] : vector<16x16xf32> to vector<16xf32>
    %232 = vector.shape_cast %231 : vector<16xf32> to vector<16x1xf32>
    %233 = vector.broadcast %232 : vector<16x1xf32> to vector<16x16xf32>
    %234 = arith.divf %230, %233 : vector<16x16xf32>
    %cst_75 = arith.constant dense<0.000000e+00> : vector<16x128xf32>
    %235 = tpu.matmul %234, %222, %cst_75 {dimension_numbers = #tpu.dot_dimension_numbers<[1], [0], [0], [1], [0, 0, 1, 1], [], []>, precision = #tpu.contract_precision<fp32>} : vector<16x16xf32>, vector<16x128xf32>, vector<16x128xf32> -> vector<16x128xf32>
    %236 = arith.addf %219, %235 : vector<16x128xf32>
    %c1_76 = arith.constant 1 : index
    %c0_77 = arith.constant 0 : index
    %c0_78 = arith.constant 0 : index
    %237 = vector.load %arg7[%c1_76, %c0_77, %c0_78] : memref<2x16x128xf32, #tpu.memory_space<vmem>>, vector<1x16x128xf32>
    %238 = vector.shape_cast %237 : vector<1x16x128xf32> to vector<16x128xf32>
    %239 = vector.shape_cast %236 : vector<16x128xf32> to vector<1x16x128xf32>
    tpu.vector_store %arg7[%c1_76, %c0_77, %c0_78], %239 {strides = array<i32>} : memref<2x16x128xf32, #tpu.memory_space<vmem>>, vector<1x16x128xf32>,
    return
  }
  func.func @transform_0(%arg0: i32) -> (i32, i32, i32) {
    %c0_i32 = arith.constant 0 : i32
    %c0_i32_0 = arith.constant 0 : i32
    %c0_i32_1 = arith.constant 0 : i32
    return %arg0, %c0_i32, %c0_i32_0 : i32, i32, i32
  }
  func.func @transform_1(%arg0: i32) -> (i32, i32, i32) {
    %c0_i32 = arith.constant 0 : i32
    %c0_i32_0 = arith.constant 0 : i32
    %c0_i32_1 = arith.constant 0 : i32
    return %arg0, %c0_i32, %c0_i32_0 : i32, i32, i32
  }
  func.func @transform_2(%arg0: i32) -> (i32, i32, i32) {
    %c0_i32 = arith.constant 0 : i32
    %c0_i32_0 = arith.constant 0 : i32
    %c0_i32_1 = arith.constant 0 : i32
    return %arg0, %c0_i32, %c0_i32_0 : i32, i32, i32
  }
  func.func @transform_3(%arg0: i32) -> (i32, i32) {
    %c0_i32 = arith.constant 0 : i32
    %c0_i32_0 = arith.constant 0 : i32
    %c0_i32_1 = arith.constant 0 : i32
    return %c0_i32, %c0_i32_0 : i32, i32
  }
  func.func @transform_4(%arg0: i32) -> i32 {
    %c0_i32 = arith.constant 0 : i32
    %c0_i32_0 = arith.constant 0 : i32
    return %c0_i32 : i32
  }
  func.func @transform_5(%arg0: i32) -> i32 {
    %c0_i32 = arith.constant 0 : i32
    %c0_i32_0 = arith.constant 0 : i32
    return %c0_i32 : i32
  }
  func.func @transform_6(%arg0: i32) -> (i32, i32, i32) {
    %c0_i32 = arith.constant 0 : i32
    %c0_i32_0 = arith.constant 0 : i32
    %c0_i32_1 = arith.constant 0 : i32
    return %arg0, %c0_i32, %c0_i32_0 : i32, i32, i32
  }
}

</mosaic_0001>

<bundles_post_ra>
// kernel: tpu_custom_call.1
= control target key start
LH: loop header
LB: loop body
LE: loop exit
PB: predicated region body
PF: predicated region fallthrough
CT: control target
= control target key end

     0   :  { %11 = vsyncpa [#allocation3], 0  ;;  %s27449_s0 = inlined_call_operand.hbm [shape: f32[2,16,128], index: 0, kind: input, shape index: {}]   ;;  %s27450_s1 = inlined_call_operand.hbm [shape: f32[2,16,16], index: 1, kind: input, shape index: {}]   ;;  %s27451_s2 = inlined_call_operand.hbm [shape: f32[2,64,16], index: 2, kind: input, shape index: {}]   ;;  %s27452_s3 = inlined_call_operand.hbm [shape: f32[128,896], index: 3, kind: input, shape index: {}]   ;;  %s27453_s4 = inlined_call_operand.hbm [shape: f32[4], index: 4, kind: input, shape index: {}]   ;;  %s27454_s5 = inlined_call_operand.hbm [shape: f32[4], index: 5, kind: input, shape index: {}]   ;;  %s27455_s6 = inlined_call_operand.hbm [shape: f32[2,16,128], index: 6, kind: output, shape index: {}]  }
   0x1   :  { %12 = vsyncpa [#allocation7], 0 }
   0x2   :  { %13 = vsyncpa [#allocation10], 0 }
   0x3   :  { %14 = vsyncpa [#allocation5], 0 }
   0x4   :  { %15 = vsyncpa [#allocation13], 0 }
   0x5   :  { %16 = vsyncpa [#allocation4], 0  ;;  %s23691_s21 = smov [#allocation6]   ;;  %s23692_s23 = smov [#allocation2]  }
   0x6   :  { %s34_s22 = sshll.u32 %s23691_s21, 4  ;;  %s22_s24 = sshll.u32 %s23692_s23, 4  ;;  %s35_s22 = int_to_ptr.vmem [resolvable:$true] %s34_s22  ;;  %s23738_s24 = int_to_ptr.vmem [resolvable:$true] %s22_s24 }
   0x7   :  { %s23549_s27 = scalar_lea.hbm %s27450_s1, 512 }
   0x8   :  { %p23550_p0 = scmp.ne.s32.totalorder %s27450_s1, %s23549_s27  ;;  %p23553_p1 = scmp.lt.u32.totalorder %s23549_s27, %s27450_s1 }
   0xa   :  { %p23555_p2 = pnand %p23553_p1, %p23550_p0 }
   0xc   :  { %23558 = shalt.err (!%p23555_p2)
}
   0xd   :  { %s23559_s8 = scalar_lea.vmem %s35_s22, 512  ;;  %p23564_p4 = scmp.lt.s32.totalorder %s35_s22, %s35_s22 }
   0xe   :  { %p23560_p3 = scmp.ne.s32.totalorder %s35_s22, %s23559_s8  ;;  %p23565_p5 = scmp.lt.s32.totalorder %s23559_s8, %s23559_s8 }
  0x10   :  { %p23566_p6 = por %p23565_p5, %p23564_p4 }
  0x12   :  { %p23567_p7 = pnand %p23566_p6, %p23560_p3 }
  0x14   :  { %23570 = shalt.err (!%p23567_p7)
}
  0x15   :  { %s23693_s9 = smov 128   ;;  %s23694_s10 = smov 8  }
  0x16   :  { %40 = dma.hbm_to_vmem [thread:$0]  %s27450_s1, 512, %s35_s22, [#allocation7], %s23693_s9, %s23693_s9, %s23694_s10  }
  0x17   :  { %s23571_s15 = scalar_lea.hbm %s27449_s0, 512 }
  0x18   :  { %p23572_p8 = scmp.ne.s32.totalorder %s27449_s0, %s23571_s15  ;;  %p23575_p9 = scmp.lt.u32.totalorder %s23571_s15, %s27449_s0 }
  0x1a   :  { %p23577_p10 = pnand %p23575_p9, %p23572_p8 }
  0x1c   :  { %23580 = shalt.err (!%p23577_p10)
}
  0x1d   :  { %s23581_s20 = scalar_lea.vmem %s23738_s24, 512  ;;  %p23586_p12 = scmp.lt.s32.totalorder %s23738_s24, %s23738_s24 }
  0x1e   :  { %p23582_p11 = scmp.ne.s32.totalorder %s23738_s24, %s23581_s20  ;;  %p23587_p13 = scmp.lt.s32.totalorder %s23581_s20, %s23581_s20 }
  0x20   :  { %p23588_p0 = por %p23587_p13, %p23586_p12 }
  0x22   :  { %p23589_p1 = pnand %p23588_p0, %p23582_p11 }
  0x24   :  { %23592 = shalt.err (!%p23589_p1)
}
  0x25   :  { %28 = dma.hbm_to_vmem [thread:$0]  %s27449_s0, 512, %s23738_s24, [#allocation3], %s23693_s9, %s23693_s9, %s23694_s10  }
  0x26   :  { %s23695_s22 = smov [#allocation8]   ;;  %s23696_s25 = smov [#allocation9]  }
  0x27   :  { %s46_s23 = sshll.u32 %s23695_s22, 4  ;;  %s58_s26 = sshll.u32 %s23696_s25, 4  ;;  %s47_s23 = int_to_ptr.vmem [resolvable:$true] %s46_s23  ;;  %s23775_s26 = int_to_ptr.vmem [resolvable:$true] %s58_s26 }
  0x28   :  { %s23593_s29 = scalar_lea.hbm %s27451_s2, 2048 }
  0x29   :  { %p23594_p2 = scmp.ne.s32.totalorder %s27451_s2, %s23593_s29  ;;  %p23597_p3 = scmp.lt.u32.totalorder %s23593_s29, %s27451_s2 }
  0x2b   :  { %p23599_p4 = pnand %p23597_p3, %p23594_p2 }
  0x2d   :  { %23602 = shalt.err (!%p23599_p4)
}
  0x2e   :  { %s23603_s0 = scalar_lea.vmem %s47_s23, 2048  ;;  %p23608_p6 = scmp.lt.s32.totalorder %s47_s23, %s47_s23 }
  0x2f   :  { %p23604_p5 = scmp.ne.s32.totalorder %s47_s23, %s23603_s0  ;;  %p23609_p7 = scmp.lt.s32.totalorder %s23603_s0, %s23603_s0 }
  0x31   :  { %p23610_p8 = por %p23609_p7, %p23608_p6 }
  0x33   :  { %p23611_p9 = pnand %p23610_p8, %p23604_p5 }
  0x35   :  { %23614 = shalt.err (!%p23611_p9)
}
  0x36   :  { %52 = dma.hbm_to_vmem [thread:$0]  %s27451_s2, 2048, %s47_s23, [#allocation7], %s23693_s9, %s23693_s9, %s23694_s10  }
  0x37   :  { %s23615_s15 = scalar_lea.hbm %s27452_s3, 14336 }
  0x38   :  { %p23616_p10 = scmp.ne.s32.totalorder %s27452_s3, %s23615_s15  ;;  %p23619_p11 = scmp.lt.u32.totalorder %s23615_s15, %s27452_s3 }
  0x3a   :  { %p23621_p12 = pnand %p23619_p11, %p23616_p10 }
  0x3c   :  { %23624 = shalt.err (!%p23621_p12)
}
  0x3d   :  { %s23625_s20 = scalar_lea.vmem %s23775_s26, 14336  ;;  %p23630_p0 = scmp.lt.s32.totalorder %s23775_s26, %s23775_s26 }
  0x3e   :  { %p23626_p13 = scmp.ne.s32.totalorder %s23775_s26, %s23625_s20  ;;  %p23631_p1 = scmp.lt.s32.totalorder %s23625_s20, %s23625_s20 }
  0x40   :  { %p23632_p2 = por %p23631_p1, %p23630_p0 }
  0x42   :  { %p23633_p3 = pnand %p23632_p2, %p23626_p13 }
  0x44   :  { %23636 = shalt.err (!%p23633_p3)
}
  0x45   :  { %s23697_s2 = smov 896   ;;  %s23698_s1 = smov 56  }
  0x46   :  { %64 = dma.hbm_to_vmem [thread:$0]  %s27452_s3, 14336, %s23775_s26, [#allocation10], %s23697_s2, %s23697_s2, %s23698_s1  }
  0x47   :  { %s23637_s27 = scalar_lea.hbm %s27453_s4, 16 }
  0x48   :  { %p23638_p4 = scmp.ne.s32.totalorder %s27453_s4, %s23637_s27  ;;  %p23641_p5 = scmp.lt.u32.totalorder %s23637_s27, %s27453_s4 }
  0x4a   :  { %p23643_p6 = pnand %p23641_p5, %p23638_p4 }
  0x4c   :  { %23646 = shalt.err (!%p23643_p6)
}
  0x4d   :  { %s23699_s8 = smov [#allocation11]   ;;  %s23647_s24 = scalar_lea.hbm %s27454_s5, 16 }
  0x4e   :  { %72 = dma.hbm_to_smem %s27453_s4, 16, %s23699_s8, [#allocation5]  }
  0x4f   :  { %p23648_p7 = scmp.ne.s32.totalorder %s27454_s5, %s23647_s24  ;;  %p23651_p8 = scmp.lt.u32.totalorder %s23647_s24, %s27454_s5 }
  0x51   :  { %p23653_p9 = pnand %p23651_p8, %p23648_p7 }
  0x53   :  { %23656 = shalt.err (!%p23653_p9)
}
  0x54   :  { %s23700_s16 = smov [#allocation12]  }
  0x55   :  { %80 = dma.hbm_to_smem %s27454_s5, 16, %s23700_s16, [#allocation13]  }
  0x56   :  { %23679 = dma.done.wait [#allocation3], 512  }
  0x57   :  { %23680 = vsyncadd [#allocation3], 4294966784 }
  0x58   :  { %23681 = dma.done.wait [#allocation7], 2560  }
  0x59   :  { %23682 = vsyncadd [#allocation7], 4294964736 }
  0x5a   :  { %23683 = dma.done.wait [#allocation10], 14336  }
  0x5b   :  { %23684 = vsyncadd [#allocation10], 4294952960 }
  0x5c   :  { %23685 = dma.done.wait [#allocation5], 16  }
  0x5d   :  { %23686 = vsyncadd [#allocation5], 4294967280 }
  0x5e   :  { %23687 = dma.done.wait [#allocation13], 16  }
  0x5f   :  { %23688 = vsyncadd [#allocation13], 4294967280 }
  0x60   :  { %99 = sfence }
  0x61   :  { %v105_v0 = vld [vmem:[#allocation9 + $0x8] sm:$0xff]  ;;  %v112_v1 = vld [vmem:[#allocation9 + $0x40] sm:$0xff]  ;;  %v111_v5 = vld [vmem:[#allocation9 + $0x38] sm:$0xff]  ;;  %v27456_v9 = vmov 0.0   ;;  %vm4036_vm0 = vcmask 130048   ;;  %s26139_s4 = sld [smem:[#allocation12]] }
  0x62   :  { %v104_v2 = vld [vmem:[#allocation9] sm:$0xff]  ;;  %v216_v3 = vand.u32 4294901760, %v105_v0  ;;  %v220_v4 = vand.u32 4294901760, %v112_v1  ;;  %v119_v7 = vld [vmem:[#allocation9 + $0x78] sm:$0xff]  ;;  %v126_v8 = vld [vmem:[#allocation9 + $0xb0] sm:$0xff]  ;;  %312 = vmatprep.mubr.f32.mxu0 %v27456_v9  ;;  %1314 = vmatprep.mubr.f32.mxu1 %v27456_v9  ;;  %v222_v10 = vand.u32 4294901760, %v111_v5 }
  0x63   :  { %v218_v6 = vand.u32 4294901760, %v104_v2  ;;  %v224_v11 = vand.u32 4294901760, %v119_v7  ;;  %v228_v12 = vand.u32 4294901760, %v126_v8  ;;  %v118_v13 = vld [vmem:[#allocation9 + $0x70] sm:$0xff]  ;;  %v125_v14 = vld [vmem:[#allocation9 + $0xa8] sm:$0xff]  ;;  %v107_v15 = vld [vmem:[#allocation9 + $0x18] sm:$0xff] }
  0x64   :  { %v23835_v16 = vpack.c.bf16 %v220_v4, %v216_v3  ;;  %v23837_v17 = vsub.f32 %v105_v0, %v216_v3  ;;  %v23839_v18 = vsub.f32 %v112_v1, %v220_v4  ;;  %v114_v20 = vld [vmem:[#allocation9 + $0x50] sm:$0xff]  ;;  %v113_v22 = vld [vmem:[#allocation9 + $0x48] sm:$0xff]  ;;  %v23845_v24 = vsub.f32 %v111_v5, %v222_v10  ;;  %v140_v32 = vld [vmem:[#allocation9 + $0x120] sm:$0xff]  ;;  %s26141_s5 = sld [smem:[#allocation12 + $0x1]]  ;;  %s26147_s19 = sld [smem:[#allocation12 + $0x2]] }
  0x65   :  { %v23841_v19 = vsub.f32 %v104_v2, %v218_v6  ;;  %v106_v21 = vld [vmem:[#allocation9 + $0x10] sm:$0xff]  ;;  %v23843_v23 = vpack.c.bf16 %v222_v10, %v218_v6  ;;  %v23847_v25 = vpack.c.bf16 %v228_v12, %v224_v11  ;;  %v23849_v26 = vsub.f32 %v119_v7, %v224_v11  ;;  %v133_v27 = vld [vmem:[#allocation9 + $0xe8] sm:$0xff]  ;;  %v132_v37 = vld [vmem:[#allocation9 + $0xe0] sm:$0xff]  ;;  %s26187_s20 = sld [smem:[#allocation12 + $0x3]]  ;;  %s8645_s2 = sld [smem:[#allocation11]] }
  0x66   :  { %27871 = vst [vmem:[#allocation21_spill] sm:$0xff] %v23835_v16  ;;  %27872 = vst [vmem:[#allocation22_spill] sm:$0xff] %v23837_v17  ;;  %21454 = vmatprep.subr.bf16.mxu0 %v23835_v16  ;;  %v23852_v28 = vsub.f32 %v126_v8, %v228_v12  ;;  %v226_v29 = vand.u32 4294901760, %v118_v13  ;;  %v230_v30 = vand.u32 4294901760, %v125_v14  ;;  %v1218_v31 = vand.u32 4294901760, %v107_v15  ;;  %v139_v38 = vld [vmem:[#allocation9 + $0x118] sm:$0xff] }
  0x67   :  { %27873 = vst [vmem:[#allocation23_spill] sm:$0xff] %v23839_v18  ;;  %27874 = vst [vmem:[#allocation24_spill] sm:$0xff] %v23841_v19  ;;  %21456 = vmatpush1.bf16.msra.mxu0 %v23843_v23  ;;  %v1222_v33 = vand.u32 4294901760, %v114_v20  ;;  %v1220_v34 = vand.u32 4294901760, %v106_v21  ;;  %v1224_v35 = vand.u32 4294901760, %v113_v22  ;;  %v232_v36 = vand.u32 4294901760, %v133_v27 }
  0x68   :  { %27875 = vst [vmem:[#allocation25_spill] sm:$0xff] %v23843_v23  ;;  %27876 = vst [vmem:[#allocation26_spill] sm:$0xff] %v23845_v24  ;;  %21458 = vmatprep.subr.bf16.mxu0 %v23847_v25  ;;  %v23856_v39 = vpack.c.bf16 %v230_v30, %v226_v29  ;;  %v23858_v40 = vsub.f32 %v118_v13, %v226_v29  ;;  %v23860_v41 = vsub.f32 %v125_v14, %v230_v30  ;;  %v121_v43 = vld [vmem:[#allocation9 + $0x88] sm:$0xff]  ;;  %v128_v44 = vld [vmem:[#allocation9 + $0xc0] sm:$0xff]  ;;  %s18561_s1 = sld [smem:[#allocation11 + $0x1]]  ;;  %s26592_s21 = sld [smem:[#allocation11 + $0x2]] }
  0x69   :  { %27877 = vst [vmem:[#allocation27_spill] sm:$0xff] %v23847_v25  ;;  %27878 = vst [vmem:[#allocation28_spill] sm:$0xff] %v23849_v26  ;;  %v23862_v42 = vsub.f32 %v107_v15, %v1218_v31  ;;  %v120_v45 = vld [vmem:[#allocation9 + $0x80] sm:$0xff]  ;;  %v23864_v46 = vpack.c.bf16 %v1222_v33, %v1218_v31  ;;  %v23866_v47 = vsub.f32 %v114_v20, %v1222_v33  ;;  %v127_v50 = vld [vmem:[#allocation9 + $0xb8] sm:$0xff]  ;;  %v236_v52 = vand.u32 4294901760, %v140_v32  ;;  %s26594_s22 = sld [smem:[#allocation11 + $0x3]] }
  0x6a   :  { %27879 = vst [vmem:[#allocation29_spill] sm:$0xff] %v23852_v28  ;;  %27880 = vst [vmem:[#allocation30_spill] sm:$0xff] %v23856_v39  ;;  %v23868_v48 = vpack.c.bf16 %v1224_v35, %v1220_v34  ;;  %v23870_v49 = vsub.f32 %v106_v21, %v1220_v34  ;;  %v23872_v51 = vsub.f32 %v113_v22, %v1224_v35  ;;  %v234_v54 = vand.u32 4294901760, %v132_v37  ;;  %v147_v59 = vld [vmem:[#allocation9 + $0x158] sm:$0xff]  ;;  %v154_v60 = vld [vmem:[#allocation9 + $0x190] sm:$0xff]  ;;  %s15940_s23 = sld [smem:[#allocation12]] }
  0x6b   :  { %27881 = vst [vmem:[#allocation31_spill] sm:$0xff] %v23858_v40  ;;  %27882 = vst [vmem:[#allocation32_spill] sm:$0xff] %v23860_v41  ;;  %v23874_v53 = vsub.f32 %v133_v27, %v232_v36  ;;  %21460 = vmatpush1.bf16.msra.mxu0 %v23856_v39  ;;  %21646 = vmatprep.subr.bf16.mxu1 %v23864_v46  ;;  %v238_v55 = vand.u32 4294901760, %v139_v38  ;;  %v1226_v56 = vand.u32 4294901760, %v121_v43  ;;  %v1230_v57 = vand.u32 4294901760, %v128_v44  ;;  %v146_v1 = vld [vmem:[#allocation9 + $0x150] sm:$0xff] }
  0x6c   :  { %27883 = vst [vmem:[#allocation33_spill] sm:$0xff] %v23864_v46  ;;  %27884 = vst [vmem:[#allocation34_spill] sm:$0xff] %v23868_v48  ;;  %v1228_v58 = vand.u32 4294901760, %v120_v45  ;;  %21648 = vmatpush1.bf16.msra.mxu1 %v23868_v48  ;;  %v23879_v61 = vpack.c.bf16 %v236_v52, %v232_v36  ;;  %v23881_v62 = vsub.f32 %v140_v32, %v236_v52  ;;  %v1232_v0 = vand.u32 4294901760, %v127_v50  ;;  %v153_v2 = vld [vmem:[#allocation9 + $0x188] sm:$0xff]  ;;  %v135_v3 = vld [vmem:[#allocation9 + $0xf8] sm:$0xff] }
  0x6d   :  { %v23883_v63 = vsub.f32 %v132_v37, %v234_v54  ;;  %v23885_v4 = vpack.c.bf16 %v238_v55, %v234_v54  ;;  %v23887_v5 = vsub.f32 %v139_v38, %v238_v55  ;;  %v23889_v6 = vpack.c.bf16 %v1230_v57, %v1226_v56  ;;  %v142_v8 = vld [vmem:[#allocation9 + $0x130] sm:$0xff]  ;;  %v141_v11 = vld [vmem:[#allocation9 + $0x128] sm:$0xff]  ;;  %v168_v34 = vld [vmem:[#allocation9 + $0x200] sm:$0xff]  ;;  %s18570_s25 = sld [smem:[#allocation12 + $0x1]]  ;;  %s18571_s27 = sld [smem:[#allocation12 + $0x2]] }
  0x6e   :  { %27885 = vst [vmem:[#allocation35_spill] sm:$0xff] %v23879_v61  ;;  %v23891_v7 = vsub.f32 %v121_v43, %v1226_v56  ;;  %v134_v10 = vld [vmem:[#allocation9 + $0xf0] sm:$0xff]  ;;  %21462 = vmatprep.subr.bf16.mxu0 %v23879_v61  ;;  %v23894_v12 = vsub.f32 %v128_v44, %v1230_v57  ;;  %v23896_v13 = vpack.c.bf16 %v1232_v0, %v1228_v58  ;;  %v240_v20 = vand.u32 4294901760, %v147_v59  ;;  %v161_v33 = vld [vmem:[#allocation9 + $0x1c8] sm:$0xff]  ;;  %v160_v43 = vld [vmem:[#allocation9 + $0x1c0] sm:$0xff]  ;;  %s18572_s28 = sld [smem:[#allocation12 + $0x3]] }
  0x6f   :  { %27886 = vst [vmem:[#allocation36_spill] sm:$0xff] %v23885_v4  ;;  %27887 = vst [vmem:[#allocation37_spill] sm:$0xff] %v23889_v6  ;;  %v23898_v14 = vsub.f32 %v120_v45, %v1228_v58  ;;  %v23900_v15 = vsub.f32 %v127_v50, %v1232_v0  ;;  %21464 = vmatpush1.bf16.msra.mxu0 %v23885_v4  ;;  %21650 = vmatprep.subr.bf16.mxu1 %v23889_v6  ;;  %v244_v21 = vand.u32 4294901760, %v154_v60  ;;  %v167_v44 = vld [vmem:[#allocation9 + $0x1f8] sm:$0xff]  ;;  %v149_v45 = vld [vmem:[#allocation9 + $0x168] sm:$0xff]  ;;  %s15918_s29 = sld [smem:[#allocation11]] }
  0x70   :  { %27888 = vst [vmem:[#allocation38_spill] sm:$0xff] %v23896_v13  ;;  %v242_v22 = vand.u32 4294901760, %v146_v1  ;;  %v246_v27 = vand.u32 4294901760, %v153_v2  ;;  %21652 = vmatpush1.bf16.msra.mxu1 %v23896_v13  ;;  %v1234_v29 = vand.u32 4294901760, %v135_v3  ;;  %v1238_v30 = vand.u32 4294901760, %v142_v8  ;;  %v156_v56 = vld [vmem:[#allocation9 + $0x1a0] sm:$0xff] }
  0x71   :  { %v1236_v31 = vand.u32 4294901760, %v134_v10  ;;  %v1240_v32 = vand.u32 4294901760, %v141_v11  ;;  %v23905_v35 = vpack.c.bf16 %v244_v21, %v240_v20  ;;  %v23907_v36 = vsub.f32 %v147_v59, %v240_v20  ;;  %v148_v57 = vld [vmem:[#allocation9 + $0x160] sm:$0xff]  ;;  %v155_v58 = vld [vmem:[#allocation9 + $0x198] sm:$0xff]  ;;  %v182_v9 = vld [vmem:[#allocation9 + $0x270] sm:$0xff]  ;;  %s18567_s30 = sld [smem:[#allocation11 + $0x1]] }
  0x72   :  { %v23909_v37 = vsub.f32 %v154_v60, %v244_v21  ;;  %v23911_v38 = vpack.c.bf16 %v246_v27, %v242_v22  ;;  %v23913_v50 = vsub.f32 %v146_v1, %v242_v22  ;;  %v23915_v52 = vsub.f32 %v153_v2, %v246_v27  ;;  %v163_v13 = vld [vmem:[#allocation9 + $0x1d8] sm:$0xff]  ;;  %v170_v48 = vld [vmem:[#allocation9 + $0x210] sm:$0xff]  ;;  %v169_v46 = vld [vmem:[#allocation9 + $0x208] sm:$0xff]  ;;  %s27395_s7 = sld [smem:[#allocation11 + $0x2]]  ;;  %s27397_s8 = sld [smem:[#allocation11 + $0x3]] }
  0x73   :  { %27889 = vst [vmem:[#allocation39_spill] sm:$0xff] %v23905_v35  ;;  %v23917_v54 = vpack.c.bf16 %v1238_v30, %v1234_v29  ;;  %v23919_v55 = vsub.f32 %v135_v3, %v1234_v29  ;;  %21466 = vmatprep.subr.bf16.mxu0 %v23905_v35  ;;  %v23922_v59 = vsub.f32 %v142_v8, %v1238_v30  ;;  %v248_v1 = vand.u32 4294901760, %v161_v33  ;;  %v175_v30 = vld [vmem:[#allocation9 + $0x238] sm:$0xff]  ;;  %v162_v61 = vld [vmem:[#allocation9 + $0x1d0] sm:$0xff]  ;;  %v196_v39 = vld [vmem:[#allocation9 + $0x2e0] sm:$0xff]  ;;  %s23702_s11 = smov [#allocation14]  }
  0x74   :  { %27890 = vst [vmem:[#allocation40_spill] sm:$0xff] %v23911_v38  ;;  %v23924_v60 = vpack.c.bf16 %v1240_v32, %v1236_v31  ;;  %v23926_v0 = vsub.f32 %v134_v10, %v1236_v31  ;;  %v23928_v20 = vsub.f32 %v141_v11, %v1240_v32  ;;  %21468 = vmatpush1.bf16.msra.mxu0 %v23911_v38  ;;  %v252_v2 = vand.u32 4294901760, %v168_v34  ;;  %v181_v38 = vld [vmem:[#allocation9 + $0x268] sm:$0xff]  ;;  %s18545_s0 = sshll.u32 %s23702_s11, 4  ;;  %s18546_s0 = int_to_ptr.vmem [resolvable:$true] %s18545_s0 }
  0x75   :  { %27891 = vst [vmem:[#allocation41_spill] sm:$0xff] %v23917_v54  ;;  %21654 = vmatprep.subr.bf16.mxu1 %v23917_v54  ;;  %v250_v3 = vand.u32 4294901760, %v160_v43  ;;  %v254_v21 = vand.u32 4294901760, %v167_v44  ;;  %v1242_v22 = vand.u32 4294901760, %v149_v45  ;;  %v1246_v27 = vand.u32 4294901760, %v156_v56  ;;  %v174_v54 = vld [vmem:[#allocation9 + $0x230] sm:$0xff]  ;;  %p23662_p11 = scmp.lt.s32.totalorder %s18546_s0, %s18546_s0 }
  0x76   :  { %27892 = vst [vmem:[#allocation42_spill] sm:$0xff] %v23924_v60  ;;  %27893 = vst [vmem:[#allocation43_spill] sm:$0xff] %v23928_v20  ;;  %21656 = vmatpush1.bf16.msra.mxu1 %v23924_v60  ;;  %v1244_v8 = vand.u32 4294901760, %v148_v57  ;;  %v1248_v29 = vand.u32 4294901760, %v155_v58  ;;  %v23933_v10 = vpack.c.bf16 %v252_v2, %v248_v1  ;;  %v23935_v11 = vsub.f32 %v161_v33, %v248_v1  ;;  %v177_v25 = vld [vmem:[#allocation9 + $0x248] sm:$0xff]  ;;  %s23657_s3 = scalar_lea.vmem %s18546_s0, 512 }
  0x77   :  { %v23937_v31 = vsub.f32 %v168_v34, %v252_v2  ;;  %v23939_v32 = vpack.c.bf16 %v254_v21, %v250_v3  ;;  %v23941_v35 = vsub.f32 %v160_v43, %v250_v3  ;;  %v23943_v60 = vsub.f32 %v167_v44, %v254_v21  ;;  %p23658_p10 = scmp.ne.s32.totalorder %s18546_s0, %s23657_s3  ;;  %p23663_p12 = scmp.lt.s32.totalorder %s23657_s3, %s23657_s3 }
  0x78   :  { %27894 = vst [vmem:[#allocation44_spill] sm:$0xff] %v23933_v10  ;;  %27895 = vst [vmem:[#allocation45_spill] sm:$0xff] %v23935_v11  ;;  %v23945_v6 = vpack.c.bf16 %v1246_v27, %v1242_v22  ;;  %v23947_v4 = vsub.f32 %v149_v45, %v1242_v22  ;;  %21470 = vmatprep.subr.bf16.mxu0 %v23933_v10  ;;  %v23950_v33 = vsub.f32 %v156_v56, %v1246_v27  ;;  %v189_v10 = vld [vmem:[#allocation9 + $0x2a8] sm:$0xff] }
  0x79   :  { %27896 = vst [vmem:[#allocation46_spill] sm:$0xff] %v23937_v31  ;;  %27897 = vst [vmem:[#allocation47_spill] sm:$0xff] %v23939_v32  ;;  %v23952_v34 = vpack.c.bf16 %v1248_v29, %v1244_v8  ;;  %v23954_v1 = vsub.f32 %v148_v57, %v1244_v8  ;;  %v23956_v2 = vsub.f32 %v155_v58, %v1248_v29  ;;  %21472 = vmatpush1.bf16.msra.mxu0 %v23939_v32  ;;  %v195_v32 = vld [vmem:[#allocation9 + $0x2d8] sm:$0xff]  ;;  %p23664_p13 = por %p23663_p12, %p23662_p11 }
  0x7a   :  { %27898 = vst [vmem:[#allocation48_spill] sm:$0xff] %v23941_v35  ;;  %27899 = vst [vmem:[#allocation49_spill] sm:$0xff] %v23943_v60  ;;  %21658 = vmatprep.subr.bf16.mxu1 %v23945_v6  ;;  %v256_v43 = vand.u32 4294901760, %v175_v30  ;;  %v260_v44 = vand.u32 4294901760, %v182_v9  ;;  %v258_v45 = vand.u32 4294901760, %v174_v54  ;;  %v262_v3 = vand.u32 4294901760, %v181_v38 }
  0x7b   :  { %27900 = vst [vmem:[#allocation50_spill] sm:$0xff] %v23945_v6  ;;  %27901 = vst [vmem:[#allocation51_spill] sm:$0xff] %v23947_v4  ;;  %21660 = vmatpush1.bf16.msra.mxu1 %v23952_v34  ;;  %v1250_v21 = vand.u32 4294901760, %v163_v13  ;;  %v1254_v22 = vand.u32 4294901760, %v170_v48  ;;  %v1252_v56 = vand.u32 4294901760, %v162_v61  ;;  %v1256_v27 = vand.u32 4294901760, %v169_v46  ;;  %p23665_p0 = pnand %p23664_p13, %p23658_p10 }
  0x7c   :  { %27902 = vst [vmem:[#allocation52_spill] sm:$0xff] %v23950_v33  ;;  %27903 = vst [vmem:[#allocation53_spill] sm:$0xff] %v23952_v34  ;;  %v23961_v57 = vpack.c.bf16 %v260_v44, %v256_v43  ;;  %v23963_v58 = vsub.f32 %v175_v30, %v256_v43  ;;  %v23965_v8 = vsub.f32 %v182_v9, %v260_v44  ;;  %v188_v6 = vld [vmem:[#allocation9 + $0x2a0] sm:$0xff]  ;;  %v183_v4 = vld [vmem:[#allocation9 + $0x278] sm:$0xff] }
  0x7d   :  { %27904 = vst [vmem:[#allocation54_spill] sm:$0xff] %v23954_v1  ;;  %27905 = vst [vmem:[#allocation55_spill] sm:$0xff] %v23956_v2  ;;  %v23967_v29 = vpack.c.bf16 %v262_v3, %v258_v45  ;;  %v23969_v23 = vsub.f32 %v174_v54, %v258_v45  ;;  %v23971_v34 = vsub.f32 %v181_v38, %v262_v3  ;;  %v184_v1 = vld [vmem:[#allocation9 + $0x280] sm:$0xff]  ;;  %v264_v38 = vand.u32 4294901760, %v189_v10 }
  0x7e   :  { %27906 = vst [vmem:[#allocation56_spill] sm:$0xff] %v23961_v57  ;;  %27907 = vst [vmem:[#allocation57_spill] sm:$0xff] %v23963_v58  ;;  %v23973_v16 = vpack.c.bf16 %v1254_v22, %v1250_v21  ;;  %v23975_v2 = vsub.f32 %v163_v13, %v1250_v21  ;;  %v176_v33 = vld [vmem:[#allocation9 + $0x240] sm:$0xff]  ;;  %21474 = vmatprep.subr.bf16.mxu0 %v23961_v57  ;;  %v23978_v9 = vsub.f32 %v170_v48, %v1254_v22  ;;  %v203_v57 = vld [vmem:[#allocation9 + $0x318] sm:$0xff] }
  0x7f   :  { %27908 = vst [vmem:[#allocation58_spill] sm:$0xff] %v23965_v8  ;;  %27909 = vst [vmem:[#allocation59_spill] sm:$0xff] %v23967_v29  ;;  %v23980_v30 = vpack.c.bf16 %v1256_v27, %v1252_v56  ;;  %v23982_v43 = vsub.f32 %v162_v61, %v1252_v56  ;;  %v23984_v44 = vsub.f32 %v169_v46, %v1256_v27  ;;  %21476 = vmatpush1.bf16.msra.mxu0 %v23967_v29  ;;  %v209_v29 = vld [vmem:[#allocation9 + $0x348] sm:$0xff]  ;;  %v190_v8 = vld [vmem:[#allocation9 + $0x2b0] sm:$0xff] }
  0x80   :  { %27910 = vst [vmem:[#allocation60_spill] sm:$0xff] %v23969_v23  ;;  %27911 = vst [vmem:[#allocation61_spill] sm:$0xff] %v23971_v34  ;;  %21662 = vmatprep.subr.bf16.mxu1 %v23973_v16  ;;  %v268_v13 = vand.u32 4294901760, %v196_v39  ;;  %v266_v54 = vand.u32 4294901760, %v188_v6  ;;  %v270_v45 = vand.u32 4294901760, %v195_v32  ;;  %v1258_v3 = vand.u32 4294901760, %v177_v25 }
  0x81   :  { %27912 = vst [vmem:[#allocation62_spill] sm:$0xff] %v23973_v16  ;;  %27913 = vst [vmem:[#allocation63_spill] sm:$0xff] %v23975_v2  ;;  %21664 = vmatpush1.bf16.msra.mxu1 %v23980_v30  ;;  %v1262_v21 = vand.u32 4294901760, %v184_v1  ;;  %v1260_v48 = vand.u32 4294901760, %v176_v33  ;;  %v1264_v22 = vand.u32 4294901760, %v183_v4  ;;  %v23991_v46 = vsub.f32 %v189_v10, %v264_v38  ;;  %v202_v16 = vld [vmem:[#allocation9 + $0x310] sm:$0xff] }
  0x82   :  { %27914 = vst [vmem:[#allocation64_spill] sm:$0xff] %v23978_v9  ;;  %27915 = vst [vmem:[#allocation65_spill] sm:$0xff] %v23980_v30  ;;  %v210_v9 = vld [vmem:[#allocation9 + $0x350] sm:$0xff]  ;;  %v23989_v61 = vpack.c.bf16 %v268_v13, %v264_v38  ;;  %v23993_v56 = vsub.f32 %v196_v39, %v268_v13  ;;  %v23995_v27 = vpack.c.bf16 %v270_v45, %v266_v54  ;;  %v197_v58 = vld [vmem:[#allocation9 + $0x2e8] sm:$0xff] }
  0x83   :  { %27916 = vst [vmem:[#allocation66_spill] sm:$0xff] %v23982_v43  ;;  %27917 = vst [vmem:[#allocation67_spill] sm:$0xff] %v23984_v44  ;;  %v191_v44 = vld [vmem:[#allocation9 + $0x2b8] sm:$0xff]  ;;  %v23997_v43 = vsub.f32 %v188_v6, %v266_v54  ;;  %v23999_v30 = vsub.f32 %v195_v32, %v270_v45  ;;  %v24001_v2 = vpack.c.bf16 %v1262_v21, %v1258_v3  ;;  %v198_v23 = vld [vmem:[#allocation9 + $0x2f0] sm:$0xff]  ;;  %v272_v6 = vand.u32 4294901760, %v203_v57 }
  0x84   :  { %27918 = vst [vmem:[#allocation68_spill] sm:$0xff] %v23989_v61  ;;  %27919 = vst [vmem:[#allocation69_spill] sm:$0xff] %v23993_v56  ;;  %v24003_v34 = vsub.f32 %v177_v25, %v1258_v3  ;;  %21478 = vmatprep.subr.bf16.mxu0 %v23989_v61  ;;  %v24006_v39 = vsub.f32 %v184_v1, %v1262_v21  ;;  %v24008_v10 = vpack.c.bf16 %v1264_v22, %v1260_v48 }
  0x85   :  { %27920 = vst [vmem:[#allocation70_spill] sm:$0xff] %v23995_v27  ;;  %27921 = vst [vmem:[#allocation71_spill] sm:$0xff] %v23997_v43  ;;  %v24010_v38 = vsub.f32 %v176_v33, %v1260_v48  ;;  %v24012_v13 = vsub.f32 %v183_v4, %v1264_v22  ;;  %21480 = vmatpush1.bf16.msra.mxu0 %v23995_v27  ;;  %21666 = vmatprep.subr.bf16.mxu1 %v24001_v2  ;;  %v276_v25 = vand.u32 4294901760, %v210_v9  ;;  %v100_v22 = vld [vmem:[#allocation2] sm:$0xff] }
  0x86   :  { %27922 = vst [vmem:[#allocation72_spill] sm:$0xff] %v23999_v30  ;;  %27923 = vst [vmem:[#allocation73_spill] sm:$0xff] %v24001_v2  ;;  %v274_v32 = vand.u32 4294901760, %v202_v16  ;;  %v278_v54 = vand.u32 4294901760, %v209_v29  ;;  %21668 = vmatpush1.bf16.msra.mxu1 %v24008_v10  ;;  %v1266_v45 = vand.u32 4294901760, %v191_v44  ;;  %v1270_v3 = vand.u32 4294901760, %v198_v23 }
  0x87   :  { %27924 = vst [vmem:[#allocation74_spill] sm:$0xff] %v24003_v34  ;;  %27925 = vst [vmem:[#allocation75_spill] sm:$0xff] %v24006_v39  ;;  %v1268_v1 = vand.u32 4294901760, %v190_v8  ;;  %v1272_v21 = vand.u32 4294901760, %v197_v58  ;;  %v24017_v61 = vpack.c.bf16 %v276_v25, %v272_v6  ;;  %v24019_v33 = vsub.f32 %v203_v57, %v272_v6  ;;  %v212_v39 = vld [vmem:[#allocation9 + $0x360] sm:$0xff] }
  0x88   :  { %27926 = vst [vmem:[#allocation76_spill] sm:$0xff] %v24008_v10  ;;  %27927 = vst [vmem:[#allocation77_spill] sm:$0xff] %v24010_v38  ;;  %v24021_v4 = vsub.f32 %v210_v9, %v276_v25  ;;  %v24023_v48 = vpack.c.bf16 %v278_v54, %v274_v32  ;;  %v24025_v2 = vsub.f32 %v202_v16, %v274_v32  ;;  %v205_v38 = vld [vmem:[#allocation9 + $0x328] sm:$0xff]  ;;  %v204_v34 = vld [vmem:[#allocation9 + $0x320] sm:$0xff]  ;;  %v27534_v16 = vand.u32 4294901760, %v23837_v17 }
  0x89   :  { %27928 = vst [vmem:[#allocation78_spill] sm:$0xff] %v24012_v13  ;;  %27929 = vst [vmem:[#allocation79_spill] sm:$0xff] %v24017_v61  ;;  %v24027_v27 = vsub.f32 %v209_v29, %v278_v54  ;;  %v24029_v13 = vpack.c.bf16 %v1270_v3, %v1266_v45  ;;  %v24031_v10 = vsub.f32 %v191_v44, %v1266_v45  ;;  %21482 = vmatprep.subr.bf16.mxu0 %v24017_v61 }
  0x8a   :  { %27930 = vst [vmem:[#allocation80_spill] sm:$0xff] %v24019_v33  ;;  %27931 = vst [vmem:[#allocation81_spill] sm:$0xff] %v24021_v4  ;;  %v24034_v57 = vsub.f32 %v198_v23, %v1270_v3  ;;  %v24036_v9 = vpack.c.bf16 %v1272_v21, %v1268_v1  ;;  %v24038_v6 = vsub.f32 %v190_v8, %v1268_v1  ;;  %21484 = vmatpush1.bf16.msra.mxu0 %v24023_v48 }
  0x8b   :  { %27932 = vst [vmem:[#allocation82_spill] sm:$0xff] %v24023_v48  ;;  %27933 = vst [vmem:[#allocation83_spill] sm:$0xff] %v24025_v2  ;;  %v24040_v25 = vsub.f32 %v197_v58, %v1272_v21  ;;  %21670 = vmatprep.subr.bf16.mxu1 %v24029_v13  ;;  %v27537_v29 = vand.u32 4294901760, %v23839_v18  ;;  %v24046_v44 = vand.u32 4294901760, %v100_v22  ;;  %v27542_v32 = vand.u32 4294901760, %v23841_v19 }
  0x8c   :  { %27934 = vst [vmem:[#allocation84_spill] sm:$0xff] %v24027_v27  ;;  %27935 = vst [vmem:[#allocation85_spill] sm:$0xff] %v24029_v13  ;;  %21672 = vmatpush1.bf16.msra.mxu1 %v24036_v9  ;;  %v27545_v23 = vand.u32 4294901760, %v23845_v24  ;;  %v1274_v8 = vand.u32 4294901760, %v205_v38  ;;  %v1278_v54 = vand.u32 4294901760, %v212_v39  ;;  %v1276_v58 = vand.u32 4294901760, %v204_v34 }
  0x8d   :  { %27936 = vst [vmem:[#allocation86_spill] sm:$0xff] %v24031_v10  ;;  %27937 = vst [vmem:[#allocation87_spill] sm:$0xff] %v24034_v57  ;;  %v360_v45 = vsub.f32 %v23837_v17, %v27534_v16  ;;  %v372_v3 = vsub.f32 %v23839_v18, %v27537_v29  ;;  %v24058_v1 = vsub.f32 %v100_v22, %v24046_v44 }
  0x8e   :  { %27938 = vst [vmem:[#allocation88_spill] sm:$0xff] %v24036_v9  ;;  %27939 = vst [vmem:[#allocation89_spill] sm:$0xff] %v24038_v6  ;;  %v366_v21 = vsub.f32 %v23841_v19, %v27542_v32  ;;  %v211_v9 = vld [vmem:[#allocation9 + $0x358] sm:$0xff]  ;;  %v378_v13 = vsub.f32 %v23845_v24, %v27545_v23  ;;  %v24066_v48 = vpack.c.bf16 %v1278_v54, %v1274_v8  ;;  %v27550_v23 = vand.u32 4294901760, %v23849_v26 }
  0x8f   :  { %27940 = vst [vmem:[#allocation90_spill] sm:$0xff] %v24040_v25  ;;  %27941 = vst [vmem:[#allocation91_spill] sm:$0xff] %v24046_v44  ;;  %v24068_v61 = vsub.f32 %v205_v38, %v1274_v8  ;;  %v24070_v16 = vsub.f32 %v212_v39, %v1278_v54  ;;  %v361_v17 = vand.u32 4294901760, %v360_v45  ;;  %v373_v29 = vand.u32 4294901760, %v372_v3 }
  0x90   :  { %27942 = vst [vmem:[#allocation92_spill] sm:$0xff] %v24058_v1  ;;  %27943 = vst [vmem:[#allocation93_spill] sm:$0xff] %v24066_v48  ;;  %v24073_v22 = vand.u32 4294901760, %v24058_v1  ;;  %v367_v44 = vand.u32 4294901760, %v366_v21  ;;  %v379_v18 = vand.u32 4294901760, %v378_v13  ;;  %21674 = vmatprep.subr.bf16.mxu1 %v24066_v48  ;;  %v1280_v32 = vand.u32 4294901760, %v211_v9 }
  0x91   :  { %27944 = vst [vmem:[#allocation94_spill] sm:$0xff] %v24068_v61  ;;  %27945 = vst [vmem:[#allocation95_spill] sm:$0xff] %v24070_v16  ;;  %v24076_v19 = vsub.f32 %v204_v34, %v1276_v58  ;;  %v21485_v24 = vpack.c.bf16 %v373_v29, %v361_v17  ;;  %v27549_v39 = vand.u32 4294901760, %v23852_v28  ;;  %v27548_v8 = vand.u32 4294901760, %v23858_v40 }
  0x92   :  { %27946 = vst [vmem:[#allocation96_spill] sm:$0xff] %v24073_v22  ;;  %v316_v38 = vsub.f32 %v24058_v1, %v24073_v22  ;;  %v21487_v54 = vpack.c.bf16 %v379_v18, %v367_v44  ;;  %v24083_v45 = vpack.c.bf16 %v1280_v32, %v1276_v58  ;;  %v24085_v3 = vsub.f32 %v211_v9, %v1280_v32 }
  0x93   :  { %27947 = vst [vmem:[#allocation97_spill] sm:$0xff] %v24076_v19  ;;  %v384_v34 = vsub.f32 %v23849_v26, %v27550_v23  ;;  %21486 = vmatprep.subr.bf16.mxu0 %v21485_v24  ;;  %v396_v17 = vsub.f32 %v23852_v28, %v27549_v39  ;;  %v390_v29 = vsub.f32 %v23858_v40, %v27548_v8  ;;  %v27551_v18 = vand.u32 4294901760, %v23860_v41 }
  0x94   :  { %27948 = vst [vmem:[#allocation98_spill] sm:$0xff] %v24083_v45  ;;  %27949 = vst [vmem:[#allocation99_spill] sm:$0xff] %v24085_v3  ;;  %v24090_v13 = vand.u32 4294901760, %v316_v38  ;;  %21676 = vmatpush1.bf16.msra.mxu1 %v24083_v45  ;;  %v27554_v44 = vand.u32 4294901760, %v23862_v42  ;;  %v27557_v32 = vand.u32 4294901760, %v23866_v47  ;;  %v27560_v24 = vand.u32 4294901760, %v23870_v49 }
  0x95   :  { %v385_v9 = vand.u32 4294901760, %v384_v34  ;;  %v397_v58 = vand.u32 4294901760, %v396_v17  ;;  %v391_v21 = vand.u32 4294901760, %v390_v29  ;;  %v402_v38 = vsub.f32 %v23860_v41, %v27551_v18 }
  0x96   :  { %27950 = vst [vmem:[#allocation100_spill] sm:$0xff] %v24090_v13  ;;  %318 = vmatmul.mubr.f32.vlgmr.msra.gmra.mrb[0].mxu0 %v24090_v13  ;;  %v27561_v8 = vand.u32 4294901760, %v23872_v51  ;;  %v1362_v34 = vsub.f32 %v23862_v42, %v27554_v44  ;;  %v1374_v39 = vsub.f32 %v23866_v47, %v27557_v32  ;;  %v1368_v17 = vsub.f32 %v23870_v49, %v27560_v24 }
  0x97   :  { %21488 = vmatpush1.bf16.msra.mxu0 %v21487_v54  ;;  %v27566_v29 = vand.u32 4294901760, %v23874_v53  ;;  %v27951_v23 = vmov 0.0   ;;  %v21489_v18 = vpack.c.bf16 %v397_v58, %v385_v9  ;;  %v403_v45 = vand.u32 4294901760, %v402_v38  ;;  %1320 = vmatmul.mubr.f32.vlgmr.msra.gmra.mrb[0].mxu1 %v24090_v13 }
  0x98   :  { %323 = vmatprep.mubr.f32.mxu0 %v27951_v23  ;;  %v1380_v54 = vsub.f32 %v23872_v51, %v27561_v8  ;;  %v27572_v44 = vand.u32 4294901760, %v23881_v62  ;;  %v1363_v48 = vand.u32 4294901760, %v1362_v34  ;;  %v1375_v32 = vand.u32 4294901760, %v1374_v39  ;;  %1325 = vmatprep.mubr.f32.mxu1 %v27951_v23 }
  0x99   :  { %v1369_v22 = vand.u32 4294901760, %v1368_v17  ;;  %v408_v24 = vsub.f32 %v23874_v53, %v27566_v29  ;;  %21490 = vmatprep.subr.bf16.mxu0 %v21489_v18  ;;  %v21491_v9 = vpack.c.bf16 %v403_v45, %v391_v21  ;;  %v27570_v8 = vand.u32 4294901760, %v23883_v63 }
  0x9a   :  { %v1381_v58 = vand.u32 4294901760, %v1380_v54  ;;  %v420_v38 = vsub.f32 %v23881_v62, %v27572_v44  ;;  %v21677_v13 = vpack.c.bf16 %v1375_v32, %v1363_v48  ;;  %v27567_v39 = vand.u32 4294901760, %v23887_v5 }
  0x9b   :  { %v409_v1 = vand.u32 4294901760, %v408_v24  ;;  %v27568_v34 = vand.u32 4294901760, %v23891_v7  ;;  %21492 = vmatpush1.bf16.msra.mxu0 %v21491_v9  ;;  %v414_v45 = vsub.f32 %v23883_v63, %v27570_v8  ;;  %v27569_v18 = vand.u32 4294901760, %v23894_v12 }
  0x9c   :  { %v21679_v17 = vpack.c.bf16 %v1381_v58, %v1369_v22  ;;  %v421_v29 = vand.u32 4294901760, %v420_v38  ;;  %21678 = vmatprep.subr.bf16.mxu1 %v21677_v13  ;;  %v426_v21 = vsub.f32 %v23887_v5, %v27567_v39  ;;  %v27571_v32 = vand.u32 4294901760, %v23898_v14 }
  0x9d   :  { %v1386_v48 = vsub.f32 %v23891_v7, %v27568_v34  ;;  %v27581_v22 = vand.u32 4294901760, %v23900_v15  ;;  %v415_v54 = vand.u32 4294901760, %v414_v45  ;;  %v1398_v9 = vsub.f32 %v23894_v12, %v27569_v18 }
  0x9e   :  { %21680 = vmatpush1.bf16.msra.mxu1 %v21679_v17  ;;  %v21493_v24 = vpack.c.bf16 %v421_v29, %v409_v1  ;;  %v27573_v13 = vand.u32 4294901760, %v23907_v36  ;;  %v427_v58 = vand.u32 4294901760, %v426_v21  ;;  %v1392_v39 = vsub.f32 %v23898_v14, %v27571_v32 }
  0x9f   :  { %v1387_v38 = vand.u32 4294901760, %v1386_v48  ;;  %v1404_v34 = vsub.f32 %v23900_v15, %v27581_v22  ;;  %v1399_v17 = vand.u32 4294901760, %v1398_v9  ;;  %v27574_v29 = vand.u32 4294901760, %v23909_v37 }
  0xa0   :  { %21494 = vmatprep.subr.bf16.mxu0 %v21493_v24  ;;  %v432_v1 = vsub.f32 %v23907_v36, %v27573_v13  ;;  %v27578_v45 = vand.u32 4294901760, %v23913_v50  ;;  %v21495_v21 = vpack.c.bf16 %v427_v58, %v415_v54  ;;  %v1393_v48 = vand.u32 4294901760, %v1392_v39 }
  0xa1   :  { %v1405_v18 = vand.u32 4294901760, %v1404_v34  ;;  %v27575_v8 = vand.u32 4294901760, %v23915_v52  ;;  %v21681_v32 = vpack.c.bf16 %v1399_v17, %v1387_v38  ;;  %v444_v24 = vsub.f32 %v23909_v37, %v27574_v29 }
  0xa2   :  { %v433_v44 = vand.u32 4294901760, %v432_v1  ;;  %v438_v9 = vsub.f32 %v23913_v50, %v27578_v45  ;;  %21496 = vmatpush1.bf16.msra.mxu0 %v21495_v21  ;;  %v27576_v39 = vand.u32 4294901760, %v23919_v55  ;;  %v27577_v34 = vand.u32 4294901760, %v23922_v59 }
  0xa3   :  { %v21683_v13 = vpack.c.bf16 %v1405_v18, %v1393_v48  ;;  %v450_v54 = vsub.f32 %v23915_v52, %v27575_v8  ;;  %21682 = vmatprep.subr.bf16.mxu1 %v21681_v32  ;;  %v445_v58 = vand.u32 4294901760, %v444_v24  ;;  %v27579_v17 = vand.u32 4294901760, %v23926_v0 }
  0xa4   :  { %v439_v38 = vand.u32 4294901760, %v438_v9  ;;  %v27580_v1 = vand.u32 4294901760, %v23928_v20  ;;  %v1410_v18 = vsub.f32 %v23919_v55, %v27576_v39  ;;  %v1422_v21 = vsub.f32 %v23922_v59, %v27577_v34 }
  0xa5   :  { %21684 = vmatpush1.bf16.msra.mxu1 %v21683_v13  ;;  %v451_v29 = vand.u32 4294901760, %v450_v54  ;;  %v27585_v48 = vand.u32 4294901760, %v23935_v11  ;;  %v21497_v8 = vpack.c.bf16 %v445_v58, %v433_v44  ;;  %v1416_v32 = vsub.f32 %v23926_v0, %v27579_v17 }
  0xa6   :  { %v1428_v13 = vsub.f32 %v23928_v20, %v27580_v1  ;;  %v27584_v24 = vand.u32 4294901760, %v23937_v31  ;;  %v1411_v54 = vand.u32 4294901760, %v1410_v18  ;;  %v1423_v39 = vand.u32 4294901760, %v1422_v21 }
  0xa7   :  { %v21499_v9 = vpack.c.bf16 %v451_v29, %v439_v38  ;;  %v456_v34 = vsub.f32 %v23935_v11, %v27585_v48  ;;  %21498 = vmatprep.subr.bf16.mxu0 %v21497_v8  ;;  %v1417_v45 = vand.u32 4294901760, %v1416_v32  ;;  %v27586_v17 = vand.u32 4294901760, %v23941_v35  ;;  %v27952_v38 = vld [vmem:[#allocation51_spill] sm:$0xff]  ;;  %v27953_v32 = vld [vmem:[#allocation52_spill] sm:$0xff] }
  0xa8   :  { %v1429_v44 = vand.u32 4294901760, %v1428_v13  ;;  %v468_v58 = vsub.f32 %v23937_v31, %v27584_v24  ;;  %v21685_v1 = vpack.c.bf16 %v1423_v39, %v1411_v54  ;;  %v27591_v29 = vand.u32 4294901760, %v23943_v60  ;;  %v27955_v54 = vld [vmem:[#allocation55_spill] sm:$0xff] }
  0xa9   :  { %21500 = vmatpush1.bf16.msra.mxu0 %v21499_v9  ;;  %v457_v22 = vand.u32 4294901760, %v456_v34  ;;  %v27592_v18 = vand.u32 4294901760, %v27952_v38  ;;  %v462_v8 = vsub.f32 %v23941_v35, %v27586_v17  ;;  %v27594_v13 = vand.u32 4294901760, %v27953_v32  ;;  %v27954_v34 = vld [vmem:[#allocation54_spill] sm:$0xff]  ;;  %v27956_v17 = vld [vmem:[#allocation57_spill] sm:$0xff] }
  0xaa   :  { %v21687_v21 = vpack.c.bf16 %v1429_v44, %v1417_v45  ;;  %v469_v20 = vand.u32 4294901760, %v468_v58  ;;  %21686 = vmatprep.subr.bf16.mxu1 %v21685_v1  ;;  %v474_v24 = vsub.f32 %v23943_v60, %v27591_v29  ;;  %v27600_v9 = vand.u32 4294901760, %v27954_v34  ;;  %v101_v44 = vld [vmem:[#allocation2 + $0x8] sm:$0xff]  ;;  %v27958_v60 = vld [vmem:[#allocation60_spill] sm:$0xff] }
  0xab   :  { %v1434_v39 = vsub.f32 %v27952_v38, %v27592_v18  ;;  %v27603_v45 = vand.u32 4294901760, %v27955_v54  ;;  %v463_v48 = vand.u32 4294901760, %v462_v8  ;;  %v1446_v1 = vsub.f32 %v27953_v32, %v27594_v13 }
  0xac   :  { %21688 = vmatpush1.bf16.msra.mxu1 %v21687_v21  ;;  %v21501_v58 = vpack.c.bf16 %v469_v20, %v457_v22  ;;  %v27602_v35 = vand.u32 4294901760, %v27956_v17  ;;  %v475_v31 = vand.u32 4294901760, %v474_v24  ;;  %v1440_v18 = vsub.f32 %v27954_v34, %v27600_v9  ;;  %v27957_v22 = vld [vmem:[#allocation58_spill] sm:$0xff] }
  0xad   :  { %v1435_v29 = vand.u32 4294901760, %v1434_v39  ;;  %v1452_v38 = vsub.f32 %v27955_v54, %v27603_v45  ;;  %v1447_v21 = vand.u32 4294901760, %v1446_v1  ;;  %v27604_v8 = vand.u32 4294901760, %v27957_v22 }
  0xae   :  { %21502 = vmatprep.subr.bf16.mxu0 %v21501_v58  ;;  %v480_v20 = vsub.f32 %v27956_v17, %v27602_v35  ;;  %v24224_v13 = vand.u32 4294901760, %v101_v44  ;;  %v21503_v24 = vpack.c.bf16 %v475_v31, %v463_v48  ;;  %v1441_v39 = vand.u32 4294901760, %v1440_v18  ;;  %v27960_v31 = vld [vmem:[#allocation61_spill] sm:$0xff]  ;;  %v102_v17 = vld [vmem:[#allocation2 + $0x10] sm:$0xff] }
  0xaf   :  { %v1453_v32 = vand.u32 4294901760, %v1452_v38  ;;  %v27606_v11 = vand.u32 4294901760, %v27958_v60  ;;  %v21689_v9 = vpack.c.bf16 %v1447_v21, %v1435_v29  ;;  %v492_v58 = vsub.f32 %v27957_v22, %v27604_v8  ;;  %v27961_v38 = vld [vmem:[#allocation63_spill] sm:$0xff]  ;;  %v27964_v22 = vld [vmem:[#allocation66_spill] sm:$0xff] }
  0xb0   :  { %v481_v34 = vand.u32 4294901760, %v480_v20  ;;  %v24231_v1 = vsub.f32 %v101_v44, %v24224_v13  ;;  %21504 = vmatpush1.bf16.msra.mxu0 %v21503_v24  ;;  %v27609_v48 = vand.u32 4294901760, %v27960_v31  ;;  %v27611_v18 = vand.u32 4294901760, %v27961_v38  ;;  %v27963_v20 = vld [vmem:[#allocation64_spill] sm:$0xff] }
  0xb1   :  { %v21691_v35 = vpack.c.bf16 %v1453_v32, %v1441_v39  ;;  %v486_v45 = vsub.f32 %v27958_v60, %v27606_v11  ;;  %21690 = vmatprep.subr.bf16.mxu1 %v21689_v9  ;;  %v493_v29 = vand.u32 4294901760, %v492_v58  ;;  %v27616_v8 = vand.u32 4294901760, %v27963_v20  ;;  %v27965_v11 = vld [vmem:[#allocation67_spill] sm:$0xff] }
  0xb2   :  { %27959 = vst [vmem:[#allocation55_spill] sm:$0xff] %v24231_v1  ;;  %v24239_v21 = vand.u32 4294901760, %v24231_v1  ;;  %v498_v32 = vsub.f32 %v27960_v31, %v27609_v48  ;;  %v1458_v39 = vsub.f32 %v27961_v38, %v27611_v18  ;;  %v27622_v9 = vand.u32 4294901760, %v27965_v11 }
  0xb3   :  { %21692 = vmatpush1.bf16.msra.mxu1 %v21691_v35  ;;  %v487_v24 = vand.u32 4294901760, %v486_v45  ;;  %v21505_v58 = vpack.c.bf16 %v493_v29, %v481_v34  ;;  %v1470_v44 = vsub.f32 %v27963_v20, %v27616_v8  ;;  %v27966_v35 = vand.u32 4294901760, %v27964_v22 }
  0xb4   :  { %27962 = vst [vmem:[#allocation101_spill] sm:$0xff] %v24239_v21  ;;  %v327_v60 = vsub.f32 %v24231_v1, %v24239_v21  ;;  %v499_v48 = vand.u32 4294901760, %v498_v32  ;;  %v1459_v31 = vand.u32 4294901760, %v1458_v39  ;;  %v1476_v18 = vsub.f32 %v27965_v11, %v27622_v9 }
  0xb5   :  { %v1464_v45 = vsub.f32 %v27964_v22, %v27966_v35  ;;  %v27620_v34 = vand.u32 4294901760, %v23991_v46  ;;  %21506 = vmatprep.subr.bf16.mxu0 %v21505_v58  ;;  %v1471_v21 = vand.u32 4294901760, %v1470_v44  ;;  %v27619_v8 = vand.u32 4294901760, %v23993_v56 }
  0xb6   :  { %v24262_v29 = vand.u32 4294901760, %v327_v60  ;;  %v21507_v20 = vpack.c.bf16 %v499_v48, %v487_v24  ;;  %v1477_v38 = vand.u32 4294901760, %v1476_v18  ;;  %v24268_v39 = vand.u32 4294901760, %v102_v17 }
  0xb7   :  { %v1465_v1 = vand.u32 4294901760, %v1464_v45  ;;  %v504_v32 = vsub.f32 %v23991_v46, %v27620_v34  ;;  %v21693_v35 = vpack.c.bf16 %v1471_v21, %v1459_v31  ;;  %v516_v60 = vsub.f32 %v23993_v56, %v27619_v8  ;;  %v27970_v45 = vld [vmem:[#allocation74_spill] sm:$0xff] }
  0xb8   :  { %27967 = vst [vmem:[#allocation66_spill] sm:$0xff] %v24262_v29  ;;  %27968 = vst [vmem:[#allocation67_spill] sm:$0xff] %v24268_v39  ;;  %329 = vmatmul.mubr.f32.gmra.mrb[2].mxu0 %v24262_v29  ;;  %v27621_v44 = vand.u32 4294901760, %v23997_v43  ;;  %v27627_v58 = vand.u32 4294901760, %v23999_v30  ;;  %1331 = vmatmul.mubr.f32.gmra.mrb[2].mxu1 %v24262_v29  ;;  %v24279_v24 = vsub.f32 %v102_v17, %v24268_v39  ;;  %v27632_v31 = vand.u32 4294901760, %v27970_v45 }
  0xb9   :  { %21508 = vmatpush1.bf16.msra.mxu0 %v21507_v20  ;;  %v21695_v48 = vpack.c.bf16 %v1477_v38, %v1465_v1  ;;  %334 = vmatprep.mubr.f32.mxu0 %v27951_v23  ;;  %v505_v18 = vand.u32 4294901760, %v504_v32  ;;  %v517_v21 = vand.u32 4294901760, %v516_v60  ;;  %v27971_v20 = vld [vmem:[#allocation75_spill] sm:$0xff]  ;;  %v27973_v32 = vld [vmem:[#allocation77_spill] sm:$0xff]  ;;  %v27974_v60 = vld [vmem:[#allocation78_spill] sm:$0xff] }
  0xba   :  { %27969 = vst [vmem:[#allocation102_spill] sm:$0xff] %v24279_v24  ;;  %21694 = vmatprep.subr.bf16.mxu1 %v21693_v35  ;;  %v510_v8 = vsub.f32 %v23997_v43, %v27621_v44  ;;  %v522_v34 = vsub.f32 %v23999_v30, %v27627_v58  ;;  %v27634_v1 = vand.u32 4294901760, %v27971_v20  ;;  %1336 = vmatprep.mubr.f32.mxu1 %v27951_v23  ;;  %v24291_v17 = vand.u32 4294901760, %v24279_v24  ;;  %v103_v30 = vld [vmem:[#allocation2 + $0x18] sm:$0xff] }
  0xbb   :  { %21696 = vmatpush1.bf16.msra.mxu1 %v21695_v48  ;;  %v1482_v38 = vsub.f32 %v27970_v45, %v27632_v31  ;;  %v27640_v35 = vand.u32 4294901760, %v27973_v32  ;;  %v27646_v44 = vand.u32 4294901760, %v27974_v60  ;;  %v21509_v9 = vpack.c.bf16 %v517_v21, %v505_v18 }
  0xbc   :  { %27972 = vst [vmem:[#allocation103_spill] sm:$0xff] %v24291_v17  ;;  %v511_v29 = vand.u32 4294901760, %v510_v8  ;;  %v523_v43 = vand.u32 4294901760, %v522_v34  ;;  %v1494_v58 = vsub.f32 %v27971_v20, %v27634_v1  ;;  %v338_v48 = vsub.f32 %v24279_v24, %v24291_v17 }
  0xbd   :  { %v1483_v56 = vand.u32 4294901760, %v1482_v38  ;;  %v1488_v31 = vsub.f32 %v27973_v32, %v27640_v35  ;;  %v1500_v45 = vsub.f32 %v27974_v60, %v27646_v44  ;;  %21510 = vmatprep.subr.bf16.mxu0 %v21509_v9  ;;  %v27644_v18 = vand.u32 4294901760, %v24019_v33 }
  0xbe   :  { %v21511_v8 = vpack.c.bf16 %v523_v43, %v511_v29  ;;  %v1495_v34 = vand.u32 4294901760, %v1494_v58  ;;  %v27642_v21 = vand.u32 4294901760, %v24021_v4  ;;  %v24311_v1 = vand.u32 4294901760, %v338_v48 }
  0xbf   :  { %v1489_v20 = vand.u32 4294901760, %v1488_v31  ;;  %v1501_v17 = vand.u32 4294901760, %v1500_v45  ;;  %v24313_v38 = vand.u32 4294901760, %v103_v30  ;;  %v528_v35 = vsub.f32 %v24019_v33, %v27644_v18 }
  0xc0   :  { %27975 = vst [vmem:[#allocation104_spill] sm:$0xff] %v24311_v1  ;;  %21512 = vmatpush1.bf16.msra.mxu0 %v21511_v8  ;;  %v21697_v24 = vpack.c.bf16 %v1495_v34, %v1483_v56  ;;  %v540_v43 = vsub.f32 %v24021_v4, %v27642_v21  ;;  %v27641_v9 = vand.u32 4294901760, %v24025_v2  ;;  %v27643_v45 = vand.u32 4294901760, %v24027_v27  ;;  %1342 = vmatmul.mubr.f32.gmra.mrb[4].mxu1 %v24311_v1 }
  0xc1   :  { %340 = vmatmul.mubr.f32.gmra.mrb[4].mxu0 %v24311_v1  ;;  %v21699_v29 = vpack.c.bf16 %v1501_v17, %v1489_v20  ;;  %v24324_v58 = vsub.f32 %v103_v30, %v24313_v38  ;;  %v27645_v56 = vand.u32 4294901760, %v24031_v10  ;;  %v529_v31 = vand.u32 4294901760, %v528_v35  ;;  %1347 = vmatprep.mubr.f32.mxu1 %v27951_v23 }
  0xc2   :  { %21698 = vmatprep.subr.bf16.mxu1 %v21697_v24  ;;  %345 = vmatprep.mubr.f32.mxu0 %v27951_v23  ;;  %v541_v48 = vand.u32 4294901760, %v540_v43  ;;  %v534_v8 = vsub.f32 %v24025_v2, %v27641_v9  ;;  %v27647_v20 = vand.u32 4294901760, %v24034_v57  ;;  %v546_v17 = vsub.f32 %v24027_v27, %v27643_v45 }
  0xc3   :  { %27976 = vst [vmem:[#allocation105_spill] sm:$0xff] %v24324_v58  ;;  %21700 = vmatpush1.bf16.msra.mxu1 %v21699_v29  ;;  %v24335_v30 = vand.u32 4294901760, %v24324_v58  ;;  %v1506_v24 = vsub.f32 %v24031_v10, %v27645_v56  ;;  %v27658_v35 = vand.u32 4294901760, %v24038_v6  ;;  %v27659_v9 = vand.u32 4294901760, %v24040_v25 }
  0xc4   :  { %v21513_v34 = vpack.c.bf16 %v541_v48, %v529_v31  ;;  %v535_v43 = vand.u32 4294901760, %v534_v8  ;;  %v1518_v29 = vsub.f32 %v24034_v57, %v27647_v20  ;;  %v547_v45 = vand.u32 4294901760, %v546_v17  ;;  %v27978_v48 = vld [vmem:[#allocation22_spill] sm:$0xff]  ;;  %v27979_v8 = vld [vmem:[#allocation23_spill] sm:$0xff] }
  0xc5   :  { %27977 = vst [vmem:[#allocation106_spill] sm:$0xff] %v24335_v30  ;;  %v349_v21 = vsub.f32 %v24324_v58, %v24335_v30  ;;  %v1507_v18 = vand.u32 4294901760, %v1506_v24  ;;  %v1512_v56 = vsub.f32 %v24038_v6, %v27658_v35  ;;  %v1524_v31 = vsub.f32 %v24040_v25, %v27659_v9  ;;  %v27982_v35 = vld [vmem:[#allocation26_spill] sm:$0xff] }
  0xc6   :  { %21514 = vmatprep.subr.bf16.mxu0 %v21513_v34  ;;  %v1519_v44 = vand.u32 4294901760, %v1518_v29  ;;  %v21517_v20 = vpack.c.bf16 %v27979_v8, %v27978_v48  ;;  %v21515_v57 = vpack.c.bf16 %v547_v45, %v535_v43  ;;  %v27663_v17 = vand.u32 4294901760, %v24068_v61  ;;  %v27981_v29 = vld [vmem:[#allocation24_spill] sm:$0xff] }
  0xc7   :  { %v24359_v1 = vand.u32 4294901760, %v349_v21  ;;  %v1513_v10 = vand.u32 4294901760, %v1512_v56  ;;  %v1525_v30 = vand.u32 4294901760, %v1524_v31  ;;  %v27660_v58 = vand.u32 4294901760, %v24070_v16  ;;  %v27994_v48 = vld [vmem:[#allocation60_spill] sm:$0xff] }
  0xc8   :  { %v21701_v24 = vpack.c.bf16 %v1519_v44, %v1507_v18  ;;  %v27661_v34 = vand.u32 4294901760, %v24076_v19  ;;  %v21519_v9 = vpack.c.bf16 %v27982_v35, %v27981_v29  ;;  %v1530_v21 = vsub.f32 %v24068_v61, %v27663_v17  ;;  %21516 = vmatpush1.bf16.msra.mxu0 %v21515_v57  ;;  %v27988_v17 = vld [vmem:[#allocation49_spill] sm:$0xff]  ;;  %v27993_v29 = vld [vmem:[#allocation58_spill] sm:$0xff] }
  0xc9   :  { %27980 = vst [vmem:[#allocation107_spill] sm:$0xff] %v24359_v1  ;;  %351 = vmatmul.mubr.f32.gmra.mrb[6].mxu0 %v24359_v1  ;;  %1353 = vmatmul.mubr.f32.gmra.mrb[6].mxu1 %v24359_v1  ;;  %v27662_v45 = vand.u32 4294901760, %v24085_v3  ;;  %v21703_v44 = vpack.c.bf16 %v1525_v30, %v1513_v10  ;;  %v1542_v18 = vsub.f32 %v24070_v16, %v27660_v58  ;;  %v27992_v35 = vld [vmem:[#allocation57_spill] sm:$0xff]  ;;  %v27997_v16 = vld [vmem:[#allocation64_spill] sm:$0xff]  ;;  %v27998_v25 = vand.u32 4294901760, %v23862_v42 }
  0xca   :  { %21702 = vmatprep.subr.bf16.mxu1 %v21701_v24  ;;  %v1536_v56 = vsub.f32 %v24076_v19, %v27661_v34  ;;  %581 = vmatprep.mubr.f32.mxu0 %v27951_v23  ;;  %v1531_v43 = vand.u32 4294901760, %v1530_v21  ;;  %v21521_v57 = vpack.c.bf16 %v23852_v28, %v23849_v26  ;;  %v27983_v24 = vld [vmem:[#allocation91_spill] sm:$0xff]  ;;  %v21709_v21 = vpack.c.bf16 %v23866_v47, %v23862_v42  ;;  %v27991_v28 = vld [vmem:[#allocation54_spill] sm:$0xff] }
  0xcb   :  { %21518 = vmatprep.subr.bf16.mxu0 %v21517_v20  ;;  %v1548_v31 = vsub.f32 %v24085_v3, %v27662_v45  ;;  %21704 = vmatpush1.bf16.msra.mxu1 %v21703_v44  ;;  %v1543_v10 = vand.u32 4294901760, %v1542_v18  ;;  %v21523_v20 = vpack.c.bf16 %v23860_v41, %v23858_v40  ;;  %v21525_v44 = vpack.c.bf16 %v23881_v62, %v23874_v53  ;;  %v27990_v41 = vld [vmem:[#allocation52_spill] sm:$0xff]  ;;  %v27995_v3 = vld [vmem:[#allocation61_spill] sm:$0xff] }
  0xcc   :  { %v1537_v30 = vand.u32 4294901760, %v1536_v56  ;;  %1583 = vmatprep.mubr.f32.mxu1 %v27951_v23  ;;  %v21711_v18 = vpack.c.bf16 %v23872_v51, %v23870_v49  ;;  %v21715_v56 = vpack.c.bf16 %v23900_v15, %v23898_v14  ;;  %v21723_v26 = vpack.c.bf16 %v27955_v54, %v27991_v28 }
  0xcd   :  { %583 = vmatmul.mubr.f32.vlgmr.msra.gmra.mrb[0].mxu0 %v27983_v24  ;;  %v1549_v58 = vand.u32 4294901760, %v1548_v31  ;;  %v21705_v34 = vpack.c.bf16 %v1543_v10, %v1531_v43  ;;  %v21717_v43 = vpack.c.bf16 %v23922_v59, %v23919_v55  ;;  %v27984_v31 = vld [vmem:[#allocation43_spill] sm:$0xff]  ;;  %v27985_v10 = vld [vmem:[#allocation45_spill] sm:$0xff]  ;;  %v21537_v8 = vpack.c.bf16 %v27993_v29, %v27992_v35 }
  0xce   :  { %21520 = vmatpush1.bf16.msra.mxu0 %v21519_v9  ;;  %588 = vmatprep.mubr.f32.mxu0 %v27951_v23  ;;  %v21527_v9 = vpack.c.bf16 %v23887_v5, %v23883_v63  ;;  %v21539_v19 = vpack.c.bf16 %v27995_v3, %v27994_v48  ;;  %v27999_v6 = vand.u32 4294901760, %v23866_v47  ;;  %v28001_v2 = vand.u32 4294901760, %v23872_v51 }
  0xcf   :  { %v21707_v45 = vpack.c.bf16 %v1549_v58, %v1537_v30  ;;  %21522 = vmatprep.subr.bf16.mxu0 %v21521_v57  ;;  %21706 = vmatprep.subr.bf16.mxu1 %v21705_v34  ;;  %v21713_v58 = vpack.c.bf16 %v23894_v12, %v23891_v7  ;;  %v21529_v34 = vpack.c.bf16 %v23909_v37, %v23907_v36  ;;  %v27986_v30 = vld [vmem:[#allocation46_spill] sm:$0xff]  ;;  %v28002_v33 = vand.u32 4294901760, %v23874_v53 }
  0xd0   :  { %v21719_v57 = vpack.c.bf16 %v27984_v31, %v23926_v0  ;;  %v24431_v27 = vpack.c.bf16 %v27999_v6, %v27998_v25  ;;  %v28003_v60 = vand.u32 4294901760, %v23881_v62  ;;  %v28004_v42 = vand.u32 4294901760, %v23883_v63 }
  0xd1   :  { %21708 = vmatpush1.bf16.msra.mxu1 %v21707_v45  ;;  %590 = vmatmul.mubr.f32.gmra.mrb[2].mxu0 %v24224_v13  ;;  %v21531_v45 = vpack.c.bf16 %v23915_v52, %v23913_v50  ;;  %v28005_v47 = vand.u32 4294901760, %v23887_v5  ;;  %v28007_v51 = vand.u32 4294901760, %v23894_v12  ;;  %v28008_v53 = vand.u32 4294901760, %v23898_v14 }
  0xd2   :  { %21524 = vmatpush1.bf16.msra.mxu0 %v21523_v20  ;;  %21710 = vmatprep.subr.bf16.mxu1 %v21709_v21  ;;  %v21533_v20 = vpack.c.bf16 %v27986_v30, %v27985_v10  ;;  %v27987_v21 = vld [vmem:[#allocation48_spill] sm:$0xff]  ;;  %v24443_v32 = vpack.c.bf16 %v28003_v60, %v28002_v33  ;;  %v28009_v62 = vand.u32 4294901760, %v23900_v15  ;;  %v28010_v63 = vand.u32 4294901760, %v23907_v36 }
  0xd3   :  { %21526 = vmatprep.subr.bf16.mxu0 %v21525_v44  ;;  %595 = vmatprep.mubr.f32.mxu0 %v27951_v23  ;;  %v21535_v1 = vpack.c.bf16 %v27988_v17, %v27987_v21  ;;  %v27989_v44 = vld [vmem:[#allocation51_spill] sm:$0xff]  ;;  %v24450_v6 = vpack.c.bf16 %v28005_v47, %v28004_v42  ;;  %v28011_v5 = vand.u32 4294901760, %v23909_v37  ;;  %v28013_v12 = vand.u32 4294901760, %v23915_v52 }
  0xd4   :  { %1585 = vmatmul.mubr.f32.vlgmr.msra.gmra.mrb[0].mxu1 %v27983_v24  ;;  %v21721_v40 = vpack.c.bf16 %v27990_v41, %v27989_v44  ;;  %v27996_v24 = vld [vmem:[#allocation63_spill] sm:$0xff]  ;;  %v24462_v33 = vpack.c.bf16 %v28009_v62, %v28008_v53  ;;  %v28014_v14 = vand.u32 4294901760, %v23919_v55  ;;  %v28015_v15 = vand.u32 4294901760, %v23922_v59  ;;  %v28039_v53 = vld [vmem:[#allocation72_spill] sm:$0xff] }
  0xd5   :  { %21712 = vmatpush1.bf16.msra.mxu1 %v21711_v18  ;;  %v21725_v61 = vpack.c.bf16 %v27997_v16, %v27996_v24  ;;  %597 = vmatmul.mubr.f32.gmra.mrb[4].mxu0 %v24268_v39  ;;  %v28000_v18 = vand.u32 4294901760, %v23870_v49  ;;  %v28006_v49 = vand.u32 4294901760, %v23891_v7  ;;  %v24470_v25 = vpack.c.bf16 %v28011_v5, %v28010_v63  ;;  %v28041_v5 = vld [vmem:[#allocation74_spill] sm:$0xff] }
  0xd6   :  { %21528 = vmatpush1.bf16.msra.mxu0 %v21527_v9  ;;  %21714 = vmatprep.subr.bf16.mxu1 %v21713_v58  ;;  %v28012_v7 = vand.u32 4294901760, %v23913_v50  ;;  %v24482_v9 = vpack.c.bf16 %v28015_v15, %v28014_v14  ;;  %v28016_v36 = vand.u32 4294901760, %v23926_v0  ;;  %v28017_v37 = vand.u32 4294901760, %v27984_v31 }
  0xd7   :  { %v24437_v4 = vpack.c.bf16 %v28001_v2, %v28000_v18  ;;  %21530 = vmatprep.subr.bf16.mxu0 %v21529_v34  ;;  %1590 = vmatprep.mubr.f32.mxu1 %v27951_v23  ;;  %v24456_v2 = vpack.c.bf16 %v28007_v51, %v28006_v49  ;;  %v28018_v50 = vand.u32 4294901760, %v27985_v10  ;;  %v28019_v52 = vand.u32 4294901760, %v27986_v30 }
  0xd8   :  { %1592 = vmatmul.mubr.f32.gmra.mrb[2].mxu1 %v24224_v13  ;;  %602 = vmatprep.mubr.f32.mxu0 %v27951_v23  ;;  %v24476_v60 = vpack.c.bf16 %v28013_v12, %v28012_v7  ;;  %v24489_v58 = vpack.c.bf16 %v28017_v37, %v28016_v36  ;;  %v28020_v55 = vand.u32 4294901760, %v27987_v21  ;;  %v28021_v59 = vand.u32 4294901760, %v27988_v17  ;;  %v28043_v12 = vld [vmem:[#allocation75_spill] sm:$0xff]  ;;  %v28045_v36 = vld [vmem:[#allocation77_spill] sm:$0xff] }
  0xd9   :  { %21716 = vmatpush1.bf16.msra.mxu1 %v21715_v56  ;;  %604 = vmatmul.mubr.f32.gmra.mrb[6].mxu0 %v24313_v38  ;;  %v24495_v34 = vpack.c.bf16 %v28019_v52, %v28018_v50  ;;  %v28022_v0 = vand.u32 4294901760, %v27989_v44  ;;  %v28023_v56 = vand.u32 4294901760, %v27990_v41  ;;  %v28024_v10 = vand.u32 4294901760, %v27991_v28  ;;  %v28047_v50 = vld [vmem:[#allocation78_spill] sm:$0xff] }
  0xda   :  { %v24501_v18 = vpack.c.bf16 %v28021_v59, %v28020_v55  ;;  %21532 = vmatpush1.bf16.msra.mxu0 %v21531_v45  ;;  %21718 = vmatprep.subr.bf16.mxu1 %v21717_v43  ;;  %v28025_v30 = vand.u32 4294901760, %v27955_v54  ;;  %v28026_v21 = vand.u32 4294901760, %v27992_v35  ;;  %v28027_v17 = vand.u32 4294901760, %v27993_v29  ;;  %v28049_v59 = vld [vmem:[#allocation80_spill] sm:$0xff] }
  0xdb   :  { %v24507_v31 = vpack.c.bf16 %v28023_v56, %v28022_v0  ;;  %21534 = vmatprep.subr.bf16.mxu0 %v21533_v20  ;;  %1597 = vmatprep.mubr.f32.mxu1 %v27951_v23  ;;  %v28028_v45 = vand.u32 4294901760, %v27994_v48  ;;  %v28029_v41 = vand.u32 4294901760, %v27995_v3  ;;  %v28030_v28 = vand.u32 4294901760, %v27996_v24  ;;  %v28035_v48 = vld [vmem:[#allocation69_spill] sm:$0xff]  ;;  %v28037_v24 = vld [vmem:[#allocation71_spill] sm:$0xff] }
  0xdc   :  { %v24513_v42 = vpack.c.bf16 %v28025_v30, %v28024_v10  ;;  %v24519_v47 = vpack.c.bf16 %v28027_v17, %v28026_v21  ;;  %v28031_v54 = vand.u32 4294901760, %v27997_v16  ;;  %v28032_v35 = vand.u32 4294901760, %v27964_v22  ;;  %1599 = vmatmul.mubr.f32.gmra.mrb[4].mxu1 %v24268_v39  ;;  %738 = vmatprep.mubr.f32.mxu0 %v27951_v23  ;;  %v28051_v56 = vld [vmem:[#allocation81_spill] sm:$0xff]  ;;  %v28053_v21 = vld [vmem:[#allocation83_spill] sm:$0xff] }
  0xdd   :  { %v24526_v43 = vpack.c.bf16 %v28029_v41, %v28028_v45  ;;  %v28033_v29 = vand.u32 4294901760, %v27965_v11  ;;  %v28034_v3 = vand.u32 4294901760, %v23991_v46  ;;  %v28036_v20 = vand.u32 4294901760, %v28035_v48  ;;  %21720 = vmatpush1.bf16.msra.mxu1 %v21719_v57  ;;  %1604 = vmatprep.mubr.f32.mxu1 %v27951_v23  ;;  %v28055_v45 = vld [vmem:[#allocation84_spill] sm:$0xff]  ;;  %v28057_v57 = vld [vmem:[#allocation86_spill] sm:$0xff] }
  0xde   :  { %v24532_v44 = vpack.c.bf16 %v28031_v54, %v28030_v28  ;;  %v28038_v16 = vand.u32 4294901760, %v28037_v24  ;;  %v28040_v62 = vand.u32 4294901760, %v28039_v53  ;;  %v28042_v7 = vand.u32 4294901760, %v28041_v5  ;;  %21536 = vmatpush1.bf16.msra.mxu0 %v21535_v1  ;;  %21722 = vmatprep.subr.bf16.mxu1 %v21721_v40  ;;  %v28069_v1 = vld [vmem:[#allocation97_spill] sm:$0xff] }
  0xdf   :  { %v24538_v49 = vpack.c.bf16 %v28033_v29, %v28032_v35  ;;  %v24546_v51 = vpack.c.bf16 %v28036_v20, %v28034_v3  ;;  %v28044_v14 = vand.u32 4294901760, %v28043_v12  ;;  %v28046_v37 = vand.u32 4294901760, %v28045_v36  ;;  %v28059_v35 = vld [vmem:[#allocation87_spill] sm:$0xff]  ;;  %v28061_v20 = vld [vmem:[#allocation89_spill] sm:$0xff]  ;;  %21538 = vmatprep.subr.bf16.mxu0 %v21537_v8 }
  0xe0   :  { %v24552_v63 = vpack.c.bf16 %v28040_v62, %v28038_v16  ;;  %v28048_v52 = vand.u32 4294901760, %v28047_v50  ;;  %v28050_v0 = vand.u32 4294901760, %v28049_v59  ;;  %v28052_v10 = vand.u32 4294901760, %v28051_v56  ;;  %v28063_v62 = vld [vmem:[#allocation90_spill] sm:$0xff]  ;;  %1606 = vmatmul.mubr.f32.gmra.mrb[6].mxu1 %v24313_v38 }
  0xe1   :  { %v24558_v15 = vpack.c.bf16 %v28044_v14, %v28042_v7  ;;  %v28054_v17 = vand.u32 4294901760, %v28053_v21  ;;  %v28056_v41 = vand.u32 4294901760, %v28055_v45  ;;  %v28058_v54 = vand.u32 4294901760, %v28057_v57  ;;  %21724 = vmatpush1.bf16.msra.mxu1 %v21723_v26  ;;  %1740 = vmatprep.mubr.f32.mxu1 %v27951_v23 }
  0xe2   :  { %v24565_v55 = vpack.c.bf16 %v28048_v52, %v28046_v37  ;;  %v24571_v30 = vpack.c.bf16 %v28052_v10, %v28050_v0  ;;  %v28060_v29 = vand.u32 4294901760, %v28059_v35  ;;  %v28062_v16 = vand.u32 4294901760, %v28061_v20  ;;  %v28065_v37 = vld [vmem:[#allocation94_spill] sm:$0xff]  ;;  %v28067_v0 = vld [vmem:[#allocation95_spill] sm:$0xff]  ;;  %21540 = vmatpush1.bf16.msra.mxu0 %v21539_v19  ;;  %21726 = vmatprep.subr.bf16.mxu1 %v21725_v61 }
  0xe3   :  { %v24577_v28 = vpack.c.bf16 %v28056_v41, %v28054_v17  ;;  %v28064_v7 = vand.u32 4294901760, %v28063_v62  ;;  %v28066_v52 = vand.u32 4294901760, %v28065_v37  ;;  %v28068_v10 = vand.u32 4294901760, %v28067_v0 }
  0xe4   :  { %v24583_v3 = vpack.c.bf16 %v28060_v29, %v28058_v54  ;;  %v21541_v40 = vpack.c.bf16 %v28035_v48, %v23991_v46  ;;  %v28070_v41 = vand.u32 4294901760, %v28069_v1  ;;  %v28071_v54 = vld [vmem:[#allocation99_spill] sm:$0xff]  ;;  %v21543_v8 = vpack.c.bf16 %v28039_v53, %v28037_v24  ;;  %v28073_v24 = vld [vmem:[#allocation21_spill] sm:$0xff]  ;;  %v28074_v53 = vld [vmem:[#allocation92_spill] sm:$0xff] }
  0xe5   :  { %v24589_v14 = vpack.c.bf16 %v28064_v7, %v28062_v16  ;;  %v24595_v17 = vpack.c.bf16 %v28068_v10, %v28066_v52  ;;  %v28072_v29 = vand.u32 4294901760, %v28071_v54  ;;  %v21727_v16 = vpack.c.bf16 %v27965_v11, %v27964_v22  ;;  %v28086_v7 = vld [vmem:[#allocation38_spill] sm:$0xff]  ;;  %v28088_v52 = vld [vmem:[#allocation40_spill] sm:$0xff] }
  0xe6   :  { %v21729_v46 = vpack.c.bf16 %v28043_v12, %v28041_v5  ;;  %21542 = vmatprep.subr.bf16.mxu0 %v21541_v40  ;;  %v21545_v48 = vpack.c.bf16 %v28051_v56, %v28049_v59  ;;  %v21731_v26 = vpack.c.bf16 %v28047_v50, %v28045_v36  ;;  %v21547_v19 = vpack.c.bf16 %v28055_v45, %v28053_v21  ;;  %v28075_v12 = vld [vmem:[#allocation25_spill] sm:$0xff]  ;;  %v28076_v36 = vld [vmem:[#allocation27_spill] sm:$0xff]  ;;  %v28078_v59 = vld [vmem:[#allocation30_spill] sm:$0xff] }
  0xe7   :  { %v24603_v39 = vpack.c.bf16 %v28072_v29, %v28070_v41  ;;  %21728 = vmatpush1.bf16.msra.mxu1 %v21727_v16  ;;  %21544 = vmatpush1.bf16.msra.mxu0 %v21543_v8  ;;  %v21733_v11 = vpack.c.bf16 %v28059_v35, %v28057_v57  ;;  %v21735_v61 = vpack.c.bf16 %v28063_v62, %v28061_v20  ;;  %v28077_v50 = vld [vmem:[#allocation55_spill] sm:$0xff]  ;;  %v28079_v56 = vld [vmem:[#allocation33_spill] sm:$0xff]  ;;  %v28081_v45 = vld [vmem:[#allocation34_spill] sm:$0xff] }
  0xe8   :  { %21730 = vmatprep.subr.bf16.mxu1 %v21729_v46  ;;  %21546 = vmatprep.subr.bf16.mxu0 %v21545_v48  ;;  %v21737_v22 = vpack.c.bf16 %v28067_v0, %v28065_v37  ;;  %v21739_v5 = vpack.c.bf16 %v28071_v54, %v28069_v1  ;;  %v28080_v21 = vld [vmem:[#allocation35_spill] sm:$0xff]  ;;  %v28082_v57 = vld [vmem:[#allocation102_spill] sm:$0xff]  ;;  %v28083_v35 = vld [vmem:[#allocation36_spill] sm:$0xff] }
  0xe9   :  { %v28084_v20 = vld [vmem:[#allocation37_spill] sm:$0xff]  ;;  %v28085_v62 = vld [vmem:[#allocation39_spill] sm:$0xff]  ;;  %v28090_v10 = vld [vmem:[#allocation44_spill] sm:$0xff] }
  0xea   :  { %v28087_v37 = vld [vmem:[#allocation105_spill] sm:$0xff]  ;;  %v28091_v40 = vld [vmem:[#allocation42_spill] sm:$0xff]  ;;  %v28092_v1 = vld [vmem:[#allocation47_spill] sm:$0xff] }
  0xeb   :  { %21732 = vmatpush1.bf16.msra.mxu1 %v21731_v26  ;;  %21548 = vmatpush1.bf16.msra.mxu0 %v21547_v19  ;;  %v28089_v0 = vld [vmem:[#allocation41_spill] sm:$0xff]  ;;  %v28093_v41 = vld [vmem:[#allocation50_spill] sm:$0xff]  ;;  %v28094_v54 = vld [vmem:[#allocation56_spill] sm:$0xff] }
  0xec   :  { %21734 = vmatprep.subr.bf16.mxu1 %v21733_v11  ;;  %21550 = vmatprep.subr.bf16.mxu0 %v28073_v24  ;;  %v28095_v29 = vld [vmem:[#allocation53_spill] sm:$0xff]  ;;  %v28096_v16 = vld [vmem:[#allocation59_spill] sm:$0xff]  ;;  %v28097_v8 = vld [vmem:[#allocation62_spill] sm:$0xff] }
  0xed   :  { %v28098_v46 = vld [vmem:[#allocation68_spill] sm:$0xff]  ;;  %v28099_v48 = vld [vmem:[#allocation65_spill] sm:$0xff]  ;;  %v28100_v26 = vld [vmem:[#allocation70_spill] sm:$0xff] }
  0xee   :  { %741 = vmatmul.mubr.f32.vlgmr.msra.gmra.mrb[0].mxu0 %v28074_v53  ;;  %v28101_v19 = vld [vmem:[#allocation73_spill] sm:$0xff]  ;;  %v28102_v11 = vld [vmem:[#allocation79_spill] sm:$0xff] }
  0xef   :  { %21736 = vmatpush1.bf16.msra.mxu1 %v21735_v61  ;;  %21552 = vmatpush1.bf16.msra.mxu0 %v28075_v12  ;;  %v28103_v61 = vld [vmem:[#allocation22_spill] sm:$0xff] }
  0xf0   :  { %21738 = vmatprep.subr.bf16.mxu1 %v21737_v22  ;;  %21554 = vmatprep.subr.bf16.mxu0 %v28076_v36  ;;  %v28104_v22 = vand.u32 4294901760, %v28103_v61 }
  0xf1   :  { %746 = vmatprep.mubr.f32.mxu0 %v27951_v23 }
  0xf2   :  { %749 = vmatmul.mubr.f32.gmra.mrb[2].mxu0 %v28077_v50 }
  0xf3   :  { %21740 = vmatpush1.bf16.msra.mxu1 %v21739_v5  ;;  %21556 = vmatpush1.bf16.msra.mxu0 %v28078_v59  ;;  %v28105_v5 = vld [vmem:[#allocation23_spill] sm:$0xff] }
  0xf4   :  { %21742 = vmatprep.subr.bf16.mxu1 %v28079_v56  ;;  %21558 = vmatprep.subr.bf16.mxu0 %v28080_v21 }
  0xf5   :  { %754 = vmatprep.mubr.f32.mxu0 %v27951_v23 }
  0xf6   :  { %1743 = vmatmul.mubr.f32.vlgmr.msra.gmra.mrb[0].mxu1 %v28074_v53  ;;  %757 = vmatmul.mubr.f32.gmra.mrb[4].mxu0 %v28082_v57  ;;  %v28108_v53 = vld [vmem:[#allocation82_spill] sm:$0xff] }
  0xf7   :  { %21744 = vmatpush1.bf16.msra.mxu1 %v28081_v45  ;;  %21560 = vmatpush1.bf16.msra.mxu0 %v28083_v35 }
  0xf8   :  { %21746 = vmatprep.subr.bf16.mxu1 %v28084_v20  ;;  %21562 = vmatprep.subr.bf16.mxu0 %v28085_v62 }
  0xf9   :  { %1748 = vmatprep.mubr.f32.mxu1 %v27951_v23  ;;  %762 = vmatprep.mubr.f32.mxu0 %v27951_v23 }
  0xfa   :  { %1751 = vmatmul.mubr.f32.gmra.mrb[2].mxu1 %v28077_v50  ;;  %765 = vmatmul.mubr.f32.gmra.mrb[6].mxu0 %v28087_v37  ;;  %v28107_v50 = vld [vmem:[#allocation76_spill] sm:$0xff] }
  0xfb   :  { %21748 = vmatpush1.bf16.msra.mxu1 %v28086_v7  ;;  %21564 = vmatpush1.bf16.msra.mxu0 %v28088_v52 }
  0xfc   :  { %21750 = vmatprep.subr.bf16.mxu1 %v28089_v0  ;;  %21566 = vmatprep.subr.bf16.mxu0 %v28090_v10 }
  0xfd   :  { %1756 = vmatprep.mubr.f32.mxu1 %v27951_v23  ;;  %867 = vmatprep.mubr.f32.mxu0 %v27951_v23 }
  0xfe   :  { %1759 = vmatmul.mubr.f32.gmra.mrb[4].mxu1 %v28082_v57 }
  0xff   :  { %21752 = vmatpush1.bf16.msra.mxu1 %v28091_v40  ;;  %1764 = vmatprep.mubr.f32.mxu1 %v27951_v23 }
 0x100   :  { %21568 = vmatpush1.bf16.msra.mxu0 %v28092_v1  ;;  %21754 = vmatprep.subr.bf16.mxu1 %v28093_v41  ;;  %v28118_v1 = vld [vmem:[#allocation88_spill] sm:$0xff] }
 0x101   :  { %21570 = vmatprep.subr.bf16.mxu0 %v28094_v54 }
 0x102   :  { %1767 = vmatmul.mubr.f32.gmra.mrb[6].mxu1 %v28087_v37  ;;  %v28106_v37 = vand.u32 4294901760, %v28105_v5  ;;  %v28121_v5 = vld [vmem:[#allocation31_spill] sm:$0xff] }
 0x103   :  { %21756 = vmatpush1.bf16.msra.mxu1 %v28095_v29  ;;  %1869 = vmatprep.mubr.f32.mxu1 %v27951_v23 }
 0x104   :  { %21572 = vmatpush1.bf16.msra.mxu0 %v28096_v16  ;;  %21758 = vmatprep.subr.bf16.mxu1 %v28097_v8  ;;  %v21581_v57 = vpack.c.bf16 %v28106_v37, %v28104_v22  ;;  %v28109_v8 = vld [vmem:[#allocation85_spill] sm:$0xff]  ;;  %v28119_v37 = vld [vmem:[#allocation96_spill] sm:$0xff] }
 0x105   :  { %21574 = vmatprep.subr.bf16.mxu0 %v28098_v46  ;;  %v28110_v46 = vld [vmem:[#allocation24_spill] sm:$0xff]  ;;  %v28120_v22 = vld [vmem:[#allocation93_spill] sm:$0xff] }
 0x106   :  { %v28111_v16 = vand.u32 4294901760, %v28110_v46 }
 0x107   :  { %21760 = vmatpush1.bf16.msra.mxu1 %v28099_v48  ;;  %v28112_v48 = vld [vmem:[#allocation26_spill] sm:$0xff] }
 0x108   :  { %21576 = vmatpush1.bf16.msra.mxu0 %v28100_v26  ;;  %21762 = vmatprep.subr.bf16.mxu1 %v28101_v19  ;;  %v28113_v29 = vand.u32 4294901760, %v28112_v48  ;;  %v28114_v19 = vld [vmem:[#allocation28_spill] sm:$0xff] }
 0x109   :  { %21578 = vmatprep.subr.bf16.mxu0 %v28102_v11  ;;  %v28115_v54 = vand.u32 4294901760, %v28114_v19  ;;  %v28116_v11 = vld [vmem:[#allocation29_spill] sm:$0xff] }
 0x10a   :  { %v21583_v26 = vpack.c.bf16 %v28113_v29, %v28111_v16  ;;  %v28117_v41 = vand.u32 4294901760, %v28116_v11  ;;  %v28126_v29 = vld [vmem:[#allocation101_spill] sm:$0xff]  ;;  %v28152_v11 = vld [vmem:[#allocation100_spill] sm:$0xff] }
 0x10b   :  { %21764 = vmatpush1.bf16.msra.mxu1 %v28107_v50 }
 0x10c   :  { %21580 = vmatpush1.bf16.msra.mxu0 %v28108_v53  ;;  %21766 = vmatprep.subr.bf16.mxu1 %v28109_v8  ;;  %v21585_v61 = vpack.c.bf16 %v28117_v41, %v28115_v54  ;;  %v28122_v8 = vand.u32 4294901760, %v28121_v5  ;;  %v28123_v53 = vld [vmem:[#allocation32_spill] sm:$0xff] }
 0x10d   :  { %21582 = vmatprep.subr.bf16.mxu0 %v21581_v57  ;;  %v28124_v46 = vand.u32 4294901760, %v28123_v53  ;;  %v28125_v57 = vld [vmem:[#allocation98_spill] sm:$0xff]  ;;  %v28127_v53 = vld [vmem:[#allocation103_spill] sm:$0xff] }
 0x10f   :  { %21768 = vmatpush1.bf16.msra.mxu1 %v28118_v1  ;;  %871 = vmatmul.mubr.f32.vlgmr.msra.gmra.mrb[0].mxu0 %v28119_v37  ;;  %v21587_v50 = vpack.c.bf16 %v28124_v46, %v28122_v8  ;;  %v24845_v46 = vld [vmem:[#allocation9 + $0x378] sm:$0xff] }
 0x110   :  { %21584 = vmatpush1.bf16.msra.mxu0 %v21583_v26  ;;  %21770 = vmatprep.subr.bf16.mxu1 %v28120_v22 }
 0x111   :  { %21586 = vmatprep.subr.bf16.mxu0 %v21585_v61  ;;  %876 = vmatprep.mubr.f32.mxu0 %v27951_v23  ;;  %v24839_v61 = vld [vmem:[#allocation9 + $0x340] sm:$0xff] }
 0x113   :  { %21772 = vmatpush1.bf16.msra.mxu1 %v28125_v57  ;;  %880 = vmatmul.mubr.f32.gmra.mrb[2].mxu0 %v28126_v29 }
 0x114   :  { %21588 = vmatpush1.bf16.msra.mxu0 %v21587_v50  ;;  %21774 = vmatprep.subr.bf16.mxu1 %v24431_v27  ;;  %v28128_v27 = vld [vmem:[#allocation106_spill] sm:$0xff]  ;;  %v152_v50 = vld [vmem:[#allocation9 + $0x180] sm:$0xff] }
 0x115   :  { %21590 = vmatprep.subr.bf16.mxu0 %v24443_v32  ;;  %885 = vmatprep.mubr.f32.mxu0 %v27951_v23  ;;  %v28130_v32 = vld [vmem:[#allocation67_spill] sm:$0xff] }
 0x116   :  { %1873 = vmatmul.mubr.f32.vlgmr.msra.gmra.mrb[0].mxu1 %v28119_v37  ;;  %v25122_v37 = vld [vmem:[#allocation9 + $0x288] sm:$0xff] }
 0x117   :  { %21776 = vmatpush1.bf16.msra.mxu1 %v24437_v4  ;;  %889 = vmatmul.mubr.f32.gmra.mrb[4].mxu0 %v28127_v53  ;;  %v28129_v4 = vld [vmem:[#allocation91_spill] sm:$0xff] }
 0x118   :  { %21592 = vmatpush1.bf16.msra.mxu0 %v24450_v6  ;;  %21778 = vmatprep.subr.bf16.mxu1 %v24456_v2  ;;  %v28132_v6 = vld [vmem:[#allocation50_spill] sm:$0xff]  ;;  %v28133_v2 = vld [vmem:[#allocation56_spill] sm:$0xff] }
 0x119   :  { %21594 = vmatprep.subr.bf16.mxu0 %v24470_v25  ;;  %1878 = vmatprep.mubr.f32.mxu1 %v27951_v23  ;;  %v28135_v25 = vld [vmem:[#allocation59_spill] sm:$0xff] }
 0x11a   :  { %1882 = vmatmul.mubr.f32.gmra.mrb[2].mxu1 %v28126_v29  ;;  %894 = vmatprep.mubr.f32.mxu0 %v27951_v23 }
 0x11b   :  { %21780 = vmatpush1.bf16.msra.mxu1 %v24462_v33  ;;  %898 = vmatmul.mubr.f32.gmra.mrb[6].mxu0 %v28128_v27  ;;  %v28134_v33 = vld [vmem:[#allocation53_spill] sm:$0xff] }
 0x11c   :  { %21596 = vmatpush1.bf16.msra.mxu0 %v24476_v60  ;;  %21782 = vmatprep.subr.bf16.mxu1 %v24482_v9  ;;  %v28136_v60 = vld [vmem:[#allocation62_spill] sm:$0xff]  ;;  %v28137_v9 = vld [vmem:[#allocation68_spill] sm:$0xff] }
 0x11d   :  { %21598 = vmatprep.subr.bf16.mxu0 %v24495_v34  ;;  %1887 = vmatprep.mubr.f32.mxu1 %v27951_v23  ;;  %v28139_v34 = vld [vmem:[#allocation70_spill] sm:$0xff] }
 0x11e   :  { %1891 = vmatmul.mubr.f32.gmra.mrb[4].mxu1 %v28127_v53  ;;  %1064 = vmatprep.mubr.f32.mxu0 %v27951_v23 }
 0x11f   :  { %21784 = vmatpush1.bf16.msra.mxu1 %v24489_v58  ;;  %1896 = vmatprep.mubr.f32.mxu1 %v27951_v23  ;;  %v28138_v58 = vld [vmem:[#allocation65_spill] sm:$0xff] }
 0x120   :  { %21600 = vmatpush1.bf16.msra.mxu0 %v24501_v18  ;;  %21786 = vmatprep.subr.bf16.mxu1 %v24507_v31  ;;  %v28140_v18 = vld [vmem:[#allocation73_spill] sm:$0xff]  ;;  %v28141_v31 = vld [vmem:[#allocation79_spill] sm:$0xff] }
 0x121   :  { %21602 = vmatprep.subr.bf16.mxu0 %v24519_v47  ;;  %v117_v47 = vld [vmem:[#allocation9 + $0x68] sm:$0xff] }
 0x122   :  { %1900 = vmatmul.mubr.f32.gmra.mrb[6].mxu1 %v28128_v27  ;;  %v25037_v27 = vld [vmem:[#allocation9 + $0x1b0] sm:$0xff] }
 0x123   :  { %21788 = vmatpush1.bf16.msra.mxu1 %v24513_v42  ;;  %2066 = vmatprep.mubr.f32.mxu1 %v27951_v23  ;;  %v110_v42 = vld [vmem:[#allocation9 + $0x30] sm:$0xff] }
 0x124   :  { %21604 = vmatpush1.bf16.msra.mxu0 %v24526_v43  ;;  %21790 = vmatprep.subr.bf16.mxu1 %v24532_v44  ;;  %v28142_v43 = vld [vmem:[#allocation76_spill] sm:$0xff]  ;;  %v28143_v44 = vld [vmem:[#allocation82_spill] sm:$0xff] }
 0x125   :  { %21606 = vmatprep.subr.bf16.mxu0 %v24546_v51  ;;  %v3223_v51 = vand.u32 4294901760, %v110_v42 }
 0x127   :  { %21792 = vmatpush1.bf16.msra.mxu1 %v24538_v49  ;;  %v28144_v49 = vld [vmem:[#allocation85_spill] sm:$0xff]  ;;  %v24825_v41 = vsub.f32 %v110_v42, %v3223_v51 }
 0x128   :  { %21608 = vmatpush1.bf16.msra.mxu0 %v24552_v63  ;;  %21794 = vmatprep.subr.bf16.mxu1 %v24558_v15  ;;  %v3226_v63 = vand.u32 4294901760, %v117_v47  ;;  %v24780_v15 = vld [vmem:[#allocation9 + $0xa0] sm:$0xff] }
 0x129   :  { %21610 = vmatprep.subr.bf16.mxu0 %v24571_v30  ;;  %28149 = vst [vmem:[#allocation49_spill] sm:$0xff] %v24825_v41 }
 0x12a   :  { %v24788_v30 = vpack.c.bf16 %v3226_v63, %v3223_v51  ;;  %v24832_v48 = vsub.f32 %v117_v47, %v3226_v63 }
 0x12b   :  { %21796 = vmatpush1.bf16.msra.mxu1 %v24565_v55  ;;  %v24782_v55 = vld [vmem:[#allocation9 + $0xd8] sm:$0xff] }
 0x12c   :  { %21612 = vmatpush1.bf16.msra.mxu0 %v24577_v28  ;;  %21798 = vmatprep.subr.bf16.mxu1 %v24583_v3  ;;  %28145 = vst [vmem:[#allocation43_spill] sm:$0xff] %v24788_v30  ;;  %v3229_v28 = vand.u32 4294901760, %v24780_v15  ;;  %v3232_v3 = vand.u32 4294901760, %v24782_v55  ;;  %28151 = vst [vmem:[#allocation52_spill] sm:$0xff] %v24832_v48 }
 0x12d   :  { %21614 = vmatprep.subr.bf16.mxu0 %v28073_v24 }
 0x12e   :  { %v24796_v24 = vpack.c.bf16 %v3232_v3, %v3229_v28 }
 0x12f   :  { %21800 = vmatpush1.bf16.msra.mxu1 %v24589_v14  ;;  %1066 = vmatmul.mubr.f32.vlgmr.msra.gmra.mrb[0].mxu0 %v28129_v4  ;;  %v138_v14 = vld [vmem:[#allocation9 + $0x110] sm:$0xff] }
 0x130   :  { %21616 = vmatpush1.bf16.msra.mxu0 %v28075_v12  ;;  %21802 = vmatprep.subr.bf16.mxu1 %v24595_v17  ;;  %v145_v17 = vld [vmem:[#allocation9 + $0x148] sm:$0xff]  ;;  %28146 = vst [vmem:[#allocation45_spill] sm:$0xff] %v24796_v24  ;;  %v3235_v12 = vand.u32 4294901760, %v138_v14 }
 0x131   :  { %21618 = vmatprep.subr.bf16.mxu0 %v28076_v36  ;;  %1071 = vmatprep.mubr.f32.mxu0 %v27951_v23  ;;  %v3238_v36 = vand.u32 4294901760, %v145_v17 }
 0x133   :  { %21804 = vmatpush1.bf16.msra.mxu1 %v24603_v39  ;;  %1073 = vmatmul.mubr.f32.gmra.mrb[2].mxu0 %v24224_v13  ;;  %v28131_v39 = vld [vmem:[#allocation47_spill] sm:$0xff] }
 0x134   :  { %21620 = vmatpush1.bf16.msra.mxu0 %v28078_v59  ;;  %21806 = vmatprep.subr.bf16.mxu1 %v28079_v56  ;;  %v159_v59 = vld [vmem:[#allocation9 + $0x1b8] sm:$0xff]  ;;  %v24804_v56 = vpack.c.bf16 %v3238_v36, %v3235_v12 }
 0x135   :  { %21622 = vmatprep.subr.bf16.mxu0 %v28080_v21  ;;  %1078 = vmatprep.mubr.f32.mxu0 %v27951_v23  ;;  %v3241_v21 = vand.u32 4294901760, %v152_v50 }
 0x136   :  { %2068 = vmatmul.mubr.f32.vlgmr.msra.gmra.mrb[0].mxu1 %v28129_v4  ;;  %28147 = vst [vmem:[#allocation46_spill] sm:$0xff] %v24804_v56 }
 0x137   :  { %21808 = vmatpush1.bf16.msra.mxu1 %v28081_v45  ;;  %1080 = vmatmul.mubr.f32.gmra.mrb[4].mxu0 %v28130_v32  ;;  %v3244_v45 = vand.u32 4294901760, %v159_v59  ;;  %v24876_v42 = vsub.f32 %v152_v50, %v3241_v21 }
 0x138   :  { %21624 = vmatpush1.bf16.msra.mxu0 %v28083_v35  ;;  %21810 = vmatprep.subr.bf16.mxu1 %v28084_v20  ;;  %v166_v35 = vld [vmem:[#allocation9 + $0x1f0] sm:$0xff]  ;;  %v173_v20 = vld [vmem:[#allocation9 + $0x228] sm:$0xff] }
 0x139   :  { %21626 = vmatprep.subr.bf16.mxu0 %v28085_v62  ;;  %2073 = vmatprep.mubr.f32.mxu1 %v27951_v23  ;;  %v24812_v62 = vpack.c.bf16 %v3244_v45, %v3241_v21  ;;  %v24878_v47 = vsub.f32 %v159_v59, %v3244_v45 }
 0x13a   :  { %2075 = vmatmul.mubr.f32.gmra.mrb[2].mxu1 %v24224_v13  ;;  %1085 = vmatprep.mubr.f32.mxu0 %v27951_v23 }
 0x13b   :  { %21812 = vmatpush1.bf16.msra.mxu1 %v28086_v7  ;;  %1087 = vmatmul.mubr.f32.gmra.mrb[6].mxu0 %v24313_v38  ;;  %28148 = vst [vmem:[#allocation48_spill] sm:$0xff] %v24812_v62  ;;  %v3247_v7 = vand.u32 4294901760, %v166_v35 }
 0x13c   :  { %21628 = vmatpush1.bf16.msra.mxu0 %v28088_v52  ;;  %21814 = vmatprep.subr.bf16.mxu1 %v28089_v0  ;;  %v3250_v52 = vand.u32 4294901760, %v173_v20  ;;  %v24815_v0 = vld [vmem:[#allocation9 + $0x260] sm:$0xff] }
 0x13d   :  { %21630 = vmatprep.subr.bf16.mxu0 %v28090_v10  ;;  %2080 = vmatprep.mubr.f32.mxu1 %v27951_v23  ;;  %v24817_v10 = vld [vmem:[#allocation9 + $0x298] sm:$0xff]  ;;  %v3253_v16 = vand.u32 4294901760, %v24815_v0 }
 0x13e   :  { %2082 = vmatmul.mubr.f32.gmra.mrb[4].mxu1 %v28130_v32  ;;  %1189 = vmatprep.mubr.f32.mxu0 %v27951_v23  ;;  %v24828_v54 = vpack.c.bf16 %v3250_v52, %v3247_v7  ;;  %v3256_v8 = vand.u32 4294901760, %v24817_v10 }
 0x13f   :  { %21816 = vmatpush1.bf16.msra.mxu1 %v28091_v40  ;;  %2087 = vmatprep.mubr.f32.mxu1 %v27951_v23  ;;  %v24821_v40 = vld [vmem:[#allocation9 + $0x2d0] sm:$0xff] }
 0x140   :  { %21632 = vmatpush1.bf16.msra.mxu0 %v28131_v39  ;;  %21818 = vmatprep.subr.bf16.mxu1 %v28132_v6  ;;  %28150 = vst [vmem:[#allocation51_spill] sm:$0xff] %v24828_v54  ;;  %v3259_v26 = vand.u32 4294901760, %v24821_v40  ;;  %v24843_v5 = vpack.c.bf16 %v3256_v8, %v3253_v16  ;;  %v24849_v39 = vsub.f32 %v24780_v15, %v3229_v28  ;;  %v27699_v28 = vand.u32 4294901760, %v24876_v42 }
 0x141   :  { %21634 = vmatprep.subr.bf16.mxu0 %v28133_v2  ;;  %v24852_v6 = vsub.f32 %v24782_v55, %v3232_v3  ;;  %v27700_v3 = vand.u32 4294901760, %v24878_v47 }
 0x142   :  { %2089 = vmatmul.mubr.f32.gmra.mrb[6].mxu1 %v24313_v38  ;;  %28153 = vst [vmem:[#allocation54_spill] sm:$0xff] %v24843_v5  ;;  %v3389_v45 = vsub.f32 %v24876_v42, %v27699_v28 }
 0x143   :  { %21820 = vmatpush1.bf16.msra.mxu1 %v28134_v33  ;;  %2191 = vmatprep.mubr.f32.mxu1 %v27951_v23  ;;  %v27712_v33 = vand.u32 4294901760, %v24839_v61 }
 0x144   :  { %21636 = vmatpush1.bf16.msra.mxu0 %v28135_v25  ;;  %21822 = vmatprep.subr.bf16.mxu1 %v28136_v60  ;;  %v27710_v25 = vand.u32 4294901760, %v24845_v46 }
 0x145   :  { %21638 = vmatprep.subr.bf16.mxu0 %v28137_v9  ;;  %v24866_v9 = vsub.f32 %v138_v14, %v3235_v12  ;;  %v24898_v14 = vsub.f32 %v166_v35, %v3247_v7  ;;  %v24913_v35 = vld [vmem:[#allocation9 + $0x28] sm:$0xff]  ;;  %v3396_v7 = vsub.f32 %v24878_v47, %v27700_v3 }
 0x147   :  { %21824 = vmatpush1.bf16.msra.mxu1 %v28138_v58  ;;  %v24868_v58 = vsub.f32 %v145_v17, %v3238_v36  ;;  %28157 = vst [vmem:[#allocation61_spill] sm:$0xff] %v24898_v14  ;;  %v24900_v17 = vsub.f32 %v173_v20, %v3250_v52  ;;  %v24915_v20 = vld [vmem:[#allocation9 + $0x60] sm:$0xff]  ;;  %v27707_v52 = vand.u32 4294901760, %v24898_v14 }
 0x148   :  { %21640 = vmatpush1.bf16.msra.mxu0 %v28139_v34  ;;  %21826 = vmatprep.subr.bf16.mxu1 %v28140_v18  ;;  %v27704_v18 = vand.u32 4294901760, %v24849_v39 }
 0x149   :  { %21642 = vmatprep.subr.bf16.mxu0 %v28141_v31  ;;  %28155 = vst [vmem:[#allocation58_spill] sm:$0xff] %v24868_v58  ;;  %v27703_v31 = vand.u32 4294901760, %v24852_v6  ;;  %v27701_v51 = vand.u32 4294901760, %v24868_v58  ;;  %28158 = vst [vmem:[#allocation63_spill] sm:$0xff] %v24900_v17 }
 0x14a   :  { %v3361_v15 = vsub.f32 %v24849_v39, %v27704_v18  ;;  %v3403_v18 = vsub.f32 %v24898_v14, %v27707_v52 }
 0x14b   :  { %21828 = vmatpush1.bf16.msra.mxu1 %v28142_v43  ;;  %v24885_v43 = vpack.c.bf16 %v27710_v25, %v27712_v33  ;;  %v3368_v55 = vsub.f32 %v24852_v6, %v27703_v31  ;;  %v3382_v36 = vsub.f32 %v24868_v58, %v27701_v51  ;;  %v24937_v51 = vld [vmem:[#allocation9 + $0x20] sm:$0xff]  ;;  %v24943_v31 = vld [vmem:[#allocation9 + $0x98] sm:$0xff]  ;;  %v24974_v33 = vld [vmem:[#allocation9 + $0xc8] sm:$0xff] }
 0x14c   :  { %21644 = vmatpush1.bf16.msra.mxu0 %v28143_v44  ;;  %21830 = vmatprep.subr.bf16.mxu1 %v28144_v49  ;;  %v27702_v49 = vand.u32 4294901760, %v24866_v9  ;;  %v3362_v59 = vand.u32 4294901760, %v3361_v15  ;;  %v24928_v15 = vsub.f32 %v24817_v10, %v3256_v8  ;;  %v27716_v10 = vand.u32 4294901760, %v24937_v51 }
 0x14d   :  { %28156 = vst [vmem:[#allocation60_spill] sm:$0xff] %v24885_v43  ;;  %v3369_v21 = vand.u32 4294901760, %v3368_v55  ;;  %v3383_v28 = vand.u32 4294901760, %v3382_v36  ;;  %v3397_v36 = vand.u32 4294901760, %v3396_v7  ;;  %v3404_v7 = vand.u32 4294901760, %v3403_v18 }
 0x14e   :  { %v3375_v12 = vsub.f32 %v24866_v9, %v27702_v49  ;;  %28160 = vst [vmem:[#allocation69_spill] sm:$0xff] %v24928_v15  ;;  %v24939_v49 = vld [vmem:[#allocation9 + $0x58] sm:$0xff]  ;;  %v28171_v18 = vand.u32 4294901760, %v24974_v33 }
 0x14f   :  { %21832 = vmatpush1.bf16.msra.mxu1 %v28118_v1  ;;  %1191 = vmatmul.mubr.f32.vlgmr.msra.gmra.mrb[0].mxu0 %v28129_v4  ;;  %v24823_v1 = vld [vmem:[#allocation9 + $0x308] sm:$0xff]  ;;  %v27713_v8 = vand.u32 4294901760, %v24939_v49 }
 0x150   :  { %21834 = vmatprep.subr.bf16.mxu1 %v28120_v22  ;;  %1196 = vmatprep.mubr.f32.mxu0 %v27951_v23  ;;  %v3262_v19 = vand.u32 4294901760, %v24823_v1  ;;  %v27706_v22 = vand.u32 4294901760, %v24825_v41  ;;  %v3376_v55 = vand.u32 4294901760, %v3375_v12  ;;  %v24945_v12 = vld [vmem:[#allocation9 + $0xd0] sm:$0xff] }
 0x151   :  { %v24963_v52 = vpack.c.bf16 %v27713_v8, %v27716_v10  ;;  %v24979_v8 = vsub.f32 %v24821_v40, %v3259_v26 }
 0x152   :  { %v24858_v2 = vpack.c.bf16 %v3262_v19, %v3259_v26  ;;  %v3347_v60 = vsub.f32 %v24825_v41, %v27706_v22  ;;  %v28173_v26 = vand.u32 4294901760, %v24839_v61 }
 0x153   :  { %21836 = vmatpush1.bf16.msra.mxu1 %v28125_v57  ;;  %1198 = vmatmul.mubr.f32.gmra.mrb[2].mxu0 %v24224_v13  ;;  %v27705_v57 = vand.u32 4294901760, %v24832_v48  ;;  %28163 = vst [vmem:[#allocation72_spill] sm:$0xff] %v24963_v52  ;;  %28166 = vst [vmem:[#allocation75_spill] sm:$0xff] %v24979_v8 }
 0x154   :  { %1203 = vmatprep.mubr.f32.mxu0 %v27951_v23  ;;  %22030 = vmatprep.subr.bf16.mxu1 %v24788_v30  ;;  %28154 = vst [vmem:[#allocation57_spill] sm:$0xff] %v24858_v2  ;;  %v3348_v44 = vand.u32 4294901760, %v3347_v60  ;;  %v27709_v60 = vand.u32 4294901760, %v24913_v35 }
 0x155   :  { %v3354_v34 = vsub.f32 %v24832_v48, %v27705_v57  ;;  %v27715_v57 = vand.u32 4294901760, %v24943_v31 }
 0x156   :  { %2193 = vmatmul.mubr.f32.vlgmr.msra.gmra.mrb[0].mxu1 %v28129_v4 }
 0x157   :  { %1205 = vmatmul.mubr.f32.gmra.mrb[4].mxu0 %v28130_v32  ;;  %2198 = vmatprep.mubr.f32.mxu1 %v27951_v23  ;;  %v3355_v63 = vand.u32 4294901760, %v3354_v34  ;;  %v27708_v34 = vand.u32 4294901760, %v24915_v20 }
 0x158   :  { %1210 = vmatprep.mubr.f32.mxu0 %v27951_v23  ;;  %22032 = vmatpush3.bf16.msra.mxu1 %v24788_v30  ;;  %v28193_v30 = vand.u32 4294901760, %v24913_v35 }
 0x159   :  { %22034 = vmatprep.subr.bf16.mxu1 %v24796_v24  ;;  %v22061_v50 = vpack.c.bf16 %v3355_v63, %v3348_v44  ;;  %v27711_v44 = vand.u32 4294901760, %v24900_v17  ;;  %v24925_v63 = vsub.f32 %v24815_v0, %v3253_v16  ;;  %v24935_v3 = vpack.c.bf16 %v27708_v34, %v27709_v60  ;;  %v28164_v60 = vld [vmem:[#allocation104_spill] sm:$0xff] }
 0x15a   :  { %2200 = vmatmul.mubr.f32.gmra.mrb[2].mxu1 %v24224_v13  ;;  %v22065_v0 = vpack.c.bf16 %v3369_v21, %v3362_v59  ;;  %v3390_v16 = vand.u32 4294901760, %v3389_v45  ;;  %v27714_v59 = vand.u32 4294901760, %v24945_v12  ;;  %v28162_v21 = vld [vmem:[#allocation66_spill] sm:$0xff]  ;;  %v22069_v34 = vpack.c.bf16 %v3383_v28, %v3376_v55 }
 0x15b   :  { %1212 = vmatmul.mubr.f32.gmra.mrb[6].mxu0 %v24313_v38  ;;  %2205 = vmatprep.mubr.f32.mxu1 %v27951_v23  ;;  %28159 = vst [vmem:[#allocation64_spill] sm:$0xff] %v24925_v63  ;;  %28161 = vst [vmem:[#allocation71_spill] sm:$0xff] %v24935_v3  ;;  %v3410_v45 = vsub.f32 %v24900_v17, %v27711_v44  ;;  %v27719_v22 = vand.u32 4294901760, %v24925_v63  ;;  %v24972_v44 = vld [vmem:[#allocation9 + $0x90] sm:$0xff]  ;;  %v24984_v28 = vsub.f32 %v24823_v1, %v3262_v19 }
 0x15c   :  { %22036 = vmatpush3.bf16.msra.mxu1 %v24796_v24  ;;  %2316 = vmatprep.mubr.f32.mxu0 %v27951_v23  ;;  %v24970_v25 = vpack.c.bf16 %v27714_v59, %v27715_v57  ;;  %v24989_v59 = vld [vmem:[#allocation9 + $0x108] sm:$0xff]  ;;  %v24991_v57 = vld [vmem:[#allocation9 + $0x140] sm:$0xff]  ;;  %v22073_v10 = vpack.c.bf16 %v3397_v36, %v3390_v16  ;;  %v28170_v16 = vand.u32 4294901760, %v24972_v44 }
 0x15d   :  { %22038 = vmatprep.subr.bf16.mxu1 %v24804_v56  ;;  %21838 = vmatprep.subr.bf16.mxu0 %v24935_v3  ;;  %28167 = vst [vmem:[#allocation77_spill] sm:$0xff] %v24984_v28  ;;  %v3411_v1 = vand.u32 4294901760, %v3410_v45  ;;  %v3417_v19 = vsub.f32 %v24925_v63, %v27719_v22  ;;  %v25012_v45 = vsub.f32 %v24839_v61, %v28173_v26  ;;  %v28175_v22 = vand.u32 4294901760, %v24845_v46 }
 0x15e   :  { %2207 = vmatmul.mubr.f32.gmra.mrb[4].mxu1 %v28130_v32  ;;  %28165 = vst [vmem:[#allocation74_spill] sm:$0xff] %v24970_v25  ;;  %21840 = vmatpush1.bf16.msra.mxu0 %v24963_v52  ;;  %v28169_v52 = vld [vmem:[#allocation107_spill] sm:$0xff]  ;;  %v25007_v36 = vpack.c.bf16 %v28171_v18, %v28170_v16  ;;  %v25026_v16 = vld [vmem:[#allocation9 + $0x100] sm:$0xff]  ;;  %v25035_v18 = vld [vmem:[#allocation9 + $0x178] sm:$0xff] }
 0x15f   :  { %2212 = vmatprep.mubr.f32.mxu1 %v27951_v23  ;;  %21842 = vmatprep.subr.bf16.mxu0 %v24970_v25  ;;  %28174 = vst [vmem:[#allocation80_spill] sm:$0xff] %v25012_v45  ;;  %v25017_v40 = vsub.f32 %v24845_v46, %v28175_v22  ;;  %v28178_v25 = vand.u32 4294901760, %v24991_v57  ;;  %v27734_v22 = vand.u32 4294901760, %v25026_v16  ;;  %v22077_v53 = vpack.c.bf16 %v3411_v1, %v3404_v7  ;;  %v25056_v7 = vld [vmem:[#allocation9 + $0x170] sm:$0xff]  ;;  %v25058_v1 = vld [vmem:[#allocation9 + $0x1a8] sm:$0xff] }
 0x160   :  { %22040 = vmatpush3.bf16.msra.mxu1 %v24804_v56  ;;  %28172 = vst [vmem:[#allocation78_spill] sm:$0xff] %v25007_v36  ;;  %v3418_v61 = vand.u32 4294901760, %v3417_v19  ;;  %v28182_v19 = vand.u32 4294901760, %v24979_v8 }
 0x161   :  { %22042 = vmatprep.subr.bf16.mxu1 %v24812_v62  ;;  %28176 = vst [vmem:[#allocation81_spill] sm:$0xff] %v25017_v40 }
 0x162   :  { %2214 = vmatmul.mubr.f32.gmra.mrb[6].mxu1 %v24313_v38  ;;  %21844 = vmatpush1.bf16.msra.mxu0 %v25007_v36 }
 0x163   :  { %19685 = vmatprep.mubr.f32.mxu1 %v28152_v11 }
 0x164   :  { %22044 = vmatpush3.bf16.msra.mxu1 %v24812_v62  ;;  %v25094_v62 = vld [vmem:[#allocation9 + $0x1e0] sm:$0xff] }
 0x165   :  { %22046 = vmatprep.subr.bf16.mxu1 %v24828_v54 }
 0x168   :  { %22048 = vmatpush3.bf16.msra.mxu1 %v24828_v54  ;;  %v28186_v54 = vand.u32 4294901760, %v25017_v40 }
 0x169   :  { %22050 = vmatprep.subr.bf16.mxu1 %v24843_v5 }
 0x16c   :  { %22052 = vmatpush3.bf16.msra.mxu1 %v24843_v5 }
 0x16d   :  { %22054 = vmatprep.subr.bf16.mxu1 %v24858_v2 }
 0x170   :  { %22056 = vmatpush3.bf16.msra.mxu1 %v24858_v2  ;;  %v28185_v2 = vand.u32 4294901760, %v25012_v45 }
 0x171   :  { %22058 = vmatprep.subr.bf16.mxu1 %v24885_v43 }
 0x172   :  { %v3445_v5 = vsub.f32 %v25012_v45, %v28185_v2  ;;  %v27766_v2 = vand.u32 4294901760, %v25094_v62 }
 0x174   :  { %22060 = vmatpush3.bf16.msra.mxu1 %v24885_v43  ;;  %v25071_v43 = vld [vmem:[#allocation9 + $0x220] sm:$0xff] }
 0x175   :  { %22062 = vmatprep.subr.bf16.mxu1 %v22061_v50 }
 0x177   :  { %19686 = vmatmul.mubr.f32.vlgmr.msra.gmra.mrb[8].mxu1 %v28162_v21 }
 0x178   :  { %22064 = vmatpush3.bf16.msra.mxu1 %v22061_v50  ;;  %19688 = vmatprep.mubr.f32.mxu1 %v28164_v60  ;;  %v28168_v50 = vand.u32 4294901760, %v24928_v15 }
 0x179   :  { %22066 = vmatprep.subr.bf16.mxu1 %v22065_v0 }
 0x17a   :  { %v3424_v55 = vsub.f32 %v24928_v15, %v28168_v50  ;;  %v28177_v50 = vand.u32 4294901760, %v24989_v59 }
 0x17b   :  { %19689 = vmatmul.mubr.f32.gmra.mrb[10].mxu1 %v28169_v52  ;;  %v25153_v52 = vsub.f32 %v24913_v35, %v28193_v30 }
 0x17c   :  { %22068 = vmatpush3.bf16.msra.mxu1 %v22065_v0  ;;  %19723 = vmatprep.mubr.f32.mxu1 %v28129_v4  ;;  %v25024_v3 = vpack.c.bf16 %v28178_v25, %v28177_v50  ;;  %v25028_v0 = vld [vmem:[#allocation9 + $0x138] sm:$0xff]  ;;  %v27736_v25 = vand.u32 4294901760, %v25035_v18  ;;  %v27735_v50 = vand.u32 4294901760, %v25037_v27  ;;  %v3425_v36 = vand.u32 4294901760, %v3424_v55 }
 0x17d   :  { %22070 = vmatprep.subr.bf16.mxu1 %v22069_v34  ;;  %v27733_v46 = vand.u32 4294901760, %v25028_v0  ;;  %v28183_v55 = vand.u32 4294901760, %v24984_v28 }
 0x17e   :  { %28179 = vst [vmem:[#allocation83_spill] sm:$0xff] %v25024_v3  ;;  %21846 = vmatprep.subr.bf16.mxu0 %v25024_v3  ;;  %v25054_v3 = vpack.c.bf16 %v27735_v50, %v27736_v25  ;;  %v27750_v50 = vand.u32 4294901760, %v25058_v1  ;;  %v25069_v25 = vld [vmem:[#allocation9 + $0x1e8] sm:$0xff] }
 0x17f   :  { %v25046_v26 = vpack.c.bf16 %v27733_v46, %v27734_v22  ;;  %v3438_v46 = vsub.f32 %v24984_v28, %v28183_v55  ;;  %v27751_v22 = vand.u32 4294901760, %v25056_v7  ;;  %v27753_v29 = vand.u32 4294901760, %v25069_v25 }
 0x180   :  { %22072 = vmatpush3.bf16.msra.mxu1 %v22069_v34  ;;  %28181 = vst [vmem:[#allocation86_spill] sm:$0xff] %v25054_v3  ;;  %v3431_v34 = vsub.f32 %v24979_v8, %v28182_v19  ;;  %v27752_v19 = vand.u32 4294901760, %v25071_v43 }
 0x181   :  { %28180 = vst [vmem:[#allocation84_spill] sm:$0xff] %v25046_v26  ;;  %22074 = vmatprep.subr.bf16.mxu1 %v22073_v10  ;;  %21848 = vmatpush1.bf16.msra.mxu0 %v25046_v26  ;;  %v25080_v55 = vpack.c.bf16 %v27750_v50, %v27751_v22  ;;  %v22081_v26 = vpack.c.bf16 %v3425_v36, %v3418_v61  ;;  %v25096_v50 = vld [vmem:[#allocation9 + $0x218] sm:$0xff]  ;;  %v3439_v36 = vand.u32 4294901760, %v3438_v46  ;;  %v25103_v22 = vld [vmem:[#allocation9 + $0x290] sm:$0xff] }
 0x182   :  { %21850 = vmatprep.subr.bf16.mxu0 %v25054_v3  ;;  %v3452_v3 = vsub.f32 %v25017_v40, %v28186_v54  ;;  %v25092_v4 = vpack.c.bf16 %v27752_v19, %v27753_v29  ;;  %v27763_v61 = vand.u32 4294901760, %v25096_v50  ;;  %v25101_v54 = vld [vmem:[#allocation9 + $0x258] sm:$0xff]  ;;  %v27764_v29 = vand.u32 4294901760, %v25103_v22 }
 0x183   :  { %28184 = vst [vmem:[#allocation87_spill] sm:$0xff] %v25080_v55  ;;  %v27765_v19 = vand.u32 4294901760, %v25101_v54 }
 0x184   :  { %22076 = vmatpush3.bf16.msra.mxu1 %v22073_v10  ;;  %28187 = vst [vmem:[#allocation89_spill] sm:$0xff] %v25092_v4  ;;  %v3432_v10 = vand.u32 4294901760, %v3431_v34  ;;  %v25112_v46 = vpack.c.bf16 %v27763_v61, %v27766_v2  ;;  %v3446_v34 = vand.u32 4294901760, %v3445_v5  ;;  %v25127_v5 = vld [vmem:[#allocation9 + $0x2c8] sm:$0xff] }
 0x185   :  { %22078 = vmatprep.subr.bf16.mxu1 %v22077_v53  ;;  %21852 = vmatpush1.bf16.msra.mxu0 %v25080_v55  ;;  %v3453_v55 = vand.u32 4294901760, %v3452_v3  ;;  %v25118_v56 = vpack.c.bf16 %v27764_v29, %v27765_v19  ;;  %v25129_v3 = vld [vmem:[#allocation9 + $0x300] sm:$0xff]  ;;  %v27775_v29 = vand.u32 4294901760, %v25127_v5 }
 0x186   :  { %21854 = vmatprep.subr.bf16.mxu0 %v25092_v4  ;;  %28188 = vst [vmem:[#allocation90_spill] sm:$0xff] %v25112_v46  ;;  %v25120_v4 = vld [vmem:[#allocation9 + $0x250] sm:$0xff]  ;;  %v22085_v24 = vpack.c.bf16 %v3439_v36, %v3432_v10  ;;  %v27774_v19 = vand.u32 4294901760, %v25129_v3 }
 0x187   :  { %28189 = vst [vmem:[#allocation94_spill] sm:$0xff] %v25118_v56  ;;  %v27776_v61 = vand.u32 4294901760, %v25120_v4  ;;  %v22089_v36 = vpack.c.bf16 %v3453_v55, %v3446_v34 }
 0x188   :  { %22080 = vmatpush3.bf16.msra.mxu1 %v22077_v53  ;;  %v27773_v53 = vand.u32 4294901760, %v25122_v37  ;;  %v25144_v2 = vpack.c.bf16 %v27774_v19, %v27775_v29  ;;  %v25163_v19 = vld [vmem:[#allocation9 + $0x338] sm:$0xff]  ;;  %v25165_v29 = vld [vmem:[#allocation9 + $0x370] sm:$0xff] }
 0x189   :  { %22082 = vmatprep.subr.bf16.mxu1 %v22081_v26  ;;  %21856 = vmatpush1.bf16.msra.mxu0 %v25112_v46  ;;  %v25146_v46 = vld [vmem:[#allocation9 + $0x2c0] sm:$0xff]  ;;  %v28199_v35 = vand.u32 4294901760, %v25163_v19 }
 0x18a   :  { %21858 = vmatprep.subr.bf16.mxu0 %v25118_v56  ;;  %v25138_v10 = vpack.c.bf16 %v27773_v53, %v27776_v61  ;;  %28191 = vst [vmem:[#allocation97_spill] sm:$0xff] %v25144_v2  ;;  %v25148_v56 = vld [vmem:[#allocation9 + $0x2f8] sm:$0xff]  ;;  %v28194_v53 = vand.u32 4294901760, %v24915_v20  ;;  %v27784_v55 = vand.u32 4294901760, %v25146_v46  ;;  %v28197_v61 = vand.u32 4294901760, %v24937_v51 }
 0x18b   :  { %28192 = vst [vmem:[#allocation99_spill] sm:$0xff] %v25148_v56  ;;  %v27783_v34 = vand.u32 4294901760, %v25148_v56  ;;  %v28200_v56 = vand.u32 4294901760, %v25165_v29 }
 0x18c   :  { %28190 = vst [vmem:[#allocation95_spill] sm:$0xff] %v25138_v10  ;;  %22084 = vmatpush3.bf16.msra.mxu1 %v22081_v26  ;;  %v25158_v26 = vsub.f32 %v24915_v20, %v28194_v53  ;;  %v22093_v53 = vpack.c.bf16 %v24832_v48, %v24825_v41 }
 0x18d   :  { %22086 = vmatprep.subr.bf16.mxu1 %v22085_v24  ;;  %21860 = vmatpush1.bf16.msra.mxu0 %v25138_v10  ;;  %v25174_v20 = vpack.c.bf16 %v27783_v34, %v27784_v55  ;;  %v25181_v10 = vsub.f32 %v24937_v51, %v28197_v61  ;;  %v25192_v34 = vpack.c.bf16 %v28200_v56, %v28199_v35  ;;  %v25196_v55 = vld [vmem:[#allocation9 + $0x368] sm:$0xff] }
 0x18e   :  { %28195 = vst [vmem:[#allocation21_spill] sm:$0xff] %v25158_v26  ;;  %21862 = vmatprep.subr.bf16.mxu0 %v25144_v2  ;;  %v28198_v2 = vand.u32 4294901760, %v24939_v49  ;;  %v27791_v61 = vand.u32 4294901760, %v25196_v55 }
 0x18f   :  { %28196 = vst [vmem:[#allocation25_spill] sm:$0xff] %v25174_v20  ;;  %28201 = vst [vmem:[#allocation27_spill] sm:$0xff] %v25192_v34  ;;  %v27798_v48 = vand.u32 4294901760, %v25181_v10 }
 0x190   :  { %22088 = vmatpush3.bf16.msra.mxu1 %v22085_v24  ;;  %v25186_v30 = vsub.f32 %v24939_v49, %v28198_v2  ;;  %v25194_v24 = vld [vmem:[#allocation9 + $0x330] sm:$0xff]  ;;  %v27793_v49 = vand.u32 4294901760, %v25153_v52  ;;  %v27794_v2 = vand.u32 4294901760, %v25158_v26 }
 0x191   :  { %22090 = vmatprep.subr.bf16.mxu1 %v22089_v36  ;;  %21864 = vmatpush1.bf16.msra.mxu0 %v25174_v20  ;;  %v27792_v51 = vand.u32 4294901760, %v25194_v24 }
 0x192   :  { %21866 = vmatprep.subr.bf16.mxu0 %v25192_v34  ;;  %v2364_v35 = vsub.f32 %v25153_v52, %v27793_v49  ;;  %v2376_v20 = vsub.f32 %v25158_v26, %v27794_v2  ;;  %v27799_v41 = vand.u32 4294901760, %v25186_v30  ;;  %v22097_v34 = vpack.c.bf16 %v24852_v6, %v24849_v39 }
 0x193   :  { %v25208_v56 = vpack.c.bf16 %v27791_v61, %v27792_v51  ;;  %v22101_v61 = vpack.c.bf16 %v24868_v58, %v24866_v9  ;;  %v2370_v2 = vsub.f32 %v25181_v10, %v27798_v48  ;;  %v25236_v58 = vpack.c.bf16 %v24900_v17, %v24898_v14 }
 0x194   :  { %22092 = vmatpush3.bf16.msra.mxu1 %v22089_v36  ;;  %v2365_v51 = vand.u32 4294901760, %v2364_v35  ;;  %v25225_v36 = vpack.c.bf16 %v24878_v47, %v24876_v42  ;;  %v2377_v49 = vand.u32 4294901760, %v2376_v20  ;;  %v2382_v26 = vsub.f32 %v25186_v30, %v27799_v41 }
 0x195   :  { %28202 = vst [vmem:[#allocation30_spill] sm:$0xff] %v25208_v56  ;;  %22094 = vmatprep.subr.bf16.mxu1 %v22093_v53  ;;  %21868 = vmatpush1.bf16.msra.mxu0 %v25208_v56  ;;  %v25240_v35 = vpack.c.bf16 %v24928_v15, %v24925_v63  ;;  %v25244_v20 = vpack.c.bf16 %v24984_v28, %v24979_v8  ;;  %v28203_v41 = vand.u32 4294901760, %v24943_v31  ;;  %v2371_v14 = vand.u32 4294901760, %v2370_v2 }
 0x196   :  { %v25248_v48 = vpack.c.bf16 %v25017_v40, %v25012_v45  ;;  %v21869_v17 = vpack.c.bf16 %v2377_v49, %v2365_v51  ;;  %v2383_v15 = vand.u32 4294901760, %v2382_v26  ;;  %v28204_v63 = vand.u32 4294901760, %v24945_v12 }
 0x197   :  { %19724 = vmatmul.mubr.f32.vlgmr.msra.gmra.mrb[8].mxu1 %v24224_v13  ;;  %v25254_v56 = vsub.f32 %v24943_v31, %v28203_v41  ;;  %v28205_v40 = vand.u32 4294901760, %v24972_v44  ;;  %v28206_v45 = vand.u32 4294901760, %v24974_v33  ;;  %v28207_v41 = vand.u32 4294901760, %v24989_v59 }
 0x198   :  { %22096 = vmatpush3.bf16.msra.mxu1 %v22093_v53  ;;  %19726 = vmatprep.mubr.f32.mxu1 %v28130_v32  ;;  %v25259_v28 = vsub.f32 %v24945_v12, %v28204_v63  ;;  %v28208_v63 = vand.u32 4294901760, %v24991_v57  ;;  %v28218_v2 = vand.u32 4294901760, %v25094_v62 }
 0x199   :  { %22098 = vmatprep.subr.bf16.mxu1 %v22097_v34  ;;  %v25264_v53 = vsub.f32 %v24972_v44, %v28205_v40  ;;  %v25269_v8 = vsub.f32 %v24974_v33, %v28206_v45  ;;  %2322 = vmatmul.mubr.f32.vlgmr.msra.gmra.mrb[8].mxu0 %v28152_v11  ;;  %v25275_v31 = vsub.f32 %v24989_v59, %v28207_v41  ;;  %v28209_v33 = vand.u32 4294901760, %v25026_v16 }
 0x19a   :  { %v25280_v12 = vsub.f32 %v24991_v57, %v28208_v63  ;;  %21870 = vmatprep.subr.bf16.mxu0 %v21869_v17  ;;  %v21871_v44 = vpack.c.bf16 %v2383_v15, %v2371_v14  ;;  %2327 = vmatprep.mubr.f32.mxu0 %v27951_v23  ;;  %v28210_v40 = vand.u32 4294901760, %v25028_v0  ;;  %v28211_v45 = vand.u32 4294901760, %v25035_v18  ;;  %v28213_v15 = vld [vmem:[#allocation92_spill] sm:$0xff] }
 0x19b   :  { %19727 = vmatmul.mubr.f32.gmra.mrb[10].mxu1 %v24313_v38  ;;  %v25287_v11 = vsub.f32 %v25026_v16, %v28209_v33  ;;  %v28212_v14 = vand.u32 4294901760, %v25037_v27  ;;  %v28214_v16 = vand.u32 4294901760, %v25056_v7  ;;  %v27832_v41 = vand.u32 4294901760, %v25259_v28 }
 0x19c   :  { %v25292_v59 = vsub.f32 %v25028_v0, %v28210_v40  ;;  %v25297_v57 = vsub.f32 %v25035_v18, %v28211_v45  ;;  %22100 = vmatpush3.bf16.msra.mxu1 %v22097_v34  ;;  %19761 = vmatprep.mubr.f32.mxu1 %v28213_v15  ;;  %v28215_v0 = vand.u32 4294901760, %v25058_v1  ;;  %v28216_v18 = vand.u32 4294901760, %v25069_v25 }
 0x19d   :  { %v25302_v17 = vsub.f32 %v25037_v27, %v28212_v14  ;;  %v25308_v26 = vsub.f32 %v25056_v7, %v28214_v16  ;;  %22102 = vmatprep.subr.bf16.mxu1 %v22101_v61  ;;  %v28217_v27 = vand.u32 4294901760, %v25071_v43  ;;  %v25328_v7 = vsub.f32 %v25094_v62, %v28218_v2  ;;  %21872 = vmatpush1.bf16.msra.mxu0 %v21871_v44 }
 0x19e   :  { %v25313_v51 = vsub.f32 %v25058_v1, %v28215_v0  ;;  %v25318_v49 = vsub.f32 %v25069_v25, %v28216_v18  ;;  %v27833_v1 = vand.u32 4294901760, %v25254_v56  ;;  %v28219_v63 = vand.u32 4294901760, %v25096_v50  ;;  %2333 = vmatmul.mubr.f32.gmra.mrb[10].mxu0 %v28162_v21 }
 0x19f   :  { %v25323_v34 = vsub.f32 %v25071_v43, %v28217_v27  ;;  %v28220_v33 = vand.u32 4294901760, %v25101_v54  ;;  %v27815_v40 = vand.u32 4294901760, %v25264_v53  ;;  %v27810_v62 = vand.u32 4294901760, %v25269_v8  ;;  %2338 = vmatprep.mubr.f32.mxu0 %v27951_v23 }
 0x1a0   :  { %v25335_v25 = vsub.f32 %v25096_v50, %v28219_v63  ;;  %v28221_v44 = vand.u32 4294901760, %v25103_v22  ;;  %v28222_v14 = vand.u32 4294901760, %v25120_v4  ;;  %v2400_v16 = vsub.f32 %v25259_v28, %v27832_v41  ;;  %22104 = vmatpush3.bf16.msra.mxu1 %v22101_v61 }
 0x1a1   :  { %v25340_v43 = vsub.f32 %v25101_v54, %v28220_v33  ;;  %v2388_v54 = vsub.f32 %v25254_v56, %v27833_v1  ;;  %v28223_v21 = vand.u32 4294901760, %v25122_v37  ;;  %v28224_v0 = vand.u32 4294901760, %v25127_v5  ;;  %22106 = vmatprep.subr.bf16.mxu1 %v25225_v36  ;;  %v28239_v1 = vld [vmem:[#allocation21_spill] sm:$0xff] }
 0x1a2   :  { %v25348_v45 = vsub.f32 %v25103_v22, %v28221_v44  ;;  %v25353_v50 = vsub.f32 %v25120_v4, %v28222_v14  ;;  %v2394_v18 = vsub.f32 %v25264_v53, %v27815_v40  ;;  %v2406_v27 = vsub.f32 %v25269_v8, %v27810_v62  ;;  %2344 = vmatmul.mubr.f32.gmra.mrb[12].mxu0 %v28164_v60 }
 0x1a3   :  { %v25365_v22 = vsub.f32 %v25122_v37, %v28223_v21  ;;  %v25370_v4 = vsub.f32 %v25127_v5, %v28224_v0  ;;  %v2389_v61 = vand.u32 4294901760, %v2388_v54  ;;  %v2401_v2 = vand.u32 4294901760, %v2400_v16  ;;  %2349 = vmatprep.mubr.f32.mxu0 %v27951_v23 }
 0x1a4   :  { %v27813_v37 = vand.u32 4294901760, %v25275_v31  ;;  %v27811_v63 = vand.u32 4294901760, %v25280_v12  ;;  %v2395_v33 = vand.u32 4294901760, %v2394_v18  ;;  %v2407_v44 = vand.u32 4294901760, %v2406_v27  ;;  %22108 = vmatpush3.bf16.msra.mxu1 %v25225_v36 }
 0x1a5   :  { %v27812_v5 = vand.u32 4294901760, %v25287_v11  ;;  %v27814_v14 = vand.u32 4294901760, %v25292_v59  ;;  %v28225_v21 = vand.u32 4294901760, %v25129_v3  ;;  %v21873_v62 = vpack.c.bf16 %v2401_v2, %v2389_v61  ;;  %22110 = vmatprep.subr.bf16.mxu1 %v25236_v58 }
 0x1a6   :  { %v2412_v54 = vsub.f32 %v25275_v31, %v27813_v37  ;;  %v2424_v16 = vsub.f32 %v25280_v12, %v27811_v63  ;;  %v28226_v60 = vand.u32 4294901760, %v25146_v46  ;;  %v27831_v36 = vand.u32 4294901760, %v25297_v57 }
 0x1a7   :  { %v25387_v0 = vsub.f32 %v25129_v3, %v28225_v21  ;;  %v21875_v3 = vpack.c.bf16 %v2407_v44, %v2395_v33  ;;  %v2418_v27 = vsub.f32 %v25287_v11, %v27812_v5  ;;  %v2430_v61 = vsub.f32 %v25292_v59, %v27814_v14  ;;  %21874 = vmatprep.subr.bf16.mxu0 %v21873_v62  ;;  %v28227_v5 = vld [vmem:[#allocation99_spill] sm:$0xff] }
 0x1a8   :  { %v25400_v18 = vsub.f32 %v25146_v46, %v28226_v60  ;;  %v2413_v2 = vand.u32 4294901760, %v2412_v54  ;;  %v2425_v21 = vand.u32 4294901760, %v2424_v16  ;;  %v27818_v63 = vand.u32 4294901760, %v25302_v17  ;;  %v28229_v16 = vld [vmem:[#allocation107_spill] sm:$0xff]  ;;  %22112 = vmatpush3.bf16.msra.mxu1 %v25236_v58 }
 0x1a9   :  { %21876 = vmatpush1.bf16.msra.mxu0 %v21875_v3  ;;  %v2419_v46 = vand.u32 4294901760, %v2418_v27  ;;  %v2431_v33 = vand.u32 4294901760, %v2430_v61  ;;  %v27817_v44 = vand.u32 4294901760, %v25308_v26  ;;  %v27816_v60 = vand.u32 4294901760, %v25313_v51  ;;  %22114 = vmatprep.subr.bf16.mxu1 %v25240_v35 }
 0x1aa   :  { %v28228_v37 = vand.u32 4294901760, %v28227_v5  ;;  %v21877_v40 = vpack.c.bf16 %v2425_v21, %v2413_v2  ;;  %v2436_v62 = vsub.f32 %v25297_v57, %v27831_v36  ;;  %v2448_v54 = vsub.f32 %v25302_v17, %v27818_v63  ;;  %2355 = vmatmul.mubr.f32.gmra.mrb[14].mxu0 %v28229_v16  ;;  %v28238_v36 = vld [vmem:[#allocation105_spill] sm:$0xff] }
 0x1ab   :  { %v21879_v3 = vpack.c.bf16 %v2431_v33, %v2419_v46  ;;  %v2442_v27 = vsub.f32 %v25308_v26, %v27817_v44  ;;  %2585 = vmatprep.mubr.f32.mxu0 %v27951_v23  ;;  %v27830_v2 = vand.u32 4294901760, %v25318_v49  ;;  %v27821_v58 = vand.u32 4294901760, %v25323_v34 }
 0x1ac   :  { %v25416_v14 = vsub.f32 %v28227_v5, %v28228_v37  ;;  %v2454_v37 = vsub.f32 %v25313_v51, %v27816_v60  ;;  %21878 = vmatprep.subr.bf16.mxu0 %v21877_v40  ;;  %v2437_v5 = vand.u32 4294901760, %v2436_v62  ;;  %v2449_v61 = vand.u32 4294901760, %v2448_v54  ;;  %22116 = vmatpush3.bf16.msra.mxu1 %v25240_v35 }
 0x1ad   :  { %21880 = vmatpush1.bf16.msra.mxu0 %v21879_v3  ;;  %v2443_v21 = vand.u32 4294901760, %v2442_v27  ;;  %v27819_v33 = vand.u32 4294901760, %v25328_v7  ;;  %v27820_v16 = vand.u32 4294901760, %v25335_v25  ;;  %v28230_v60 = vand.u32 4294901760, %v25163_v19  ;;  %22118 = vmatprep.subr.bf16.mxu1 %v25244_v20 }
 0x1ae   :  { %v2455_v46 = vand.u32 4294901760, %v2454_v37  ;;  %v21881_v63 = vpack.c.bf16 %v2449_v61, %v2437_v5  ;;  %v2460_v40 = vsub.f32 %v25318_v49, %v27830_v2  ;;  %v2472_v62 = vsub.f32 %v25323_v34, %v27821_v58 }
 0x1af   :  { %v25441_v44 = vsub.f32 %v25163_v19, %v28230_v60  ;;  %v28231_v54 = vand.u32 4294901760, %v25165_v29  ;;  %v2466_v19 = vsub.f32 %v25328_v7, %v27819_v33  ;;  %v2478_v60 = vsub.f32 %v25335_v25, %v27820_v16 }
 0x1b0   :  { %v21883_v27 = vpack.c.bf16 %v2455_v46, %v2443_v21  ;;  %21882 = vmatprep.subr.bf16.mxu0 %v21881_v63  ;;  %v2461_v37 = vand.u32 4294901760, %v2460_v40  ;;  %v2473_v5 = vand.u32 4294901760, %v2472_v62  ;;  %v27829_v35 = vand.u32 4294901760, %v25340_v43  ;;  %22120 = vmatpush3.bf16.msra.mxu1 %v25244_v20 }
 0x1b1   :  { %v25453_v3 = vsub.f32 %v25165_v29, %v28231_v54  ;;  %v27827_v61 = vand.u32 4294901760, %v25348_v45  ;;  %v2467_v29 = vand.u32 4294901760, %v2466_v19  ;;  %v2479_v21 = vand.u32 4294901760, %v2478_v60  ;;  %22122 = vmatprep.subr.bf16.mxu1 %v25248_v48 }
 0x1b2   :  { %21884 = vmatpush1.bf16.msra.mxu0 %v21883_v27  ;;  %v27822_v46 = vand.u32 4294901760, %v25353_v50  ;;  %v27823_v54 = vand.u32 4294901760, %v25365_v22  ;;  %v28232_v33 = vand.u32 4294901760, %v25194_v24  ;;  %v21885_v58 = vpack.c.bf16 %v2473_v5, %v2461_v37 }
 0x1b3   :  { %v2484_v63 = vsub.f32 %v25340_v43, %v27829_v35  ;;  %v2496_v40 = vsub.f32 %v25348_v45, %v27827_v61  ;;  %v28233_v62 = vand.u32 4294901760, %v25196_v55  ;;  %v21887_v19 = vpack.c.bf16 %v2479_v21, %v2467_v29 }
 0x1b4   :  { %v25469_v16 = vsub.f32 %v25194_v24, %v28232_v33  ;;  %v2490_v24 = vsub.f32 %v25353_v50, %v27822_v46  ;;  %v2502_v33 = vsub.f32 %v25365_v22, %v27823_v54  ;;  %21886 = vmatprep.subr.bf16.mxu0 %v21885_v58  ;;  %v27826_v20 = vand.u32 4294901760, %v25370_v4  ;;  %22124 = vmatpush3.bf16.msra.mxu1 %v25248_v48 }
 0x1b5   :  { %v25481_v27 = vsub.f32 %v25196_v55, %v28233_v62  ;;  %v2485_v60 = vand.u32 4294901760, %v2484_v63  ;;  %v2497_v37 = vand.u32 4294901760, %v2496_v40  ;;  %v27824_v5 = vand.u32 4294901760, %v25387_v0 }
 0x1b6   :  { %21888 = vmatpush1.bf16.msra.mxu0 %v21887_v19  ;;  %v2491_v55 = vand.u32 4294901760, %v2490_v24  ;;  %v2503_v29 = vand.u32 4294901760, %v2502_v33  ;;  %v27825_v21 = vand.u32 4294901760, %v25400_v18  ;;  %v27828_v62 = vand.u32 4294901760, %v25416_v14  ;;  %v28234_v24 = vld [vmem:[#allocation43_spill] sm:$0xff] }
 0x1b7   :  { %v21889_v46 = vpack.c.bf16 %v2497_v37, %v2485_v60  ;;  %v2508_v54 = vsub.f32 %v25370_v4, %v27826_v20  ;;  %v2520_v58 = vsub.f32 %v25387_v0, %v27824_v5  ;;  %22126 = vmatprep.subr.bf16.mxu1 %v28234_v24  ;;  %v2531_v37 = vand.u32 4294901760, %v25441_v44  ;;  %v28235_v20 = vld [vmem:[#allocation55_spill] sm:$0xff] }
 0x1b8   :  { %v21891_v63 = vpack.c.bf16 %v2503_v29, %v2491_v55  ;;  %v2514_v40 = vsub.f32 %v25400_v18, %v27825_v21  ;;  %v2526_v19 = vsub.f32 %v25416_v14, %v27828_v62  ;;  %v2543_v5 = vand.u32 4294901760, %v25453_v3  ;;  %19762 = vmatmul.mubr.f32.vlgmr.msra.gmra.mrb[8].mxu1 %v28235_v20 }
 0x1b9   :  { %21890 = vmatprep.subr.bf16.mxu0 %v21889_v46  ;;  %v2509_v33 = vand.u32 4294901760, %v2508_v54  ;;  %v2521_v60 = vand.u32 4294901760, %v2520_v58  ;;  %v2537_v29 = vand.u32 4294901760, %v25469_v16  ;;  %v2549_v21 = vand.u32 4294901760, %v25481_v27  ;;  %22128 = vmatpush3.bf16.msra.mxu1 %v28234_v24  ;;  %v28236_v54 = vld [vmem:[#allocation102_spill] sm:$0xff] }
 0x1ba   :  { %21892 = vmatpush1.bf16.msra.mxu0 %v21891_v63  ;;  %v2515_v48 = vand.u32 4294901760, %v2514_v40  ;;  %v2527_v55 = vand.u32 4294901760, %v2526_v19  ;;  %v2532_v62 = vsub.f32 %v25441_v44, %v2531_v37  ;;  %v2544_v46 = vsub.f32 %v25453_v3, %v2543_v5  ;;  %19764 = vmatprep.mubr.f32.mxu1 %v28236_v54  ;;  %v28237_v19 = vld [vmem:[#allocation45_spill] sm:$0xff]  ;;  %v28241_v54 = vld [vmem:[#allocation46_spill] sm:$0xff] }
 0x1bb   :  { %v21893_v61 = vpack.c.bf16 %v2521_v60, %v2509_v33  ;;  %v2538_v63 = vsub.f32 %v25469_v16, %v2537_v29  ;;  %v2550_v40 = vsub.f32 %v25481_v27, %v2549_v21  ;;  %22130 = vmatprep.subr.bf16.mxu1 %v28237_v19  ;;  %v21901_v24 = vpack.c.bf16 %v28239_v1, %v25153_v52 }
 0x1bc   :  { %v21895_v58 = vpack.c.bf16 %v2527_v55, %v2515_v48  ;;  %v2533_v35 = vand.u32 4294901760, %v2532_v62  ;;  %v2545_v2 = vand.u32 4294901760, %v2544_v46  ;;  %19765 = vmatmul.mubr.f32.gmra.mrb[10].mxu1 %v28238_v36  ;;  %v28240_v48 = vld [vmem:[#allocation96_spill] sm:$0xff]  ;;  %v21905_v62 = vpack.c.bf16 %v25259_v28, %v25254_v56 }
 0x1bd   :  { %21894 = vmatprep.subr.bf16.mxu0 %v21893_v61  ;;  %v2539_v33 = vand.u32 4294901760, %v2538_v63  ;;  %v2551_v60 = vand.u32 4294901760, %v2550_v40  ;;  %22132 = vmatpush3.bf16.msra.mxu1 %v28237_v19  ;;  %v21903_v61 = vpack.c.bf16 %v25186_v30, %v25181_v10  ;;  %v28243_v46 = vand.u32 4294901760, %v28239_v1 }
 0x1be   :  { %21896 = vmatpush1.bf16.msra.mxu0 %v21895_v58  ;;  %v21897_v41 = vpack.c.bf16 %v2545_v2, %v2533_v35  ;;  %19799 = vmatprep.mubr.f32.mxu1 %v28240_v48  ;;  %v21907_v2 = vpack.c.bf16 %v25269_v8, %v25264_v53  ;;  %v28242_v35 = vand.u32 4294901760, %v25153_v52  ;;  %v28244_v63 = vand.u32 4294901760, %v25181_v10 }
 0x1bf   :  { %v21899_v55 = vpack.c.bf16 %v2551_v60, %v2539_v33  ;;  %22134 = vmatprep.subr.bf16.mxu1 %v28241_v54  ;;  %v28246_v33 = vand.u32 4294901760, %v25254_v56  ;;  %v28247_v60 = vand.u32 4294901760, %v25259_v28  ;;  %v28248_v52 = vand.u32 4294901760, %v25264_v53 }
 0x1c0   :  { %21898 = vmatprep.subr.bf16.mxu0 %v21897_v41  ;;  %v25536_v58 = vpack.c.bf16 %v28243_v46, %v28242_v35  ;;  %v28245_v41 = vand.u32 4294901760, %v25186_v30  ;;  %v28249_v1 = vand.u32 4294901760, %v25269_v8  ;;  %v28250_v10 = vand.u32 4294901760, %v25275_v31  ;;  %v28257_v8 = vld [vmem:[#allocation48_spill] sm:$0xff] }
 0x1c1   :  { %22136 = vmatpush3.bf16.msra.mxu1 %v28241_v54  ;;  %v28251_v30 = vand.u32 4294901760, %v25280_v12  ;;  %v28252_v56 = vand.u32 4294901760, %v25287_v11  ;;  %v28253_v28 = vand.u32 4294901760, %v25292_v59  ;;  %v28255_v53 = vand.u32 4294901760, %v25302_v17 }
 0x1c2   :  { %21900 = vmatpush1.bf16.msra.mxu0 %v21899_v55  ;;  %v25542_v40 = vpack.c.bf16 %v28245_v41, %v28244_v63  ;;  %v25555_v55 = vpack.c.bf16 %v28249_v1, %v28248_v52  ;;  %v28254_v63 = vand.u32 4294901760, %v25297_v57  ;;  %22138 = vmatprep.subr.bf16.mxu1 %v28257_v8  ;;  %v28260_v52 = vand.u32 4294901760, %v25313_v51 }
 0x1c3   :  { %21902 = vmatprep.subr.bf16.mxu0 %v21901_v24  ;;  %v25548_v24 = vpack.c.bf16 %v28247_v60, %v28246_v33  ;;  %v25561_v35 = vpack.c.bf16 %v28251_v30, %v28250_v10  ;;  %v25567_v46 = vpack.c.bf16 %v28253_v28, %v28252_v56  ;;  %v28258_v33 = vld [vmem:[#allocation91_spill] sm:$0xff]  ;;  %v28259_v60 = vand.u32 4294901760, %v25308_v26 }
 0x1c4   :  { %v25573_v41 = vpack.c.bf16 %v28255_v53, %v28254_v63  ;;  %v28262_v10 = vand.u32 4294901760, %v25318_v49  ;;  %v28263_v30 = vand.u32 4294901760, %v25323_v34  ;;  %v28265_v28 = vand.u32 4294901760, %v25328_v7 }
 0x1c5   :  { %2587 = vmatmul.mubr.f32.vlgmr.msra.gmra.mrb[8].mxu0 %v28258_v33  ;;  %v25581_v1 = vpack.c.bf16 %v28260_v52, %v28259_v60  ;;  %v28266_v63 = vand.u32 4294901760, %v25335_v25  ;;  %v28269_v60 = vand.u32 4294901760, %v25348_v45  ;;  %22140 = vmatpush3.bf16.msra.mxu1 %v28257_v8 }
 0x1c6   :  { %28256 = vst [vmem:[#allocation33_spill] sm:$0xff] %v25573_v41  ;;  %v25587_v56 = vpack.c.bf16 %v28263_v30, %v28262_v10  ;;  %21904 = vmatpush1.bf16.msra.mxu0 %v21903_v61  ;;  %2592 = vmatprep.mubr.f32.mxu0 %v27951_v23  ;;  %v28268_v41 = vand.u32 4294901760, %v25340_v43  ;;  %v28272_v10 = vand.u32 4294901760, %v25365_v22  ;;  %v21909_v61 = vpack.c.bf16 %v25280_v12, %v25275_v31 }
 0x1c7   :  { %28261 = vst [vmem:[#allocation35_spill] sm:$0xff] %v25581_v1  ;;  %v25593_v53 = vpack.c.bf16 %v28266_v63, %v28265_v28  ;;  %v28271_v1 = vand.u32 4294901760, %v25353_v50  ;;  %v28274_v28 = vand.u32 4294901760, %v25387_v0  ;;  %21906 = vmatprep.subr.bf16.mxu0 %v21905_v62  ;;  %v21911_v31 = vpack.c.bf16 %v25292_v59, %v25287_v11  ;;  %v28279_v59 = vld [vmem:[#allocation57_spill] sm:$0xff] }
 0x1c8   :  { %28264 = vst [vmem:[#allocation34_spill] sm:$0xff] %v25587_v56  ;;  %v25600_v52 = vpack.c.bf16 %v28269_v60, %v28268_v41  ;;  %v28273_v56 = vand.u32 4294901760, %v25370_v4  ;;  %v28276_v41 = vand.u32 4294901760, %v25416_v14  ;;  %v21913_v12 = vpack.c.bf16 %v25302_v17, %v25297_v57 }
 0x1c9   :  { %28267 = vst [vmem:[#allocation36_spill] sm:$0xff] %v25593_v53  ;;  %v25606_v30 = vpack.c.bf16 %v28272_v10, %v28271_v1  ;;  %v28275_v53 = vand.u32 4294901760, %v25400_v18  ;;  %v25624_v1 = vpack.c.bf16 %v2549_v21, %v2537_v29  ;;  %v28277_v10 = vld [vmem:[#allocation51_spill] sm:$0xff]  ;;  %2594 = vmatmul.mubr.f32.gmra.mrb[10].mxu0 %v24224_v13  ;;  %v21915_v21 = vpack.c.bf16 %v25313_v51, %v25308_v26  ;;  %v28280_v26 = vld [vmem:[#allocation60_spill] sm:$0xff]  ;;  %v28281_v51 = vld [vmem:[#allocation49_spill] sm:$0xff] }
 0x1ca   :  { %28270 = vst [vmem:[#allocation37_spill] sm:$0xff] %v25600_v52  ;;  %v25612_v63 = vpack.c.bf16 %v28274_v28, %v28273_v56  ;;  %v25622_v52 = vpack.c.bf16 %v2543_v5, %v2531_v37  ;;  %22142 = vmatprep.subr.bf16.mxu1 %v28277_v10  ;;  %21908 = vmatpush1.bf16.msra.mxu0 %v21907_v2  ;;  %v28278_v5 = vld [vmem:[#allocation54_spill] sm:$0xff]  ;;  %v28287_v56 = vld [vmem:[#allocation101_spill] sm:$0xff] }
 0x1cb   :  { %v25620_v60 = vpack.c.bf16 %v28276_v41, %v28275_v53  ;;  %2599 = vmatprep.mubr.f32.mxu0 %v27951_v23  ;;  %21910 = vmatprep.subr.bf16.mxu0 %v21909_v61  ;;  %v21917_v11 = vpack.c.bf16 %v25323_v34, %v25318_v49  ;;  %v21919_v57 = vpack.c.bf16 %v25335_v25, %v25328_v7  ;;  %v28282_v49 = vand.u32 4294901760, %v28281_v51  ;;  %v28283_v34 = vld [vmem:[#allocation52_spill] sm:$0xff]  ;;  %v28296_v28 = vld [vmem:[#allocation61_spill] sm:$0xff]  ;;  %v28308_v51 = vld [vmem:[#allocation75_spill] sm:$0xff] }
 0x1cc   :  { %22144 = vmatpush3.bf16.msra.mxu1 %v28277_v10  ;;  %v21921_v17 = vpack.c.bf16 %v25348_v45, %v25340_v43  ;;  %v28284_v37 = vand.u32 4294901760, %v28283_v34  ;;  %v21923_v62 = vpack.c.bf16 %v25365_v22, %v25353_v50  ;;  %v21925_v7 = vpack.c.bf16 %v25387_v0, %v25370_v4  ;;  %v28288_v22 = vld [vmem:[#allocation103_spill] sm:$0xff]  ;;  %v28310_v34 = vld [vmem:[#allocation77_spill] sm:$0xff] }
 0x1cd   :  { %22146 = vmatprep.subr.bf16.mxu1 %v28278_v5  ;;  %2601 = vmatmul.mubr.f32.gmra.mrb[12].mxu0 %v28130_v32  ;;  %v28285_v25 = vand.u32 4294901760, %v24849_v39  ;;  %v28286_v43 = vand.u32 4294901760, %v24852_v6  ;;  %v21927_v2 = vpack.c.bf16 %v25416_v14, %v25400_v18  ;;  %v21929_v50 = vpack.c.bf16 %v25453_v3, %v25441_v44  ;;  %v28290_v39 = vld [vmem:[#allocation58_spill] sm:$0xff] }
 0x1ce   :  { %21912 = vmatpush1.bf16.msra.mxu0 %v21911_v31  ;;  %2606 = vmatprep.mubr.f32.mxu0 %v27951_v23  ;;  %v22157_v29 = vpack.c.bf16 %v28284_v37, %v28282_v49  ;;  %v28289_v4 = vand.u32 4294901760, %v24866_v9  ;;  %v28291_v0 = vand.u32 4294901760, %v28290_v39  ;;  %v21931_v53 = vpack.c.bf16 %v25481_v27, %v25469_v16  ;;  %v28292_v14 = vld [vmem:[#allocation106_spill] sm:$0xff]  ;;  %v28295_v9 = vld [vmem:[#allocation71_spill] sm:$0xff]  ;;  %v28300_v31 = vld [vmem:[#allocation72_spill] sm:$0xff] }
 0x1cf   :  { %21914 = vmatprep.subr.bf16.mxu0 %v21913_v12  ;;  %v22161_v45 = vpack.c.bf16 %v28286_v43, %v28285_v25  ;;  %v28293_v18 = vand.u32 4294901760, %v24876_v42  ;;  %v28294_v44 = vand.u32 4294901760, %v24878_v47  ;;  %v28297_v61 = vand.u32 4294901760, %v28296_v28  ;;  %v28298_v16 = vld [vmem:[#allocation63_spill] sm:$0xff]  ;;  %v28301_v42 = vld [vmem:[#allocation74_spill] sm:$0xff]  ;;  %v28302_v47 = vld [vmem:[#allocation64_spill] sm:$0xff] }
 0x1d0   :  { %22148 = vmatpush3.bf16.msra.mxu1 %v28278_v5  ;;  %v22165_v6 = vpack.c.bf16 %v28291_v0, %v28289_v4  ;;  %v28299_v27 = vand.u32 4294901760, %v28298_v16  ;;  %v28303_v12 = vand.u32 4294901760, %v28302_v47  ;;  %v28309_v49 = vand.u32 4294901760, %v28308_v51  ;;  %v28315_v25 = vld [vmem:[#allocation80_spill] sm:$0xff]  ;;  %v28319_v4 = vld [vmem:[#allocation87_spill] sm:$0xff]  ;;  %v28320_v39 = vld [vmem:[#allocation89_spill] sm:$0xff] }
 0x1d1   :  { %22150 = vmatprep.subr.bf16.mxu1 %v28279_v59  ;;  %2608 = vmatmul.mubr.f32.gmra.mrb[14].mxu0 %v24313_v38  ;;  %v22169_v3 = vpack.c.bf16 %v28294_v44, %v28293_v18  ;;  %v28311_v37 = vand.u32 4294901760, %v28310_v34  ;;  %v28316_v43 = vand.u32 4294901760, %v28315_v25  ;;  %v28321_v0 = vld [vmem:[#allocation90_spill] sm:$0xff]  ;;  %v28324_v18 = vld [vmem:[#allocation95_spill] sm:$0xff]  ;;  %v28326_v44 = vld [vmem:[#allocation25_spill] sm:$0xff] }
 0x1d2   :  { %21916 = vmatpush1.bf16.msra.mxu0 %v21915_v21  ;;  %2742 = vmatprep.mubr.f32.mxu0 %v27951_v23  ;;  %v22173_v41 = vpack.c.bf16 %v28299_v27, %v28297_v61  ;;  %v28304_v21 = vld [vmem:[#allocation69_spill] sm:$0xff]  ;;  %v28328_v28 = vld [vmem:[#allocation30_spill] sm:$0xff] }
 0x1d3   :  { %21918 = vmatprep.subr.bf16.mxu0 %v21917_v11  ;;  %v28305_v11 = vand.u32 4294901760, %v28304_v21 }
 0x1d4   :  { %22152 = vmatpush3.bf16.msra.mxu1 %v28279_v59 }
 0x1d5   :  { %22154 = vmatprep.subr.bf16.mxu1 %v28280_v26 }
 0x1d6   :  { %21920 = vmatpush1.bf16.msra.mxu0 %v21919_v57  ;;  %v22177_v57 = vpack.c.bf16 %v28305_v11, %v28303_v12 }
 0x1d7   :  { %21922 = vmatprep.subr.bf16.mxu0 %v21921_v17  ;;  %v28306_v17 = vld [vmem:[#allocation78_spill] sm:$0xff] }
 0x1d8   :  { %22156 = vmatpush3.bf16.msra.mxu1 %v28280_v26 }
 0x1d9   :  { %22158 = vmatprep.subr.bf16.mxu1 %v22157_v29 }
 0x1da   :  { %21924 = vmatpush1.bf16.msra.mxu0 %v21923_v62  ;;  %v28312_v62 = vld [vmem:[#allocation102_spill] sm:$0xff] }
 0x1db   :  { %19800 = vmatmul.mubr.f32.vlgmr.msra.gmra.mrb[8].mxu1 %v28287_v56  ;;  %21926 = vmatprep.subr.bf16.mxu0 %v21925_v7  ;;  %v28313_v7 = vld [vmem:[#allocation84_spill] sm:$0xff] }
 0x1dc   :  { %22160 = vmatpush3.bf16.msra.mxu1 %v22157_v29  ;;  %19802 = vmatprep.mubr.f32.mxu1 %v28288_v22  ;;  %v22181_v29 = vpack.c.bf16 %v28311_v37, %v28309_v49 }
 0x1dd   :  { %22162 = vmatprep.subr.bf16.mxu1 %v22161_v45 }
 0x1de   :  { %21928 = vmatpush1.bf16.msra.mxu0 %v21927_v2 }
 0x1df   :  { %19803 = vmatmul.mubr.f32.gmra.mrb[10].mxu1 %v28292_v14  ;;  %21930 = vmatprep.subr.bf16.mxu0 %v21929_v50 }
 0x1e0   :  { %22164 = vmatpush3.bf16.msra.mxu1 %v22161_v45  ;;  %19837 = vmatprep.mubr.f32.mxu1 %v28258_v33  ;;  %v28317_v45 = vld [vmem:[#allocation81_spill] sm:$0xff] }
 0x1e1   :  { %22166 = vmatprep.subr.bf16.mxu1 %v22165_v6  ;;  %v28318_v2 = vand.u32 4294901760, %v28317_v45 }
 0x1e2   :  { %21932 = vmatpush1.bf16.msra.mxu0 %v21931_v53  ;;  %v28323_v53 = vld [vmem:[#allocation43_spill] sm:$0xff] }
 0x1e3   :  { %21934 = vmatprep.subr.bf16.mxu0 %v28295_v9  ;;  %v22185_v50 = vpack.c.bf16 %v28318_v2, %v28316_v43 }
 0x1e4   :  { %22168 = vmatpush3.bf16.msra.mxu1 %v22165_v6  ;;  %v28322_v6 = vld [vmem:[#allocation94_spill] sm:$0xff] }
 0x1e5   :  { %22170 = vmatprep.subr.bf16.mxu1 %v22169_v3  ;;  %2745 = vmatmul.mubr.f32.vlgmr.msra.gmra.mrb[8].mxu0 %v28213_v15  ;;  %v28307_v15 = vld [vmem:[#allocation83_spill] sm:$0xff] }
 0x1e6   :  { %21936 = vmatpush1.bf16.msra.mxu0 %v28300_v31  ;;  %2750 = vmatprep.mubr.f32.mxu0 %v27951_v23 }
 0x1e7   :  { %21938 = vmatprep.subr.bf16.mxu0 %v28301_v42 }
 0x1e8   :  { %22172 = vmatpush3.bf16.msra.mxu1 %v22169_v3  ;;  %v28327_v3 = vld [vmem:[#allocation27_spill] sm:$0xff] }
 0x1e9   :  { %22174 = vmatprep.subr.bf16.mxu1 %v22173_v41  ;;  %2753 = vmatmul.mubr.f32.gmra.mrb[10].mxu0 %v28235_v20  ;;  %v28314_v20 = vld [vmem:[#allocation86_spill] sm:$0xff] }
 0x1ea   :  { %21940 = vmatpush1.bf16.msra.mxu0 %v28306_v17  ;;  %2758 = vmatprep.mubr.f32.mxu0 %v27951_v23 }
 0x1eb   :  { %21942 = vmatprep.subr.bf16.mxu0 %v28307_v15 }
 0x1ec   :  { %22176 = vmatpush3.bf16.msra.mxu1 %v22173_v41 }
 0x1ed   :  { %22178 = vmatprep.subr.bf16.mxu1 %v22177_v57  ;;  %2761 = vmatmul.mubr.f32.gmra.mrb[12].mxu0 %v28312_v62 }
 0x1ee   :  { %21944 = vmatpush1.bf16.msra.mxu0 %v28313_v7  ;;  %2766 = vmatprep.mubr.f32.mxu0 %v27951_v23 }
 0x1ef   :  { %21946 = vmatprep.subr.bf16.mxu0 %v28314_v20 }
 0x1f0   :  { %22180 = vmatpush3.bf16.msra.mxu1 %v22177_v57 }
 0x1f1   :  { %22182 = vmatprep.subr.bf16.mxu1 %v22181_v29  ;;  %2769 = vmatmul.mubr.f32.gmra.mrb[14].mxu0 %v28238_v36  ;;  %v28325_v36 = vld [vmem:[#allocation97_spill] sm:$0xff] }
 0x1f2   :  { %21948 = vmatpush1.bf16.msra.mxu0 %v28319_v4  ;;  %2871 = vmatprep.mubr.f32.mxu0 %v27951_v23 }
 0x1f3   :  { %21950 = vmatprep.subr.bf16.mxu0 %v28320_v39 }
 0x1f4   :  { %22184 = vmatpush3.bf16.msra.mxu1 %v22181_v29 }
 0x1f5   :  { %22186 = vmatprep.subr.bf16.mxu1 %v22185_v50 }
 0x1f6   :  { %21952 = vmatpush1.bf16.msra.mxu0 %v28321_v0 }
 0x1f7   :  { %21954 = vmatprep.subr.bf16.mxu0 %v28322_v6 }
 0x1f8   :  { %22188 = vmatpush3.bf16.msra.mxu1 %v22185_v50 }
 0x1f9   :  { %22190 = vmatprep.subr.bf16.mxu1 %v28323_v53 }
 0x1fa   :  { %21956 = vmatpush1.bf16.msra.mxu0 %v28324_v18 }
 0x1fb   :  { %19838 = vmatmul.mubr.f32.vlgmr.msra.gmra.mrb[8].mxu1 %v24224_v13  ;;  %21958 = vmatprep.subr.bf16.mxu0 %v28325_v36 }
 0x1fc   :  { %22192 = vmatpush3.bf16.msra.mxu1 %v28323_v53  ;;  %19840 = vmatprep.mubr.f32.mxu1 %v28130_v32 }
 0x1fd   :  { %22194 = vmatprep.subr.bf16.mxu1 %v28237_v19 }
 0x1fe   :  { %21960 = vmatpush1.bf16.msra.mxu0 %v28326_v44 }
 0x1ff   :  { %19841 = vmatmul.mubr.f32.gmra.mrb[10].mxu1 %v24313_v38  ;;  %21962 = vmatprep.subr.bf16.mxu0 %v28327_v3 }
 0x200   :  { %22196 = vmatpush3.bf16.msra.mxu1 %v28237_v19  ;;  %19875 = vmatprep.mubr.f32.mxu1 %v28258_v33  ;;  %v28330_v19 = vld [vmem:[#allocation35_spill] sm:$0xff] }
 0x201   :  { %22198 = vmatprep.subr.bf16.mxu1 %v28241_v54 }
 0x202   :  { %21964 = vmatpush1.bf16.msra.mxu0 %v28328_v28 }
 0x203   :  { %21966 = vmatprep.subr.bf16.mxu0 %v25536_v58  ;;  %v28332_v58 = vld [vmem:[#allocation36_spill] sm:$0xff] }
 0x204   :  { %22200 = vmatpush3.bf16.msra.mxu1 %v28241_v54  ;;  %v28329_v54 = vld [vmem:[#allocation33_spill] sm:$0xff] }
 0x205   :  { %22202 = vmatprep.subr.bf16.mxu1 %v28257_v8  ;;  %2875 = vmatmul.mubr.f32.vlgmr.msra.gmra.mrb[8].mxu0 %v28240_v48  ;;  %v28331_v48 = vld [vmem:[#allocation34_spill] sm:$0xff] }
 0x206   :  { %21968 = vmatpush1.bf16.msra.mxu0 %v25542_v40  ;;  %2880 = vmatprep.mubr.f32.mxu0 %v27951_v23  ;;  %v28333_v40 = vld [vmem:[#allocation37_spill] sm:$0xff] }
 0x207   :  { %21970 = vmatprep.subr.bf16.mxu0 %v25548_v24 }
 0x208   :  { %22204 = vmatpush3.bf16.msra.mxu1 %v28257_v8 }
 0x209   :  { %22206 = vmatprep.subr.bf16.mxu1 %v28277_v10  ;;  %2884 = vmatmul.mubr.f32.gmra.mrb[10].mxu0 %v28287_v56 }
 0x20a   :  { %21972 = vmatpush1.bf16.msra.mxu0 %v25555_v55  ;;  %2889 = vmatprep.mubr.f32.mxu0 %v27951_v23 }
 0x20b   :  { %21974 = vmatprep.subr.bf16.mxu0 %v25561_v35 }
 0x20c   :  { %22208 = vmatpush3.bf16.msra.mxu1 %v28277_v10 }
 0x20d   :  { %22210 = vmatprep.subr.bf16.mxu1 %v28278_v5  ;;  %2893 = vmatmul.mubr.f32.gmra.mrb[12].mxu0 %v28288_v22 }
 0x20e   :  { %21976 = vmatpush1.bf16.msra.mxu0 %v25567_v46  ;;  %2898 = vmatprep.mubr.f32.mxu0 %v27951_v23 }
 0x20f   :  { %21978 = vmatprep.subr.bf16.mxu0 %v28329_v54 }
 0x210   :  { %22212 = vmatpush3.bf16.msra.mxu1 %v28278_v5 }
 0x211   :  { %22214 = vmatprep.subr.bf16.mxu1 %v28279_v59  ;;  %2902 = vmatmul.mubr.f32.gmra.mrb[14].mxu0 %v28292_v14 }
 0x212   :  { %21980 = vmatpush1.bf16.msra.mxu0 %v28330_v19  ;;  %3068 = vmatprep.mubr.f32.mxu0 %v27951_v23  ;;  %v4029_v19 = vld [vmem:[#allocation8 + $0x8] sm:$0xff] }
 0x213   :  { %21982 = vmatprep.subr.bf16.mxu0 %v28331_v48  ;;  %v4030_v48 = vld [vmem:[#allocation8 + $0x10] sm:$0xff] }
 0x214   :  { %22216 = vmatpush3.bf16.msra.mxu1 %v28279_v59 }
 0x215   :  { %22218 = vmatprep.subr.bf16.mxu1 %v28280_v26 }
 0x216   :  { %21984 = vmatpush1.bf16.msra.mxu0 %v28332_v58  ;;  %v4031_v58 = vld [vmem:[#allocation8 + $0x18] sm:$0xff] }
 0x217   :  { %21986 = vmatprep.subr.bf16.mxu0 %v28333_v40 }
 0x218   :  { %22220 = vmatpush3.bf16.msra.mxu1 %v28280_v26 }
 0x21a   :  { %21988 = vmatpush1.bf16.msra.mxu0 %v25606_v30 }
 0x21b   :  { %19876 = vmatmul.mubr.f32.vlgmr.msra.gmra.mrb[8].mxu1 %v24224_v13  ;;  %21990 = vmatprep.subr.bf16.mxu0 %v25612_v63 }
 0x21c   :  { %19878 = vmatprep.mubr.f32.mxu1 %v28130_v32 }
 0x21e   :  { %21992 = vmatpush1.bf16.msra.mxu0 %v25620_v60 }
 0x21f   :  { %19879 = vmatmul.mubr.f32.gmra.mrb[10].mxu1 %v24313_v38  ;;  %21994 = vmatprep.subr.bf16.mxu0 %v25622_v52 }
 0x222   :  { %21996 = vmatpush1.bf16.msra.mxu0 %v25624_v1  ;;  %v25772_v24 = vpop.f32.mrb[0].mxu0 }
 0x223   :  { %21998 = vmatprep.subr.bf16.mxu0 %v28295_v9  ;;  %v25776_v55 = vpop.f32.mrb[1].mxu0  ;;  %v3992_v35 = vmul.f32 %v25772_v24, %v25772_v24 }
 0x224   :  { %v4004_v46 = vmul.f32 %v25776_v55, %v25776_v55 }
 0x225   :  { %3070 = vmatmul.mubr.f32.vlgmr.msra.gmra.mrb[8].mxu0 %v28258_v33  ;;  %3994 = vadd.xlane.f32.xlu0 %v3992_v35 }
 0x226   :  { %22000 = vmatpush1.bf16.msra.mxu0 %v28300_v31  ;;  %3075 = vmatprep.mubr.f32.mxu0 %v27951_v23  ;;  %v25784_v8 = vpop.f32.mrb[2].mxu0 }
 0x227   :  { %22002 = vmatprep.subr.bf16.mxu0 %v28301_v42  ;;  %4006 = vadd.xlane.f32.xlu1 %v4004_v46  ;;  %v25787_v52 = vpop.f32.mrb[3].mxu0  ;;  %v3993_v30 = vmul.f32 %v25784_v8, %v25784_v8 }
 0x228   :  { %v4005_v63 = vmul.f32 %v25787_v52, %v25787_v52 }
 0x229   :  { %3077 = vmatmul.mubr.f32.gmra.mrb[10].mxu0 %v24224_v13  ;;  %v25795_v60 = vpop.f32.mrb[0].mxu1  ;;  %3996 = vadd.xlane.f32.xlu0 %v3993_v30  ;;  %v4044_v30 = vsel %vm4036_vm0, %v4030_v48, 0 }
 0x22a   :  { %22004 = vmatpush1.bf16.msra.mxu0 %v28306_v17  ;;  %3082 = vmatprep.mubr.f32.mxu0 %v27951_v23  ;;  %v2196_v1 = vpop.f32.mrb[1].mxu1  ;;  %v25798_v10 = vpop.f32.mrb[4].mxu0  ;;  %v4016_v5 = vmul.f32 %v25795_v60, %v25795_v60 }
 0x22b   :  { %22006 = vmatprep.subr.bf16.mxu0 %v28307_v15  ;;  %4008 = vadd.xlane.f32.xlu1 %v4005_v63  ;;  %28334 = vst [vmem:[#allocation39_spill] sm:$0xff] %v25798_v10  ;;  %v10762_v59 = vand.u32 4294901760, %v2196_v1  ;;  %v25803_v26 = vpop.f32.mrb[5].mxu0 }
 0x22c   :  { %28335 = vst [vmem:[#allocation38_spill] sm:$0xff] %v25803_v26 }
 0x22d   :  { %3084 = vmatmul.mubr.f32.gmra.mrb[12].mxu0 %v28130_v32  ;;  %v10850_v56 = vsub.f32 %v2196_v1, %v10762_v59  ;;  %v25807_v22 = vpop.f32.mrb[2].mxu1  ;;  %4018 = vadd.xlane.f32.xlu0 %v4016_v5  ;;  %v25869_v5 = vand.u32 4294901760, %v4044_v30 }
 0x22e   :  { %22008 = vmatpush1.bf16.msra.mxu0 %v28313_v7  ;;  %3089 = vmatprep.mubr.f32.mxu0 %v27951_v23  ;;  %v4017_v14 = vmul.f32 %v25807_v22, %v25807_v22  ;;  %v25812_v9 = vpop.f32.mrb[6].mxu0  ;;  %v2203_v61 = vpop.f32.mrb[3].mxu1 }
 0x22f   :  { %22010 = vmatprep.subr.bf16.mxu0 %v28314_v20  ;;  %28336 = vst [vmem:[#allocation40_spill] sm:$0xff] %v25812_v9  ;;  %v10851_v16 = vand.u32 4294901760, %v10850_v56  ;;  %v25816_v27 = vpop.f32.mrb[7].mxu0  ;;  %v10765_v41 = vand.u32 4294901760, %v2203_v61 }
 0x230   :  { %28337 = vst [vmem:[#allocation41_spill] sm:$0xff] %v25816_v27  ;;  %4020 = vadd.xlane.f32.xlu1 %v4017_v14 }
 0x231   :  { %3091 = vmatmul.mubr.f32.gmra.mrb[14].mxu0 %v24313_v38  ;;  %v10852_v31 = vsub.f32 %v10850_v56, %v10851_v16  ;;  %v25819_v42 = vpack.c.bf16 %v10765_v41, %v10762_v59  ;;  %v10857_v47 = vsub.f32 %v2203_v61, %v10765_v41  ;;  %v25821_v12 = vpop.f32.mrb[4].mxu1  ;;  %v4032_v59 = vld [vmem:[#allocation8 + $0x20] sm:$0xff] }
 0x232   :  { %22012 = vmatpush1.bf16.msra.mxu0 %v28319_v4  ;;  %3193 = vmatprep.mubr.f32.mxu0 %v27951_v23  ;;  %28339 = vst [vmem:[#allocation42_spill] sm:$0xff] %v25821_v12  ;;  %v2210_v21 = vpop.f32.mrb[5].mxu1  ;;  %v4050_v41 = vsel %vm4036_vm0, %v4032_v59, 0 }
 0x233   :  { %22014 = vmatprep.subr.bf16.mxu0 %v28320_v39  ;;  %28338 = vst [vmem:[#allocation44_spill] sm:$0xff] %v25819_v42  ;;  %v10858_v11 = vand.u32 4294901760, %v10857_v47  ;;  %v18036_v57 = vand.u32 4294901760, %v2210_v21  ;;  %v25825_v17 = vpack.c.bf16 %v10857_v47, %v10850_v56  ;;  %v10853_v34 = vand.u32 4294901760, %v10852_v31  ;;  %v4033_v31 = vld [vmem:[#allocation8 + $0x28] sm:$0xff] }
 0x235   :  { %28340 = vst [vmem:[#allocation22_spill] sm:$0xff] %v25825_v17  ;;  %v10859_v15 = vsub.f32 %v10857_v47, %v10858_v11  ;;  %v18124_v51 = vsub.f32 %v2210_v21, %v18036_v57  ;;  %v25827_v49 = vpop.f32.mrb[6].mxu1  ;;  %v25829_v37 = vpack.c.bf16 %v10858_v11, %v10851_v16  ;;  %v25878_v11 = vsub.f32 %v4044_v30, %v25869_v5 }
 0x236   :  { %22016 = vmatpush1.bf16.msra.mxu0 %v28321_v0  ;;  %28341 = vst [vmem:[#allocation23_spill] sm:$0xff] %v25827_v49  ;;  %v2217_v29 = vpop.f32.mrb[7].mxu1 }
 0x237   :  { %22018 = vmatprep.subr.bf16.mxu0 %v28322_v6  ;;  %28342 = vst [vmem:[#allocation24_spill] sm:$0xff] %v25829_v37  ;;  %v18125_v62 = vand.u32 4294901760, %v18124_v51  ;;  %v18039_v7 = vand.u32 4294901760, %v2217_v29  ;;  %v10860_v20 = vand.u32 4294901760, %v10859_v15 }
 0x239   :  { %v18126_v25 = vsub.f32 %v18124_v51, %v18125_v62  ;;  %v25833_v43 = vpack.c.bf16 %v18039_v7, %v18036_v57  ;;  %v18131_v45 = vsub.f32 %v2217_v29, %v18039_v7  ;;  %v25835_v2 = vpack.c.bf16 %v10860_v20, %v10853_v34 }
 0x23a   :  { %22020 = vmatpush1.bf16.msra.mxu0 %v28324_v18  ;;  %v25883_v34 = vand.u32 4294901760, %v4050_v41  ;;  %v4053_v29 = vsel %vm4036_vm0, %v4033_v31, 0 }
 0x23b   :  { %22022 = vmatprep.subr.bf16.mxu0 %v28325_v36  ;;  %28343 = vst [vmem:[#allocation26_spill] sm:$0xff] %v25833_v43  ;;  %28344 = vst [vmem:[#allocation28_spill] sm:$0xff] %v25835_v2  ;;  %v18132_v50 = vand.u32 4294901760, %v18131_v45  ;;  %v25839_v4 = vpack.c.bf16 %v18131_v45, %v18124_v51  ;;  %v18127_v0 = vand.u32 4294901760, %v18126_v25  ;;  %v4028_v36 = vld [vmem:[#allocation8] sm:$0xff]  ;;  %v4034_v51 = vld [vmem:[#allocation8 + $0x30] sm:$0xff] }
 0x23c   :  { %v25890_v25 = vand.u32 4294901760, %v25878_v11 }
 0x23d   :  { %28345 = vst [vmem:[#allocation29_spill] sm:$0xff] %v25839_v4  ;;  %v18133_v39 = vsub.f32 %v18131_v45, %v18132_v50  ;;  %v25841_v6 = vpack.c.bf16 %v18132_v50, %v18125_v62  ;;  %v4056_v45 = vsel %vm4036_vm0, %v4034_v51, 0 }
 0x23e   :  { %22024 = vmatpush1.bf16.msra.mxu0 %v28326_v44  ;;  %v4038_v44 = vsel %vm4036_vm0, %v4028_v36, 0 }
 0x23f   :  { %22026 = vmatprep.subr.bf16.mxu0 %v28327_v3  ;;  %28346 = vst [vmem:[#allocation88_spill] sm:$0xff] %v25841_v6  ;;  %v18134_v53 = vand.u32 4294901760, %v18133_v39  ;;  %v25850_v3 = vand.u32 4294901760, %v4038_v44 }
 0x241   :  { %v25845_v18 = vpack.c.bf16 %v18134_v53, %v18127_v0  ;;  %v25854_v54 = vsub.f32 %v4038_v44, %v25850_v3  ;;  %v25896_v0 = vand.u32 4294901760, %v4053_v29  ;;  %v4035_v53 = vld [vmem:[#allocation8 + $0x38] sm:$0xff] }
 0x242   :  { %22028 = vmatpush1.bf16.msra.mxu0 %v28328_v28 }
 0x243   :  { %28347 = vst [vmem:[#allocation93_spill] sm:$0xff] %v25845_v18  ;;  %v25913_v30 = vsub.f32 %v4053_v29, %v25896_v0 }
 0x245   :  { %3195 = vmatmul.mubr.f32.vlgmr.msra.gmra.mrb[8].mxu0 %v28258_v33  ;;  %v25858_v33 = vand.u32 4294901760, %v25854_v54 }
 0x246   :  { %3200 = vmatprep.mubr.f32.mxu0 %v27951_v23 }
 0x247   :  { %v4131_v28 = vsub.f32 %v25854_v54, %v25858_v33 }
 0x249   :  { %3202 = vmatmul.mubr.f32.gmra.mrb[10].mxu0 %v24224_v13  ;;  %v4132_v13 = vand.u32 4294901760, %v4131_v28  ;;  %v25900_v28 = vsub.f32 %v4050_v41, %v25883_v34 }
 0x24a   :  { %3207 = vmatprep.mubr.f32.mxu0 %v27951_v23 }
 0x24b   :  { %19885 = vmatprep.mubr.f32.mxu1 %v4132_v13 }
 0x24d   :  { %3209 = vmatmul.mubr.f32.gmra.mrb[12].mxu0 %v28130_v32  ;;  %v4041_v32 = vsel %vm4036_vm0, %v4029_v19, 0  ;;  %v25903_v19 = vand.u32 4294901760, %v4056_v45 }
 0x24e   :  { %3214 = vmatprep.mubr.f32.mxu0 %v27951_v23  ;;  %v4047_v23 = vsel %vm4036_vm0, %v4031_v58, 0 }
 0x24f   :  { %v25871_v61 = vand.u32 4294901760, %v4047_v23 }
 0x251   :  { %3216 = vmatmul.mubr.f32.gmra.mrb[14].mxu0 %v24313_v38  ;;  %v25867_v38 = vand.u32 4294901760, %v4041_v32  ;;  %v25881_v15 = vsub.f32 %v4047_v23, %v25871_v61 }
 0x252   :  { %19981 = vmatprep.mubr.f32.mxu0 %v4132_v13 }
 0x253   :  { %v25875_v21 = vsub.f32 %v4041_v32, %v25867_v38  ;;  %v25894_v39 = vand.u32 4294901760, %v25881_v15 }
 0x255   :  { %v25887_v20 = vand.u32 4294901760, %v25875_v21 }
 0x257   :  { %v4141_v58 = vsub.f32 %v25875_v21, %v25887_v20 }
 0x259   :  { %v4142_v31 = vand.u32 4294901760, %v4141_v58 }
 0x2b2   :  { %v3995_v40 = vpop.xlane.xlu0 %3994 }
 0x2b3   :  { %v3998_v35 = vmax.f32 %v3995_v40, 1e-24  ;;  %v4151_v40 = vsub.f32 %v25878_v11, %v25890_v25 }
 0x2b4   :  { %v4007_v46 = vpop.xlane.xlu1 %4006 }
 0x2b5   :  { %v4010_v63 = vmax.f32 %v4007_v46, 1e-24  ;;  %23493 = vrsqrt.f32 %v3998_v35  ;;  %v4059_v35 = vsel %vm4036_vm0, %v4035_v53, 0 }
 0x2b6   :  { %v3997_v1 = vpop.xlane.xlu0 %3996 }
 0x2b7   :  { %23495 = vrsqrt.f32 %v4010_v63  ;;  %v3999_v56 = vmax.f32 %v3997_v1, 1e-24  ;;  %v25917_v1 = vand.u32 4294901760, %v25900_v28 }
 0x2b8   :  { %v4009_v14 = vpop.xlane.xlu1 %4008 }
 0x2b9   :  { %v4011_v16 = vmax.f32 %v4009_v14, 1e-24  ;;  %23497 = vrsqrt.f32 %v3999_v56  ;;  %v25921_v14 = vsub.f32 %v4056_v45, %v25903_v19  ;;  %v4171_v45 = vsub.f32 %v25900_v28, %v25917_v1 }
 0x2ba   :  { %v4019_v47 = vpop.xlane.xlu0 %4018 }
 0x2bb   :  { %23499 = vrsqrt.f32 %v4011_v16  ;;  %v4022_v57 = vmax.f32 %v4019_v47, 1e-24  ;;  %v25923_v16 = vand.u32 4294901760, %v4059_v35  ;;  %v4152_v47 = vand.u32 4294901760, %v4151_v40 }
 0x2bc   :  { %v4172_v18 = vand.u32 4294901760, %v4171_v45 }
 0x2bd   :  { %23501 = vrsqrt.f32 %v4022_v57  ;;  %v4021_v62 = vpop.xlane.xlu1 %4020  ;;  %v25939_v58 = vsub.f32 %v4059_v35, %v25923_v16 }
 0x2be   :  { %v4023_v7 = vmax.f32 %v4021_v62, 1e-24 }
 0x2bf   :  { %v23494_v50 = vpop.eup %23493 }
 0x2c0   :  { %v4002_v44 = vmul.f32 %v23494_v50, %v25772_v24  ;;  %23503 = vrsqrt.f32 %v4023_v7  ;;  %v4161_v24 = vsub.f32 %v25881_v15, %v25894_v39  ;;  %v25926_v7 = vand.u32 4294901760, %v25913_v30 }
 0x2c1   :  { %v23496_v36 = vpop.eup %23495 }
 0x2c2   :  { %v4014_v13 = vmul.f32 %v23496_v36, %v25776_v55  ;;  %v4062_v48 = vand.u32 4294901760, %v4002_v44  ;;  %v4162_v62 = vand.u32 4294901760, %v4161_v24 }
 0x2c3   :  { %v23498_v46 = vpop.eup %23497 }
 0x2c4   :  { %v4822_v32 = vand.u32 4294901760, %v4014_v13  ;;  %v4003_v63 = vmul.f32 %v23498_v46, %v25784_v8  ;;  %v4210_v23 = vsub.f32 %v4002_v44, %v4062_v48 }
 0x2c5   :  { %v23500_v55 = vpop.eup %23499 }
 0x2c6   :  { %v4970_v59 = vsub.f32 %v4014_v13, %v4822_v32  ;;  %v4015_v56 = vmul.f32 %v23500_v55, %v25787_v52  ;;  %v4065_v41 = vand.u32 4294901760, %v4003_v63  ;;  %v4211_v57 = vand.u32 4294901760, %v4210_v23 }
 0x2c7   :  { %v23502_v51 = vpop.eup %23501  ;;  %v25936_v13 = vand.u32 4294901760, %v25921_v14 }
 0x2c8   :  { %v4825_v29 = vand.u32 4294901760, %v4015_v56  ;;  %v4971_v8 = vand.u32 4294901760, %v4970_v59  ;;  %v25928_v50 = vpack.c.bf16 %v4065_v41, %v4062_v48  ;;  %v4026_v52 = vmul.f32 %v23502_v51, %v25795_v60 }
 0x2c9   :  { %v4217_v53 = vsub.f32 %v4003_v63, %v4065_v41  ;;  %v4212_v48 = vsub.f32 %v4210_v23, %v4211_v57  ;;  %v4181_v41 = vsub.f32 %v25913_v30, %v25926_v7 }
 0x2ca   :  { %v25933_v36 = vpack.c.bf16 %v4825_v29, %v4822_v32  ;;  %v4977_v44 = vsub.f32 %v4015_v56, %v4825_v29  ;;  %v23504_v40 = vpop.eup %23503  ;;  %v25941_v46 = vand.u32 4294901760, %v4026_v52  ;;  %22222 = vmatprep.subr.bf16.mxu1 %v25928_v50  ;;  %v4972_v32 = vsub.f32 %v4970_v59, %v4971_v8 }
 0x2cb   :  { %v4218_v60 = vand.u32 4294901760, %v4217_v53  ;;  %v22229_v24 = vpack.c.bf16 %v4217_v53, %v4210_v23  ;;  %v4027_v55 = vmul.f32 %v23504_v40, %v25807_v22  ;;  %22224 = vmatpush3.bf16.msra.mxu1 %v25928_v50  ;;  %v25960_v40 = vand.u32 4294901760, %v25939_v58 }
 0x2cc   :  { %28348 = vst [vmem:[#allocation31_spill] sm:$0xff] %v25941_v46  ;;  %22246 = vmatprep.subr.bf16.mxu0 %v25933_v36  ;;  %v4978_v63 = vand.u32 4294901760, %v4977_v44  ;;  %v25947_v56 = vpack.c.bf16 %v4977_v44, %v4970_v59  ;;  %v25955_v23 = vsub.f32 %v4026_v52, %v25941_v46  ;;  %v4213_v59 = vand.u32 4294901760, %v4212_v48 }
 0x2cd   :  { %22248 = vmatpush3.bf16.msra.mxu0 %v25933_v36  ;;  %v4219_v35 = vsub.f32 %v4217_v53, %v4218_v60  ;;  %v25952_v51 = vpack.c.bf16 %v4218_v60, %v4211_v57  ;;  %v25957_v22 = vand.u32 4294901760, %v4027_v55  ;;  %v4191_v53 = vsub.f32 %v25921_v14, %v25936_v13 }
 0x2ce   :  { %28349 = vst [vmem:[#allocation32_spill] sm:$0xff] %v25955_v23  ;;  %v4979_v29 = vsub.f32 %v4977_v44, %v4978_v63  ;;  %v25962_v6 = vpack.c.bf16 %v4978_v63, %v4971_v8  ;;  %19886 = vmatmul.mubr.f32.vlgmr.msra.gmra.mrb[12].mxu1 %v4142_v31  ;;  %v25967_v57 = vand.u32 4294901760, %v25955_v23  ;;  %v4973_v44 = vand.u32 4294901760, %v4972_v32 }
 0x2cf   :  { %28350 = vst [vmem:[#allocation98_spill] sm:$0xff] %v25957_v22  ;;  %v4220_v4 = vand.u32 4294901760, %v4219_v35  ;;  %v25970_v52 = vsub.f32 %v4027_v55, %v25957_v22  ;;  %19888 = vmatprep.mubr.f32.mxu1 %v4152_v47  ;;  %v25974_v8 = vpack.c.bf16 %v25957_v22, %v25941_v46  ;;  %v4182_v55 = vand.u32 4294901760, %v4181_v41 }
 0x2d0   :  { %28351 = vst [vmem:[#allocation67_spill] sm:$0xff] %v25967_v57  ;;  %19982 = vmatmul.mubr.f32.vlgmr.msra.gmra.mrb[16].mxu0 %v4142_v31  ;;  %v4980_v60 = vand.u32 4294901760, %v4979_v29  ;;  %v9263_v48 = vsub.f32 %v25955_v23, %v25967_v57 }
 0x2d1   :  { %28352 = vst [vmem:[#allocation47_spill] sm:$0xff] %v25970_v52  ;;  %v22225_v63 = vpack.c.bf16 %v4220_v4, %v4213_v59  ;;  %19984 = vmatprep.mubr.f32.mxu0 %v4152_v47  ;;  %v25981_v43 = vand.u32 4294901760, %v25970_v52  ;;  %v25985_v31 = vpack.c.bf16 %v25970_v52, %v25955_v23  ;;  %v4201_v4 = vsub.f32 %v25939_v58, %v25960_v40 }
 0x2d2   :  { %v25978_v35 = vpack.c.bf16 %v4980_v60, %v4973_v44  ;;  %19889 = vmatmul.mubr.f32.gmra.mrb[14].mxu1 %v4162_v62  ;;  %v4192_v47 = vand.u32 4294901760, %v4191_v53  ;;  %v25989_v32 = vand.u32 4294901760, %v9263_v48 }
 0x2d3   :  { %28353 = vst [vmem:[#allocation50_spill] sm:$0xff] %v25981_v43  ;;  %28354 = vst [vmem:[#allocation56_spill] sm:$0xff] %v25985_v31  ;;  %22226 = vmatprep.subr.bf16.mxu1 %v22225_v63  ;;  %v9273_v45 = vsub.f32 %v25970_v52, %v25981_v43  ;;  %v25995_v29 = vpack.c.bf16 %v25981_v43, %v25967_v57  ;;  %19891 = vmatprep.mubr.f32.mxu1 %v4172_v18 }
 0x2d4   :  { %22228 = vmatpush3.bf16.msra.mxu1 %v22225_v63  ;;  %19985 = vmatmul.mubr.f32.gmra.mrb[18].mxu0 %v4162_v62  ;;  %v4202_v62 = vand.u32 4294901760, %v4201_v4 }
 0x2d5   :  { %28355 = vst [vmem:[#allocation53_spill] sm:$0xff] %v25995_v29  ;;  %22250 = vmatprep.subr.bf16.mxu0 %v25978_v35  ;;  %22230 = vmatprep.subr.bf16.mxu1 %v22229_v24  ;;  %v25999_v41 = vand.u32 4294901760, %v9273_v45 }
 0x2d6   :  { %22252 = vmatpush3.bf16.msra.mxu0 %v25978_v35  ;;  %19892 = vmatmul.mubr.f32.gmra.mrb[16].mxu1 %v4182_v55 }
 0x2d7   :  { %22254 = vmatprep.subr.bf16.mxu0 %v25947_v56  ;;  %19987 = vmatprep.mubr.f32.mxu0 %v4172_v18  ;;  %v26004_v59 = vpack.c.bf16 %v25999_v41, %v25989_v32 }
 0x2d8   :  { %19894 = vmatprep.mubr.f32.mxu1 %v4192_v47  ;;  %19988 = vmatmul.mubr.f32.gmra.mrb[20].mxu0 %v4182_v55 }
 0x2d9   :  { %19990 = vmatprep.mubr.f32.mxu0 %v4192_v47 }
 0x2da   :  { %19895 = vmatmul.mubr.f32.gmra.mrb[18].mxu1 %v4202_v62 }
 0x2db   :  { %19901 = vmatprep.mubr.f32.mxu1 %v25850_v3 }
 0x2dc   :  { %19991 = vmatmul.mubr.f32.gmra.mrb[22].mxu0 %v4202_v62 }
 0x2dd   :  { %19997 = vmatprep.mubr.f32.mxu0 %v25850_v3 }
 0x2de   :  { %19902 = vmatmul.mubr.f32.vlgmr.msra.gmra.mrb[12].mxu1 %v25867_v38 }
 0x2df   :  { %22232 = vmatpush3.bf16.msra.mxu1 %v22229_v24  ;;  %19904 = vmatprep.mubr.f32.mxu1 %v25869_v5 }
 0x2e0   :  { %22234 = vmatprep.subr.bf16.mxu1 %v25928_v50  ;;  %19998 = vmatmul.mubr.f32.vlgmr.msra.gmra.mrb[16].mxu0 %v25867_v38 }
 0x2e1   :  { %22256 = vmatpush3.bf16.msra.mxu0 %v25947_v56  ;;  %20000 = vmatprep.mubr.f32.mxu0 %v25869_v5 }
 0x2e2   :  { %22258 = vmatprep.subr.bf16.mxu0 %v25933_v36  ;;  %19905 = vmatmul.mubr.f32.gmra.mrb[14].mxu1 %v25871_v61 }
 0x2e3   :  { %19907 = vmatprep.mubr.f32.mxu1 %v25883_v34 }
 0x2e4   :  { %20001 = vmatmul.mubr.f32.gmra.mrb[18].mxu0 %v25871_v61 }
 0x2e5   :  { %20003 = vmatprep.mubr.f32.mxu0 %v25883_v34 }
 0x2e6   :  { %19908 = vmatmul.mubr.f32.gmra.mrb[16].mxu1 %v25896_v0 }
 0x2e7   :  { %19910 = vmatprep.mubr.f32.mxu1 %v25903_v19 }
 0x2e8   :  { %20004 = vmatmul.mubr.f32.gmra.mrb[20].mxu0 %v25896_v0 }
 0x2e9   :  { %20006 = vmatprep.mubr.f32.mxu0 %v25903_v19 }
 0x2ea   :  { %19911 = vmatmul.mubr.f32.gmra.mrb[18].mxu1 %v25923_v16 }
 0x2eb   :  { %19917 = vmatprep.mubr.f32.mxu1 %v25854_v54 }
 0x2ec   :  { %20007 = vmatmul.mubr.f32.gmra.mrb[22].mxu0 %v25923_v16 }
 0x2ed   :  { %20013 = vmatprep.mubr.f32.mxu0 %v25854_v54 }
 0x2ee   :  { %v19877_v18 = vpop.f32.mrb[8].mxu1  ;;  %19918 = vmatmul.mubr.f32.vlgmr.msra.gmra.mrb[12].mxu1 %v25875_v21 }
 0x2ef   :  { %v10257_v24 = vand.u32 4294901760, %v19877_v18  ;;  %v3970_v53 = vpop.f32.mrb[9].mxu1  ;;  %22236 = vmatpush3.bf16.msra.mxu1 %v25928_v50  ;;  %19920 = vmatprep.mubr.f32.mxu1 %v25878_v11 }
 0x2f0   :  { %v10254_v44 = vand.u32 4294901760, %v3970_v53  ;;  %22238 = vmatprep.subr.bf16.mxu1 %v25952_v51  ;;  %20014 = vmatmul.mubr.f32.vlgmr.msra.gmra.mrb[16].mxu0 %v25875_v21 }
 0x2f1   :  { %v10349_v60 = vsub.f32 %v19877_v18, %v10257_v24  ;;  %22260 = vmatpush3.bf16.msra.mxu0 %v25933_v36  ;;  %20016 = vmatprep.mubr.f32.mxu0 %v25878_v11 }
 0x2f2   :  { %v26028_v63 = vpack.c.bf16 %v10257_v24, %v10254_v44  ;;  %v10342_v48 = vsub.f32 %v3970_v53, %v10254_v44  ;;  %v19880_v55 = vpop.f32.mrb[10].mxu1  ;;  %22262 = vmatprep.subr.bf16.mxu0 %v25962_v6  ;;  %19921 = vmatmul.mubr.f32.gmra.mrb[14].mxu1 %v25881_v15 }
 0x2f3   :  { %v10350_v4 = vand.u32 4294901760, %v10349_v60  ;;  %v17531_v47 = vand.u32 4294901760, %v19880_v55  ;;  %v3982_v45 = vpop.f32.mrb[11].mxu1  ;;  %19923 = vmatprep.mubr.f32.mxu1 %v25900_v28 }
 0x2f4   :  { %28356 = vst [vmem:[#allocation59_spill] sm:$0xff] %v26028_v63  ;;  %v10343_v62 = vand.u32 4294901760, %v10342_v48  ;;  %v17528_v54 = vand.u32 4294901760, %v3982_v45  ;;  %v26034_v18 = vpack.c.bf16 %v10349_v60, %v10342_v48  ;;  %20017 = vmatmul.mubr.f32.gmra.mrb[18].mxu0 %v25881_v15 }
 0x2f5   :  { %v10351_v24 = vsub.f32 %v10349_v60, %v10350_v4  ;;  %v17623_v53 = vsub.f32 %v19880_v55, %v17531_v47  ;;  %20019 = vmatprep.mubr.f32.mxu0 %v25900_v28 }
 0x2f6   :  { %v10344_v44 = vsub.f32 %v10342_v48, %v10343_v62  ;;  %v26040_v37 = vpack.c.bf16 %v17531_v47, %v17528_v54  ;;  %v17616_v17 = vsub.f32 %v3982_v45, %v17528_v54  ;;  %v26043_v42 = vpack.c.bf16 %v10350_v4, %v10343_v62  ;;  %19924 = vmatmul.mubr.f32.gmra.mrb[16].mxu1 %v25913_v30 }
 0x2f7   :  { %v17624_v21 = vand.u32 4294901760, %v17623_v53  ;;  %v10352_v2 = vand.u32 4294901760, %v10351_v24  ;;  %19926 = vmatprep.mubr.f32.mxu1 %v25921_v14 }
 0x2f8   :  { %28357 = vst [vmem:[#allocation62_spill] sm:$0xff] %v26040_v37  ;;  %28358 = vst [vmem:[#allocation68_spill] sm:$0xff] %v26043_v42  ;;  %v17617_v12 = vand.u32 4294901760, %v17616_v17  ;;  %v10345_v11 = vand.u32 4294901760, %v10344_v44  ;;  %v26046_v60 = vpack.c.bf16 %v17623_v53, %v17616_v17  ;;  %20020 = vmatmul.mubr.f32.gmra.mrb[20].mxu0 %v25913_v30 }
 0x2f9   :  { %v17625_v55 = vsub.f32 %v17623_v53, %v17624_v21  ;;  %20022 = vmatprep.mubr.f32.mxu0 %v25921_v14 }
 0x2fa   :  { %28359 = vst [vmem:[#allocation65_spill] sm:$0xff] %v26046_v60  ;;  %v17618_v48 = vsub.f32 %v17616_v17, %v17617_v12  ;;  %v26050_v47 = vpack.c.bf16 %v10352_v2, %v10345_v11  ;;  %v26052_v45 = vpack.c.bf16 %v17624_v21, %v17617_v12  ;;  %19927 = vmatmul.mubr.f32.gmra.mrb[18].mxu1 %v25939_v58 }
 0x2fb   :  { %v17626_v4 = vand.u32 4294901760, %v17625_v55  ;;  %19933 = vmatprep.mubr.f32.mxu1 %v25858_v33 }
 0x2fc   :  { %28360 = vst [vmem:[#allocation70_spill] sm:$0xff] %v26052_v45  ;;  %v17619_v15 = vand.u32 4294901760, %v17618_v48  ;;  %20023 = vmatmul.mubr.f32.gmra.mrb[22].mxu0 %v25939_v58 }
 0x2fd   :  { %20029 = vmatprep.mubr.f32.mxu0 %v25858_v33 }
 0x2fe   :  { %v26058_v62 = vpack.c.bf16 %v17626_v4, %v17619_v15  ;;  %19934 = vmatmul.mubr.f32.vlgmr.msra.gmra.mrb[12].mxu1 %v25887_v20 }
 0x2ff   :  { %22240 = vmatpush3.bf16.msra.mxu1 %v25952_v51  ;;  %19936 = vmatprep.mubr.f32.mxu1 %v25890_v25 }
 0x300   :  { %28361 = vst [vmem:[#allocation73_spill] sm:$0xff] %v26058_v62  ;;  %22242 = vmatprep.subr.bf16.mxu1 %v25928_v50  ;;  %20030 = vmatmul.mubr.f32.vlgmr.msra.gmra.mrb[16].mxu0 %v25887_v20 }
 0x301   :  { %22264 = vmatpush3.bf16.msra.mxu0 %v25962_v6  ;;  %20032 = vmatprep.mubr.f32.mxu0 %v25890_v25 }
 0x302   :  { %22266 = vmatprep.subr.bf16.mxu0 %v25933_v36  ;;  %19937 = vmatmul.mubr.f32.gmra.mrb[14].mxu1 %v25894_v39 }
 0x303   :  { %19939 = vmatprep.mubr.f32.mxu1 %v25917_v1 }
 0x304   :  { %20033 = vmatmul.mubr.f32.gmra.mrb[18].mxu0 %v25894_v39 }
 0x305   :  { %20035 = vmatprep.mubr.f32.mxu0 %v25917_v1 }
 0x306   :  { %19940 = vmatmul.mubr.f32.gmra.mrb[16].mxu1 %v25926_v7 }
 0x307   :  { %19942 = vmatprep.mubr.f32.mxu1 %v25936_v13 }
 0x308   :  { %20036 = vmatmul.mubr.f32.gmra.mrb[20].mxu0 %v25926_v7 }
 0x309   :  { %20038 = vmatprep.mubr.f32.mxu0 %v25936_v13 }
 0x30a   :  { %19943 = vmatmul.mubr.f32.gmra.mrb[18].mxu1 %v25960_v40 }
 0x30b   :  { %19949 = vmatprep.mubr.f32.mxu1 %v25850_v3 }
 0x30c   :  { %20039 = vmatmul.mubr.f32.gmra.mrb[22].mxu0 %v25960_v40 }
 0x30d   :  { %20045 = vmatprep.mubr.f32.mxu0 %v25850_v3 }
 0x30e   :  { %19950 = vmatmul.mubr.f32.vlgmr.msra.gmra.mrb[12].mxu1 %v25867_v38 }
 0x30f   :  { %22244 = vmatpush3.bf16.msra.mxu1 %v25928_v50  ;;  %19952 = vmatprep.mubr.f32.mxu1 %v25869_v5 }
 0x310   :  { %20046 = vmatmul.mubr.f32.vlgmr.msra.gmra.mrb[16].mxu0 %v25867_v38 }
 0x311   :  { %22268 = vmatpush3.bf16.msra.mxu0 %v25933_v36  ;;  %20048 = vmatprep.mubr.f32.mxu0 %v25869_v5 }
 0x312   :  { %19953 = vmatmul.mubr.f32.gmra.mrb[14].mxu1 %v25871_v61 }
 0x313   :  { %19955 = vmatprep.mubr.f32.mxu1 %v25883_v34 }
 0x314   :  { %20049 = vmatmul.mubr.f32.gmra.mrb[18].mxu0 %v25871_v61 }
 0x315   :  { %20051 = vmatprep.mubr.f32.mxu0 %v25883_v34 }
 0x316   :  { %19956 = vmatmul.mubr.f32.gmra.mrb[16].mxu1 %v25896_v0 }
 0x317   :  { %19958 = vmatprep.mubr.f32.mxu1 %v25903_v19 }
 0x318   :  { %v26092_v12 = vpop.f32.mrb[8].mxu0  ;;  %20052 = vmatmul.mubr.f32.gmra.mrb[20].mxu0 %v25896_v0 }
 0x319   :  { %v3198_v17 = vpop.f32.mrb[9].mxu0  ;;  %20054 = vmatprep.mubr.f32.mxu0 %v25903_v19 }
 0x31a   :  { %19959 = vmatmul.mubr.f32.gmra.mrb[18].mxu1 %v25923_v16  ;;  %v9722_v20 = vand.u32 4294901760, %v3198_v17 }
 0x31b   :  { %19965 = vmatprep.mubr.f32.mxu1 %v25850_v3 }
 0x31c   :  { %v26098_v2 = vpop.f32.mrb[10].mxu0  ;;  %20055 = vmatmul.mubr.f32.gmra.mrb[22].mxu0 %v25923_v16 }
 0x31d   :  { %v3205_v33 = vpop.f32.mrb[11].mxu0  ;;  %20061 = vmatprep.mubr.f32.mxu0 %v25850_v3 }
 0x31e   :  { %v9725_v25 = vand.u32 4294901760, %v3205_v33  ;;  %19966 = vmatmul.mubr.f32.vlgmr.msra.gmra.mrb[12].mxu1 %v25867_v38 }
 0x31f   :  { %19968 = vmatprep.mubr.f32.mxu1 %v25869_v5 }
 0x320   :  { %v26104_v39 = vpack.c.bf16 %v9725_v25, %v9722_v20  ;;  %v26106_v28 = vpop.f32.mrb[12].mxu0  ;;  %20062 = vmatmul.mubr.f32.vlgmr.msra.gmra.mrb[16].mxu0 %v25867_v38  ;;  %v9810_v38 = vsub.f32 %v3198_v17, %v9722_v20 }
 0x321   :  { %28362 = vst [vmem:[#allocation79_spill] sm:$0xff] %v26106_v28  ;;  %v3212_v30 = vpop.f32.mrb[13].mxu0  ;;  %20064 = vmatprep.mubr.f32.mxu0 %v25869_v5  ;;  %v9817_v5 = vsub.f32 %v3205_v33, %v9725_v25 }
 0x322   :  { %19969 = vmatmul.mubr.f32.gmra.mrb[14].mxu1 %v25871_v61  ;;  %v16996_v7 = vand.u32 4294901760, %v3212_v30  ;;  %v9811_v13 = vand.u32 4294901760, %v9810_v38 }
 0x323   :  { %19971 = vmatprep.mubr.f32.mxu1 %v25883_v34  ;;  %v26127_v40 = vpack.c.bf16 %v9817_v5, %v9810_v38 }
 0x324   :  { %v26112_v1 = vpop.f32.mrb[14].mxu0  ;;  %20065 = vmatmul.mubr.f32.gmra.mrb[18].mxu0 %v25871_v61  ;;  %v9818_v61 = vand.u32 4294901760, %v9817_v5  ;;  %v9812_v58 = vsub.f32 %v9810_v38, %v9811_v13 }
 0x325   :  { %28363 = vst [vmem:[#allocation76_spill] sm:$0xff] %v26112_v1  ;;  %v3219_v14 = vpop.f32.mrb[15].mxu0  ;;  %20067 = vmatprep.mubr.f32.mxu0 %v25883_v34  ;;  %v8678_v1 = vstv %s26147_s19 }
 0x326   :  { %v16999_v50 = vand.u32 4294901760, %v3219_v14  ;;  %19972 = vmatmul.mubr.f32.gmra.mrb[16].mxu1 %v25896_v0  ;;  %v9819_v51 = vsub.f32 %v9817_v5, %v9818_v61  ;;  %v9813_v34 = vand.u32 4294901760, %v9812_v58  ;;  %v26129_v24 = vpack.c.bf16 %v9818_v61, %v9811_v13 }
 0x327   :  { %19974 = vmatprep.mubr.f32.mxu1 %v25903_v19  ;;  %v8672_v58 = vstv %s26141_s5 }
 0x328   :  { %v26118_v3 = vpack.c.bf16 %v16999_v50, %v16996_v7  ;;  %20068 = vmatmul.mubr.f32.gmra.mrb[20].mxu0 %v25896_v0  ;;  %v9820_v54 = vand.u32 4294901760, %v9819_v51  ;;  %v17084_v0 = vsub.f32 %v3212_v30, %v16996_v7 }
 0x329   :  { %20070 = vmatprep.mubr.f32.mxu0 %v25903_v19  ;;  %v17091_v19 = vsub.f32 %v3219_v14, %v16999_v50  ;;  %v8668_v50 = vstv %s26139_s4 }
 0x32a   :  { %28364 = vst [vmem:[#allocation82_spill] sm:$0xff] %v26118_v3  ;;  %19975 = vmatmul.mubr.f32.gmra.mrb[18].mxu1 %v25923_v16  ;;  %v26131_v53 = vpack.c.bf16 %v9820_v54, %v9813_v34  ;;  %v17085_v44 = vand.u32 4294901760, %v17084_v0 }
 0x32b   :  { %v17092_v21 = vand.u32 4294901760, %v17091_v19  ;;  %v26133_v55 = vpack.c.bf16 %v17091_v19, %v17084_v0 }
 0x32c   :  { %20071 = vmatmul.mubr.f32.gmra.mrb[22].mxu0 %v25923_v16  ;;  %v17086_v11 = vsub.f32 %v17084_v0, %v17085_v44 }
 0x32d   :  { %v17093_v16 = vsub.f32 %v17091_v19, %v17092_v21  ;;  %28365 = vst [vmem:[#allocation85_spill] sm:$0xff] %v26133_v55  ;;  %v26135_v15 = vpack.c.bf16 %v17092_v21, %v17085_v44 }
 0x32e   :  { %v17087_v48 = vand.u32 4294901760, %v17086_v11 }
 0x32f   :  { %v17094_v4 = vand.u32 4294901760, %v17093_v16  ;;  %28366 = vst [vmem:[#allocation100_spill] sm:$0xff] %v26135_v15 }
 0x331   :  { %v26137_v17 = vpack.c.bf16 %v17094_v4, %v17087_v48 }
 0x333   :  { %28367 = vst [vmem:[#allocation66_spill] sm:$0xff] %v26137_v17 }
 0x3f1   :  { %v19967_v33 = vpop.f32.mrb[12].mxu1 }
 0x3f2   :  { %v26143_v20 = vand.u32 4294901760, %v19967_v33  ;;  %v4775_v25 = vpop.f32.mrb[13].mxu1 }
 0x3f3   :  { %v26145_v30 = vand.u32 4294901760, %v4775_v25  ;;  %v20063_v14 = vpop.f32.mrb[16].mxu0 }
 0x3f4   :  { %v26150_v7 = vsub.f32 %v19967_v33, %v26143_v20  ;;  %v5535_v38 = vpop.f32.mrb[17].mxu0  ;;  %v8670_v0 = vmul.f32 %v20063_v14, %v8668_v50 }
 0x3f5   :  { %v26154_v5 = vsub.f32 %v4775_v25, %v26145_v30  ;;  %v19970_v13 = vpop.f32.mrb[14].mxu1  ;;  %v26158_v61 = vpack.c.bf16 %v26143_v20, %v26145_v30 }
 0x3f6   :  { %v26162_v51 = vand.u32 4294901760, %v26150_v7  ;;  %v26164_v34 = vand.u32 4294901760, %v19970_v13  ;;  %v4787_v54 = vpop.f32.mrb[15].mxu1 }
 0x3f7   :  { %v26167_v19 = vand.u32 4294901760, %v26154_v5  ;;  %v26169_v44 = vand.u32 4294901760, %v4787_v54  ;;  %22270 = vmatprep.subr.bf16.mxu1 %v26158_v61  ;;  %v20066_v21 = vpop.f32.mrb[18].mxu0  ;;  %v22277_v9 = vpack.c.bf16 %v26150_v7, %v26154_v5 }
 0x3f8   :  { %v26173_v11 = vsub.f32 %v19970_v13, %v26164_v34  ;;  %22272 = vmatpush3.bf16.xpose.msra.mxu1 %v26158_v61  ;;  %v5661_v16 = vsub.f32 %v26150_v7, %v26162_v51  ;;  %v8674_v48 = vmul.f32 %v20066_v21, %v8672_v58  ;;  %v5547_v4 = vpop.f32.mrb[19].mxu0 }
 0x3f9   :  { %v26179_v33 = vsub.f32 %v4787_v54, %v26169_v44  ;;  %v19973_v25 = vpop.f32.mrb[16].mxu1  ;;  %v26183_v14 = vpack.c.bf16 %v26164_v34, %v26169_v44  ;;  %v5651_v13 = vsub.f32 %v26154_v5, %v26167_v19 }
 0x3fa   :  { %v26190_v45 = vand.u32 4294901760, %v26173_v11  ;;  %v26192_v60 = vand.u32 4294901760, %v19973_v25  ;;  %v4799_v21 = vpop.f32.mrb[17].mxu1  ;;  %v26194_v62 = vand.u32 4294901760, %v5661_v16  ;;  %v8676_v54 = vadd.f32 %v8674_v48, %v8670_v0 }
 0x3fb   :  { %v26197_v37 = vand.u32 4294901760, %v26179_v33  ;;  %v26199_v15 = vand.u32 4294901760, %v4799_v21  ;;  %22294 = vmatprep.subr.bf16.mxu0 %v26183_v14  ;;  %v26202_v55 = vand.u32 4294901760, %v5651_v13  ;;  %v20069_v17 = vpop.f32.mrb[20].mxu0  ;;  %v8669_v0 = vmul.f32 %v8668_v50, %v5535_v38 }
 0x3fc   :  { %v26206_v28 = vsub.f32 %v19973_v25, %v26192_v60  ;;  %22296 = vmatpush3.bf16.xpose.msra.mxu0 %v26183_v14  ;;  %v5681_v16 = vsub.f32 %v26173_v11, %v26190_v45  ;;  %v8673_v48 = vmul.f32 %v8672_v58, %v5547_v4  ;;  %v5559_v3 = vpop.f32.mrb[21].mxu0  ;;  %v8680_v4 = vmul.f32 %v20069_v17, %v8678_v1 }
 0x3fd   :  { %v26212_v49 = vsub.f32 %v4799_v21, %v26199_v15  ;;  %v19976_v26 = vpop.f32.mrb[18].mxu1  ;;  %20077 = vmatprep.mubr.f32.mxu1 %v26202_v55  ;;  %20173 = vmatprep.mubr.f32.mxu0 %v26202_v55  ;;  %v22273_v25 = vpack.c.bf16 %v26194_v62, %v26202_v55  ;;  %v5671_v13 = vsub.f32 %v26179_v33, %v26197_v37 }
 0x3fe   :  { %v26221_v42 = vand.u32 4294901760, %v26206_v28  ;;  %v26223_v50 = vand.u32 4294901760, %v19976_v26  ;;  %v4811_v38 = vpop.f32.mrb[19].mxu1  ;;  %v26225_v58 = vand.u32 4294901760, %v5681_v16  ;;  %v8675_v16 = vadd.f32 %v8673_v48, %v8669_v0 }
 0x3ff   :  { %v26228_v21 = vand.u32 4294901760, %v26212_v49  ;;  %v26230_v27 = vand.u32 4294901760, %v4811_v38  ;;  %20078 = vmatmul.mubr.f32.vlgmr.msra.gmra.mrb[20].mxu1 %v26194_v62  ;;  %22274 = vmatprep.subr.bf16.mxu1 %v22273_v25  ;;  %v26233_v10 = vand.u32 4294901760, %v5671_v13  ;;  %v20072_v63 = vpop.f32.mrb[22].mxu0  ;;  %v8682_v23 = vadd.f32 %v8680_v4, %v8676_v54 }
 0x400   :  { %v26238_v43 = vsub.f32 %v19976_v26, %v26223_v50  ;;  %22276 = vmatpush3.bf16.xpose.msra.mxu1 %v22273_v25  ;;  %v5701_v17 = vsub.f32 %v26206_v28, %v26221_v42  ;;  %v5571_v29 = vpop.f32.mrb[23].mxu0  ;;  %v8684_v26 = vstv %s26187_s20  ;;  %v22301_v22 = vpack.c.bf16 %v26173_v11, %v26179_v33 }
 0x401   :  { %v26243_v57 = vsub.f32 %v4811_v38, %v26230_v27  ;;  %20080 = vmatprep.mubr.f32.mxu1 %v26233_v10  ;;  %22278 = vmatprep.subr.bf16.mxu1 %v22277_v9  ;;  %v22297_v13 = vpack.c.bf16 %v26225_v58, %v26233_v10  ;;  %v5691_v52 = vsub.f32 %v26212_v49, %v26228_v21 }
 0x402   :  { %v26252_v25 = vand.u32 4294901760, %v26238_v43  ;;  %v8679_v38 = vmul.f32 %v8678_v1, %v5559_v3  ;;  %v8686_v31 = vmul.f32 %v20072_v63, %v8684_v26  ;;  %v8685_v46 = vmul.f32 %v8684_v26, %v5571_v29 }
 0x403   :  { %v26255_v0 = vand.u32 4294901760, %v26243_v57  ;;  %20081 = vmatmul.mubr.f32.gmra.mrb[22].mxu1 %v26225_v58  ;;  %20174 = vmatmul.mubr.f32.vlgmr.msra.gmra.mrb[24].mxu0 %v26194_v62  ;;  %v26259_v48 = vand.u32 4294901760, %v5691_v52  ;;  %v26265_v54 = vand.u32 4294901760, %v5701_v17 }
 0x404   :  { %22298 = vmatprep.subr.bf16.mxu0 %v22297_v13  ;;  %20176 = vmatprep.mubr.f32.mxu0 %v26233_v10  ;;  %v5721_v52 = vsub.f32 %v26238_v43, %v26252_v25  ;;  %v8681_v1 = vadd.f32 %v8679_v38, %v8675_v16  ;;  %v26271_v3 = vadd.f32 %v8686_v31, %v8682_v23 }
 0x405   :  { %22300 = vmatpush3.bf16.xpose.msra.mxu0 %v22297_v13  ;;  %20083 = vmatprep.mubr.f32.mxu1 %v26259_v48  ;;  %v5711_v4 = vsub.f32 %v26243_v57, %v26255_v0  ;;  %v26349_v23 = vpack.c.bf16 %v26192_v60, %v26199_v15  ;;  %v22321_v31 = vpack.c.bf16 %v26265_v54, %v26259_v48 }
 0x406   :  { %22302 = vmatprep.subr.bf16.mxu0 %v22301_v22  ;;  %v26277_v63 = vadd.f32 %v8685_v46, %v8681_v1  ;;  %v26281_v17 = vand.u32 4294901760, %v5721_v52  ;;  %v22309_v46 = vpack.c.bf16 %v26190_v45, %v26197_v37  ;;  %v22349_v16 = vpack.c.bf16 %v26238_v43, %v26243_v57 }
 0x407   :  { %20084 = vmatmul.mubr.f32.gmra.mrb[24].mxu1 %v26265_v54  ;;  %20177 = vmatmul.mubr.f32.gmra.mrb[26].mxu0 %v26225_v58  ;;  %v26275_v29 = vand.u32 4294901760, %v5711_v4 }
 0x408   :  { %20179 = vmatprep.mubr.f32.mxu0 %v26259_v48 }
 0x409   :  { %20086 = vmatprep.mubr.f32.mxu1 %v26275_v29 }
 0x40b   :  { %20087 = vmatmul.mubr.f32.gmra.mrb[26].mxu1 %v26281_v17  ;;  %20180 = vmatmul.mubr.f32.gmra.mrb[28].mxu0 %v26265_v54 }
 0x40c   :  { %20093 = vmatprep.mubr.f32.mxu1 %v26145_v30  ;;  %20182 = vmatprep.mubr.f32.mxu0 %v26275_v29 }
 0x40f   :  { %20094 = vmatmul.mubr.f32.vlgmr.msra.gmra.mrb[20].mxu1 %v26143_v20  ;;  %20183 = vmatmul.mubr.f32.gmra.mrb[30].mxu0 %v26281_v17 }
 0x410   :  { %22280 = vmatpush3.bf16.xpose.msra.mxu1 %v22277_v9  ;;  %20096 = vmatprep.mubr.f32.mxu1 %v26169_v44  ;;  %v22285_v9 = vpack.c.bf16 %v26162_v51, %v26167_v19 }
 0x411   :  { %22282 = vmatprep.subr.bf16.mxu1 %v26158_v61  ;;  %20189 = vmatprep.mubr.f32.mxu0 %v26145_v30 }
 0x413   :  { %20097 = vmatmul.mubr.f32.gmra.mrb[22].mxu1 %v26164_v34  ;;  %20190 = vmatmul.mubr.f32.vlgmr.msra.gmra.mrb[24].mxu0 %v26143_v20 }
 0x414   :  { %22304 = vmatpush3.bf16.xpose.msra.mxu0 %v22301_v22  ;;  %20099 = vmatprep.mubr.f32.mxu1 %v26199_v15  ;;  %v26359_v22 = vpack.c.bf16 %v26223_v50, %v26230_v27 }
 0x415   :  { %20192 = vmatprep.mubr.f32.mxu0 %v26169_v44  ;;  %22306 = vmatprep.subr.bf16.mxu0 %v26183_v14 }
 0x417   :  { %20100 = vmatmul.mubr.f32.gmra.mrb[24].mxu1 %v26192_v60  ;;  %20193 = vmatmul.mubr.f32.gmra.mrb[26].mxu0 %v26164_v34 }
 0x418   :  { %20102 = vmatprep.mubr.f32.mxu1 %v26230_v27  ;;  %20195 = vmatprep.mubr.f32.mxu0 %v26199_v15 }
 0x41b   :  { %20103 = vmatmul.mubr.f32.gmra.mrb[26].mxu1 %v26223_v50  ;;  %20196 = vmatmul.mubr.f32.gmra.mrb[28].mxu0 %v26192_v60 }
 0x41c   :  { %20109 = vmatprep.mubr.f32.mxu1 %v26154_v5  ;;  %20198 = vmatprep.mubr.f32.mxu0 %v26230_v27 }
 0x41f   :  { %20110 = vmatmul.mubr.f32.vlgmr.msra.gmra.mrb[20].mxu1 %v26150_v7  ;;  %20199 = vmatmul.mubr.f32.gmra.mrb[30].mxu0 %v26223_v50 }
 0x420   :  { %22284 = vmatpush3.bf16.xpose.msra.mxu1 %v26158_v61  ;;  %20112 = vmatprep.mubr.f32.mxu1 %v26179_v33 }
 0x421   :  { %22286 = vmatprep.subr.bf16.mxu1 %v22285_v9  ;;  %20205 = vmatprep.mubr.f32.mxu0 %v26154_v5 }
 0x423   :  { %20113 = vmatmul.mubr.f32.gmra.mrb[22].mxu1 %v26173_v11  ;;  %20206 = vmatmul.mubr.f32.vlgmr.msra.gmra.mrb[24].mxu0 %v26150_v7 }
 0x424   :  { %22308 = vmatpush3.bf16.xpose.msra.mxu0 %v26183_v14  ;;  %20115 = vmatprep.mubr.f32.mxu1 %v26212_v49 }
 0x425   :  { %20208 = vmatprep.mubr.f32.mxu0 %v26179_v33  ;;  %22310 = vmatprep.subr.bf16.mxu0 %v22309_v46 }
 0x427   :  { %20116 = vmatmul.mubr.f32.gmra.mrb[24].mxu1 %v26206_v28  ;;  %20209 = vmatmul.mubr.f32.gmra.mrb[26].mxu0 %v26173_v11 }
 0x428   :  { %20118 = vmatprep.mubr.f32.mxu1 %v26243_v57  ;;  %20211 = vmatprep.mubr.f32.mxu0 %v26212_v49 }
 0x42b   :  { %20119 = vmatmul.mubr.f32.gmra.mrb[26].mxu1 %v26238_v43  ;;  %20212 = vmatmul.mubr.f32.gmra.mrb[28].mxu0 %v26206_v28 }
 0x42c   :  { %20125 = vmatprep.mubr.f32.mxu1 %v26167_v19  ;;  %20214 = vmatprep.mubr.f32.mxu0 %v26243_v57 }
 0x42f   :  { %20126 = vmatmul.mubr.f32.vlgmr.msra.gmra.mrb[20].mxu1 %v26162_v51  ;;  %20215 = vmatmul.mubr.f32.gmra.mrb[30].mxu0 %v26238_v43 }
 0x430   :  { %22288 = vmatpush3.bf16.xpose.msra.mxu1 %v22285_v9  ;;  %20128 = vmatprep.mubr.f32.mxu1 %v26197_v37 }
 0x431   :  { %22290 = vmatprep.subr.bf16.mxu1 %v26158_v61  ;;  %20221 = vmatprep.mubr.f32.mxu0 %v26167_v19 }
 0x433   :  { %20129 = vmatmul.mubr.f32.gmra.mrb[22].mxu1 %v26190_v45  ;;  %20222 = vmatmul.mubr.f32.vlgmr.msra.gmra.mrb[24].mxu0 %v26162_v51 }
 0x434   :  { %22312 = vmatpush3.bf16.xpose.msra.mxu0 %v22309_v46  ;;  %20131 = vmatprep.mubr.f32.mxu1 %v26228_v21 }
 0x435   :  { %20224 = vmatprep.mubr.f32.mxu0 %v26197_v37  ;;  %22314 = vmatprep.subr.bf16.mxu0 %v26183_v14 }
 0x437   :  { %20132 = vmatmul.mubr.f32.gmra.mrb[24].mxu1 %v26221_v42  ;;  %20225 = vmatmul.mubr.f32.gmra.mrb[26].mxu0 %v26190_v45 }
 0x438   :  { %20134 = vmatprep.mubr.f32.mxu1 %v26255_v0  ;;  %20227 = vmatprep.mubr.f32.mxu0 %v26228_v21 }
 0x43b   :  { %20135 = vmatmul.mubr.f32.gmra.mrb[26].mxu1 %v26252_v25  ;;  %20228 = vmatmul.mubr.f32.gmra.mrb[28].mxu0 %v26221_v42 }
 0x43c   :  { %20141 = vmatprep.mubr.f32.mxu1 %v26145_v30  ;;  %20230 = vmatprep.mubr.f32.mxu0 %v26255_v0 }
 0x43f   :  { %20142 = vmatmul.mubr.f32.vlgmr.msra.gmra.mrb[20].mxu1 %v26143_v20  ;;  %20231 = vmatmul.mubr.f32.gmra.mrb[30].mxu0 %v26252_v25 }
 0x440   :  { %22292 = vmatpush3.bf16.xpose.msra.mxu1 %v26158_v61  ;;  %20144 = vmatprep.mubr.f32.mxu1 %v26169_v44  ;;  %v22345_v61 = vpack.c.bf16 %v26281_v17, %v26275_v29 }
 0x441   :  { %20237 = vmatprep.mubr.f32.mxu0 %v26145_v30  ;;  %22318 = vmatprep.subr.bf16.mxu1 %v26349_v23 }
 0x443   :  { %20145 = vmatmul.mubr.f32.gmra.mrb[22].mxu1 %v26164_v34  ;;  %20238 = vmatmul.mubr.f32.vlgmr.msra.gmra.mrb[24].mxu0 %v26143_v20 }
 0x444   :  { %22316 = vmatpush3.bf16.xpose.msra.mxu0 %v26183_v14  ;;  %20147 = vmatprep.mubr.f32.mxu1 %v26199_v15  ;;  %v22325_v14 = vpack.c.bf16 %v26206_v28, %v26212_v49 }
 0x445   :  { %20240 = vmatprep.mubr.f32.mxu0 %v26169_v44  ;;  %22342 = vmatprep.subr.bf16.mxu0 %v26359_v22 }
 0x447   :  { %20148 = vmatmul.mubr.f32.gmra.mrb[24].mxu1 %v26192_v60  ;;  %20241 = vmatmul.mubr.f32.gmra.mrb[26].mxu0 %v26164_v34 }
 0x448   :  { %20150 = vmatprep.mubr.f32.mxu1 %v26230_v27  ;;  %20243 = vmatprep.mubr.f32.mxu0 %v26199_v15 }
 0x44b   :  { %20151 = vmatmul.mubr.f32.gmra.mrb[26].mxu1 %v26223_v50  ;;  %20244 = vmatmul.mubr.f32.gmra.mrb[28].mxu0 %v26192_v60 }
 0x44c   :  { %20157 = vmatprep.mubr.f32.mxu1 %v26145_v30  ;;  %20246 = vmatprep.mubr.f32.mxu0 %v26230_v27 }
 0x44f   :  { %20158 = vmatmul.mubr.f32.vlgmr.msra.gmra.mrb[20].mxu1 %v26143_v20  ;;  %20247 = vmatmul.mubr.f32.gmra.mrb[30].mxu0 %v26223_v50 }
 0x450   :  { %22320 = vmatpush3.bf16.xpose.msra.mxu1 %v26349_v23  ;;  %20160 = vmatprep.mubr.f32.mxu1 %v26169_v44 }
 0x451   :  { %20253 = vmatprep.mubr.f32.mxu0 %v26145_v30  ;;  %22322 = vmatprep.subr.bf16.mxu1 %v22321_v31 }
 0x453   :  { %20161 = vmatmul.mubr.f32.gmra.mrb[22].mxu1 %v26164_v34  ;;  %20254 = vmatmul.mubr.f32.vlgmr.msra.gmra.mrb[24].mxu0 %v26143_v20 }
 0x454   :  { %22344 = vmatpush3.bf16.xpose.msra.mxu0 %v26359_v22  ;;  %20163 = vmatprep.mubr.f32.mxu1 %v26199_v15 }
 0x455   :  { %20256 = vmatprep.mubr.f32.mxu0 %v26169_v44  ;;  %22346 = vmatprep.subr.bf16.mxu0 %v22345_v61 }
 0x457   :  { %20164 = vmatmul.mubr.f32.gmra.mrb[24].mxu1 %v26192_v60  ;;  %20257 = vmatmul.mubr.f32.gmra.mrb[26].mxu0 %v26164_v34 }
 0x458   :  { %20166 = vmatprep.mubr.f32.mxu1 %v26230_v27  ;;  %20259 = vmatprep.mubr.f32.mxu0 %v26199_v15 }
 0x45b   :  { %20167 = vmatmul.mubr.f32.gmra.mrb[26].mxu1 %v26223_v50  ;;  %20260 = vmatmul.mubr.f32.gmra.mrb[28].mxu0 %v26192_v60 }
 0x45c   :  { %20262 = vmatprep.mubr.f32.mxu0 %v26230_v27  ;;  %20269 = vmatprep.mubr.f32.mxu1 %v26202_v55 }
 0x45f   :  { %20263 = vmatmul.mubr.f32.gmra.mrb[30].mxu0 %v26223_v50  ;;  %20270 = vmatmul.mubr.f32.vlgmr.msra.gmra.mrb[28].mxu1 %v26194_v62 }
 0x460   :  { %22324 = vmatpush3.bf16.xpose.msra.mxu1 %v22321_v31  ;;  %20272 = vmatprep.mubr.f32.mxu1 %v26233_v10 }
 0x461   :  { %22326 = vmatprep.subr.bf16.mxu1 %v22325_v14  ;;  %20365 = vmatprep.mubr.f32.mxu0 %v26202_v55 }
 0x463   :  { %20273 = vmatmul.mubr.f32.gmra.mrb[30].mxu1 %v26225_v58  ;;  %20366 = vmatmul.mubr.f32.vlgmr.msra.gmra.mrb[32].mxu0 %v26194_v62  ;;  %v22357_v62 = vpack.c.bf16 %v26252_v25, %v26255_v0 }
 0x464   :  { %22348 = vmatpush3.bf16.xpose.msra.mxu0 %v22345_v61  ;;  %20275 = vmatprep.mubr.f32.mxu1 %v26259_v48 }
 0x465   :  { %20368 = vmatprep.mubr.f32.mxu0 %v26233_v10  ;;  %22350 = vmatprep.subr.bf16.mxu0 %v22349_v16  ;;  %v22333_v10 = vpack.c.bf16 %v26221_v42, %v26228_v21 }
 0x467   :  { %20276 = vmatmul.mubr.f32.gmra.mrb[32].mxu1 %v26265_v54  ;;  %20369 = vmatmul.mubr.f32.gmra.mrb[34].mxu0 %v26225_v58 }
 0x468   :  { %20278 = vmatprep.mubr.f32.mxu1 %v26275_v29  ;;  %20371 = vmatprep.mubr.f32.mxu0 %v26259_v48 }
 0x46b   :  { %20279 = vmatmul.mubr.f32.gmra.mrb[34].mxu1 %v26281_v17  ;;  %20372 = vmatmul.mubr.f32.gmra.mrb[36].mxu0 %v26265_v54 }
 0x46c   :  { %20285 = vmatprep.mubr.f32.mxu1 %v26145_v30  ;;  %20374 = vmatprep.mubr.f32.mxu0 %v26275_v29 }
 0x46f   :  { %20286 = vmatmul.mubr.f32.vlgmr.msra.gmra.mrb[28].mxu1 %v26143_v20  ;;  %20375 = vmatmul.mubr.f32.gmra.mrb[38].mxu0 %v26281_v17 }
 0x470   :  { %22328 = vmatpush3.bf16.xpose.msra.mxu1 %v22325_v14  ;;  %20288 = vmatprep.mubr.f32.mxu1 %v26169_v44 }
 0x471   :  { %22330 = vmatprep.subr.bf16.mxu1 %v26349_v23  ;;  %20381 = vmatprep.mubr.f32.mxu0 %v26145_v30 }
 0x473   :  { %20289 = vmatmul.mubr.f32.gmra.mrb[30].mxu1 %v26164_v34  ;;  %20382 = vmatmul.mubr.f32.vlgmr.msra.gmra.mrb[32].mxu0 %v26143_v20 }
 0x474   :  { %22352 = vmatpush3.bf16.xpose.msra.mxu0 %v22349_v16  ;;  %20291 = vmatprep.mubr.f32.mxu1 %v26199_v15 }
 0x475   :  { %20384 = vmatprep.mubr.f32.mxu0 %v26169_v44  ;;  %22354 = vmatprep.subr.bf16.mxu0 %v26359_v22 }
 0x477   :  { %20292 = vmatmul.mubr.f32.gmra.mrb[32].mxu1 %v26192_v60  ;;  %20385 = vmatmul.mubr.f32.gmra.mrb[34].mxu0 %v26164_v34 }
 0x478   :  { %20294 = vmatprep.mubr.f32.mxu1 %v26230_v27  ;;  %20387 = vmatprep.mubr.f32.mxu0 %v26199_v15 }
 0x47b   :  { %20295 = vmatmul.mubr.f32.gmra.mrb[34].mxu1 %v26223_v50  ;;  %20388 = vmatmul.mubr.f32.gmra.mrb[36].mxu0 %v26192_v60 }
 0x47c   :  { %20301 = vmatprep.mubr.f32.mxu1 %v26154_v5  ;;  %20390 = vmatprep.mubr.f32.mxu0 %v26230_v27 }
 0x47f   :  { %20302 = vmatmul.mubr.f32.vlgmr.msra.gmra.mrb[28].mxu1 %v26150_v7  ;;  %20391 = vmatmul.mubr.f32.gmra.mrb[38].mxu0 %v26223_v50 }
 0x480   :  { %22332 = vmatpush3.bf16.xpose.msra.mxu1 %v26349_v23  ;;  %20304 = vmatprep.mubr.f32.mxu1 %v26179_v33 }
 0x481   :  { %22334 = vmatprep.subr.bf16.mxu1 %v22333_v10  ;;  %20397 = vmatprep.mubr.f32.mxu0 %v26154_v5 }
 0x483   :  { %20305 = vmatmul.mubr.f32.gmra.mrb[30].mxu1 %v26173_v11  ;;  %20398 = vmatmul.mubr.f32.vlgmr.msra.gmra.mrb[32].mxu0 %v26150_v7 }
 0x484   :  { %22356 = vmatpush3.bf16.xpose.msra.mxu0 %v26359_v22  ;;  %20307 = vmatprep.mubr.f32.mxu1 %v26212_v49 }
 0x485   :  { %20400 = vmatprep.mubr.f32.mxu0 %v26179_v33  ;;  %22358 = vmatprep.subr.bf16.mxu0 %v22357_v62 }
 0x487   :  { %20308 = vmatmul.mubr.f32.gmra.mrb[32].mxu1 %v26206_v28  ;;  %20401 = vmatmul.mubr.f32.gmra.mrb[34].mxu0 %v26173_v11 }
 0x488   :  { %20310 = vmatprep.mubr.f32.mxu1 %v26243_v57  ;;  %20403 = vmatprep.mubr.f32.mxu0 %v26212_v49  ;;  %v26497_v49 = vand.u32 4294901760, %v26271_v3 }
 0x48b   :  { %20311 = vmatmul.mubr.f32.gmra.mrb[34].mxu1 %v26238_v43  ;;  %20404 = vmatmul.mubr.f32.gmra.mrb[36].mxu0 %v26206_v28 }
 0x48c   :  { %20317 = vmatprep.mubr.f32.mxu1 %v26167_v19  ;;  %20406 = vmatprep.mubr.f32.mxu0 %v26243_v57  ;;  %v26509_v57 = vand.u32 4294901760, %v26098_v2 }
 0x48e   :  { %v9799_v7 = vsub.f32 %v26098_v2, %v26509_v57 }
 0x48f   :  { %20318 = vmatmul.mubr.f32.vlgmr.msra.gmra.mrb[28].mxu1 %v26162_v51  ;;  %20407 = vmatmul.mubr.f32.gmra.mrb[38].mxu0 %v26238_v43  ;;  %v26502_v43 = vand.u32 4294901760, %v26092_v12 }
 0x490   :  { %22336 = vmatpush3.bf16.xpose.msra.mxu1 %v22333_v10  ;;  %20320 = vmatprep.mubr.f32.mxu1 %v26197_v37 }
 0x491   :  { %22338 = vmatprep.subr.bf16.mxu1 %v26349_v23  ;;  %20413 = vmatprep.mubr.f32.mxu0 %v26167_v19  ;;  %v9789_v55 = vsub.f32 %v26092_v12, %v26502_v43  ;;  %v9800_v12 = vand.u32 4294901760, %v9799_v7 }
 0x493   :  { %20321 = vmatmul.mubr.f32.gmra.mrb[30].mxu1 %v26190_v45  ;;  %20414 = vmatmul.mubr.f32.vlgmr.msra.gmra.mrb[32].mxu0 %v26162_v51  ;;  %v9790_v51 = vand.u32 4294901760, %v9789_v55 }
 0x494   :  { %22360 = vmatpush3.bf16.xpose.msra.mxu0 %v22357_v62  ;;  %20323 = vmatprep.mubr.f32.mxu1 %v26228_v21 }
 0x495   :  { %20416 = vmatprep.mubr.f32.mxu0 %v26197_v37  ;;  %22362 = vmatprep.subr.bf16.mxu0 %v26359_v22  ;;  %v9791_v2 = vsub.f32 %v9789_v55, %v9790_v51 }
 0x497   :  { %20324 = vmatmul.mubr.f32.gmra.mrb[32].mxu1 %v26221_v42  ;;  %20417 = vmatmul.mubr.f32.gmra.mrb[34].mxu0 %v26190_v45  ;;  %v8767_v45 = vsub.f32 %v26271_v3, %v26497_v49 }
 0x498   :  { %20326 = vmatprep.mubr.f32.mxu1 %v26255_v0  ;;  %20419 = vmatprep.mubr.f32.mxu0 %v26228_v21 }
 0x499   :  { %v8768_v5 = vand.u32 4294901760, %v8767_v45 }
 0x49b   :  { %20327 = vmatmul.mubr.f32.gmra.mrb[34].mxu1 %v26252_v25  ;;  %20420 = vmatmul.mubr.f32.gmra.mrb[36].mxu0 %v26221_v42  ;;  %v26490_v42 = vand.u32 4294901760, %v26277_v63 }
 0x49c   :  { %20333 = vmatprep.mubr.f32.mxu1 %v26145_v30  ;;  %20422 = vmatprep.mubr.f32.mxu0 %v26255_v0 }
 0x49d   :  { %v8757_v37 = vsub.f32 %v26277_v63, %v26490_v42 }
 0x49f   :  { %20334 = vmatmul.mubr.f32.vlgmr.msra.gmra.mrb[28].mxu1 %v26143_v20  ;;  %20423 = vmatmul.mubr.f32.gmra.mrb[38].mxu0 %v26252_v25  ;;  %v8758_v28 = vand.u32 4294901760, %v8757_v37 }
 0x4a0   :  { %22340 = vmatpush3.bf16.xpose.msra.mxu1 %v26349_v23  ;;  %20336 = vmatprep.mubr.f32.mxu1 %v26169_v44 }
 0x4a1   :  { %20429 = vmatprep.mubr.f32.mxu0 %v26145_v30  ;;  %22366 = vmatprep.subr.bf16.mxu1 %v25933_v36 }
 0x4a3   :  { %20337 = vmatmul.mubr.f32.gmra.mrb[30].mxu1 %v26164_v34  ;;  %20430 = vmatmul.mubr.f32.vlgmr.msra.gmra.mrb[32].mxu0 %v26143_v20 }
 0x4a4   :  { %22364 = vmatpush3.bf16.xpose.msra.mxu0 %v26359_v22  ;;  %20339 = vmatprep.mubr.f32.mxu1 %v26199_v15 }
 0x4a5   :  { %20432 = vmatprep.mubr.f32.mxu0 %v26169_v44  ;;  %22414 = vmatprep.subr.bf16.mxu0 %v26104_v39 }
 0x4a7   :  { %20340 = vmatmul.mubr.f32.gmra.mrb[32].mxu1 %v26192_v60  ;;  %20433 = vmatmul.mubr.f32.gmra.mrb[34].mxu0 %v26164_v34 }
 0x4a8   :  { %20342 = vmatprep.mubr.f32.mxu1 %v26230_v27  ;;  %20435 = vmatprep.mubr.f32.mxu0 %v26199_v15 }
 0x4ab   :  { %20343 = vmatmul.mubr.f32.gmra.mrb[34].mxu1 %v26223_v50  ;;  %20436 = vmatmul.mubr.f32.gmra.mrb[36].mxu0 %v26192_v60 }
 0x4ac   :  { %20349 = vmatprep.mubr.f32.mxu1 %v26145_v30  ;;  %20438 = vmatprep.mubr.f32.mxu0 %v26230_v27 }
 0x4af   :  { %20350 = vmatmul.mubr.f32.vlgmr.msra.gmra.mrb[28].mxu1 %v26143_v20  ;;  %20439 = vmatmul.mubr.f32.gmra.mrb[38].mxu0 %v26223_v50 }
 0x4b0   :  { %22368 = vmatpush3.bf16.xpose.msra.mxu1 %v25933_v36  ;;  %20352 = vmatprep.mubr.f32.mxu1 %v26169_v44 }
 0x4b1   :  { %20445 = vmatprep.mubr.f32.mxu0 %v26145_v30  ;;  %22370 = vmatprep.subr.bf16.mxu1 %v25978_v35  ;;  %v8759_v30 = vsub.f32 %v8757_v37, %v8758_v28 }
 0x4b3   :  { %20353 = vmatmul.mubr.f32.gmra.mrb[30].mxu1 %v26164_v34  ;;  %20446 = vmatmul.mubr.f32.vlgmr.msra.gmra.mrb[32].mxu0 %v26143_v20  ;;  %v8769_v20 = vsub.f32 %v8767_v45, %v8768_v5  ;;  %v8760_v19 = vand.u32 4294901760, %v8759_v30 }
 0x4b4   :  { %22416 = vmatpush3.bf16.xpose.msra.mxu0 %v26104_v39  ;;  %20355 = vmatprep.mubr.f32.mxu1 %v26199_v15 }
 0x4b5   :  { %20448 = vmatprep.mubr.f32.mxu0 %v26169_v44  ;;  %22418 = vmatprep.subr.bf16.mxu0 %v26131_v53  ;;  %v9801_v44 = vsub.f32 %v9799_v7, %v9800_v12  ;;  %v8770_v11 = vand.u32 4294901760, %v8769_v20 }
 0x4b7   :  { %20356 = vmatmul.mubr.f32.gmra.mrb[32].mxu1 %v26192_v60  ;;  %20449 = vmatmul.mubr.f32.gmra.mrb[34].mxu0 %v26164_v34  ;;  %v9792_v34 = vand.u32 4294901760, %v9791_v2 }
 0x4b8   :  { %20358 = vmatprep.mubr.f32.mxu1 %v26230_v27  ;;  %20451 = vmatprep.mubr.f32.mxu0 %v26199_v15  ;;  %v9802_v15 = vand.u32 4294901760, %v9801_v44 }
 0x4bb   :  { %20359 = vmatmul.mubr.f32.gmra.mrb[34].mxu1 %v26223_v50  ;;  %20452 = vmatmul.mubr.f32.gmra.mrb[36].mxu0 %v26192_v60  ;;  %v28376_v60 = vld [vmem:[#allocation59_spill] sm:$0xff] }
 0x4bc   :  { %20454 = vmatprep.mubr.f32.mxu0 %v26230_v27  ;;  %20461 = vmatprep.mubr.f32.mxu1 %v8760_v19  ;;  %v28368_v27 = vld [vmem:[#allocation31_spill] sm:$0xff] }
 0x4bf   :  { %20455 = vmatmul.mubr.f32.gmra.mrb[38].mxu0 %v26223_v50  ;;  %20462 = vmatmul.mubr.f32.vlgmr.msra.gmra.mrb[36].mxu1 %v8770_v11 }
 0x4c0   :  { %22372 = vmatpush3.bf16.xpose.msra.mxu1 %v25978_v35  ;;  %20468 = vmatprep.mubr.f32.mxu1 %v26490_v42  ;;  %v28372_v35 = vld [vmem:[#allocation47_spill] sm:$0xff] }
 0x4c1   :  { %22374 = vmatprep.subr.bf16.mxu1 %v25947_v56  ;;  %20545 = vmatprep.mubr.f32.mxu0 %v9792_v34  ;;  %v8656_v34 = vstv %s26592_s21 }
 0x4c3   :  { %20546 = vmatmul.mubr.f32.vlgmr.msra.gmra.mrb[40].mxu0 %v9802_v15 }
 0x4c4   :  { %22420 = vmatpush3.bf16.xpose.msra.mxu0 %v26131_v53  ;;  %20552 = vmatprep.mubr.f32.mxu0 %v26502_v43 }
 0x4c5   :  { %22422 = vmatprep.subr.bf16.mxu0 %v26127_v40 }
 0x4c7   :  { %20469 = vmatmul.mubr.f32.vlgmr.msra.gmra.mrb[36].mxu1 %v26497_v49 }
 0x4c8   :  { %22376 = vmatpush3.bf16.xpose.msra.mxu1 %v25947_v56  ;;  %20475 = vmatprep.mubr.f32.mxu1 %v8757_v37  ;;  %v28371_v56 = vld [vmem:[#allocation32_spill] sm:$0xff]  ;;  %v8646_v37 = vstv %s8645_s2 }
 0x4c9   :  { %22378 = vmatprep.subr.bf16.mxu1 %v25933_v36 }
 0x4cb   :  { %20553 = vmatmul.mubr.f32.vlgmr.msra.gmra.mrb[40].mxu0 %v26509_v57 }
 0x4cc   :  { %22424 = vmatpush3.bf16.xpose.msra.mxu0 %v26127_v40  ;;  %20559 = vmatprep.mubr.f32.mxu0 %v9789_v55 }
 0x4cd   :  { %22426 = vmatprep.subr.bf16.mxu0 %v26104_v39 }
 0x4cf   :  { %20476 = vmatmul.mubr.f32.vlgmr.msra.gmra.mrb[36].mxu1 %v8767_v45  ;;  %v8650_v45 = vstv %s18561_s1 }
 0x4d0   :  { %22380 = vmatpush3.bf16.xpose.msra.mxu1 %v25933_v36  ;;  %20482 = vmatprep.mubr.f32.mxu1 %v8758_v28 }
 0x4d1   :  { %22382 = vmatprep.subr.bf16.mxu1 %v25962_v6 }
 0x4d3   :  { %20560 = vmatmul.mubr.f32.vlgmr.msra.gmra.mrb[40].mxu0 %v9799_v7 }
 0x4d4   :  { %22428 = vmatpush3.bf16.xpose.msra.mxu0 %v26104_v39  ;;  %20566 = vmatprep.mubr.f32.mxu0 %v9790_v51 }
 0x4d5   :  { %22430 = vmatprep.subr.bf16.mxu0 %v26129_v24 }
 0x4d7   :  { %20483 = vmatmul.mubr.f32.vlgmr.msra.gmra.mrb[36].mxu1 %v8768_v5 }
 0x4d8   :  { %22384 = vmatpush3.bf16.xpose.msra.mxu1 %v25962_v6  ;;  %20489 = vmatprep.mubr.f32.mxu1 %v26490_v42  ;;  %v28369_v6 = vld [vmem:[#allocation56_spill] sm:$0xff] }
 0x4d9   :  { %22386 = vmatprep.subr.bf16.mxu1 %v25933_v36 }
 0x4db   :  { %20567 = vmatmul.mubr.f32.vlgmr.msra.gmra.mrb[40].mxu0 %v9800_v12 }
 0x4dc   :  { %22432 = vmatpush3.bf16.xpose.msra.mxu0 %v26129_v24  ;;  %20573 = vmatprep.mubr.f32.mxu0 %v26502_v43 }
 0x4dd   :  { %22434 = vmatprep.subr.bf16.mxu0 %v26104_v39 }
 0x4df   :  { %20490 = vmatmul.mubr.f32.vlgmr.msra.gmra.mrb[36].mxu1 %v26497_v49 }
 0x4e0   :  { %22388 = vmatpush3.bf16.xpose.msra.mxu1 %v25933_v36  ;;  %20496 = vmatprep.mubr.f32.mxu1 %v26490_v42  ;;  %v28370_v36 = vld [vmem:[#allocation98_spill] sm:$0xff] }
 0x4e1   :  { %22390 = vmatprep.subr.bf16.mxu1 %v25974_v8 }
 0x4e3   :  { %20574 = vmatmul.mubr.f32.vlgmr.msra.gmra.mrb[40].mxu0 %v26509_v57 }
 0x4e4   :  { %22436 = vmatpush3.bf16.xpose.msra.mxu0 %v26104_v39  ;;  %20580 = vmatprep.mubr.f32.mxu0 %v26502_v43 }
 0x4e5   :  { %22442 = vmatprep.subr.bf16.mxu0 %v26050_v47 }
 0x4e7   :  { %20497 = vmatmul.mubr.f32.vlgmr.msra.gmra.mrb[36].mxu1 %v26497_v49 }
 0x4e8   :  { %22392 = vmatpush3.bf16.xpose.msra.mxu1 %v25974_v8  ;;  %20503 = vmatprep.mubr.f32.mxu1 %v25989_v32  ;;  %v28373_v32 = vld [vmem:[#allocation67_spill] sm:$0xff] }
 0x4e9   :  { %22394 = vmatprep.subr.bf16.mxu1 %v26004_v59 }
 0x4eb   :  { %20581 = vmatmul.mubr.f32.vlgmr.msra.gmra.mrb[40].mxu0 %v26509_v57 }
 0x4ec   :  { %22444 = vmatpush3.bf16.msra.mxu0 %v26050_v47 }
 0x4ed   :  { %22446 = vmatprep.subr.bf16.mxu0 %v26034_v18 }
 0x4ef   :  { %20504 = vmatmul.mubr.f32.vlgmr.msra.gmra.mrb[36].mxu1 %v25999_v41  ;;  %v28374_v41 = vld [vmem:[#allocation53_spill] sm:$0xff] }
 0x4f0   :  { %22396 = vmatpush3.bf16.xpose.msra.mxu1 %v26004_v59  ;;  %20510 = vmatprep.mubr.f32.mxu1 %v28368_v27  ;;  %v28375_v59 = vld [vmem:[#allocation50_spill] sm:$0xff] }
 0x4f1   :  { %22398 = vmatprep.subr.bf16.mxu1 %v28369_v6 }
 0x4f7   :  { %20511 = vmatmul.mubr.f32.vlgmr.msra.gmra.mrb[36].mxu1 %v28370_v36 }
 0x4f8   :  { %22400 = vmatpush3.bf16.xpose.msra.mxu1 %v28369_v6  ;;  %20517 = vmatprep.mubr.f32.mxu1 %v28371_v56 }
 0x4f9   :  { %22402 = vmatprep.subr.bf16.mxu1 %v25974_v8 }
 0x4ff   :  { %20518 = vmatmul.mubr.f32.vlgmr.msra.gmra.mrb[36].mxu1 %v28372_v35 }
 0x500   :  { %22404 = vmatpush3.bf16.xpose.msra.mxu1 %v25974_v8  ;;  %20524 = vmatprep.mubr.f32.mxu1 %v28373_v32 }
 0x501   :  { %22406 = vmatprep.subr.bf16.mxu1 %v28374_v41 }
 0x507   :  { %20525 = vmatmul.mubr.f32.vlgmr.msra.gmra.mrb[36].mxu1 %v28375_v59 }
 0x508   :  { %22408 = vmatpush3.bf16.xpose.msra.mxu1 %v28374_v41  ;;  %20531 = vmatprep.mubr.f32.mxu1 %v28368_v27 }
 0x509   :  { %22410 = vmatprep.subr.bf16.mxu1 %v25974_v8 }
 0x50f   :  { %20532 = vmatmul.mubr.f32.vlgmr.msra.gmra.mrb[36].mxu1 %v28370_v36 }
 0x510   :  { %22412 = vmatpush3.bf16.xpose.msra.mxu1 %v25974_v8  ;;  %20538 = vmatprep.mubr.f32.mxu1 %v28368_v27 }
 0x511   :  { %22438 = vmatprep.subr.bf16.mxu1 %v28376_v60 }
 0x517   :  { %20539 = vmatmul.mubr.f32.vlgmr.msra.gmra.mrb[36].mxu1 %v28370_v36 }
 0x518   :  { %22440 = vmatpush3.bf16.msra.mxu1 %v28376_v60 }
 0x522   :  { %v20159_v47 = vpop.f32.mrb[20].mxu1 }
 0x523   :  { %v6295_v39 = vpop.f32.mrb[21].mxu1 }
 0x526   :  { %v20162_v40 = vpop.f32.mrb[22].mxu1  ;;  %v20255_v24 = vpop.f32.mrb[24].mxu0 }
 0x527   :  { %v7102_v53 = vmax.f32 %v20159_v47, %v20255_v24  ;;  %v6307_v33 = vpop.f32.mrb[23].mxu1  ;;  %v7055_v50 = vpop.f32.mrb[25].mxu0 }
 0x528   :  { %v7101_v58 = vmax.f32 %v6295_v39, %v7055_v50 }
 0x52a   :  { %v20165_v21 = vpop.f32.mrb[24].mxu1  ;;  %v20258_v13 = vpop.f32.mrb[26].mxu0 }
 0x52b   :  { %v7104_v26 = vmax.f32 %v20162_v40, %v20258_v13  ;;  %v6319_v8 = vpop.f32.mrb[25].mxu1  ;;  %v7067_v25 = vpop.f32.mrb[27].mxu0  ;;  %v8662_v40 = vstv %s26594_s22 }
 0x52c   :  { %v7103_v0 = vmax.f32 %v6307_v33, %v7067_v25 }
 0x52e   :  { %v20168_v48 = vpop.f32.mrb[26].mxu1  ;;  %v20261_v38 = vpop.f32.mrb[28].mxu0 }
 0x52f   :  { %v7106_v54 = vmax.f32 %v20165_v21, %v20261_v38  ;;  %v6331_v4 = vpop.f32.mrb[27].mxu1  ;;  %v7079_v52 = vpop.f32.mrb[29].mxu0 }
 0x530   :  { %v7105_v1 = vmax.f32 %v6319_v8, %v7079_v52 }
 0x532   :  { %v20264_v3 = vpop.f32.mrb[30].mxu0 }
 0x533   :  { %v7108_v29 = vmax.f32 %v20168_v48, %v20264_v3  ;;  %v7091_v63 = vpop.f32.mrb[31].mxu0 }
 0x534   :  { %v7107_v17 = vmax.f32 %v6331_v4, %v7091_v63 }
 0x582   :  { %v20351_v9 = vpop.f32.mrb[28].mxu1 }
 0x583   :  { %v7870_v46 = vmax.f32 %v7102_v53, %v20351_v9  ;;  %v7823_v23 = vpop.f32.mrb[29].mxu1 }
 0x584   :  { %v7869_v22 = vmax.f32 %v7101_v58, %v7823_v23 }
 0x586   :  { %v20354_v31 = vpop.f32.mrb[30].mxu1  ;;  %v20447_v61 = vpop.f32.mrb[32].mxu0 }
 0x587   :  { %v7872_v14 = vmax.f32 %v7104_v26, %v20354_v31  ;;  %v8638_v16 = vmax.f32 %v7870_v46, %v20447_v61  ;;  %v7835_v10 = vpop.f32.mrb[31].mxu1  ;;  %v8591_v62 = vpop.f32.mrb[33].mxu0 }
 0x588   :  { %v7871_v42 = vmax.f32 %v7103_v0, %v7835_v10  ;;  %v8637_v49 = vmax.f32 %v7869_v22, %v8591_v62  ;;  %v9192_v10 = vld [vmem:[#allocation6 + $0x8] sm:$0xff]  ;;  %v9191_v62 = vld [vmem:[#allocation6] sm:$0xff] }
 0x589   :  { %v8648_v12 = vmul.f32 %v8646_v37, %v8638_v16 }
 0x58a   :  { %v20357_v43 = vpop.f32.mrb[32].mxu1  ;;  %v20450_v57 = vpop.f32.mrb[34].mxu0  ;;  %v8647_v19 = vmul.f32 %v8646_v37, %v8637_v49  ;;  %v28378_v37 = vld [vmem:[#allocation39_spill] sm:$0xff] }
 0x58b   :  { %v7874_v28 = vmax.f32 %v7106_v54, %v20357_v43  ;;  %v8640_v55 = vmax.f32 %v7872_v14, %v20450_v57  ;;  %v7847_v7 = vpop.f32.mrb[33].mxu1  ;;  %v8603_v5 = vpop.f32.mrb[35].mxu0  ;;  %v11265_v43 = vmul.f32 %v28378_v37, %v28378_v37 }
 0x58c   :  { %v7873_v30 = vmax.f32 %v7105_v1, %v7847_v7  ;;  %v8639_v51 = vmax.f32 %v7871_v42, %v8603_v5  ;;  %v28377_v42 = vld [vmem:[#allocation40_spill] sm:$0xff] }
 0x58d   :  { %v8652_v20 = vmul.f32 %v8650_v45, %v8640_v55  ;;  %v11266_v49 = vmul.f32 %v28377_v42, %v28377_v42 }
 0x58e   :  { %v8651_v2 = vmul.f32 %v8650_v45, %v8639_v51  ;;  %v20360_v44 = vpop.f32.mrb[34].mxu1  ;;  %v20453_v11 = vpop.f32.mrb[36].mxu0  ;;  %v11303_v51 = vld [vmem:[#allocation8 + $0x48] sm:$0xff] }
 0x58f   :  { %v8654_v15 = vadd.f32 %v8652_v20, %v8648_v12  ;;  %v7876_v27 = vmax.f32 %v7108_v29, %v20360_v44  ;;  %v8642_v6 = vmax.f32 %v7874_v28, %v20453_v11  ;;  %v7859_v36 = vpop.f32.mrb[35].mxu1  ;;  %v8615_v56 = vpop.f32.mrb[37].mxu0 }
 0x590   :  { %v8653_v35 = vadd.f32 %v8651_v2, %v8647_v19  ;;  %v7875_v32 = vmax.f32 %v7107_v17, %v7859_v36  ;;  %v8641_v41 = vmax.f32 %v7873_v30, %v8615_v56  ;;  %v11302_v30 = vld [vmem:[#allocation8 + $0x40] sm:$0xff]  ;;  %v11304_v19 = vld [vmem:[#allocation8 + $0x50] sm:$0xff] }
 0x591   :  { %v8658_v59 = vmul.f32 %v8656_v34, %v8642_v6  ;;  %v11311_v20 = vsel %vm4036_vm0, %v11302_v30, 0  ;;  %v11305_v6 = vld [vmem:[#allocation8 + $0x58] sm:$0xff] }
 0x592   :  { %v8657_v47 = vmul.f32 %v8656_v34, %v8641_v41  ;;  %v20456_v39 = vpop.f32.mrb[38].mxu0  ;;  %v11314_v34 = vsel %vm4036_vm0, %v11303_v51, 0 }
 0x593   :  { %v8644_v24 = vmax.f32 %v7876_v27, %v20456_v39  ;;  %v8627_v53 = vpop.f32.mrb[39].mxu0  ;;  %v8660_v33 = vadd.f32 %v8658_v59, %v8654_v15  ;;  %v26610_v15 = vand.u32 4294901760, %v11311_v20  ;;  %v11317_v27 = vsel %vm4036_vm0, %v11304_v19, 0 }
 0x594   :  { %v8643_v50 = vmax.f32 %v7875_v32, %v8627_v53  ;;  %v8659_v58 = vadd.f32 %v8657_v47, %v8653_v35  ;;  %v26613_v32 = vand.u32 4294901760, %v11314_v34  ;;  %v26615_v59 = vand.u32 4294901760, %v11317_v27 }
 0x595   :  { %v8664_v21 = vmul.f32 %v8662_v40, %v8644_v24  ;;  %v11320_v47 = vsel %vm4036_vm0, %v11305_v6, 0  ;;  %v26619_v24 = vsub.f32 %v11311_v20, %v26610_v15 }
 0x596   :  { %v8663_v13 = vmul.f32 %v8662_v40, %v8643_v50 }
 0x597   :  { %v8666_v26 = vadd.f32 %v8664_v21, %v8660_v33 }
 0x598   :  { %v8665_v8 = vadd.f32 %v8663_v13, %v8659_v58  ;;  %v11306_v58 = vld [vmem:[#allocation8 + $0x60] sm:$0xff]  ;;  %v26622_v13 = vsub.f32 %v11314_v34, %v26613_v32 }
 0x5be   :  { %v20582_v25 = vpop.f32.mrb[40].mxu0 }
 0x5bf   :  { %v10224_v0 = vmul.f32 0.17677669, %v20582_v25  ;;  %v10213_v48 = vpop.f32.mrb[41].mxu0 }
 0x5c0   :  { %v10223_v38 = vmul.f32 0.17677669, %v10213_v48  ;;  %v11308_v48 = vld [vmem:[#allocation8 + $0x70] sm:$0xff] }
 0x5c1   :  { %v10228_v54 = vsel %vm4036_vm0, %v10224_v0, -inf }
 0x5c2   :  { %10229 = vmax.xlane.f32.xlu1 %v10228_v54  ;;  %v10225_v4 = vsel %vm4036_vm0, %v10223_v38, -inf }
 0x5c3   :  { %10226 = vmax.xlane.f32.xlu0 %v10225_v4  ;;  %v26634_v4 = vand.u32 4294901760, %v26619_v24 }
 0x5ea   :  { %v20540_v52 = vpop.f32.mrb[36].mxu1 }
 0x5eb   :  { %v22749_v1 = vadd.f32 %v20540_v52, %v8666_v26  ;;  %v9685_v3 = vpop.f32.mrb[37].mxu1  ;;  %v26624_v26 = vand.u32 4294901760, %v11320_v47  ;;  %v11323_v52 = vsel %vm4036_vm0, %v11306_v58, 0 }
 0x5ec   :  { %v22750_v29 = vadd.f32 %v9685_v3, %v8665_v8  ;;  %v11307_v8 = vld [vmem:[#allocation8 + $0x68] sm:$0xff] }
 0x5ed   :  { %v9698_v57 = vadd.f32 %v22749_v1, %v9192_v10  ;;  %v11326_v3 = vsel %vm4036_vm0, %v11307_v8, 0 }
 0x5ee   :  { %v9697_v45 = vadd.f32 %v22750_v29, %v9191_v62 }
 0x5ef   :  { %v9702_v28 = vsel %vm4036_vm0, %v9698_v57, -inf }
 0x5f0   :  { %v9699_v55 = vsel %vm4036_vm0, %v9697_v45, -inf }
 0x64f   :  { %v10230_v63 = vpop.xlane.xlu1 %10229 }
 0x650   :  { %v10232_v17 = vsub.f32 %v10224_v0, %v10230_v63  ;;  %v10227_v9 = vpop.xlane.xlu0 %10226  ;;  %v26628_v0 = vsub.f32 %v11317_v27, %v26615_v59 }
 0x651   :  { %v10231_v46 = vsub.f32 %v10223_v38, %v10227_v9  ;;  %v26647_v9 = vsub.f32 %v11320_v47, %v26624_v26 }
 0x652   :  { %v10235_v23 = vmul.f32 1.442695, %v10232_v17  ;;  %v26644_v17 = vand.u32 4294901760, %v26622_v13 }
 0x653   :  { %v10233_v22 = vmul.f32 1.442695, %v10231_v46  ;;  %v11329_v46 = vsel %vm4036_vm0, %v11308_v48, 0 }
 0x654   :  { %23505 = vpow2.f32 %v10235_v23  ;;  %v11309_v23 = vld [vmem:[#allocation8 + $0x78] sm:$0xff] }
 0x655   :  { %23507 = vpow2.f32 %v10233_v22 }
 0x65e   :  { %v23506_v31 = vpop.eup %23505 }
 0x65f   :  { %v23508_v61 = vpop.eup %23507  ;;  %v10240_v14 = vsel %vm4036_vm0, %v23506_v31, 0.0 }
 0x660   :  { %10241 = vadd.xlane.f32.xlu1 %v10240_v14  ;;  %v10237_v16 = vsel %vm4036_vm0, %v23508_v61, 0.0  ;;  %v26654_v14 = vand.u32 4294901760, %v26628_v0 }
 0x661   :  { %10238 = vadd.xlane.f32.xlu0 %v10237_v16  ;;  %v26656_v16 = vand.u32 4294901760, %v11323_v52 }
 0x662   :  { %v11424_v51 = vsub.f32 %v26628_v0, %v26654_v14 }
 0x664   :  { %11269 = vadd.xlane.f32.xlu1 %v11266_v49  ;;  %v11404_v49 = vsub.f32 %v26619_v24, %v26634_v4 }
 0x665   :  { %11267 = vadd.xlane.f32.xlu0 %v11265_v43  ;;  %v26663_v43 = vand.u32 4294901760, %v11326_v3 }
 0x668   :  { %9703 = vmax.xlane.f32.xlu1 %v9702_v28  ;;  %v11332_v28 = vsel %vm4036_vm0, %v11309_v23, 0  ;;  %v28381_v23 = vld [vmem:[#allocation38_spill] sm:$0xff] }
 0x669   :  { %9700 = vmax.xlane.f32.xlu0 %v9699_v55 }
 0x6ed   :  { %v10242_v7 = vpop.xlane.xlu1 %10241 }
 0x6ee   :  { %23509 = vrcp.f32 %v10242_v7  ;;  %v10239_v5 = vpop.xlane.xlu0 %10238  ;;  %v11414_v7 = vsub.f32 %v26622_v13, %v26644_v17 }
 0x6ef   :  { %23511 = vrcp.f32 %v10239_v5  ;;  %v26676_v5 = vand.u32 4294901760, %v26647_v9 }
 0x6f1   :  { %v11270_v12 = vpop.xlane.xlu1 %11269 }
 0x6f2   :  { %v11272_v2 = vmax.f32 %v11270_v12, 1e-24  ;;  %v11268_v44 = vpop.xlane.xlu0 %11267  ;;  %v26681_v12 = vsub.f32 %v11323_v52, %v26656_v16  ;;  %v26718_v52 = vand.u32 4294901760, %v11424_v51 }
 0x6f3   :  { %v11271_v11 = vmax.f32 %v11268_v44, 1e-24  ;;  %v26688_v44 = vsub.f32 %v11326_v3, %v26663_v43 }
 0x6f4   :  { %23513 = vrsqrt.f32 %v11272_v2  ;;  %v26707_v58 = vand.u32 4294901760, %v26681_v12 }
 0x6f5   :  { %23515 = vrsqrt.f32 %v11271_v11  ;;  %v9704_v36 = vpop.xlane.xlu1 %9703  ;;  %v26690_v11 = vand.u32 4294901760, %v11332_v28  ;;  %v26721_v3 = vand.u32 4294901760, %v26688_v44 }
 0x6f6   :  { %v9706_v56 = vsub.f32 %v9698_v57, %v9704_v36  ;;  %v9701_v35 = vpop.xlane.xlu0 %9700 }
 0x6f7   :  { %v9705_v41 = vsub.f32 %v9697_v45, %v9701_v35  ;;  %v26666_v45 = vand.u32 4294901760, %v11329_v46 }
 0x6f8   :  { %v23510_v39 = vpop.eup %23509  ;;  %v9709_v40 = vmul.f32 1.442695, %v9706_v56 }
 0x6f9   :  { %v23512_v53 = vpop.eup %23511  ;;  %v9707_v33 = vmul.f32 1.442695, %v9705_v41  ;;  %v10246_v50 = vmul.f32 %v23510_v39, %v23506_v31  ;;  %v26697_v56 = vsub.f32 %v11329_v46, %v26666_v45  ;;  %v28380_v46 = vld [vmem:[#allocation68_spill] sm:$0xff] }
 0x6fa   :  { %23517 = vpow2.f32 %v9709_v40  ;;  %v10244_v21 = vmul.f32 %v23512_v53, %v23508_v61  ;;  %v28379_v40 = vld [vmem:[#allocation41_spill] sm:$0xff] }
 0x6fb   :  { %23519 = vpow2.f32 %v9707_v33  ;;  %v10251_v25 = vsel %vm4036_vm0, %v10246_v50, 0  ;;  %v11278_v53 = vmul.f32 %v28379_v40, %v28379_v40  ;;  %v26704_v33 = vand.u32 4294901760, %v11404_v49 }
 0x6fc   :  { %v10248_v38 = vsel %vm4036_vm0, %v10244_v21, 0  ;;  %v26631_v54 = vand.u32 4294901760, %v10251_v25  ;;  %v26710_v21 = vand.u32 4294901760, %v11414_v7  ;;  %v28383_v7 = vld [vmem:[#allocation42_spill] sm:$0xff] }
 0x6fd   :  { %v26637_v1 = vand.u32 4294901760, %v10248_v38 }
 0x6fe   :  { %v23514_v29 = vpop.eup %23513  ;;  %v26641_v63 = vsub.f32 %v10251_v25, %v26631_v54  ;;  %v11434_v25 = vsub.f32 %v26647_v9, %v26676_v5 }
 0x6ff   :  { %v23516_v22 = vpop.eup %23515  ;;  %v11276_v31 = vmul.f32 %v23514_v29, %v28377_v42  ;;  %20594 = vmatprep.mubr.f32.mxu0 %v26637_v1  ;;  %v10321_v61 = vsub.f32 %v10248_v38, %v26637_v1  ;;  %v26724_v29 = vsub.f32 %v11332_v28, %v26690_v11 }
 0x700   :  { %v11275_v10 = vmul.f32 %v23516_v22, %v28378_v37  ;;  %20595 = vmatmul.mubr.f32.vlgmr.msra.gmra.mrb[42].mxu0 %v26631_v54  ;;  %v10332_v62 = vand.u32 4294901760, %v26641_v63  ;;  %v11277_v22 = vmul.f32 %v28381_v23, %v28381_v23  ;;  %v26739_v28 = vand.u32 4294901760, %v11434_v25 }
 0x701   :  { %v11338_v42 = vand.u32 4294901760, %v11276_v31  ;;  %22448 = vmatpush3.bf16.msra.mxu0 %v26034_v18  ;;  %20601 = vmatprep.mubr.f32.mxu0 %v10321_v61  ;;  %v10322_v57 = vand.u32 4294901760, %v10321_v61 }
 0x702   :  { %v11335_v55 = vand.u32 4294901760, %v11275_v10  ;;  %22450 = vmatprep.subr.bf16.mxu0 %v28376_v60  ;;  %v10333_v37 = vsub.f32 %v26641_v63, %v10332_v62 }
 0x703   :  { %v10323_v18 = vsub.f32 %v10321_v61, %v10322_v57  ;;  %v11490_v30 = vsub.f32 %v11276_v31, %v11338_v42  ;;  %v26730_v61 = vand.u32 4294901760, %v26697_v56 }
 0x704   :  { %v26683_v20 = vpop.eup %23517  ;;  %v26685_v19 = vpack.c.bf16 %v11338_v42, %v11335_v55  ;;  %v11483_v2 = vsub.f32 %v11275_v10, %v11335_v55  ;;  %v10334_v41 = vand.u32 4294901760, %v10333_v37  ;;  %v11444_v10 = vsub.f32 %v26681_v12, %v26707_v58  ;;  %v28382_v42 = vld [vmem:[#allocation23_spill] sm:$0xff] }
 0x705   :  { %v26692_v34 = vpop.eup %23519  ;;  %v9714_v27 = vsel %vm4036_vm0, %v26683_v20, 0.0  ;;  %v10324_v6 = vand.u32 4294901760, %v10323_v18  ;;  %v11491_v36 = vand.u32 4294901760, %v11490_v30  ;;  %v11454_v55 = vsub.f32 %v26688_v44, %v26721_v3 }
 0x706   :  { %9715 = vadd.xlane.f32.xlu1 %v9714_v27  ;;  %22486 = vmatprep.subr.bf16.mxu1 %v26685_v19  ;;  %v9711_v35 = vsel %vm4036_vm0, %v26692_v34, 0.0  ;;  %v11484_v47 = vand.u32 4294901760, %v11483_v2  ;;  %v22493_v39 = vpack.c.bf16 %v11490_v30, %v11483_v2  ;;  %v26744_v37 = vand.u32 4294901760, %v26724_v29 }
 0x707   :  { %20587 = vmatprep.mubr.f32.mxu1 %v10324_v6  ;;  %9712 = vadd.xlane.f32.xlu0 %v9711_v35  ;;  %v11492_v50 = vsub.f32 %v11490_v30, %v11491_v36  ;;  %v11289_v18 = vmul.f32 %v28383_v7, %v28383_v7  ;;  %v11464_v30 = vsub.f32 %v26697_v56, %v26730_v61  ;;  %v26750_v51 = vand.u32 4294901760, %v11444_v10 }
 0x708   :  { %20588 = vmatmul.mubr.f32.vlgmr.msra.gmra.mrb[38].mxu1 %v10334_v41  ;;  %20602 = vmatmul.mubr.f32.vlgmr.msra.gmra.mrb[42].mxu0 %v26641_v63  ;;  %v11485_v8 = vsub.f32 %v11483_v2, %v11484_v47  ;;  %v26714_v48 = vpack.c.bf16 %v11491_v36, %v11484_v47  ;;  %v26756_v2 = vand.u32 4294901760, %v11454_v55  ;;  %v11474_v27 = vsub.f32 %v26724_v29, %v26744_v37 }
 0x709   :  { %22452 = vmatpush3.bf16.msra.mxu0 %v28376_v60  ;;  %22488 = vmatpush3.bf16.msra.mxu1 %v26685_v19  ;;  %v11493_v38 = vand.u32 4294901760, %v11492_v50  ;;  %v26761_v6 = vand.u32 4294901760, %v11464_v30 }
 0x70a   :  { %20608 = vmatprep.mubr.f32.mxu0 %v10322_v57  ;;  %22454 = vmatprep.subr.bf16.mxu0 %v28380_v46  ;;  %v11486_v31 = vand.u32 4294901760, %v11485_v8  ;;  %v11290_v57 = vmul.f32 %v28382_v42, %v28382_v42  ;;  %v26766_v63 = vand.u32 4294901760, %v11474_v27 }
 0x70b   :  { %11281 = vadd.xlane.f32.xlu1 %v11278_v53  ;;  %20671 = vmatprep.mubr.f32.mxu1 %v26704_v33 }
 0x70c   :  { %11279 = vadd.xlane.f32.xlu0 %v11277_v22  ;;  %20672 = vmatmul.mubr.f32.vlgmr.msra.gmra.mrb[40].mxu1 %v26710_v21  ;;  %v22489_v49 = vpack.c.bf16 %v11493_v38, %v11486_v31 }
 0x70d   :  { %20674 = vmatprep.mubr.f32.mxu1 %v26718_v52 }
 0x70e   :  { %22490 = vmatprep.subr.bf16.mxu1 %v22489_v49 }
 0x70f   :  { %11293 = vadd.xlane.f32.xlu1 %v11290_v57  ;;  %22492 = vmatpush3.bf16.msra.mxu1 %v22489_v49 }
 0x710   :  { %11291 = vadd.xlane.f32.xlu0 %v11289_v18  ;;  %20609 = vmatmul.mubr.f32.vlgmr.msra.gmra.mrb[42].mxu0 %v10332_v62  ;;  %v28384_v62 = vld [vmem:[#allocation44_spill] sm:$0xff] }
 0x711   :  { %22456 = vmatpush3.bf16.msra.mxu0 %v28380_v46  ;;  %20675 = vmatmul.mubr.f32.gmra.mrb[42].mxu1 %v26739_v28 }
 0x712   :  { %22494 = vmatprep.subr.bf16.mxu1 %v22493_v39  ;;  %20615 = vmatprep.mubr.f32.mxu0 %v26637_v1 }
 0x713   :  { %22458 = vmatprep.subr.bf16.mxu0 %v28376_v60  ;;  %20677 = vmatprep.mubr.f32.mxu1 %v26750_v51 }
 0x715   :  { %20678 = vmatmul.mubr.f32.gmra.mrb[44].mxu1 %v26756_v2 }
 0x716   :  { %20680 = vmatprep.mubr.f32.mxu1 %v26761_v6 }
 0x718   :  { %20616 = vmatmul.mubr.f32.vlgmr.msra.gmra.mrb[42].mxu0 %v26631_v54 }
 0x719   :  { %22460 = vmatpush3.bf16.msra.mxu0 %v28376_v60  ;;  %20681 = vmatmul.mubr.f32.gmra.mrb[46].mxu1 %v26766_v63  ;;  %v28385_v60 = vld [vmem:[#allocation28_spill] sm:$0xff] }
 0x71a   :  { %20622 = vmatprep.mubr.f32.mxu0 %v26637_v1  ;;  %22462 = vmatprep.subr.bf16.mxu0 %v28384_v62 }
 0x71b   :  { %20687 = vmatprep.mubr.f32.mxu1 %v26610_v15 }
 0x71d   :  { %20688 = vmatmul.mubr.f32.vlgmr.msra.gmra.mrb[40].mxu1 %v26613_v32 }
 0x71e   :  { %22496 = vmatpush3.bf16.msra.mxu1 %v22493_v39  ;;  %20690 = vmatprep.mubr.f32.mxu1 %v26615_v59 }
 0x71f   :  { %22498 = vmatprep.subr.bf16.mxu1 %v26685_v19 }
 0x720   :  { %20623 = vmatmul.mubr.f32.vlgmr.msra.gmra.mrb[42].mxu0 %v26631_v54 }
 0x721   :  { %22464 = vmatpush3.bf16.msra.mxu0 %v28384_v62  ;;  %20691 = vmatmul.mubr.f32.gmra.mrb[42].mxu1 %v26624_v26 }
 0x722   :  { %22466 = vmatprep.subr.bf16.mxu0 %v28385_v60  ;;  %20693 = vmatprep.mubr.f32.mxu1 %v26656_v16 }
 0x725   :  { %20694 = vmatmul.mubr.f32.gmra.mrb[44].mxu1 %v26663_v43 }
 0x726   :  { %20696 = vmatprep.mubr.f32.mxu1 %v26666_v45 }
 0x729   :  { %20697 = vmatmul.mubr.f32.gmra.mrb[46].mxu1 %v26690_v11 }
 0x72a   :  { %20703 = vmatprep.mubr.f32.mxu1 %v26619_v24 }
 0x72d   :  { %20704 = vmatmul.mubr.f32.vlgmr.msra.gmra.mrb[40].mxu1 %v26622_v13 }
 0x72e   :  { %22500 = vmatpush3.bf16.msra.mxu1 %v26685_v19  ;;  %20706 = vmatprep.mubr.f32.mxu1 %v26628_v0 }
 0x72f   :  { %22502 = vmatprep.subr.bf16.mxu1 %v26714_v48 }
 0x731   :  { %20707 = vmatmul.mubr.f32.gmra.mrb[42].mxu1 %v26647_v9 }
 0x732   :  { %20709 = vmatprep.mubr.f32.mxu1 %v26681_v12 }
 0x735   :  { %20710 = vmatmul.mubr.f32.gmra.mrb[44].mxu1 %v26688_v44 }
 0x736   :  { %20712 = vmatprep.mubr.f32.mxu1 %v26697_v56 }
 0x739   :  { %20713 = vmatmul.mubr.f32.gmra.mrb[46].mxu1 %v26724_v29 }
 0x73a   :  { %20719 = vmatprep.mubr.f32.mxu1 %v26634_v4 }
 0x73d   :  { %20720 = vmatmul.mubr.f32.vlgmr.msra.gmra.mrb[40].mxu1 %v26644_v17 }
 0x73e   :  { %22504 = vmatpush3.bf16.msra.mxu1 %v26714_v48  ;;  %20722 = vmatprep.mubr.f32.mxu1 %v26654_v14 }
 0x73f   :  { %22506 = vmatprep.subr.bf16.mxu1 %v26685_v19 }
 0x741   :  { %20723 = vmatmul.mubr.f32.gmra.mrb[42].mxu1 %v26676_v5 }
 0x742   :  { %20725 = vmatprep.mubr.f32.mxu1 %v26707_v58 }
 0x745   :  { %20726 = vmatmul.mubr.f32.gmra.mrb[44].mxu1 %v26721_v3 }
 0x746   :  { %20728 = vmatprep.mubr.f32.mxu1 %v26730_v61 }
 0x749   :  { %20729 = vmatmul.mubr.f32.gmra.mrb[46].mxu1 %v26744_v37 }
 0x74a   :  { %20735 = vmatprep.mubr.f32.mxu1 %v26610_v15 }
 0x74d   :  { %20736 = vmatmul.mubr.f32.vlgmr.msra.gmra.mrb[40].mxu1 %v26613_v32 }
 0x74e   :  { %22508 = vmatpush3.bf16.msra.mxu1 %v26685_v19  ;;  %20738 = vmatprep.mubr.f32.mxu1 %v26615_v59 }
 0x751   :  { %20739 = vmatmul.mubr.f32.gmra.mrb[42].mxu1 %v26624_v26 }
 0x752   :  { %20741 = vmatprep.mubr.f32.mxu1 %v26656_v16 }
 0x755   :  { %20742 = vmatmul.mubr.f32.gmra.mrb[44].mxu1 %v26663_v43 }
 0x756   :  { %20744 = vmatprep.mubr.f32.mxu1 %v26666_v45 }
 0x759   :  { %20745 = vmatmul.mubr.f32.gmra.mrb[46].mxu1 %v26690_v11 }
 0x75a   :  { %20751 = vmatprep.mubr.f32.mxu1 %v26610_v15 }
 0x75d   :  { %20752 = vmatmul.mubr.f32.vlgmr.msra.gmra.mrb[40].mxu1 %v26613_v32 }
 0x75e   :  { %20754 = vmatprep.mubr.f32.mxu1 %v26615_v59 }
 0x761   :  { %20755 = vmatmul.mubr.f32.gmra.mrb[42].mxu1 %v26624_v26 }
 0x762   :  { %20757 = vmatprep.mubr.f32.mxu1 %v26656_v16 }
 0x765   :  { %20758 = vmatmul.mubr.f32.gmra.mrb[44].mxu1 %v26663_v43 }
 0x766   :  { %20760 = vmatprep.mubr.f32.mxu1 %v26666_v45 }
 0x769   :  { %20761 = vmatmul.mubr.f32.gmra.mrb[46].mxu1 %v26690_v11 }
 0x793   :  { %v9716_v54 = vpop.xlane.xlu1 %9715 }
 0x794   :  { %23521 = vrcp.f32 %v9716_v54  ;;  %v9713_v1 = vpop.xlane.xlu0 %9712 }
 0x795   :  { %23523 = vrcp.f32 %v9713_v1 }
 0x798   :  { %v11282_v19 = vpop.xlane.xlu1 %11281 }
 0x799   :  { %v11284_v36 = vmax.f32 %v11282_v19, 1e-24  ;;  %v11280_v35 = vpop.xlane.xlu0 %11279 }
 0x79a   :  { %v11283_v41 = vmax.f32 %v11280_v35, 1e-24 }
 0x79b   :  { %23525 = vrsqrt.f32 %v11284_v36 }
 0x79c   :  { %23527 = vrsqrt.f32 %v11283_v41  ;;  %v11294_v47 = vpop.xlane.xlu1 %11293 }
 0x79d   :  { %v11296_v39 = vmax.f32 %v11294_v47, 1e-24  ;;  %v11292_v53 = vpop.xlane.xlu0 %11291 }
 0x79e   :  { %v23522_v50 = vpop.eup %23521  ;;  %v11295_v8 = vmax.f32 %v11292_v53, 1e-24 }
 0x79f   :  { %v23524_v25 = vpop.eup %23523  ;;  %v9720_v48 = vmul.f32 %v23522_v50, %v26683_v20  ;;  %23529 = vrsqrt.f32 %v11296_v39 }
 0x7a0   :  { %v9718_v38 = vmul.f32 %v23524_v25, %v26692_v34  ;;  %23531 = vrsqrt.f32 %v11295_v8 }
 0x7a1   :  { %v10759_v46 = vsel %vm4036_vm0, %v9720_v48, 0 }
 0x7a2   :  { %v10756_v22 = vsel %vm4036_vm0, %v9718_v38, 0  ;;  %v26827_v31 = vand.u32 4294901760, %v10759_v46 }
 0x7a3   :  { %v26829_v10 = vand.u32 4294901760, %v10756_v22 }
 0x7a4   :  { %v10839_v49 = vsub.f32 %v10759_v46, %v26827_v31 }
 0x7a5   :  { %v23526_v57 = vpop.eup %23525  ;;  %v10829_v55 = vsub.f32 %v10756_v22, %v26829_v10 }
 0x7a6   :  { %v23528_v18 = vpop.eup %23527  ;;  %v11288_v20 = vmul.f32 %v23526_v57, %v28379_v40  ;;  %v10840_v30 = vand.u32 4294901760, %v10839_v49 }
 0x7a7   :  { %v11287_v34 = vmul.f32 %v23528_v18, %v28381_v23  ;;  %v10830_v27 = vand.u32 4294901760, %v10829_v55 }
 0x7a8   :  { %v12098_v54 = vand.u32 4294901760, %v11288_v20  ;;  %v10841_v1 = vsub.f32 %v10839_v49, %v10840_v30 }
 0x7a9   :  { %v23530_v19 = vpop.eup %23529  ;;  %v12095_v36 = vand.u32 4294901760, %v11287_v34  ;;  %v10831_v35 = vsub.f32 %v10829_v55, %v10830_v27 }
 0x7aa   :  { %v23532_v41 = vpop.eup %23531  ;;  %v12250_v47 = vsub.f32 %v11288_v20, %v12098_v54  ;;  %v11300_v39 = vmul.f32 %v23530_v19, %v28382_v42  ;;  %v10842_v48 = vand.u32 4294901760, %v10841_v1 }
 0x7ab   :  { %v26836_v53 = vpack.c.bf16 %v12098_v54, %v12095_v36  ;;  %v12243_v50 = vsub.f32 %v11287_v34, %v12095_v36  ;;  %v11299_v8 = vmul.f32 %v23532_v41, %v28383_v7  ;;  %v10832_v25 = vand.u32 4294901760, %v10831_v35  ;;  %v28386_v34 = vld [vmem:[#allocation22_spill] sm:$0xff] }
 0x7ac   :  { %v26839_v40 = vand.u32 4294901760, %v11300_v39  ;;  %v12251_v23 = vand.u32 4294901760, %v12250_v47 }
 0x7ad   :  { %v26841_v38 = vand.u32 4294901760, %v11299_v8  ;;  %20629 = vmatprep.mubr.f32.mxu0 %v10832_v25  ;;  %v12244_v46 = vand.u32 4294901760, %v12243_v50  ;;  %v26843_v22 = vpack.c.bf16 %v12250_v47, %v12243_v50 }
 0x7ae   :  { %v26846_v57 = vsub.f32 %v11300_v39, %v26839_v40  ;;  %20630 = vmatmul.mubr.f32.vlgmr.msra.gmra.mrb[42].mxu0 %v10842_v48  ;;  %v12252_v42 = vsub.f32 %v12250_v47, %v12251_v23 }
 0x7af   :  { %22468 = vmatpush3.bf16.msra.mxu0 %v28385_v60  ;;  %20636 = vmatprep.mubr.f32.mxu0 %v26829_v10  ;;  %v12245_v7 = vsub.f32 %v12243_v50, %v12244_v46  ;;  %v26850_v18 = vpack.c.bf16 %v12251_v23, %v12244_v46  ;;  %v26854_v20 = vpack.c.bf16 %v26839_v40, %v26841_v38  ;;  %v28387_v23 = vld [vmem:[#allocation24_spill] sm:$0xff] }
 0x7b0   :  { %22470 = vmatprep.subr.bf16.mxu0 %v28386_v34  ;;  %v12253_v54 = vand.u32 4294901760, %v12252_v42  ;;  %v26858_v1 = vsub.f32 %v11299_v8, %v26841_v38  ;;  %v26861_v19 = vand.u32 4294901760, %v26846_v57 }
 0x7b1   :  { %v12246_v36 = vand.u32 4294901760, %v12245_v7 }
 0x7b2   :  { %v26864_v60 = vand.u32 4294901760, %v26858_v1  ;;  %v16547_v35 = vsub.f32 %v26846_v57, %v26861_v19  ;;  %v26870_v41 = vpack.c.bf16 %v26846_v57, %v26858_v1 }
 0x7b3   :  { %v26872_v47 = vpack.c.bf16 %v12253_v54, %v12246_v36 }
 0x7b4   :  { %v16537_v39 = vsub.f32 %v26858_v1, %v26864_v60  ;;  %v26876_v50 = vand.u32 4294901760, %v16547_v35  ;;  %v26880_v8 = vpack.c.bf16 %v26861_v19, %v26864_v60 }
 0x7b6   :  { %20637 = vmatmul.mubr.f32.vlgmr.msra.gmra.mrb[42].mxu0 %v26827_v31  ;;  %v26883_v25 = vand.u32 4294901760, %v16537_v39 }
 0x7b7   :  { %22472 = vmatpush3.bf16.msra.mxu0 %v28386_v34  ;;  %20643 = vmatprep.mubr.f32.mxu0 %v10829_v55 }
 0x7b8   :  { %22474 = vmatprep.subr.bf16.mxu0 %v28384_v62  ;;  %v26889_v48 = vpack.c.bf16 %v26876_v50, %v26883_v25 }
 0x7be   :  { %20644 = vmatmul.mubr.f32.vlgmr.msra.gmra.mrb[42].mxu0 %v10839_v49 }
 0x7bf   :  { %22476 = vmatpush3.bf16.msra.mxu0 %v28384_v62  ;;  %20650 = vmatprep.mubr.f32.mxu0 %v10830_v27 }
 0x7c0   :  { %22478 = vmatprep.subr.bf16.mxu0 %v28387_v23 }
 0x7c6   :  { %20651 = vmatmul.mubr.f32.vlgmr.msra.gmra.mrb[42].mxu0 %v10840_v30 }
 0x7c7   :  { %22480 = vmatpush3.bf16.msra.mxu0 %v28387_v23  ;;  %20657 = vmatprep.mubr.f32.mxu0 %v26829_v10 }
 0x7c8   :  { %22482 = vmatprep.subr.bf16.mxu0 %v28384_v62 }
 0x7ce   :  { %20658 = vmatmul.mubr.f32.vlgmr.msra.gmra.mrb[42].mxu0 %v26827_v31 }
 0x7cf   :  { %22484 = vmatpush3.bf16.msra.mxu0 %v28384_v62  ;;  %20664 = vmatprep.mubr.f32.mxu0 %v26829_v10 }
 0x7d0   :  { %22510 = vmatprep.subr.bf16.mxu0 %v26836_v53 }
 0x7d6   :  { %20665 = vmatmul.mubr.f32.vlgmr.msra.gmra.mrb[42].mxu0 %v26827_v31 }
 0x7d7   :  { %22512 = vmatpush3.bf16.msra.mxu0 %v26836_v53  ;;  %20767 = vmatprep.mubr.f32.mxu0 %v26704_v33 }
 0x7d8   :  { %22514 = vmatprep.subr.bf16.mxu0 %v26872_v47 }
 0x7da   :  { %20768 = vmatmul.mubr.f32.vlgmr.msra.gmra.mrb[44].mxu0 %v26710_v21 }
 0x7db   :  { %22516 = vmatpush3.bf16.msra.mxu0 %v26872_v47  ;;  %v26906_v49 = vpop.f32.mrb[38].mxu1  ;;  %20770 = vmatprep.mubr.f32.mxu0 %v26718_v52 }
 0x7dc   :  { %22518 = vmatprep.subr.bf16.mxu0 %v26843_v22  ;;  %v26910_v62 = vpop.f32.mrb[39].mxu1 }
 0x7de   :  { %20771 = vmatmul.mubr.f32.gmra.mrb[46].mxu0 %v26739_v28 }
 0x7df   :  { %20773 = vmatprep.mubr.f32.mxu0 %v26750_v51 }
 0x7e2   :  { %20774 = vmatmul.mubr.f32.gmra.mrb[48].mxu0 %v26756_v2 }
 0x7e3   :  { %20776 = vmatprep.mubr.f32.mxu0 %v26761_v6 }
 0x7e6   :  { %20777 = vmatmul.mubr.f32.gmra.mrb[50].mxu0 %v26766_v63 }
 0x7e7   :  { %20783 = vmatprep.mubr.f32.mxu0 %v26610_v15 }
 0x7ea   :  { %20784 = vmatmul.mubr.f32.vlgmr.msra.gmra.mrb[44].mxu0 %v26613_v32 }
 0x7eb   :  { %22520 = vmatpush3.bf16.msra.mxu0 %v26843_v22  ;;  %20786 = vmatprep.mubr.f32.mxu0 %v26615_v59 }
 0x7ec   :  { %22522 = vmatprep.subr.bf16.mxu0 %v26836_v53 }
 0x7ee   :  { %20787 = vmatmul.mubr.f32.gmra.mrb[46].mxu0 %v26624_v26 }
 0x7ef   :  { %20789 = vmatprep.mubr.f32.mxu0 %v26656_v16 }
 0x7f2   :  { %20790 = vmatmul.mubr.f32.gmra.mrb[48].mxu0 %v26663_v43 }
 0x7f3   :  { %20792 = vmatprep.mubr.f32.mxu0 %v26666_v45 }
 0x7f6   :  { %20793 = vmatmul.mubr.f32.gmra.mrb[50].mxu0 %v26690_v11 }
 0x7f7   :  { %20799 = vmatprep.mubr.f32.mxu0 %v26619_v24 }
 0x7fa   :  { %20800 = vmatmul.mubr.f32.vlgmr.msra.gmra.mrb[44].mxu0 %v26622_v13 }
 0x7fb   :  { %22524 = vmatpush3.bf16.msra.mxu0 %v26836_v53  ;;  %20802 = vmatprep.mubr.f32.mxu0 %v26628_v0 }
 0x7fc   :  { %22526 = vmatprep.subr.bf16.mxu0 %v26850_v18 }
 0x7fe   :  { %20803 = vmatmul.mubr.f32.gmra.mrb[46].mxu0 %v26647_v9 }
 0x7ff   :  { %20805 = vmatprep.mubr.f32.mxu0 %v26681_v12 }
 0x802   :  { %20806 = vmatmul.mubr.f32.gmra.mrb[48].mxu0 %v26688_v44 }
 0x803   :  { %20808 = vmatprep.mubr.f32.mxu0 %v26697_v56 }
 0x806   :  { %20809 = vmatmul.mubr.f32.gmra.mrb[50].mxu0 %v26724_v29 }
 0x807   :  { %20815 = vmatprep.mubr.f32.mxu0 %v26634_v4 }
 0x80a   :  { %20816 = vmatmul.mubr.f32.vlgmr.msra.gmra.mrb[44].mxu0 %v26644_v17 }
 0x80b   :  { %22528 = vmatpush3.bf16.msra.mxu0 %v26850_v18  ;;  %20818 = vmatprep.mubr.f32.mxu0 %v26654_v14 }
 0x80c   :  { %22530 = vmatprep.subr.bf16.mxu0 %v26836_v53 }
 0x80e   :  { %20819 = vmatmul.mubr.f32.gmra.mrb[46].mxu0 %v26676_v5 }
 0x80f   :  { %20821 = vmatprep.mubr.f32.mxu0 %v26707_v58 }
 0x812   :  { %20822 = vmatmul.mubr.f32.gmra.mrb[48].mxu0 %v26721_v3 }
 0x813   :  { %20824 = vmatprep.mubr.f32.mxu0 %v26730_v61 }
 0x816   :  { %20825 = vmatmul.mubr.f32.gmra.mrb[50].mxu0 %v26744_v37 }
 0x817   :  { %20831 = vmatprep.mubr.f32.mxu0 %v26610_v15 }
 0x81a   :  { %20832 = vmatmul.mubr.f32.vlgmr.msra.gmra.mrb[44].mxu0 %v26613_v32 }
 0x81b   :  { %22532 = vmatpush3.bf16.msra.mxu0 %v26836_v53  ;;  %20834 = vmatprep.mubr.f32.mxu0 %v26615_v59 }
 0x81e   :  { %20835 = vmatmul.mubr.f32.gmra.mrb[46].mxu0 %v26624_v26 }
 0x81f   :  { %20837 = vmatprep.mubr.f32.mxu0 %v26656_v16 }
 0x822   :  { %20838 = vmatmul.mubr.f32.gmra.mrb[48].mxu0 %v26663_v43 }
 0x823   :  { %20840 = vmatprep.mubr.f32.mxu0 %v26666_v45 }
 0x826   :  { %20841 = vmatmul.mubr.f32.gmra.mrb[50].mxu0 %v26690_v11 }
 0x827   :  { %20847 = vmatprep.mubr.f32.mxu0 %v26610_v15 }
 0x82a   :  { %20848 = vmatmul.mubr.f32.vlgmr.msra.gmra.mrb[44].mxu0 %v26613_v32 }
 0x82b   :  { %20850 = vmatprep.mubr.f32.mxu0 %v26615_v59 }
 0x82e   :  { %20851 = vmatmul.mubr.f32.gmra.mrb[46].mxu0 %v26624_v26 }
 0x82f   :  { %20853 = vmatprep.mubr.f32.mxu0 %v26656_v16 }
 0x830   :  { %v20753_v24 = vpop.f32.mrb[40].mxu1 }
 0x831   :  { %v26961_v13 = vand.u32 4294901760, %v20753_v24  ;;  %v12048_v0 = vpop.f32.mrb[41].mxu1 }
 0x832   :  { %v26963_v4 = vand.u32 4294901760, %v12048_v0  ;;  %20854 = vmatmul.mubr.f32.gmra.mrb[48].mxu0 %v26663_v43 }
 0x833   :  { %v26967_v17 = vsub.f32 %v20753_v24, %v26961_v13  ;;  %20856 = vmatprep.mubr.f32.mxu0 %v26666_v45 }
 0x834   :  { %v26971_v15 = vsub.f32 %v12048_v0, %v26963_v4  ;;  %v20756_v32 = vpop.f32.mrb[42].mxu1  ;;  %v26975_v59 = vpack.c.bf16 %v26961_v13, %v26963_v4 }
 0x835   :  { %v26978_v26 = vand.u32 4294901760, %v26967_v17  ;;  %v26980_v9 = vand.u32 4294901760, %v20756_v32  ;;  %v12060_v14 = vpop.f32.mrb[43].mxu1 }
 0x836   :  { %v26983_v16 = vand.u32 4294901760, %v26971_v15  ;;  %v26985_v43 = vand.u32 4294901760, %v12060_v14  ;;  %22534 = vmatprep.subr.bf16.mxu1 %v26975_v59  ;;  %20857 = vmatmul.mubr.f32.gmra.mrb[50].mxu0 %v26690_v11  ;;  %v22541_v7 = vpack.c.bf16 %v26967_v17, %v26971_v15 }
 0x837   :  { %v26990_v45 = vsub.f32 %v20756_v32, %v26980_v9  ;;  %22536 = vmatpush3.bf16.xpose.msra.mxu1 %v26975_v59  ;;  %v12934_v5 = vsub.f32 %v26967_v17, %v26978_v26 }
 0x838   :  { %v26996_v12 = vsub.f32 %v12060_v14, %v26985_v43  ;;  %v20759_v44 = vpop.f32.mrb[44].mxu1  ;;  %v27000_v56 = vpack.c.bf16 %v26980_v9, %v26985_v43  ;;  %v12924_v33 = vsub.f32 %v26971_v15, %v26983_v16 }
 0x839   :  { %v27005_v11 = vand.u32 4294901760, %v26990_v45  ;;  %v27007_v58 = vand.u32 4294901760, %v20759_v44  ;;  %v12072_v21 = vpop.f32.mrb[45].mxu1  ;;  %v27009_v52 = vand.u32 4294901760, %v12934_v5 }
 0x83a   :  { %v27012_v3 = vand.u32 4294901760, %v26996_v12  ;;  %v27014_v29 = vand.u32 4294901760, %v12072_v21  ;;  %22558 = vmatprep.subr.bf16.mxu0 %v27000_v56  ;;  %v27017_v61 = vand.u32 4294901760, %v12924_v33  ;;  %v22565_v32 = vpack.c.bf16 %v26990_v45, %v26996_v12 }
 0x83b   :  { %v27020_v28 = vsub.f32 %v20759_v44, %v27007_v58  ;;  %22560 = vmatpush3.bf16.xpose.msra.mxu0 %v27000_v56  ;;  %v12954_v37 = vsub.f32 %v26990_v45, %v27005_v11 }
 0x83c   :  { %v27026_v51 = vsub.f32 %v12072_v21, %v27014_v29  ;;  %v20762_v2 = vpop.f32.mrb[46].mxu1  ;;  %20863 = vmatprep.mubr.f32.mxu1 %v27017_v61  ;;  %20959 = vmatprep.mubr.f32.mxu0 %v27017_v61  ;;  %v22537_v6 = vpack.c.bf16 %v27009_v52, %v27017_v61  ;;  %v12944_v63 = vsub.f32 %v26996_v12, %v27012_v3 }
 0x83d   :  { %v27035_v31 = vand.u32 4294901760, %v27020_v28  ;;  %v27037_v10 = vand.u32 4294901760, %v20762_v2  ;;  %v12084_v55 = vpop.f32.mrb[47].mxu1  ;;  %v27039_v30 = vand.u32 4294901760, %v12954_v37  ;;  %v22549_v37 = vpack.c.bf16 %v26978_v26, %v26983_v16 }
 0x83e   :  { %v27042_v27 = vand.u32 4294901760, %v27026_v51  ;;  %v27044_v46 = vand.u32 4294901760, %v12084_v55  ;;  %20864 = vmatmul.mubr.f32.vlgmr.msra.gmra.mrb[48].mxu1 %v27009_v52  ;;  %22538 = vmatprep.subr.bf16.mxu1 %v22537_v6  ;;  %v27047_v42 = vand.u32 4294901760, %v12944_v63 }
 0x83f   :  { %v27052_v34 = vsub.f32 %v20762_v2, %v27037_v10  ;;  %22540 = vmatpush3.bf16.xpose.msra.mxu1 %v22537_v6  ;;  %v12974_v54 = vsub.f32 %v27020_v28, %v27035_v31  ;;  %v22573_v2 = vpack.c.bf16 %v27005_v11, %v27012_v3  ;;  %v27158_v6 = vpack.c.bf16 %v27007_v58, %v27014_v29 }
 0x840   :  { %v27057_v36 = vsub.f32 %v12084_v55, %v27044_v46  ;;  %20866 = vmatprep.mubr.f32.mxu1 %v27047_v42  ;;  %22542 = vmatprep.subr.bf16.mxu1 %v22541_v7  ;;  %v22561_v35 = vpack.c.bf16 %v27039_v30, %v27047_v42  ;;  %v12964_v39 = vsub.f32 %v27026_v51, %v27042_v27 }
 0x841   :  { %v27065_v23 = vand.u32 4294901760, %v27052_v34  ;;  %v27078_v14 = vand.u32 4294901760, %v12974_v54  ;;  %v27168_v63 = vpack.c.bf16 %v27037_v10, %v27044_v46  ;;  %v22589_v55 = vpack.c.bf16 %v27020_v28, %v27026_v51 }
 0x842   :  { %v27068_v24 = vand.u32 4294901760, %v27057_v36  ;;  %20867 = vmatmul.mubr.f32.gmra.mrb[50].mxu1 %v27039_v30  ;;  %20960 = vmatmul.mubr.f32.vlgmr.msra.gmra.mrb[52].mxu0 %v27009_v52  ;;  %v27072_v0 = vand.u32 4294901760, %v12964_v39 }
 0x843   :  { %22562 = vmatprep.subr.bf16.mxu0 %v22561_v35  ;;  %20962 = vmatprep.mubr.f32.mxu0 %v27047_v42  ;;  %v12994_v44 = vsub.f32 %v27052_v34, %v27065_v23 }
 0x844   :  { %22564 = vmatpush3.bf16.xpose.msra.mxu0 %v22561_v35  ;;  %20869 = vmatprep.mubr.f32.mxu1 %v27072_v0  ;;  %v12984_v5 = vsub.f32 %v27057_v36, %v27068_v24 }
 0x845   :  { %22566 = vmatprep.subr.bf16.mxu0 %v22565_v32  ;;  %v27090_v21 = vand.u32 4294901760, %v12994_v44 }
 0x846   :  { %20870 = vmatmul.mubr.f32.gmra.mrb[52].mxu1 %v27078_v14  ;;  %20963 = vmatmul.mubr.f32.gmra.mrb[54].mxu0 %v27039_v30  ;;  %v27086_v33 = vand.u32 4294901760, %v12984_v5 }
 0x847   :  { %20965 = vmatprep.mubr.f32.mxu0 %v27072_v0 }
 0x848   :  { %20872 = vmatprep.mubr.f32.mxu1 %v27086_v33 }
 0x84a   :  { %20873 = vmatmul.mubr.f32.gmra.mrb[54].mxu1 %v27090_v21  ;;  %20966 = vmatmul.mubr.f32.gmra.mrb[56].mxu0 %v27078_v14 }
 0x84b   :  { %20879 = vmatprep.mubr.f32.mxu1 %v26963_v4  ;;  %20968 = vmatprep.mubr.f32.mxu0 %v27086_v33 }
 0x84e   :  { %20880 = vmatmul.mubr.f32.vlgmr.msra.gmra.mrb[48].mxu1 %v26961_v13  ;;  %20969 = vmatmul.mubr.f32.gmra.mrb[58].mxu0 %v27090_v21 }
 0x84f   :  { %22544 = vmatpush3.bf16.xpose.msra.mxu1 %v22541_v7  ;;  %20882 = vmatprep.mubr.f32.mxu1 %v26985_v43  ;;  %v22613_v7 = vpack.c.bf16 %v27052_v34, %v27057_v36 }
 0x850   :  { %22546 = vmatprep.subr.bf16.mxu1 %v26975_v59  ;;  %20975 = vmatprep.mubr.f32.mxu0 %v26963_v4 }
 0x852   :  { %20883 = vmatmul.mubr.f32.gmra.mrb[50].mxu1 %v26980_v9  ;;  %20976 = vmatmul.mubr.f32.vlgmr.msra.gmra.mrb[52].mxu0 %v26961_v13 }
 0x853   :  { %22568 = vmatpush3.bf16.xpose.msra.mxu0 %v22565_v32  ;;  %20885 = vmatprep.mubr.f32.mxu1 %v27014_v29 }
 0x854   :  { %20978 = vmatprep.mubr.f32.mxu0 %v26985_v43  ;;  %22570 = vmatprep.subr.bf16.mxu0 %v27000_v56 }
 0x856   :  { %20886 = vmatmul.mubr.f32.gmra.mrb[52].mxu1 %v27007_v58  ;;  %20979 = vmatmul.mubr.f32.gmra.mrb[54].mxu0 %v26980_v9 }
 0x857   :  { %20888 = vmatprep.mubr.f32.mxu1 %v27044_v46  ;;  %20981 = vmatprep.mubr.f32.mxu0 %v27014_v29 }
 0x85a   :  { %20889 = vmatmul.mubr.f32.gmra.mrb[54].mxu1 %v27037_v10  ;;  %20982 = vmatmul.mubr.f32.gmra.mrb[56].mxu0 %v27007_v58 }
 0x85b   :  { %20895 = vmatprep.mubr.f32.mxu1 %v26971_v15  ;;  %20984 = vmatprep.mubr.f32.mxu0 %v27044_v46 }
 0x85e   :  { %20896 = vmatmul.mubr.f32.vlgmr.msra.gmra.mrb[48].mxu1 %v26967_v17  ;;  %20985 = vmatmul.mubr.f32.gmra.mrb[58].mxu0 %v27037_v10 }
 0x85f   :  { %22548 = vmatpush3.bf16.xpose.msra.mxu1 %v26975_v59  ;;  %20898 = vmatprep.mubr.f32.mxu1 %v26996_v12 }
 0x860   :  { %22550 = vmatprep.subr.bf16.mxu1 %v22549_v37  ;;  %20991 = vmatprep.mubr.f32.mxu0 %v26971_v15 }
 0x862   :  { %20899 = vmatmul.mubr.f32.gmra.mrb[50].mxu1 %v26990_v45  ;;  %20992 = vmatmul.mubr.f32.vlgmr.msra.gmra.mrb[52].mxu0 %v26967_v17 }
 0x863   :  { %22572 = vmatpush3.bf16.xpose.msra.mxu0 %v27000_v56  ;;  %20901 = vmatprep.mubr.f32.mxu1 %v27026_v51 }
 0x864   :  { %20994 = vmatprep.mubr.f32.mxu0 %v26996_v12  ;;  %22574 = vmatprep.subr.bf16.mxu0 %v22573_v2 }
 0x866   :  { %20902 = vmatmul.mubr.f32.gmra.mrb[52].mxu1 %v27020_v28  ;;  %20995 = vmatmul.mubr.f32.gmra.mrb[54].mxu0 %v26990_v45 }
 0x867   :  { %20904 = vmatprep.mubr.f32.mxu1 %v27057_v36  ;;  %20997 = vmatprep.mubr.f32.mxu0 %v27026_v51 }
 0x86a   :  { %20905 = vmatmul.mubr.f32.gmra.mrb[54].mxu1 %v27052_v34  ;;  %20998 = vmatmul.mubr.f32.gmra.mrb[56].mxu0 %v27020_v28 }
 0x86b   :  { %20911 = vmatprep.mubr.f32.mxu1 %v26983_v16  ;;  %21000 = vmatprep.mubr.f32.mxu0 %v27057_v36 }
 0x86e   :  { %20912 = vmatmul.mubr.f32.vlgmr.msra.gmra.mrb[48].mxu1 %v26978_v26  ;;  %21001 = vmatmul.mubr.f32.gmra.mrb[58].mxu0 %v27052_v34 }
 0x86f   :  { %22552 = vmatpush3.bf16.xpose.msra.mxu1 %v22549_v37  ;;  %20914 = vmatprep.mubr.f32.mxu1 %v27012_v3 }
 0x870   :  { %22554 = vmatprep.subr.bf16.mxu1 %v26975_v59  ;;  %21007 = vmatprep.mubr.f32.mxu0 %v26983_v16 }
 0x872   :  { %20915 = vmatmul.mubr.f32.gmra.mrb[50].mxu1 %v27005_v11  ;;  %21008 = vmatmul.mubr.f32.vlgmr.msra.gmra.mrb[52].mxu0 %v26978_v26 }
 0x873   :  { %22576 = vmatpush3.bf16.xpose.msra.mxu0 %v22573_v2  ;;  %20917 = vmatprep.mubr.f32.mxu1 %v27042_v27 }
 0x874   :  { %21010 = vmatprep.mubr.f32.mxu0 %v27012_v3  ;;  %22578 = vmatprep.subr.bf16.mxu0 %v27000_v56 }
 0x876   :  { %20918 = vmatmul.mubr.f32.gmra.mrb[52].mxu1 %v27035_v31  ;;  %21011 = vmatmul.mubr.f32.gmra.mrb[54].mxu0 %v27005_v11 }
 0x877   :  { %20920 = vmatprep.mubr.f32.mxu1 %v27068_v24  ;;  %21013 = vmatprep.mubr.f32.mxu0 %v27042_v27 }
 0x87a   :  { %20921 = vmatmul.mubr.f32.gmra.mrb[54].mxu1 %v27065_v23  ;;  %21014 = vmatmul.mubr.f32.gmra.mrb[56].mxu0 %v27035_v31 }
 0x87b   :  { %20927 = vmatprep.mubr.f32.mxu1 %v26963_v4  ;;  %21016 = vmatprep.mubr.f32.mxu0 %v27068_v24 }
 0x87e   :  { %20928 = vmatmul.mubr.f32.vlgmr.msra.gmra.mrb[48].mxu1 %v26961_v13  ;;  %21017 = vmatmul.mubr.f32.gmra.mrb[58].mxu0 %v27065_v23 }
 0x87f   :  { %22556 = vmatpush3.bf16.xpose.msra.mxu1 %v26975_v59  ;;  %20930 = vmatprep.mubr.f32.mxu1 %v26985_v43  ;;  %v22585_v59 = vpack.c.bf16 %v27078_v14, %v27072_v0 }
 0x880   :  { %21023 = vmatprep.mubr.f32.mxu0 %v26963_v4  ;;  %22582 = vmatprep.subr.bf16.mxu1 %v27158_v6 }
 0x882   :  { %20931 = vmatmul.mubr.f32.gmra.mrb[50].mxu1 %v26980_v9  ;;  %21024 = vmatmul.mubr.f32.vlgmr.msra.gmra.mrb[52].mxu0 %v26961_v13 }
 0x883   :  { %22580 = vmatpush3.bf16.xpose.msra.mxu0 %v27000_v56  ;;  %20933 = vmatprep.mubr.f32.mxu1 %v27014_v29  ;;  %v22609_v56 = vpack.c.bf16 %v27090_v21, %v27086_v33 }
 0x884   :  { %21026 = vmatprep.mubr.f32.mxu0 %v26985_v43  ;;  %22606 = vmatprep.subr.bf16.mxu0 %v27168_v63 }
 0x886   :  { %20934 = vmatmul.mubr.f32.gmra.mrb[52].mxu1 %v27007_v58  ;;  %21027 = vmatmul.mubr.f32.gmra.mrb[54].mxu0 %v26980_v9 }
 0x887   :  { %20936 = vmatprep.mubr.f32.mxu1 %v27044_v46  ;;  %21029 = vmatprep.mubr.f32.mxu0 %v27014_v29 }
 0x88a   :  { %20937 = vmatmul.mubr.f32.gmra.mrb[54].mxu1 %v27037_v10  ;;  %21030 = vmatmul.mubr.f32.gmra.mrb[56].mxu0 %v27007_v58 }
 0x88b   :  { %20943 = vmatprep.mubr.f32.mxu1 %v26963_v4  ;;  %21032 = vmatprep.mubr.f32.mxu0 %v27044_v46 }
 0x88e   :  { %20944 = vmatmul.mubr.f32.vlgmr.msra.gmra.mrb[48].mxu1 %v26961_v13  ;;  %21033 = vmatmul.mubr.f32.gmra.mrb[58].mxu0 %v27037_v10 }
 0x88f   :  { %22584 = vmatpush3.bf16.xpose.msra.mxu1 %v27158_v6  ;;  %20946 = vmatprep.mubr.f32.mxu1 %v26985_v43 }
 0x890   :  { %21039 = vmatprep.mubr.f32.mxu0 %v26963_v4  ;;  %22586 = vmatprep.subr.bf16.mxu1 %v22585_v59 }
 0x892   :  { %20947 = vmatmul.mubr.f32.gmra.mrb[50].mxu1 %v26980_v9  ;;  %21040 = vmatmul.mubr.f32.vlgmr.msra.gmra.mrb[52].mxu0 %v26961_v13 }
 0x893   :  { %22608 = vmatpush3.bf16.xpose.msra.mxu0 %v27168_v63  ;;  %20949 = vmatprep.mubr.f32.mxu1 %v27014_v29 }
 0x894   :  { %21042 = vmatprep.mubr.f32.mxu0 %v26985_v43  ;;  %22610 = vmatprep.subr.bf16.mxu0 %v22609_v56 }
 0x896   :  { %20950 = vmatmul.mubr.f32.gmra.mrb[52].mxu1 %v27007_v58  ;;  %21043 = vmatmul.mubr.f32.gmra.mrb[54].mxu0 %v26980_v9 }
 0x897   :  { %20952 = vmatprep.mubr.f32.mxu1 %v27044_v46  ;;  %21045 = vmatprep.mubr.f32.mxu0 %v27014_v29 }
 0x89a   :  { %20953 = vmatmul.mubr.f32.gmra.mrb[54].mxu1 %v27037_v10  ;;  %21046 = vmatmul.mubr.f32.gmra.mrb[56].mxu0 %v27007_v58 }
 0x89b   :  { %21048 = vmatprep.mubr.f32.mxu0 %v27044_v46  ;;  %21055 = vmatprep.mubr.f32.mxu1 %v27017_v61 }
 0x89e   :  { %21049 = vmatmul.mubr.f32.gmra.mrb[58].mxu0 %v27037_v10  ;;  %21056 = vmatmul.mubr.f32.vlgmr.msra.gmra.mrb[56].mxu1 %v27009_v52 }
 0x89f   :  { %22588 = vmatpush3.bf16.xpose.msra.mxu1 %v22585_v59  ;;  %21058 = vmatprep.mubr.f32.mxu1 %v27047_v42 }
 0x8a0   :  { %22590 = vmatprep.subr.bf16.mxu1 %v22589_v55  ;;  %21151 = vmatprep.mubr.f32.mxu0 %v27017_v61 }
 0x8a2   :  { %21059 = vmatmul.mubr.f32.gmra.mrb[58].mxu1 %v27039_v30  ;;  %21152 = vmatmul.mubr.f32.vlgmr.msra.gmra.mrb[60].mxu0 %v27009_v52 }
 0x8a3   :  { %22612 = vmatpush3.bf16.xpose.msra.mxu0 %v22609_v56  ;;  %21061 = vmatprep.mubr.f32.mxu1 %v27072_v0 }
 0x8a4   :  { %21154 = vmatprep.mubr.f32.mxu0 %v27047_v42  ;;  %22614 = vmatprep.subr.bf16.mxu0 %v22613_v7 }
 0x8a6   :  { %21062 = vmatmul.mubr.f32.gmra.mrb[60].mxu1 %v27078_v14  ;;  %21155 = vmatmul.mubr.f32.gmra.mrb[62].mxu0 %v27039_v30  ;;  %v15945_v30 = vstv %s18570_s25 }
 0x8a7   :  { %21064 = vmatprep.mubr.f32.mxu1 %v27086_v33  ;;  %21157 = vmatprep.mubr.f32.mxu0 %v27072_v0 }
 0x8a9   :  { %v20666_v61 = vpop.f32.mrb[42].mxu0 }
 0x8aa   :  { %v22751_v52 = vadd.f32 %v20666_v61, %v26906_v49  ;;  %21065 = vmatmul.mubr.f32.gmra.mrb[62].mxu1 %v27090_v21  ;;  %21158 = vmatmul.mubr.f32.gmra.mrb[64].mxu0 %v27078_v14  ;;  %v11253_v54 = vpop.f32.mrb[43].mxu0  ;;  %v22597_v49 = vpack.c.bf16 %v27035_v31, %v27042_v27 }
 0x8ab   :  { %v22752_v35 = vadd.f32 %v11253_v54, %v26910_v62  ;;  %21071 = vmatprep.mubr.f32.mxu1 %v26963_v4  ;;  %21160 = vmatprep.mubr.f32.mxu0 %v27086_v33  ;;  %v22621_v62 = vpack.c.bf16 %v27065_v23, %v27068_v24  ;;  %v15957_v33 = vstv %s18572_s28 }
 0x8ac   :  { %11264 = vst [vmem:[#allocation14 + $0x8] sm:$0xff] %v22751_v52 }
 0x8ad   :  { %11263 = vst [vmem:[#allocation14] sm:$0xff] %v22752_v35 }
 0x8ae   :  { %21072 = vmatmul.mubr.f32.vlgmr.msra.gmra.mrb[56].mxu1 %v26961_v13  ;;  %21161 = vmatmul.mubr.f32.gmra.mrb[66].mxu0 %v27090_v21 }
 0x8af   :  { %22592 = vmatpush3.bf16.xpose.msra.mxu1 %v22589_v55  ;;  %21074 = vmatprep.mubr.f32.mxu1 %v26985_v43 }
 0x8b0   :  { %22594 = vmatprep.subr.bf16.mxu1 %v27158_v6  ;;  %21167 = vmatprep.mubr.f32.mxu0 %v26963_v4 }
 0x8b2   :  { %21075 = vmatmul.mubr.f32.gmra.mrb[58].mxu1 %v26980_v9  ;;  %21168 = vmatmul.mubr.f32.vlgmr.msra.gmra.mrb[60].mxu0 %v26961_v13 }
 0x8b3   :  { %22616 = vmatpush3.bf16.xpose.msra.mxu0 %v22613_v7  ;;  %21077 = vmatprep.mubr.f32.mxu1 %v27014_v29 }
 0x8b4   :  { %21170 = vmatprep.mubr.f32.mxu0 %v26985_v43  ;;  %22618 = vmatprep.subr.bf16.mxu0 %v27168_v63 }
 0x8b6   :  { %21078 = vmatmul.mubr.f32.gmra.mrb[60].mxu1 %v27007_v58  ;;  %21171 = vmatmul.mubr.f32.gmra.mrb[62].mxu0 %v26980_v9 }
 0x8b7   :  { %21080 = vmatprep.mubr.f32.mxu1 %v27044_v46  ;;  %21173 = vmatprep.mubr.f32.mxu0 %v27014_v29 }
 0x8ba   :  { %21081 = vmatmul.mubr.f32.gmra.mrb[62].mxu1 %v27037_v10  ;;  %21174 = vmatmul.mubr.f32.gmra.mrb[64].mxu0 %v27007_v58 }
 0x8bb   :  { %21087 = vmatprep.mubr.f32.mxu1 %v26971_v15  ;;  %21176 = vmatprep.mubr.f32.mxu0 %v27044_v46 }
 0x8be   :  { %21088 = vmatmul.mubr.f32.vlgmr.msra.gmra.mrb[56].mxu1 %v26967_v17  ;;  %21177 = vmatmul.mubr.f32.gmra.mrb[66].mxu0 %v27037_v10 }
 0x8bf   :  { %22596 = vmatpush3.bf16.xpose.msra.mxu1 %v27158_v6  ;;  %21090 = vmatprep.mubr.f32.mxu1 %v26996_v12 }
 0x8c0   :  { %22598 = vmatprep.subr.bf16.mxu1 %v22597_v49  ;;  %21183 = vmatprep.mubr.f32.mxu0 %v26971_v15  ;;  %v28389_v15 = vld [vmem:[#allocation79_spill] sm:$0xff] }
 0x8c2   :  { %21091 = vmatmul.mubr.f32.gmra.mrb[58].mxu1 %v26990_v45  ;;  %21184 = vmatmul.mubr.f32.vlgmr.msra.gmra.mrb[60].mxu0 %v26967_v17  ;;  %v28388_v17 = vld [vmem:[#allocation82_spill] sm:$0xff] }
 0x8c3   :  { %22620 = vmatpush3.bf16.xpose.msra.mxu0 %v27168_v63  ;;  %21093 = vmatprep.mubr.f32.mxu1 %v27026_v51 }
 0x8c4   :  { %21186 = vmatprep.mubr.f32.mxu0 %v26996_v12  ;;  %22622 = vmatprep.subr.bf16.mxu0 %v22621_v62 }
 0x8c6   :  { %21094 = vmatmul.mubr.f32.gmra.mrb[60].mxu1 %v27020_v28  ;;  %21187 = vmatmul.mubr.f32.gmra.mrb[62].mxu0 %v26990_v45 }
 0x8c7   :  { %21096 = vmatprep.mubr.f32.mxu1 %v27057_v36  ;;  %21189 = vmatprep.mubr.f32.mxu0 %v27026_v51 }
 0x8ca   :  { %21097 = vmatmul.mubr.f32.gmra.mrb[62].mxu1 %v27052_v34  ;;  %21190 = vmatmul.mubr.f32.gmra.mrb[64].mxu0 %v27020_v28 }
 0x8cb   :  { %21103 = vmatprep.mubr.f32.mxu1 %v26983_v16  ;;  %21192 = vmatprep.mubr.f32.mxu0 %v27057_v36 }
 0x8ce   :  { %21104 = vmatmul.mubr.f32.vlgmr.msra.gmra.mrb[56].mxu1 %v26978_v26  ;;  %21193 = vmatmul.mubr.f32.gmra.mrb[66].mxu0 %v27052_v34 }
 0x8cf   :  { %22600 = vmatpush3.bf16.xpose.msra.mxu1 %v22597_v49  ;;  %21106 = vmatprep.mubr.f32.mxu1 %v27012_v3 }
 0x8d0   :  { %22602 = vmatprep.subr.bf16.mxu1 %v27158_v6  ;;  %21199 = vmatprep.mubr.f32.mxu0 %v26983_v16  ;;  %v28390_v16 = vld [vmem:[#allocation76_spill] sm:$0xff] }
 0x8d1   :  { %v27312_v45 = vand.u32 4294901760, %v28390_v16 }
 0x8d2   :  { %21107 = vmatmul.mubr.f32.gmra.mrb[58].mxu1 %v27005_v11  ;;  %21200 = vmatmul.mubr.f32.vlgmr.msra.gmra.mrb[60].mxu0 %v26978_v26  ;;  %v27305_v26 = vand.u32 4294901760, %v28389_v15 }
 0x8d3   :  { %22624 = vmatpush3.bf16.xpose.msra.mxu0 %v22621_v62  ;;  %21109 = vmatprep.mubr.f32.mxu1 %v27042_v27 }
 0x8d4   :  { %21202 = vmatprep.mubr.f32.mxu0 %v27012_v3  ;;  %22626 = vmatprep.subr.bf16.mxu0 %v27168_v63  ;;  %v27318_v12 = vsub.f32 %v28389_v15, %v27305_v26  ;;  %v28393_v15 = vld [vmem:[#allocation100_spill] sm:$0xff] }
 0x8d6   :  { %21110 = vmatmul.mubr.f32.gmra.mrb[60].mxu1 %v27035_v31  ;;  %21203 = vmatmul.mubr.f32.gmra.mrb[62].mxu0 %v27005_v11  ;;  %v27326_v11 = vsub.f32 %v28390_v16, %v27312_v45  ;;  %v17064_v3 = vand.u32 4294901760, %v27318_v12 }
 0x8d7   :  { %21112 = vmatprep.mubr.f32.mxu1 %v27068_v24  ;;  %21205 = vmatprep.mubr.f32.mxu0 %v27042_v27 }
 0x8d8   :  { %v17065_v28 = vsub.f32 %v27318_v12, %v17064_v3 }
 0x8da   :  { %21113 = vmatmul.mubr.f32.gmra.mrb[62].mxu1 %v27065_v23  ;;  %21206 = vmatmul.mubr.f32.gmra.mrb[64].mxu0 %v27035_v31  ;;  %v17066_v51 = vand.u32 4294901760, %v17065_v28  ;;  %v15941_v31 = vstv %s15940_s23 }
 0x8db   :  { %21119 = vmatprep.mubr.f32.mxu1 %v26963_v4  ;;  %21208 = vmatprep.mubr.f32.mxu0 %v27068_v24 }
 0x8de   :  { %21120 = vmatmul.mubr.f32.vlgmr.msra.gmra.mrb[56].mxu1 %v26961_v13  ;;  %21209 = vmatmul.mubr.f32.gmra.mrb[66].mxu0 %v27065_v23  ;;  %v15951_v23 = vstv %s18571_s27 }
 0x8df   :  { %22604 = vmatpush3.bf16.xpose.msra.mxu1 %v27158_v6  ;;  %21122 = vmatprep.mubr.f32.mxu1 %v26985_v43 }
 0x8e0   :  { %21215 = vmatprep.mubr.f32.mxu0 %v26963_v4  ;;  %22630 = vmatprep.subr.bf16.mxu1 %v26836_v53 }
 0x8e2   :  { %21123 = vmatmul.mubr.f32.gmra.mrb[58].mxu1 %v26980_v9  ;;  %21216 = vmatmul.mubr.f32.vlgmr.msra.gmra.mrb[60].mxu0 %v26961_v13 }
 0x8e3   :  { %22628 = vmatpush3.bf16.xpose.msra.mxu0 %v27168_v63  ;;  %21125 = vmatprep.mubr.f32.mxu1 %v27014_v29 }
 0x8e4   :  { %21218 = vmatprep.mubr.f32.mxu0 %v26985_v43  ;;  %22678 = vmatprep.subr.bf16.mxu0 %v28388_v17 }
 0x8e6   :  { %21126 = vmatmul.mubr.f32.gmra.mrb[60].mxu1 %v27007_v58  ;;  %21219 = vmatmul.mubr.f32.gmra.mrb[62].mxu0 %v26980_v9 }
 0x8e7   :  { %21128 = vmatprep.mubr.f32.mxu1 %v27044_v46  ;;  %21221 = vmatprep.mubr.f32.mxu0 %v27014_v29 }
 0x8ea   :  { %21129 = vmatmul.mubr.f32.gmra.mrb[62].mxu1 %v27037_v10  ;;  %21222 = vmatmul.mubr.f32.gmra.mrb[64].mxu0 %v27007_v58 }
 0x8eb   :  { %21135 = vmatprep.mubr.f32.mxu1 %v26963_v4  ;;  %21224 = vmatprep.mubr.f32.mxu0 %v27044_v46 }
 0x8ee   :  { %21136 = vmatmul.mubr.f32.vlgmr.msra.gmra.mrb[56].mxu1 %v26961_v13  ;;  %21225 = vmatmul.mubr.f32.gmra.mrb[66].mxu0 %v27037_v10 }
 0x8ef   :  { %22632 = vmatpush3.bf16.xpose.msra.mxu1 %v26836_v53  ;;  %21138 = vmatprep.mubr.f32.mxu1 %v26985_v43 }
 0x8f0   :  { %21231 = vmatprep.mubr.f32.mxu0 %v26963_v4  ;;  %22634 = vmatprep.subr.bf16.mxu1 %v26872_v47  ;;  %v28391_v4 = vld [vmem:[#allocation66_spill] sm:$0xff] }
 0x8f2   :  { %21139 = vmatmul.mubr.f32.gmra.mrb[58].mxu1 %v26980_v9  ;;  %21232 = vmatmul.mubr.f32.vlgmr.msra.gmra.mrb[60].mxu0 %v26961_v13  ;;  %v17074_v13 = vand.u32 4294901760, %v27326_v11 }
 0x8f3   :  { %22680 = vmatpush3.bf16.xpose.msra.mxu0 %v28388_v17  ;;  %21141 = vmatprep.mubr.f32.mxu1 %v27014_v29 }
 0x8f4   :  { %21234 = vmatprep.mubr.f32.mxu0 %v26985_v43  ;;  %22682 = vmatprep.subr.bf16.mxu0 %v28391_v4  ;;  %v17075_v43 = vsub.f32 %v27326_v11, %v17074_v13 }
 0x8f6   :  { %21142 = vmatmul.mubr.f32.gmra.mrb[60].mxu1 %v27007_v58  ;;  %21235 = vmatmul.mubr.f32.gmra.mrb[62].mxu0 %v26980_v9  ;;  %v17076_v27 = vand.u32 4294901760, %v17075_v43 }
 0x8f7   :  { %21144 = vmatprep.mubr.f32.mxu1 %v27044_v46  ;;  %21237 = vmatprep.mubr.f32.mxu0 %v27014_v29 }
 0x8fa   :  { %21145 = vmatmul.mubr.f32.gmra.mrb[62].mxu1 %v27037_v10  ;;  %21238 = vmatmul.mubr.f32.gmra.mrb[64].mxu0 %v27007_v58 }
 0x8fb   :  { %21240 = vmatprep.mubr.f32.mxu0 %v27044_v46 }
 0x8fd   :  { %v20849_v9 = vpop.f32.mrb[44].mxu0 }
 0x8fe   :  { %21241 = vmatmul.mubr.f32.gmra.mrb[66].mxu0 %v27037_v10  ;;  %v12808_v29 = vpop.f32.mrb[45].mxu0  ;;  %v15943_v34 = vmul.f32 %v20849_v9, %v15941_v31  ;;  %v28392_v10 = vld [vmem:[#allocation85_spill] sm:$0xff] }
 0x8ff   :  { %21331 = vmatprep.mubr.f32.mxu0 %v17066_v51  ;;  %v15942_v39 = vmul.f32 %v15941_v31, %v12808_v29 }
 0x901   :  { %v20852_v42 = vpop.f32.mrb[46].mxu0 }
 0x902   :  { %v15947_v36 = vmul.f32 %v20852_v42, %v15945_v30  ;;  %21332 = vmatmul.mubr.f32.vlgmr.msra.gmra.mrb[68].mxu0 %v17076_v27  ;;  %v12820_v58 = vpop.f32.mrb[47].mxu0 }
 0x903   :  { %22684 = vmatpush3.bf16.xpose.msra.mxu0 %v28391_v4  ;;  %v15946_v46 = vmul.f32 %v15945_v30, %v12820_v58  ;;  %21338 = vmatprep.mubr.f32.mxu0 %v27305_v26 }
 0x904   :  { %v15949_v24 = vadd.f32 %v15947_v36, %v15943_v34  ;;  %22686 = vmatprep.subr.bf16.mxu0 %v28392_v10 }
 0x905   :  { %v15948_v0 = vadd.f32 %v15946_v46, %v15942_v39  ;;  %v20855_v32 = vpop.f32.mrb[48].mxu0 }
 0x906   :  { %v15953_v14 = vmul.f32 %v20855_v32, %v15951_v23  ;;  %v12832_v5 = vpop.f32.mrb[49].mxu0 }
 0x907   :  { %v15952_v44 = vmul.f32 %v15951_v23, %v12832_v5 }
 0x908   :  { %v15955_v21 = vadd.f32 %v15953_v14, %v15949_v24  ;;  %v15923_v14 = vstv %s18567_s30 }
 0x909   :  { %v15954_v37 = vadd.f32 %v15952_v44, %v15948_v0  ;;  %v20858_v2 = vpop.f32.mrb[50].mxu0  ;;  %v15919_v0 = vstv %s15918_s29 }
 0x90a   :  { %v15959_v6 = vmul.f32 %v20858_v2, %v15957_v33  ;;  %21339 = vmatmul.mubr.f32.vlgmr.msra.gmra.mrb[68].mxu0 %v27312_v45  ;;  %v12844_v63 = vpop.f32.mrb[51].mxu0 }
 0x90b   :  { %22688 = vmatpush3.bf16.xpose.msra.mxu0 %v28392_v10  ;;  %v15958_v59 = vmul.f32 %v15957_v33, %v12844_v63  ;;  %21345 = vmatprep.mubr.f32.mxu0 %v27318_v12 }
 0x90c   :  { %v15961_v56 = vadd.f32 %v15959_v6, %v15955_v21  ;;  %22690 = vmatprep.subr.bf16.mxu0 %v28388_v17 }
 0x90d   :  { %v15960_v55 = vadd.f32 %v15958_v59, %v15954_v37 }
 0x90e   :  { %v16039_v7 = vand.u32 4294901760, %v15961_v56 }
 0x90f   :  { %v16029_v61 = vand.u32 4294901760, %v15960_v55 }
 0x910   :  { %v16040_v52 = vsub.f32 %v15961_v56, %v16039_v7 }
 0x911   :  { %v16030_v54 = vsub.f32 %v15960_v55, %v16029_v61 }
 0x912   :  { %v16041_v35 = vand.u32 4294901760, %v16040_v52  ;;  %21346 = vmatmul.mubr.f32.vlgmr.msra.gmra.mrb[68].mxu0 %v27326_v11  ;;  %v28394_v11 = vld [vmem:[#allocation62_spill] sm:$0xff] }
 0x913   :  { %22692 = vmatpush3.bf16.xpose.msra.mxu0 %v28388_v17  ;;  %21352 = vmatprep.mubr.f32.mxu0 %v17064_v3  ;;  %v16031_v49 = vand.u32 4294901760, %v16030_v54 }
 0x914   :  { %v16042_v62 = vsub.f32 %v16040_v52, %v16041_v35  ;;  %22694 = vmatprep.subr.bf16.mxu0 %v28393_v15 }
 0x915   :  { %v16032_v16 = vsub.f32 %v16030_v54, %v16031_v49 }
 0x916   :  { %v16043_v4 = vand.u32 4294901760, %v16042_v62 }
 0x917   :  { %v16033_v12 = vand.u32 4294901760, %v16032_v16 }
 0x919   :  { %21247 = vmatprep.mubr.f32.mxu1 %v16033_v12 }
 0x91a   :  { %21353 = vmatmul.mubr.f32.vlgmr.msra.gmra.mrb[68].mxu0 %v17074_v13  ;;  %21248 = vmatmul.mubr.f32.vlgmr.msra.gmra.mrb[64].mxu1 %v16043_v4 }
 0x91b   :  { %22696 = vmatpush3.bf16.xpose.msra.mxu0 %v28393_v15  ;;  %22636 = vmatpush3.bf16.xpose.msra.mxu1 %v26872_v47  ;;  %v28395_v47 = vld [vmem:[#allocation73_spill] sm:$0xff] }
 0x91c   :  { %21359 = vmatprep.mubr.f32.mxu0 %v27305_v26  ;;  %22698 = vmatprep.subr.bf16.mxu0 %v28388_v17 }
 0x91d   :  { %21254 = vmatprep.mubr.f32.mxu1 %v16029_v61  ;;  %22638 = vmatprep.subr.bf16.mxu1 %v26843_v22 }
 0x922   :  { %21360 = vmatmul.mubr.f32.vlgmr.msra.gmra.mrb[68].mxu0 %v27312_v45  ;;  %21255 = vmatmul.mubr.f32.vlgmr.msra.gmra.mrb[64].mxu1 %v16039_v7 }
 0x923   :  { %22700 = vmatpush3.bf16.xpose.msra.mxu0 %v28388_v17  ;;  %22640 = vmatpush3.bf16.xpose.msra.mxu1 %v26843_v22 }
 0x924   :  { %21366 = vmatprep.mubr.f32.mxu0 %v27305_v26  ;;  %22702 = vmatprep.subr.bf16.mxu0 %v28394_v11 }
 0x925   :  { %21261 = vmatprep.mubr.f32.mxu1 %v16030_v54  ;;  %22642 = vmatprep.subr.bf16.mxu1 %v26836_v53 }
 0x92a   :  { %21367 = vmatmul.mubr.f32.vlgmr.msra.gmra.mrb[68].mxu0 %v27312_v45  ;;  %21262 = vmatmul.mubr.f32.vlgmr.msra.gmra.mrb[64].mxu1 %v16040_v52 }
 0x92b   :  { %22704 = vmatpush3.bf16.msra.mxu0 %v28394_v11  ;;  %22644 = vmatpush3.bf16.xpose.msra.mxu1 %v26836_v53 }
 0x92c   :  { %22706 = vmatprep.subr.bf16.mxu0 %v28395_v47  ;;  %21268 = vmatprep.mubr.f32.mxu1 %v16031_v49 }
 0x92d   :  { %22646 = vmatprep.subr.bf16.mxu1 %v26850_v18 }
 0x932   :  { %21269 = vmatmul.mubr.f32.vlgmr.msra.gmra.mrb[64].mxu1 %v16041_v35 }
 0x933   :  { %22648 = vmatpush3.bf16.xpose.msra.mxu1 %v26850_v18  ;;  %21275 = vmatprep.mubr.f32.mxu1 %v16029_v61 }
 0x934   :  { %22650 = vmatprep.subr.bf16.mxu1 %v26836_v53 }
 0x93a   :  { %21276 = vmatmul.mubr.f32.vlgmr.msra.gmra.mrb[64].mxu1 %v16039_v7 }
 0x93b   :  { %22652 = vmatpush3.bf16.xpose.msra.mxu1 %v26836_v53  ;;  %21282 = vmatprep.mubr.f32.mxu1 %v16029_v61  ;;  %v15929_v61 = vstv %s27395_s7 }
 0x93c   :  { %22654 = vmatprep.subr.bf16.mxu1 %v26854_v20 }
 0x942   :  { %21283 = vmatmul.mubr.f32.vlgmr.msra.gmra.mrb[64].mxu1 %v16039_v7 }
 0x943   :  { %22656 = vmatpush3.bf16.xpose.msra.mxu1 %v26854_v20  ;;  %21289 = vmatprep.mubr.f32.mxu1 %v26883_v25 }
 0x944   :  { %22658 = vmatprep.subr.bf16.mxu1 %v26889_v48 }
 0x94a   :  { %21290 = vmatmul.mubr.f32.vlgmr.msra.gmra.mrb[64].mxu1 %v26876_v50 }
 0x94b   :  { %22660 = vmatpush3.bf16.xpose.msra.mxu1 %v26889_v48  ;;  %21296 = vmatprep.mubr.f32.mxu1 %v26841_v38 }
 0x94c   :  { %22662 = vmatprep.subr.bf16.mxu1 %v26870_v41 }
 0x952   :  { %21297 = vmatmul.mubr.f32.vlgmr.msra.gmra.mrb[64].mxu1 %v26839_v40 }
 0x953   :  { %22664 = vmatpush3.bf16.xpose.msra.mxu1 %v26870_v41  ;;  %21303 = vmatprep.mubr.f32.mxu1 %v26858_v1 }
 0x954   :  { %22666 = vmatprep.subr.bf16.mxu1 %v26854_v20 }
 0x95a   :  { %21304 = vmatmul.mubr.f32.vlgmr.msra.gmra.mrb[64].mxu1 %v26846_v57 }
 0x95b   :  { %22668 = vmatpush3.bf16.xpose.msra.mxu1 %v26854_v20  ;;  %21310 = vmatprep.mubr.f32.mxu1 %v26864_v60 }
 0x95c   :  { %22670 = vmatprep.subr.bf16.mxu1 %v26880_v8 }
 0x961   :  { %v20945_v53 = vpop.f32.mrb[48].mxu1 }
 0x962   :  { %v13568_v22 = vpop.f32.mrb[49].mxu1  ;;  %21311 = vmatmul.mubr.f32.vlgmr.msra.gmra.mrb[64].mxu1 %v26861_v19 }
 0x963   :  { %22672 = vmatpush3.bf16.xpose.msra.mxu1 %v26880_v8  ;;  %21317 = vmatprep.mubr.f32.mxu1 %v26841_v38 }
 0x964   :  { %22674 = vmatprep.subr.bf16.mxu1 %v26854_v20 }
 0x965   :  { %v20948_v18 = vpop.f32.mrb[50].mxu1  ;;  %v21041_v1 = vpop.f32.mrb[52].mxu0 }
 0x966   :  { %v14375_v41 = vmax.f32 %v20945_v53, %v21041_v1  ;;  %v13580_v57 = vpop.f32.mrb[51].mxu1  ;;  %v14328_v50 = vpop.f32.mrb[53].mxu0 }
 0x967   :  { %v14374_v25 = vmax.f32 %v13568_v22, %v14328_v50 }
 0x969   :  { %v20951_v48 = vpop.f32.mrb[52].mxu1  ;;  %v21044_v60 = vpop.f32.mrb[54].mxu0 }
 0x96a   :  { %v14377_v17 = vmax.f32 %v20948_v18, %v21044_v60  ;;  %v13592_v26 = vpop.f32.mrb[53].mxu1  ;;  %v14340_v45 = vpop.f32.mrb[55].mxu0  ;;  %21318 = vmatmul.mubr.f32.vlgmr.msra.gmra.mrb[64].mxu1 %v26839_v40  ;;  %v15935_v18 = vstv %s27397_s8 }
 0x96b   :  { %v14376_v19 = vmax.f32 %v13580_v57, %v14340_v45  ;;  %22676 = vmatpush3.bf16.xpose.msra.mxu1 %v26854_v20  ;;  %21324 = vmatprep.mubr.f32.mxu1 %v26841_v38 }
 0x96d   :  { %v20954_v8 = vpop.f32.mrb[54].mxu1  ;;  %v21047_v3 = vpop.f32.mrb[56].mxu0 }
 0x96e   :  { %v14379_v13 = vmax.f32 %v20951_v48, %v21047_v3  ;;  %v13604_v28 = vpop.f32.mrb[55].mxu1  ;;  %v14352_v43 = vpop.f32.mrb[57].mxu0 }
 0x96f   :  { %v14378_v9 = vmax.f32 %v13592_v26, %v14352_v43 }
 0x971   :  { %v21050_v51 = vpop.f32.mrb[58].mxu0 }
 0x972   :  { %v14381_v29 = vmax.f32 %v20954_v8, %v21050_v51  ;;  %v14364_v31 = vpop.f32.mrb[59].mxu0  ;;  %21325 = vmatmul.mubr.f32.vlgmr.msra.gmra.mrb[64].mxu1 %v26839_v40 }
 0x973   :  { %v14380_v30 = vmax.f32 %v13604_v28, %v14364_v31  ;;  %v16465_v31 = vld [vmem:[#allocation6 + $0x10] sm:$0xff] }
 0x9c1   :  { %v21137_v27 = vpop.f32.mrb[56].mxu1 }
 0x9c2   :  { %v15143_v42 = vmax.f32 %v14375_v41, %v21137_v27  ;;  %v15096_v34 = vpop.f32.mrb[57].mxu1 }
 0x9c3   :  { %v15142_v20 = vmax.f32 %v14374_v25, %v15096_v34 }
 0x9c5   :  { %v21140_v36 = vpop.f32.mrb[58].mxu1  ;;  %v21233_v38 = vpop.f32.mrb[60].mxu0 }
 0x9c6   :  { %v15145_v58 = vmax.f32 %v14377_v17, %v21140_v36  ;;  %v15911_v39 = vmax.f32 %v15143_v42, %v21233_v38  ;;  %v15108_v46 = vpop.f32.mrb[59].mxu1  ;;  %v15864_v23 = vpop.f32.mrb[61].mxu0 }
 0x9c7   :  { %v15144_v24 = vmax.f32 %v14376_v19, %v15108_v46  ;;  %v15910_v10 = vmax.f32 %v15142_v20, %v15864_v23 }
 0x9c8   :  { %v15921_v6 = vmul.f32 %v15919_v0, %v15911_v39 }
 0x9c9   :  { %v21143_v32 = vpop.f32.mrb[60].mxu1  ;;  %v21236_v40 = vpop.f32.mrb[62].mxu0  ;;  %v15920_v59 = vmul.f32 %v15919_v0, %v15910_v10 }
 0x9ca   :  { %v15147_v5 = vmax.f32 %v14379_v13, %v21143_v32  ;;  %v15913_v44 = vmax.f32 %v15145_v58, %v21236_v40  ;;  %v15120_v33 = vpop.f32.mrb[61].mxu1  ;;  %v15876_v21 = vpop.f32.mrb[63].mxu0 }
 0x9cb   :  { %v15146_v37 = vmax.f32 %v14378_v9, %v15120_v33  ;;  %v15912_v2 = vmax.f32 %v15144_v24, %v15876_v21  ;;  %v16466_v9 = vld [vmem:[#allocation6 + $0x18] sm:$0xff] }
 0x9cc   :  { %v15925_v63 = vmul.f32 %v15923_v14, %v15913_v44 }
 0x9cd   :  { %v15924_v56 = vmul.f32 %v15923_v14, %v15912_v2  ;;  %v21146_v55 = vpop.f32.mrb[62].mxu1  ;;  %v21239_v7 = vpop.f32.mrb[64].mxu0 }
 0x9ce   :  { %v15927_v52 = vadd.f32 %v15925_v63, %v15921_v6  ;;  %v15149_v54 = vmax.f32 %v14381_v29, %v21146_v55  ;;  %v15915_v35 = vmax.f32 %v15147_v5, %v21239_v7  ;;  %v15132_v49 = vpop.f32.mrb[63].mxu1  ;;  %v15888_v62 = vpop.f32.mrb[65].mxu0 }
 0x9cf   :  { %v15926_v15 = vadd.f32 %v15924_v56, %v15920_v59  ;;  %v15148_v16 = vmax.f32 %v14380_v30, %v15132_v49  ;;  %v15914_v12 = vmax.f32 %v15146_v37, %v15888_v62 }
 0x9d0   :  { %v15931_v4 = vmul.f32 %v15929_v61, %v15915_v35 }
 0x9d1   :  { %v15930_v53 = vmul.f32 %v15929_v61, %v15914_v12  ;;  %v21242_v22 = vpop.f32.mrb[66].mxu0 }
 0x9d2   :  { %v15917_v1 = vmax.f32 %v15149_v54, %v21242_v22  ;;  %v15900_v41 = vpop.f32.mrb[67].mxu0  ;;  %v15933_v57 = vadd.f32 %v15931_v4, %v15927_v52 }
 0x9d3   :  { %v15916_v50 = vmax.f32 %v15148_v16, %v15900_v41  ;;  %v15932_v25 = vadd.f32 %v15930_v53, %v15926_v15  ;;  %v28396_v41 = vld [vmem:[#allocation65_spill] sm:$0xff] }
 0x9d4   :  { %v15937_v48 = vmul.f32 %v15935_v18, %v15917_v1 }
 0x9d5   :  { %v15936_v60 = vmul.f32 %v15935_v18, %v15916_v50  ;;  %v28399_v50 = vld [vmem:[#allocation93_spill] sm:$0xff] }
 0x9d6   :  { %v15939_v17 = vadd.f32 %v15937_v48, %v15933_v57  ;;  %v28397_v57 = vld [vmem:[#allocation70_spill] sm:$0xff] }
 0x9d7   :  { %v15938_v26 = vadd.f32 %v15936_v60, %v15932_v25 }
 0x9fd   :  { %v21368_v45 = vpop.f32.mrb[68].mxu0 }
 0x9fe   :  { %v17498_v19 = vmul.f32 0.17677669, %v21368_v45  ;;  %v17487_v8 = vpop.f32.mrb[69].mxu0 }
 0x9ff   :  { %v17497_v3 = vmul.f32 0.17677669, %v17487_v8 }
 0xa00   :  { %v17502_v13 = vsel %vm4036_vm0, %v17498_v19, -inf }
 0xa01   :  { %17503 = vmax.xlane.f32.xlu1 %v17502_v13  ;;  %v17499_v28 = vsel %vm4036_vm0, %v17497_v3, -inf }
 0xa02   :  { %17500 = vmax.xlane.f32.xlu0 %v17499_v28 }
 0xa45   :  { %v21326_v43 = vpop.f32.mrb[64].mxu1 }
 0xa46   :  { %v22753_v51 = vadd.f32 %v21326_v43, %v15939_v17  ;;  %v16959_v29 = vpop.f32.mrb[65].mxu1 }
 0xa47   :  { %v22754_v30 = vadd.f32 %v16959_v29, %v15938_v26 }
 0xa48   :  { %v16972_v27 = vadd.f32 %v22753_v51, %v16466_v9 }
 0xa49   :  { %v16971_v42 = vadd.f32 %v22754_v30, %v16465_v31 }
 0xa4a   :  { %v16976_v34 = vsel %vm4036_vm0, %v16972_v27, -inf }
 0xa4b   :  { %16977 = vmax.xlane.f32.xlu1 %v16976_v34  ;;  %v16973_v20 = vsel %vm4036_vm0, %v16971_v42, -inf }
 0xa4c   :  { %16974 = vmax.xlane.f32.xlu0 %v16973_v20 }
 0xa8e   :  { %v17504_v36 = vpop.xlane.xlu1 %17503 }
 0xa8f   :  { %v17506_v38 = vsub.f32 %v17498_v19, %v17504_v36  ;;  %v17501_v58 = vpop.xlane.xlu0 %17500 }
 0xa90   :  { %v17505_v39 = vsub.f32 %v17497_v3, %v17501_v58 }
 0xa91   :  { %v17509_v46 = vmul.f32 1.442695, %v17506_v38 }
 0xa92   :  { %v17507_v23 = vmul.f32 1.442695, %v17505_v39 }
 0xa93   :  { %23533 = vpow2.f32 %v17509_v46 }
 0xa94   :  { %23535 = vpow2.f32 %v17507_v23 }
 0xa9d   :  { %v23534_v24 = vpop.eup %23533 }
 0xa9e   :  { %v23536_v10 = vpop.eup %23535  ;;  %v17514_v0 = vsel %vm4036_vm0, %v23534_v24, 0.0 }
 0xa9f   :  { %17515 = vadd.xlane.f32.xlu1 %v17514_v0  ;;  %v17511_v32 = vsel %vm4036_vm0, %v23536_v10, 0.0 }
 0xaa0   :  { %17512 = vadd.xlane.f32.xlu0 %v17511_v32 }
 0xad8   :  { %v16978_v40 = vpop.xlane.xlu1 %16977 }
 0xad9   :  { %v16980_v14 = vsub.f32 %v16972_v27, %v16978_v40  ;;  %v16975_v5 = vpop.xlane.xlu0 %16974  ;;  %v28400_v27 = vld [vmem:[#allocation29_spill] sm:$0xff] }
 0xada   :  { %v16979_v44 = vsub.f32 %v16971_v42, %v16975_v5  ;;  %v28401_v42 = vld [vmem:[#allocation88_spill] sm:$0xff] }
 0xadb   :  { %v16983_v33 = vmul.f32 1.442695, %v16980_v14 }
 0xadc   :  { %v16981_v21 = vmul.f32 1.442695, %v16979_v44 }
 0xadd   :  { %23537 = vpow2.f32 %v16983_v33 }
 0xade   :  { %23539 = vpow2.f32 %v16981_v21 }
 0xae7   :  { %v23538_v37 = vpop.eup %23537 }
 0xae8   :  { %v23540_v2 = vpop.eup %23539  ;;  %v16988_v6 = vsel %vm4036_vm0, %v23538_v37, 0.0 }
 0xae9   :  { %16989 = vadd.xlane.f32.xlu1 %v16988_v6  ;;  %v16985_v63 = vsel %vm4036_vm0, %v23540_v2, 0.0 }
 0xaea   :  { %16986 = vadd.xlane.f32.xlu0 %v16985_v63 }
 0xb2c   :  { %v17516_v59 = vpop.xlane.xlu1 %17515 }
 0xb2d   :  { %23541 = vrcp.f32 %v17516_v59  ;;  %v17513_v56 = vpop.xlane.xlu0 %17512 }
 0xb2e   :  { %23543 = vrcp.f32 %v17513_v56 }
 0xb37   :  { %v23542_v55 = vpop.eup %23541 }
 0xb38   :  { %v23544_v7 = vpop.eup %23543  ;;  %v17520_v61 = vmul.f32 %v23542_v55, %v23534_v24 }
 0xb39   :  { %v17518_v52 = vmul.f32 %v23544_v7, %v23536_v10 }
 0xb3a   :  { %v17525_v54 = vsel %vm4036_vm0, %v17520_v61, 0 }
 0xb3b   :  { %v17522_v35 = vsel %vm4036_vm0, %v17518_v52, 0  ;;  %v17604_v49 = vand.u32 4294901760, %v17525_v54 }
 0xb3c   :  { %v17594_v62 = vand.u32 4294901760, %v17522_v35 }
 0xb3d   :  { %v17605_v15 = vsub.f32 %v17525_v54, %v17604_v49 }
 0xb3e   :  { %v17595_v16 = vsub.f32 %v17522_v35, %v17594_v62 }
 0xb3f   :  { %v17606_v12 = vand.u32 4294901760, %v17605_v15 }
 0xb40   :  { %v17596_v4 = vand.u32 4294901760, %v17595_v16 }
 0xb41   :  { %v17607_v53 = vsub.f32 %v17605_v15, %v17606_v12 }
 0xb42   :  { %v17597_v22 = vsub.f32 %v17595_v16, %v17596_v4 }
 0xb43   :  { %v17608_v1 = vand.u32 4294901760, %v17607_v53 }
 0xb44   :  { %v17598_v18 = vand.u32 4294901760, %v17597_v22 }
 0xb46   :  { %21373 = vmatprep.mubr.f32.mxu0 %v17598_v18 }
 0xb47   :  { %21374 = vmatmul.mubr.f32.vlgmr.msra.gmra.mrb[70].mxu0 %v17608_v1 }
 0xb48   :  { %22708 = vmatpush3.bf16.msra.mxu0 %v28395_v47  ;;  %21380 = vmatprep.mubr.f32.mxu0 %v17594_v62  ;;  %v28398_v47 = vld [vmem:[#allocation26_spill] sm:$0xff] }
 0xb49   :  { %22710 = vmatprep.subr.bf16.mxu0 %v28396_v41 }
 0xb4f   :  { %21381 = vmatmul.mubr.f32.vlgmr.msra.gmra.mrb[70].mxu0 %v17604_v49 }
 0xb50   :  { %22712 = vmatpush3.bf16.msra.mxu0 %v28396_v41  ;;  %21387 = vmatprep.mubr.f32.mxu0 %v17595_v16 }
 0xb51   :  { %22714 = vmatprep.subr.bf16.mxu0 %v28394_v11 }
 0xb57   :  { %21388 = vmatmul.mubr.f32.vlgmr.msra.gmra.mrb[70].mxu0 %v17605_v15 }
 0xb58   :  { %22716 = vmatpush3.bf16.msra.mxu0 %v28394_v11  ;;  %21394 = vmatprep.mubr.f32.mxu0 %v17596_v4 }
 0xb59   :  { %22718 = vmatprep.subr.bf16.mxu0 %v28397_v57 }
 0xb5f   :  { %21395 = vmatmul.mubr.f32.vlgmr.msra.gmra.mrb[70].mxu0 %v17606_v12 }
 0xb60   :  { %22720 = vmatpush3.bf16.msra.mxu0 %v28397_v57  ;;  %21401 = vmatprep.mubr.f32.mxu0 %v17594_v62 }
 0xb61   :  { %22722 = vmatprep.subr.bf16.mxu0 %v28394_v11 }
 0xb67   :  { %21402 = vmatmul.mubr.f32.vlgmr.msra.gmra.mrb[70].mxu0 %v17604_v49 }
 0xb68   :  { %22724 = vmatpush3.bf16.msra.mxu0 %v28394_v11  ;;  %21408 = vmatprep.mubr.f32.mxu0 %v17594_v62 }
 0xb69   :  { %22726 = vmatprep.subr.bf16.mxu0 %v28398_v47 }
 0xb6f   :  { %21409 = vmatmul.mubr.f32.vlgmr.msra.gmra.mrb[70].mxu0 %v17604_v49 }
 0xb70   :  { %22728 = vmatpush3.bf16.msra.mxu0 %v28398_v47 }
 0xb71   :  { %22730 = vmatprep.subr.bf16.mxu0 %v28399_v50 }
 0xb76   :  { %v16990_v25 = vpop.xlane.xlu1 %16989 }
 0xb77   :  { %23545 = vrcp.f32 %v16990_v25  ;;  %v16987_v48 = vpop.xlane.xlu0 %16986 }
 0xb78   :  { %23547 = vrcp.f32 %v16987_v48 }
 0xb81   :  { %v23546_v60 = vpop.eup %23545 }
 0xb82   :  { %v23548_v17 = vpop.eup %23547  ;;  %v16994_v26 = vmul.f32 %v23546_v60, %v23538_v37 }
 0xb83   :  { %v16992_v45 = vmul.f32 %v23548_v17, %v23540_v2 }
 0xb84   :  { %v18033_v19 = vsel %vm4036_vm0, %v16994_v26, 0 }
 0xb85   :  { %v18112_v8 = vand.u32 4294901760, %v18033_v19  ;;  %v18030_v11 = vsel %vm4036_vm0, %v16992_v45, 0 }
 0xb86   :  { %v18102_v3 = vand.u32 4294901760, %v18030_v11 }
 0xb87   :  { %v18113_v13 = vsub.f32 %v18033_v19, %v18112_v8 }
 0xb88   :  { %v18103_v28 = vsub.f32 %v18030_v11, %v18102_v3 }
 0xb89   :  { %v18114_v43 = vand.u32 4294901760, %v18113_v13 }
 0xb8a   :  { %v18104_v9 = vand.u32 4294901760, %v18103_v28 }
 0xb8b   :  { %v18115_v51 = vsub.f32 %v18113_v13, %v18114_v43 }
 0xb8c   :  { %v18105_v29 = vsub.f32 %v18103_v28, %v18104_v9 }
 0xb8d   :  { %v18116_v30 = vand.u32 4294901760, %v18115_v51 }
 0xb8e   :  { %v18106_v31 = vand.u32 4294901760, %v18105_v29 }
 0xb90   :  { %21415 = vmatprep.mubr.f32.mxu0 %v18106_v31 }
 0xb91   :  { %21416 = vmatmul.mubr.f32.vlgmr.msra.gmra.mrb[70].mxu0 %v18116_v30 }
 0xb92   :  { %22732 = vmatpush3.bf16.msra.mxu0 %v28399_v50  ;;  %21422 = vmatprep.mubr.f32.mxu0 %v18102_v3 }
 0xb93   :  { %22734 = vmatprep.subr.bf16.mxu0 %v28400_v27 }
 0xb99   :  { %21423 = vmatmul.mubr.f32.vlgmr.msra.gmra.mrb[70].mxu0 %v18112_v8 }
 0xb9a   :  { %22736 = vmatpush3.bf16.msra.mxu0 %v28400_v27  ;;  %21429 = vmatprep.mubr.f32.mxu0 %v18103_v28 }
 0xb9b   :  { %22738 = vmatprep.subr.bf16.mxu0 %v28398_v47 }
 0xba1   :  { %21430 = vmatmul.mubr.f32.vlgmr.msra.gmra.mrb[70].mxu0 %v18113_v13 }
 0xba2   :  { %22740 = vmatpush3.bf16.msra.mxu0 %v28398_v47  ;;  %21436 = vmatprep.mubr.f32.mxu0 %v18104_v9 }
 0xba3   :  { %22742 = vmatprep.subr.bf16.mxu0 %v28401_v42 }
 0xba9   :  { %21437 = vmatmul.mubr.f32.vlgmr.msra.gmra.mrb[70].mxu0 %v18114_v43 }
 0xbaa   :  { %22744 = vmatpush3.bf16.msra.mxu0 %v28401_v42  ;;  %21443 = vmatprep.mubr.f32.mxu0 %v18102_v3 }
 0xbab   :  { %22746 = vmatprep.subr.bf16.mxu0 %v28398_v47 }
 0xbb1   :  { %21444 = vmatmul.mubr.f32.vlgmr.msra.gmra.mrb[70].mxu0 %v18112_v8 }
 0xbb2   :  { %22748 = vmatpush3.bf16.msra.mxu0 %v28398_v47  ;;  %21450 = vmatprep.mubr.f32.mxu0 %v18102_v3 }
 0xbb9   :  { %21451 = vmatmul.mubr.f32.vlgmr.msra.gmra.mrb[70].mxu0 %v18112_v8 }
 0xc8c   :  { %v21452_v34 = vpop.f32.mrb[70].mxu0 }
 0xc8d   :  { %18539 = vst [vmem:[#allocation14 + $0x18] sm:$0xff] %v21452_v34  ;;  %v18527_v20 = vpop.f32.mrb[71].mxu0 }
 0xc8e   :  { %18538 = vst [vmem:[#allocation14 + $0x10] sm:$0xff] %v18527_v20 }
 0xc8f   :  { %23668 = shalt.err (!%p23665_p0)
}
 0xc90   :  { %s23669_s12 = scalar_lea.hbm %s27455_s6, 512 }
 0xc91   :  { %p23670_p1 = scmp.ne.s32.totalorder %s27455_s6, %s23669_s12  ;;  %p23673_p2 = scmp.lt.u32.totalorder %s23669_s12, %s27455_s6 }
 0xc93   :  { %p23675_p3 = pnand %p23673_p2, %p23670_p1 }
 0xc95   :  { %23678 = shalt.err (!%p23675_p3)
}
 0xc96   :  { %18551 = dma.vmem_to_hbm [thread:$0]  %s18546_s0, 512, %s27455_s6, [#allocation4], %s23693_s9, %s23693_s9, %s23694_s10  }
 0xc97   :  { %23689 = dma.done.wait [#allocation4], 512  }
 0xc98   :  { %23690 = vsyncadd [#allocation4], 4294966784 }
 0xc99   :  { %18555 = vsyncpa [#allocation3], 1 }
 0xc9a   :  { %18556 = vsyncpa [#allocation7], 1 }
 0xc9b   :  { %18557 = vsyncpa [#allocation10], 1 }
 0xc9c   :  { %18558 = vsyncpa [#allocation4], 1 }
 0xc9d   :  { %18559 = vsyncpa [#allocation5], 1 }
 0xc9e   :  { %18560 = vsyncpa [#allocation13], 1 }

</bundles_post_ra>
